<compile_context>
chip_gen: v6e
topology: v6e:2x2x1
jax: 0.10.0
libtpu: 0.0.40
codegen_flags: <defaults>
</compile_context>

<pallas_src>
import functools

import jax
import jax.numpy as jnp
import numpy as np
from jax.experimental import pallas as pl
from jax.experimental.pallas import tpu as pltpu

EPS = 1e-5  # PyTorch InstanceNorm2d default eps


def _tpu_flavor():
    """Best-effort TPU-generation sniff; only used for tiling decisions, never correctness."""
    try:
        kind = jax.devices()[0].device_kind.lower().replace(" ", "")
    except Exception:
        return "v6"
    if "v5" in kind:
        return "v5"   # single TC, 128-deep MXU -> collapse batch, unfolded taps
    if "v7" in kind or "tpu7" in kind:
        return "v7"   # two TCs, 64 MiB VMEM  -> keep batch as a parallel grid axis
    return "v6"       # single TC, 256-deep MXU (safe default for unknown parts)


# ---------------------------------------------------------------------------
# In-kernel helper: 3x3 reflect conv (bias-free) + InstanceNorm(affine) + ReLU on Nb samples
# ---------------------------------------------------------------------------
def _conv3x3_in_relu(t, w, gamma, beta, is_w0, is_wlast, *, H, W, fold_k):
    """t: (Nb, H*W, C) f32, rows h-major per sample; w: (9*C, C) bf16 with taps flattened
    (kh, kw, cin) along K; gamma/beta: (1, C) f32; is_w0/is_wlast: ((H+2)*W, C) bool.
    Returns (Nb, H*W, C) f32 (post-ReLU)."""
    Nb, HW, C = t.shape

    def slabs_for(t2):
        # Reflect halo along H: rows are h-major, so the halo rows are aligned sublane concats.
        flat = jnp.concatenate([t2[W:2 * W], t2, t2[(H - 2) * W:(H - 1) * W]], axis=0)
        # W-neighbour slabs via XLU rolls over the flattened (h, w) axis (kept in f32 to avoid
        # packed-sublane roll complications).  The wrap across row boundaries lands exactly on
        # the w==0 / w==W-1 columns, which are overwritten with the reflect values below.
        # NOTE: the +/-1 rolls must canonicalize to single vrot ops; verify with
        # `grep -o vrot` on the bundle dump before further tuning.
        lraw = pltpu.roll(flat, 1, axis=0)                    # value at (h, w-1)
        rraw = pltpu.roll(flat, flat.shape[0] - 1, axis=0)    # value at (h, w+1)
        left = jnp.where(is_w0, rraw, lraw)                   # reflect: x[:, -1] := x[:, 1]
        right = jnp.where(is_wlast, lraw, rraw)               # reflect: x[:, W]  := x[:, W-2]
        # Cast the three slabs to bf16 ONCE (3 converts instead of 9 per-tap casts; the nine
        # tap slices below then read half the bytes).
        return (left.astype(jnp.bfloat16), flat.astype(jnp.bfloat16),
                right.astype(jnp.bfloat16))

    slabs = [slabs_for(t[n]) for n in range(Nb)]              # per sample: (kw=0, 1, 2)

    if fold_k:
        # v6e/v7x: fold all nine taps into the contraction dim -> one (Nb*HW, 9C) x (9C, C)
        # bf16 matmul per stage (K = 9C keeps the 256-deep MXU well fed), f32 accumulation.
        patches = jnp.concatenate(
            [jnp.concatenate([slabs[n][kw][kh * W:kh * W + HW]
                              for kh in range(3) for kw in range(3)], axis=-1)
             for n in range(Nb)], axis=0)                     # (Nb*HW, 9*C) bf16
        acc = jnp.dot(patches, w, preferred_element_type=jnp.float32)
    else:
        # v5e: the 128-deep MXU consumes K=9C in nine passes either way, so skip the patch
        # materialisation (saves the (HW,9C) stores on v5e's single vst slot) and accumulate
        # nine (Nb*HW, C) x (C, C) dots in f32 instead.
        acc = jnp.zeros((Nb * HW, C), jnp.float32)
        for kh in range(3):
            for kw in range(3):
                k = kh * 3 + kw
                tap = jnp.concatenate([slabs[n][kw][kh * W:kh * W + HW]
                                       for n in range(Nb)], axis=0)
                acc = acc + jnp.dot(tap, w[k * C:(k + 1) * C],
                                    preferred_element_type=jnp.float32)
    acc = acc.reshape(Nb, HW, C)

    # InstanceNorm: per-(sample, channel) single-pass stats in f32, folded with the affine
    # into one scale/shift pair so the (Nb, HW, C) tensor only sees mul + add + ReLU.
    # (Conv bias is omitted entirely: IN's mean subtraction cancels a uniform bias exactly.)
    inv_n = 1.0 / float(HW)
    mean = jnp.sum(acc, axis=1, keepdims=True) * inv_n                      # (Nb, 1, C)
    var = jnp.sum(acc * acc, axis=1, keepdims=True) * inv_n - mean * mean
    var = jnp.maximum(var, 0.0)            # guard E[x^2]-m^2 cancellation -> negative -> NaN
    scale = gamma * jax.lax.rsqrt(var + EPS)                                # (Nb, 1, C)
    shift = beta - mean * scale
    return jnp.maximum(acc * scale + shift, 0.0)


def resblock_kernel(x_ref, w_ref, vec_ref, o_ref, *, H, W, fold_k):
    Nb, HW, C = x_ref.shape
    x = x_ref[...]                                            # (Nb, HW, C) f32

    # Boundary-column masks for the reflect in W, built ONCE per grid step (JAX does not CSE
    # iota/broadcast) and shared by both conv stages.
    wpos = jax.lax.broadcasted_iota(jnp.int32, ((H + 2) * W, C), 0) % W
    is_w0 = wpos == 0
    is_wlast = wpos == W - 1

    vec = vec_ref[...]                                        # rows: gamma1, beta1, gamma2, beta2
    y1 = _conv3x3_in_relu(x, w_ref[0], vec[0:1], vec[1:2], is_w0, is_wlast,
                          H=H, W=W, fold_k=fold_k)
    y2 = _conv3x3_in_relu(y1, w_ref[1], vec[2:3], vec[3:4], is_w0, is_wlast,
                          H=H, W=W, fold_k=fold_k)
    o_ref[...] = (y2 + x).astype(o_ref.dtype)                 # final ReLU precedes residual add


# ---------------------------------------------------------------------------
# pallas_call wrapper
# ---------------------------------------------------------------------------
def _resblock_call(x2, w_all, vec, H, W, flavor):
    N, HW, C = x2.shape

    # v5e/v6e have one TensorCore: grid=(N,) is a serial loop, so collapse the batch into a
    # single grid step (bigger MXU M, no per-step overhead).  v7x has two TCs: keep batch as
    # a "parallel" grid axis so each core takes a sample.
    if flavor == "v7" and N > 1:
        nb, grid = 1, (N,)
        # TODO(synk): for large images with tiny batch on v7x, grid over spatial tiles with
        # two-pass IN stats instead, so each TC gets >1 step and input DMA overlaps compute.
    else:
        nb, grid = N, (1,)

    img_spec = pl.BlockSpec((nb, HW, C), lambda n: (n, 0, 0))
    w_spec = pl.BlockSpec((2, 9 * C, C), lambda n: (0, 0, 0))
    vec_spec = pl.BlockSpec((4, C), lambda n: (0, 0))

    # Explicit VMEM budget: double-buffered IO/weight blocks + in-kernel temporaries with ~2x
    # headroom; capped at 48 MiB to keep headroom under v7x's 64 MiB physical VMEM.
    io = 2 * 2 * nb * HW * C * 4                       # x + out blocks, double-buffered, f32
    wts = 2 * (2 * 9 * C * C * 2 + 4 * C * 4)          # packed weights (bf16) + affine vec
    halo = nb * (HW + 2 * W) * C * (5 * 4 + 3 * 2)     # f32 halo/rolls/selects + bf16 slabs
    patches = nb * HW * 9 * C * 2                      # folded-K bf16 patches
    acts = 4 * nb * HW * C * 4                         # acc / y1 / y2 / misc f32
    vmem_limit = 2 * (io + wts + halo + patches + acts) + (4 << 20)
    vmem_limit = max(min(vmem_limit, 48 << 20), 32 << 20)

    return pl.pallas_call(
        functools.partial(resblock_kernel, H=H, W=W, fold_k=(flavor != "v5")),
        out_shape=jax.ShapeDtypeStruct((N, HW, C), x2.dtype),
        grid=grid,
        in_specs=[img_spec, w_spec, vec_spec],
        out_specs=img_spec,
        compiler_params=pltpu.CompilerParams(
            dimension_semantics=("parallel",),
            vmem_limit_bytes=vmem_limit,
        ),
    )(x2, w_all, vec)


def resblock_forward_nhwc(x_nhwc, params):
    """NHWC entry point (preferred inside an NHWC model: no layout transposes around the
    kernel).  params = (w1, b1, g1, be1, w2, b2, g2, be2) in PyTorch layouts:
    w: (Cout, Cin, 3, 3); b (conv bias), g (IN gamma), be (IN beta): (C,).
    Conv biases are ignored: InstanceNorm's mean subtraction cancels a uniform bias exactly."""
    (w1, _b1, g1, be1, w2, _b2, g2, be2) = params
    N, H, W, C = x_nhwc.shape
    assert H >= 2 and W >= 2, "reflect padding=1 needs H, W >= 2"
    assert W % 8 == 0, "W must be a multiple of 8 (sublane-aligned kh*W tap slices)"
    assert C % 128 == 0, "C must be a multiple of 128 (lane-dense channels)"

    def prep_w(w):
        # (Cout, Cin, 3, 3) -> (kh, kw, Cin, Cout) -> (9*Cin, Cout); bf16 MXU operands.
        return jnp.transpose(w, (2, 3, 1, 0)).reshape(9 * C, C).astype(jnp.bfloat16)

    w_all = jnp.stack([prep_w(w1), prep_w(w2)])                     # (2, 9C, C) bf16
    vec = jnp.stack([g1, be1, g2, be2]).astype(jnp.float32)         # (4, C)  f32

    y = _resblock_call(x_nhwc.reshape(N, H * W, C), w_all, vec, H, W, _tpu_flavor())
    return y.reshape(N, H, W, C)


def resblock_forward(x_nchw, params):
    """PyTorch-layout (NCHW) adapter.  Prefer resblock_forward_nhwc inside an NHWC model: the
    two transposes here are full HBM round trips of the activation."""
    y = resblock_forward_nhwc(jnp.transpose(x_nchw, (0, 2, 3, 1)), params)
    return jnp.transpose(y, (0, 3, 1, 2))


# ---------------------------------------------------------------------------
# Pure-JAX reference (mirrors the PyTorch forward). matmul_dtype=bfloat16 models the kernel's
# mixed-precision MXU operands (f32 accumulation) for a tight numerical comparison.
# ---------------------------------------------------------------------------
def ref_resblock(x, params, matmul_dtype=jnp.float32):
    (w1, b1, g1, be1, w2, b2, g2, be2) = params

    def conv(t, w, b):
        tp = jnp.pad(t, ((0, 0), (0, 0), (1, 1), (1, 1)), mode="reflect")
        y = jax.lax.conv_general_dilated(
            tp.astype(matmul_dtype), w.astype(matmul_dtype), (1, 1), "VALID",
            dimension_numbers=("NCHW", "OIHW", "NCHW"),
            preferred_element_type=jnp.float32)
        return y + b[None, :, None, None]

    def inorm(t, g, be):
        m = t.mean(axis=(2, 3), keepdims=True)
        v = ((t - m) ** 2).mean(axis=(2, 3), keepdims=True)
        return (t - m) * jax.lax.rsqrt(v + EPS) * g[None, :, None, None] + be[None, :, None, None]

    y = jax.nn.relu(inorm(conv(x, w1, b1), g1, be1))
    y = jax.nn.relu(inorm(conv(y, w2, b2), g2, be2))
    return y + x


# ---------------------------------------------------------------------------
if __name__ == "__main__":
    # Module default filters=128 (keeps channels lane-dense); small batch / spatial extent.
    N, C, H, W = 2, 128, 16, 16
    keys = jax.random.split(jax.random.PRNGKey(0), 9)
    x = jax.random.normal(keys[0], (N, C, H, W), jnp.float32)

    w1 = 0.1 * jax.random.normal(keys[1], (C, C, 3, 3), jnp.float32)
    b1 = 0.1 * jax.random.normal(keys[2], (C,), jnp.float32)
    w2 = 0.1 * jax.random.normal(keys[3], (C, C, 3, 3), jnp.float32)
    b2 = 0.1 * jax.random.normal(keys[4], (C,), jnp.float32)
    g1 = 1.0 + 0.1 * jax.random.normal(keys[5], (C,), jnp.float32)
    be1 = 0.1 * jax.random.normal(keys[6], (C,), jnp.float32)
    g2 = 1.0 + 0.1 * jax.random.normal(keys[7], (C,), jnp.float32)
    be2 = 0.1 * jax.random.normal(keys[8], (C,), jnp.float32)
    params = (w1, b1, g1, be1, w2, b2, g2, be2)

    fwd = jax.jit(resblock_forward)
    out = jax.block_until_ready(fwd(x, params))
    assert out.shape == (N, C, H, W) and out.dtype == jnp.float32

    # Tight check vs a reference modelling the same bf16-operand / f32-accumulate matmuls
    # (isolates indexing / padding / IN logic), and a looser check vs the exact f32 PyTorch
    # semantics (bounds the mixed-precision drift introduced by the bf16 MXU operands).
    ref_mixed = jax.block_until_ready(ref_resblock(x, params, matmul_dtype=jnp.bfloat16))
    ref_f32 = jax.block_until_ready(ref_resblock(x, params, matmul_dtype=jnp.float32))

    np.testing.assert_allclose(np.asarray(out), np.asarray(ref_mixed), atol=5e-3, rtol=5e-3)
    np.testing.assert_allclose(np.asarray(out), np.asarray(ref_f32), atol=8e-2, rtol=8e-2)
    assert float(jnp.mean(jnp.abs(out - ref_f32))) < 1.5e-2
    print("KERNEL_OK")
</pallas_src>

<mosaic_0001>
module attributes {stable_mosaic.version = 11 : i64} {
  func.func @resblock_kernel(%arg0: i32, %arg1: memref<2x256x128xf32, #tpu.memory_space<vmem>>, %arg2: memref<2x1152x128xbf16, #tpu.memory_space<vmem>>, %arg3: memref<4x128xf32, #tpu.memory_space<vmem>>, %arg4: memref<2x256x128xf32, #tpu.memory_space<vmem>>) attributes {dimension_semantics = [#tpu.dimension_semantics<parallel>], iteration_bounds = array<i64: 1>, scalar_prefetch = 0 : i64, scratch_operands = 0 : i64, tpu.core_type = #tpu.core_type<tc>, window_params = [{transform_indices = @transform_0, window_bounds = array<i64: 2, 256, 128>}, {pipeline_mode = #tpu.pipeline_mode<synchronous>, transform_indices = @transform_1, window_bounds = array<i64: 2, 1152, 128>}, {pipeline_mode = #tpu.pipeline_mode<synchronous>, transform_indices = @transform_2, window_bounds = array<i64: 4, 128>}, {transform_indices = @transform_3, window_bounds = array<i64: 2, 256, 128>}]} {
    %c0 = arith.constant 0 : index
    %c0_0 = arith.constant 0 : index
    %c0_1 = arith.constant 0 : index
    %0 = vector.load %arg1[%c0, %c0_0, %c0_1] : memref<2x256x128xf32, #tpu.memory_space<vmem>>, vector<2x256x128xf32>
    %1 = tpu.iota {dimensions = array<i32: 0>} : vector<288x128xi32>
    %c16_i32 = arith.constant 16 : i32
    %c0_i32 = arith.constant 0 : i32
    %2 = arith.cmpi eq, %c16_i32, %c0_i32 : i32
    %c1_i32 = arith.constant 1 : i32
    %3 = arith.select %2, %c1_i32, %c16_i32 : i32
    %4 = vector.broadcast %3 : i32 to vector<288x128xi32>
    %5 = arith.remsi %1, %4 : vector<288x128xi32>
    %c0_i32_2 = arith.constant 0 : i32
    %6 = vector.broadcast %c0_i32_2 : i32 to vector<288x128xi32>
    %7 = arith.cmpi ne, %5, %6 : vector<288x128xi32>
    %c0_i32_3 = arith.constant 0 : i32
    %8 = vector.broadcast %c0_i32_3 : i32 to vector<288x128xi32>
    %9 = arith.cmpi slt, %5, %8 : vector<288x128xi32>
    %c0_i32_4 = arith.constant 0 : i32
    %10 = arith.cmpi slt, %3, %c0_i32_4 : i32
    %11 = vector.broadcast %10 : i1 to vector<288x128xi1>
    %12 = vector.broadcast %11 : vector<288x128xi1> to vector<288x128xi1>
    %13 = arith.xori %9, %12 : vector<288x128xi1>
    %14 = arith.andi %13, %7 : vector<288x128xi1>
    %15 = vector.broadcast %3 : i32 to vector<288x128xi32>
    %16 = arith.addi %5, %15 : vector<288x128xi32>
    %17 = arith.select %14, %16, %5 : vector<288x128xi1>, vector<288x128xi32>
    %c0_i32_5 = arith.constant 0 : i32
    %18 = vector.broadcast %c0_i32_5 : i32 to vector<288x128xi32>
    %19 = arith.cmpi eq, %17, %18 : vector<288x128xi32>
    %c15_i32 = arith.constant 15 : i32
    %20 = vector.broadcast %c15_i32 : i32 to vector<288x128xi32>
    %21 = arith.cmpi eq, %17, %20 : vector<288x128xi32>
    %c0_6 = arith.constant 0 : index
    %c0_7 = arith.constant 0 : index
    %22 = vector.load %arg3[%c0_6, %c0_7] : memref<4x128xf32, #tpu.memory_space<vmem>>, vector<4x128xf32>
    %c0_8 = arith.constant 0 : index
    %c0_9 = arith.constant 0 : index
    %c0_10 = arith.constant 0 : index
    %23 = vector.load %arg2[%c0_8, %c0_9, %c0_10] : memref<2x1152x128xbf16, #tpu.memory_space<vmem>>, vector<1x1152x128xbf16>
    %24 = vector.shape_cast %23 : vector<1x1152x128xbf16> to vector<1152x128xbf16>
    %25 = vector.extract_strided_slice %22 {offsets = [0, 0], sizes = [1, 128], strides = [1, 1]} : vector<4x128xf32> to vector<1x128xf32>
    %26 = vector.extract_strided_slice %22 {offsets = [1, 0], sizes = [1, 128], strides = [1, 1]} : vector<4x128xf32> to vector<1x128xf32>
    %27 = vector.extract_strided_slice %0 {offsets = [0, 0, 0], sizes = [1, 256, 128], strides = [1, 1, 1]} : vector<2x256x128xf32> to vector<1x256x128xf32>
    %28 = vector.shape_cast %27 : vector<1x256x128xf32> to vector<256x128xf32>
    %29 = vector.extract_strided_slice %28 {offsets = [16, 0], sizes = [16, 128], strides = [1, 1]} : vector<256x128xf32> to vector<16x128xf32>
    %30 = vector.extract_strided_slice %28 {offsets = [224, 0], sizes = [16, 128], strides = [1, 1]} : vector<256x128xf32> to vector<16x128xf32>
    %31 = tpu.concatenate %29, %28, %30 in 0 : vector<16x128xf32>, vector<256x128xf32>, vector<16x128xf32> -> vector<288x128xf32>
    %c1_i32_11 = arith.constant 1 : i32
    %32 = tpu.dynamic_rotate %31 by %c1_i32_11 dim 0 : vector<288x128xf32>, i32 -> vector<288x128xf32>
    %c287_i32 = arith.constant 287 : i32
    %33 = tpu.dynamic_rotate %31 by %c287_i32 dim 0 : vector<288x128xf32>, i32 -> vector<288x128xf32>
    %34 = arith.select %19, %33, %32 : vector<288x128xi1>, vector<288x128xf32>
    %35 = arith.select %21, %32, %33 : vector<288x128xi1>, vector<288x128xf32>
    %36 = arith.truncf %34 : vector<288x128xf32> to vector<288x128xbf16>
    %37 = arith.truncf %31 : vector<288x128xf32> to vector<288x128xbf16>
    %38 = arith.truncf %35 : vector<288x128xf32> to vector<288x128xbf16>
    %39 = vector.extract_strided_slice %0 {offsets = [1, 0, 0], sizes = [1, 256, 128], strides = [1, 1, 1]} : vector<2x256x128xf32> to vector<1x256x128xf32>
    %40 = vector.shape_cast %39 : vector<1x256x128xf32> to vector<256x128xf32>
    %41 = vector.extract_strided_slice %40 {offsets = [16, 0], sizes = [16, 128], strides = [1, 1]} : vector<256x128xf32> to vector<16x128xf32>
    %42 = vector.extract_strided_slice %40 {offsets = [224, 0], sizes = [16, 128], strides = [1, 1]} : vector<256x128xf32> to vector<16x128xf32>
    %43 = tpu.concatenate %41, %40, %42 in 0 : vector<16x128xf32>, vector<256x128xf32>, vector<16x128xf32> -> vector<288x128xf32>
    %c1_i32_12 = arith.constant 1 : i32
    %44 = tpu.dynamic_rotate %43 by %c1_i32_12 dim 0 : vector<288x128xf32>, i32 -> vector<288x128xf32>
    %c287_i32_13 = arith.constant 287 : i32
    %45 = tpu.dynamic_rotate %43 by %c287_i32_13 dim 0 : vector<288x128xf32>, i32 -> vector<288x128xf32>
    %46 = arith.select %19, %45, %44 : vector<288x128xi1>, vector<288x128xf32>
    %47 = arith.select %21, %44, %45 : vector<288x128xi1>, vector<288x128xf32>
    %48 = arith.truncf %46 : vector<288x128xf32> to vector<288x128xbf16>
    %49 = arith.truncf %43 : vector<288x128xf32> to vector<288x128xbf16>
    %50 = arith.truncf %47 : vector<288x128xf32> to vector<288x128xbf16>
    %51 = vector.extract_strided_slice %36 {offsets = [0, 0], sizes = [256, 128], strides = [1, 1]} : vector<288x128xbf16> to vector<256x128xbf16>
    %52 = vector.extract_strided_slice %37 {offsets = [0, 0], sizes = [256, 128], strides = [1, 1]} : vector<288x128xbf16> to vector<256x128xbf16>
    %53 = vector.extract_strided_slice %38 {offsets = [0, 0], sizes = [256, 128], strides = [1, 1]} : vector<288x128xbf16> to vector<256x128xbf16>
    %54 = vector.extract_strided_slice %36 {offsets = [16, 0], sizes = [256, 128], strides = [1, 1]} : vector<288x128xbf16> to vector<256x128xbf16>
    %55 = vector.extract_strided_slice %37 {offsets = [16, 0], sizes = [256, 128], strides = [1, 1]} : vector<288x128xbf16> to vector<256x128xbf16>
    %56 = vector.extract_strided_slice %38 {offsets = [16, 0], sizes = [256, 128], strides = [1, 1]} : vector<288x128xbf16> to vector<256x128xbf16>
    %57 = vector.extract_strided_slice %36 {offsets = [32, 0], sizes = [256, 128], strides = [1, 1]} : vector<288x128xbf16> to vector<256x128xbf16>
    %58 = vector.extract_strided_slice %37 {offsets = [32, 0], sizes = [256, 128], strides = [1, 1]} : vector<288x128xbf16> to vector<256x128xbf16>
    %59 = vector.extract_strided_slice %38 {offsets = [32, 0], sizes = [256, 128], strides = [1, 1]} : vector<288x128xbf16> to vector<256x128xbf16>
    %60 = tpu.concatenate %51, %52, %53, %54, %55, %56, %57, %58, %59 in 1 : vector<256x128xbf16>, vector<256x128xbf16>, vector<256x128xbf16>, vector<256x128xbf16>, vector<256x128xbf16>, vector<256x128xbf16>, vector<256x128xbf16>, vector<256x128xbf16>, vector<256x128xbf16> -> vector<256x1152xbf16>
    %61 = vector.extract_strided_slice %48 {offsets = [0, 0], sizes = [256, 128], strides = [1, 1]} : vector<288x128xbf16> to vector<256x128xbf16>
    %62 = vector.extract_strided_slice %49 {offsets = [0, 0], sizes = [256, 128], strides = [1, 1]} : vector<288x128xbf16> to vector<256x128xbf16>
    %63 = vector.extract_strided_slice %50 {offsets = [0, 0], sizes = [256, 128], strides = [1, 1]} : vector<288x128xbf16> to vector<256x128xbf16>
    %64 = vector.extract_strided_slice %48 {offsets = [16, 0], sizes = [256, 128], strides = [1, 1]} : vector<288x128xbf16> to vector<256x128xbf16>
    %65 = vector.extract_strided_slice %49 {offsets = [16, 0], sizes = [256, 128], strides = [1, 1]} : vector<288x128xbf16> to vector<256x128xbf16>
    %66 = vector.extract_strided_slice %50 {offsets = [16, 0], sizes = [256, 128], strides = [1, 1]} : vector<288x128xbf16> to vector<256x128xbf16>
    %67 = vector.extract_strided_slice %48 {offsets = [32, 0], sizes = [256, 128], strides = [1, 1]} : vector<288x128xbf16> to vector<256x128xbf16>
    %68 = vector.extract_strided_slice %49 {offsets = [32, 0], sizes = [256, 128], strides = [1, 1]} : vector<288x128xbf16> to vector<256x128xbf16>
    %69 = vector.extract_strided_slice %50 {offsets = [32, 0], sizes = [256, 128], strides = [1, 1]} : vector<288x128xbf16> to vector<256x128xbf16>
    %70 = tpu.concatenate %61, %62, %63, %64, %65, %66, %67, %68, %69 in 1 : vector<256x128xbf16>, vector<256x128xbf16>, vector<256x128xbf16>, vector<256x128xbf16>, vector<256x128xbf16>, vector<256x128xbf16>, vector<256x128xbf16>, vector<256x128xbf16>, vector<256x128xbf16> -> vector<256x1152xbf16>
    %71 = tpu.concatenate %60, %70 in 0 : vector<256x1152xbf16>, vector<256x1152xbf16> -> vector<512x1152xbf16>
    %cst = arith.constant dense<0.000000e+00> : vector<512x128xf32>
    %72 = tpu.matmul %71, %24, %cst {dimension_numbers = #tpu.dot_dimension_numbers<[1], [0], [0], [1], [0, 0, 1, 1], [], []>} : vector<512x1152xbf16>, vector<1152x128xbf16>, vector<512x128xf32> -> vector<512x128xf32>
    %73 = vector.shape_cast %72 : vector<512x128xf32> to vector<2x256x128xf32>
    %cst_14 = arith.constant dense<0.000000e+00> : vector<2x128xf32>
    %74 = vector.multi_reduction <add>, %73, %cst_14 [1] : vector<2x256x128xf32> to vector<2x128xf32>
    %75 = vector.shape_cast %74 : vector<2x128xf32> to vector<2x1x128xf32>
    %cst_15 = arith.constant 3.906250e-03 : f32
    %76 = vector.broadcast %cst_15 : f32 to vector<2x1x128xf32>
    %77 = arith.mulf %75, %76 : vector<2x1x128xf32>
    %78 = arith.mulf %73, %73 : vector<2x256x128xf32>
    %cst_16 = arith.constant dense<0.000000e+00> : vector<2x128xf32>
    %79 = vector.multi_reduction <add>, %78, %cst_16 [1] : vector<2x256x128xf32> to vector<2x128xf32>
    %80 = vector.shape_cast %79 : vector<2x128xf32> to vector<2x1x128xf32>
    %cst_17 = arith.constant 3.906250e-03 : f32
    %81 = vector.broadcast %cst_17 : f32 to vector<2x1x128xf32>
    %82 = arith.mulf %80, %81 : vector<2x1x128xf32>
    %83 = arith.mulf %77, %77 : vector<2x1x128xf32>
    %84 = arith.subf %82, %83 : vector<2x1x128xf32>
    %cst_18 = arith.constant 0.000000e+00 : f32
    %85 = vector.broadcast %cst_18 : f32 to vector<2x1x128xf32>
    %86 = arith.maximumf %84, %85 : vector<2x1x128xf32>
    %cst_19 = arith.constant 9.99999974E-6 : f32
    %87 = vector.broadcast %cst_19 : f32 to vector<2x1x128xf32>
    %88 = arith.addf %86, %87 : vector<2x1x128xf32>
    %89 = math.rsqrt %88 : vector<2x1x128xf32>
    %90 = vector.shape_cast %25 : vector<1x128xf32> to vector<1x1x128xf32>
    %91 = vector.broadcast %90 : vector<1x1x128xf32> to vector<2x1x128xf32>
    %92 = arith.mulf %91, %89 : vector<2x1x128xf32>
    %93 = arith.mulf %77, %92 : vector<2x1x128xf32>
    %94 = vector.shape_cast %26 : vector<1x128xf32> to vector<1x1x128xf32>
    %95 = vector.broadcast %94 : vector<1x1x128xf32> to vector<2x1x128xf32>
    %96 = arith.subf %95, %93 : vector<2x1x128xf32>
    %97 = vector.broadcast %92 : vector<2x1x128xf32> to vector<2x256x128xf32>
    %98 = arith.mulf %73, %97 : vector<2x256x128xf32>
    %99 = vector.broadcast %96 : vector<2x1x128xf32> to vector<2x256x128xf32>
    %100 = arith.addf %98, %99 : vector<2x256x128xf32>
    %cst_20 = arith.constant 0.000000e+00 : f32
    %101 = vector.broadcast %cst_20 : f32 to vector<2x256x128xf32>
    %102 = arith.maximumf %100, %101 : vector<2x256x128xf32>
    %c1 = arith.constant 1 : index
    %c0_21 = arith.constant 0 : index
    %c0_22 = arith.constant 0 : index
    %103 = vector.load %arg2[%c1, %c0_21, %c0_22] : memref<2x1152x128xbf16, #tpu.memory_space<vmem>>, vector<1x1152x128xbf16>
    %104 = vector.shape_cast %103 : vector<1x1152x128xbf16> to vector<1152x128xbf16>
    %105 = vector.extract_strided_slice %22 {offsets = [2, 0], sizes = [1, 128], strides = [1, 1]} : vector<4x128xf32> to vector<1x128xf32>
    %106 = vector.extract_strided_slice %22 {offsets = [3, 0], sizes = [1, 128], strides = [1, 1]} : vector<4x128xf32> to vector<1x128xf32>
    %107 = vector.extract_strided_slice %102 {offsets = [0, 0, 0], sizes = [1, 256, 128], strides = [1, 1, 1]} : vector<2x256x128xf32> to vector<1x256x128xf32>
    %108 = vector.shape_cast %107 : vector<1x256x128xf32> to vector<256x128xf32>
    %109 = vector.extract_strided_slice %108 {offsets = [16, 0], sizes = [16, 128], strides = [1, 1]} : vector<256x128xf32> to vector<16x128xf32>
    %110 = vector.extract_strided_slice %108 {offsets = [224, 0], sizes = [16, 128], strides = [1, 1]} : vector<256x128xf32> to vector<16x128xf32>
    %111 = tpu.concatenate %109, %108, %110 in 0 : vector<16x128xf32>, vector<256x128xf32>, vector<16x128xf32> -> vector<288x128xf32>
    %c1_i32_23 = arith.constant 1 : i32
    %112 = tpu.dynamic_rotate %111 by %c1_i32_23 dim 0 : vector<288x128xf32>, i32 -> vector<288x128xf32>
    %c287_i32_24 = arith.constant 287 : i32
    %113 = tpu.dynamic_rotate %111 by %c287_i32_24 dim 0 : vector<288x128xf32>, i32 -> vector<288x128xf32>
    %114 = arith.select %19, %113, %112 : vector<288x128xi1>, vector<288x128xf32>
    %115 = arith.select %21, %112, %113 : vector<288x128xi1>, vector<288x128xf32>
    %116 = arith.truncf %114 : vector<288x128xf32> to vector<288x128xbf16>
    %117 = arith.truncf %111 : vector<288x128xf32> to vector<288x128xbf16>
    %118 = arith.truncf %115 : vector<288x128xf32> to vector<288x128xbf16>
    %119 = vector.extract_strided_slice %102 {offsets = [1, 0, 0], sizes = [1, 256, 128], strides = [1, 1, 1]} : vector<2x256x128xf32> to vector<1x256x128xf32>
    %120 = vector.shape_cast %119 : vector<1x256x128xf32> to vector<256x128xf32>
    %121 = vector.extract_strided_slice %120 {offsets = [16, 0], sizes = [16, 128], strides = [1, 1]} : vector<256x128xf32> to vector<16x128xf32>
    %122 = vector.extract_strided_slice %120 {offsets = [224, 0], sizes = [16, 128], strides = [1, 1]} : vector<256x128xf32> to vector<16x128xf32>
    %123 = tpu.concatenate %121, %120, %122 in 0 : vector<16x128xf32>, vector<256x128xf32>, vector<16x128xf32> -> vector<288x128xf32>
    %c1_i32_25 = arith.constant 1 : i32
    %124 = tpu.dynamic_rotate %123 by %c1_i32_25 dim 0 : vector<288x128xf32>, i32 -> vector<288x128xf32>
    %c287_i32_26 = arith.constant 287 : i32
    %125 = tpu.dynamic_rotate %123 by %c287_i32_26 dim 0 : vector<288x128xf32>, i32 -> vector<288x128xf32>
    %126 = arith.select %19, %125, %124 : vector<288x128xi1>, vector<288x128xf32>
    %127 = arith.select %21, %124, %125 : vector<288x128xi1>, vector<288x128xf32>
    %128 = arith.truncf %126 : vector<288x128xf32> to vector<288x128xbf16>
    %129 = arith.truncf %123 : vector<288x128xf32> to vector<288x128xbf16>
    %130 = arith.truncf %127 : vector<288x128xf32> to vector<288x128xbf16>
    %131 = vector.extract_strided_slice %116 {offsets = [0, 0], sizes = [256, 128], strides = [1, 1]} : vector<288x128xbf16> to vector<256x128xbf16>
    %132 = vector.extract_strided_slice %117 {offsets = [0, 0], sizes = [256, 128], strides = [1, 1]} : vector<288x128xbf16> to vector<256x128xbf16>
    %133 = vector.extract_strided_slice %118 {offsets = [0, 0], sizes = [256, 128], strides = [1, 1]} : vector<288x128xbf16> to vector<256x128xbf16>
    %134 = vector.extract_strided_slice %116 {offsets = [16, 0], sizes = [256, 128], strides = [1, 1]} : vector<288x128xbf16> to vector<256x128xbf16>
    %135 = vector.extract_strided_slice %117 {offsets = [16, 0], sizes = [256, 128], strides = [1, 1]} : vector<288x128xbf16> to vector<256x128xbf16>
    %136 = vector.extract_strided_slice %118 {offsets = [16, 0], sizes = [256, 128], strides = [1, 1]} : vector<288x128xbf16> to vector<256x128xbf16>
    %137 = vector.extract_strided_slice %116 {offsets = [32, 0], sizes = [256, 128], strides = [1, 1]} : vector<288x128xbf16> to vector<256x128xbf16>
    %138 = vector.extract_strided_slice %117 {offsets = [32, 0], sizes = [256, 128], strides = [1, 1]} : vector<288x128xbf16> to vector<256x128xbf16>
    %139 = vector.extract_strided_slice %118 {offsets = [32, 0], sizes = [256, 128], strides = [1, 1]} : vector<288x128xbf16> to vector<256x128xbf16>
    %140 = tpu.concatenate %131, %132, %133, %134, %135, %136, %137, %138, %139 in 1 : vector<256x128xbf16>, vector<256x128xbf16>, vector<256x128xbf16>, vector<256x128xbf16>, vector<256x128xbf16>, vector<256x128xbf16>, vector<256x128xbf16>, vector<256x128xbf16>, vector<256x128xbf16> -> vector<256x1152xbf16>
    %141 = vector.extract_strided_slice %128 {offsets = [0, 0], sizes = [256, 128], strides = [1, 1]} : vector<288x128xbf16> to vector<256x128xbf16>
    %142 = vector.extract_strided_slice %129 {offsets = [0, 0], sizes = [256, 128], strides = [1, 1]} : vector<288x128xbf16> to vector<256x128xbf16>
    %143 = vector.extract_strided_slice %130 {offsets = [0, 0], sizes = [256, 128], strides = [1, 1]} : vector<288x128xbf16> to vector<256x128xbf16>
    %144 = vector.extract_strided_slice %128 {offsets = [16, 0], sizes = [256, 128], strides = [1, 1]} : vector<288x128xbf16> to vector<256x128xbf16>
    %145 = vector.extract_strided_slice %129 {offsets = [16, 0], sizes = [256, 128], strides = [1, 1]} : vector<288x128xbf16> to vector<256x128xbf16>
    %146 = vector.extract_strided_slice %130 {offsets = [16, 0], sizes = [256, 128], strides = [1, 1]} : vector<288x128xbf16> to vector<256x128xbf16>
    %147 = vector.extract_strided_slice %128 {offsets = [32, 0], sizes = [256, 128], strides = [1, 1]} : vector<288x128xbf16> to vector<256x128xbf16>
    %148 = vector.extract_strided_slice %129 {offsets = [32, 0], sizes = [256, 128], strides = [1, 1]} : vector<288x128xbf16> to vector<256x128xbf16>
    %149 = vector.extract_strided_slice %130 {offsets = [32, 0], sizes = [256, 128], strides = [1, 1]} : vector<288x128xbf16> to vector<256x128xbf16>
    %150 = tpu.concatenate %141, %142, %143, %144, %145, %146, %147, %148, %149 in 1 : vector<256x128xbf16>, vector<256x128xbf16>, vector<256x128xbf16>, vector<256x128xbf16>, vector<256x128xbf16>, vector<256x128xbf16>, vector<256x128xbf16>, vector<256x128xbf16>, vector<256x128xbf16> -> vector<256x1152xbf16>
    %151 = tpu.concatenate %140, %150 in 0 : vector<256x1152xbf16>, vector<256x1152xbf16> -> vector<512x1152xbf16>
    %cst_27 = arith.constant dense<0.000000e+00> : vector<512x128xf32>
    %152 = tpu.matmul %151, %104, %cst_27 {dimension_numbers = #tpu.dot_dimension_numbers<[1], [0], [0], [1], [0, 0, 1, 1], [], []>} : vector<512x1152xbf16>, vector<1152x128xbf16>, vector<512x128xf32> -> vector<512x128xf32>
    %153 = vector.shape_cast %152 : vector<512x128xf32> to vector<2x256x128xf32>
    %cst_28 = arith.constant dense<0.000000e+00> : vector<2x128xf32>
    %154 = vector.multi_reduction <add>, %153, %cst_28 [1] : vector<2x256x128xf32> to vector<2x128xf32>
    %155 = vector.shape_cast %154 : vector<2x128xf32> to vector<2x1x128xf32>
    %cst_29 = arith.constant 3.906250e-03 : f32
    %156 = vector.broadcast %cst_29 : f32 to vector<2x1x128xf32>
    %157 = arith.mulf %155, %156 : vector<2x1x128xf32>
    %158 = arith.mulf %153, %153 : vector<2x256x128xf32>
    %cst_30 = arith.constant dense<0.000000e+00> : vector<2x128xf32>
    %159 = vector.multi_reduction <add>, %158, %cst_30 [1] : vector<2x256x128xf32> to vector<2x128xf32>
    %160 = vector.shape_cast %159 : vector<2x128xf32> to vector<2x1x128xf32>
    %cst_31 = arith.constant 3.906250e-03 : f32
    %161 = vector.broadcast %cst_31 : f32 to vector<2x1x128xf32>
    %162 = arith.mulf %160, %161 : vector<2x1x128xf32>
    %163 = arith.mulf %157, %157 : vector<2x1x128xf32>
    %164 = arith.subf %162, %163 : vector<2x1x128xf32>
    %cst_32 = arith.constant 0.000000e+00 : f32
    %165 = vector.broadcast %cst_32 : f32 to vector<2x1x128xf32>
    %166 = arith.maximumf %164, %165 : vector<2x1x128xf32>
    %cst_33 = arith.constant 9.99999974E-6 : f32
    %167 = vector.broadcast %cst_33 : f32 to vector<2x1x128xf32>
    %168 = arith.addf %166, %167 : vector<2x1x128xf32>
    %169 = math.rsqrt %168 : vector<2x1x128xf32>
    %170 = vector.shape_cast %105 : vector<1x128xf32> to vector<1x1x128xf32>
    %171 = vector.broadcast %170 : vector<1x1x128xf32> to vector<2x1x128xf32>
    %172 = arith.mulf %171, %169 : vector<2x1x128xf32>
    %173 = arith.mulf %157, %172 : vector<2x1x128xf32>
    %174 = vector.shape_cast %106 : vector<1x128xf32> to vector<1x1x128xf32>
    %175 = vector.broadcast %174 : vector<1x1x128xf32> to vector<2x1x128xf32>
    %176 = arith.subf %175, %173 : vector<2x1x128xf32>
    %177 = vector.broadcast %172 : vector<2x1x128xf32> to vector<2x256x128xf32>
    %178 = arith.mulf %153, %177 : vector<2x256x128xf32>
    %179 = vector.broadcast %176 : vector<2x1x128xf32> to vector<2x256x128xf32>
    %180 = arith.addf %178, %179 : vector<2x256x128xf32>
    %cst_34 = arith.constant 0.000000e+00 : f32
    %181 = vector.broadcast %cst_34 : f32 to vector<2x256x128xf32>
    %182 = arith.maximumf %180, %181 : vector<2x256x128xf32>
    %183 = arith.addf %182, %0 : vector<2x256x128xf32>
    %c0_35 = arith.constant 0 : index
    %c0_36 = arith.constant 0 : index
    %c0_37 = arith.constant 0 : index
    %184 = vector.load %arg4[%c0_35, %c0_36, %c0_37] : memref<2x256x128xf32, #tpu.memory_space<vmem>>, vector<2x256x128xf32>
    tpu.vector_store %arg4[%c0_35, %c0_36, %c0_37], %183 {strides = array<i32>} : memref<2x256x128xf32, #tpu.memory_space<vmem>>, vector<2x256x128xf32>,
    return
  }
  func.func @transform_0(%arg0: i32) -> (i32, i32, i32) {
    %c0_i32 = arith.constant 0 : i32
    %c0_i32_0 = arith.constant 0 : i32
    %c0_i32_1 = arith.constant 0 : i32
    return %arg0, %c0_i32, %c0_i32_0 : i32, i32, i32
  }
  func.func @transform_1(%arg0: i32) -> (i32, i32, i32) {
    %c0_i32 = arith.constant 0 : i32
    %c0_i32_0 = arith.constant 0 : i32
    %c0_i32_1 = arith.constant 0 : i32
    %c0_i32_2 = arith.constant 0 : i32
    return %c0_i32, %c0_i32_0, %c0_i32_1 : i32, i32, i32
  }
  func.func @transform_2(%arg0: i32) -> (i32, i32) {
    %c0_i32 = arith.constant 0 : i32
    %c0_i32_0 = arith.constant 0 : i32
    %c0_i32_1 = arith.constant 0 : i32
    return %c0_i32, %c0_i32_0 : i32, i32
  }
  func.func @transform_3(%arg0: i32) -> (i32, i32, i32) {
    %c0_i32 = arith.constant 0 : i32
    %c0_i32_0 = arith.constant 0 : i32
    %c0_i32_1 = arith.constant 0 : i32
    return %arg0, %c0_i32, %c0_i32_0 : i32, i32, i32
  }
}

</mosaic_0001>

<bundles_post_ra>
// kernel: resblock_forward.1
= control target key start
LH: loop header
LB: loop body
LE: loop exit
PB: predicated region body
PF: predicated region fallthrough
CT: control target
= control target key end

     0   :  { %v13598_v1 = vmov 0   ;;  %v80_v11 = vlaneseq  ;;  %v14036_v26 = vmov 0  ;;  %v14040_v62 = vmov 0  ;;  %s13587_s0 = inlined_call_operand.vmem [shape: f32[2,256,128], index: 0, kind: input, shape index: {}]   ;;  %s13588_s1 = inlined_call_operand.vmem [shape: bf16[2,1152,128], index: 1, kind: input, shape index: {}]   ;;  %s13589_s2 = inlined_call_operand.vmem [shape: f32[4,128], index: 2, kind: input, shape index: {}]   ;;  %s13590_s3 = inlined_call_operand.hbm [shape: f32[2,256,128], index: 3, kind: output, shape index: {}]  }
   0x1   :  { %v7259_v0 = vld [vmem:[%s13588_s1 + $0x38] sm:$0xff]   ;;  %1712 = vmatprep.subr.bf16.mxu0 %v13598_v1  ;;  %2001 = vmatprep.subr.bf16.mxu1 %v13598_v1  ;;  %v7261_v3 = vld [vmem:[%s13588_s1 + $0x30] sm:$0xff]   ;;  %v7263_v5 = vld [vmem:[%s13588_s1 + $0x28] sm:$0xff]  }
   0x2   :  { %v7260_v2 = vld [vmem:[%s13588_s1 + $0xb8] sm:$0xff]   ;;  %1713 = vmatpush1.bf16.msra.mxu0 %v7259_v0  ;;  %v7262_v4 = vld [vmem:[%s13588_s1 + $0xb0] sm:$0xff]   ;;  %v7264_v6 = vld [vmem:[%s13588_s1 + $0xa8] sm:$0xff]   ;;  %v7575_v14 = vshrl.u32 %v80_v11, 7 }
   0x3   :  { %2002 = vmatpush1.bf16.msra.mxu1 %v7260_v2  ;;  %1714 = vmatprep.subr.bf16.mxu0 %v13598_v1  ;;  %v7265_v7 = vld [vmem:[%s13588_s1 + $0x20] sm:$0xff]   ;;  %v7267_v9 = vld [vmem:[%s13588_s1 + $0x18] sm:$0xff]   ;;  %v7269_v12 = vld [vmem:[%s13588_s1 + $0x10] sm:$0xff]  }
   0x4   :  { %2003 = vmatprep.subr.bf16.mxu1 %v13598_v1  ;;  %v7266_v8 = vld [vmem:[%s13588_s1 + $0xa0] sm:$0xff]   ;;  %v7268_v10 = vld [vmem:[%s13588_s1 + $0x98] sm:$0xff]   ;;  %v7270_v13 = vld [vmem:[%s13588_s1 + $0x90] sm:$0xff]   ;;  %14035 = vst [vmem:[#allocation5_spill] sm:$0xff] %v7575_v14  ;;  %v83_v17 = vadd.s32 16, %v7575_v14  ;;  %vm13591_vm1 = vcmp.lt.s32.totalorder %v7575_v14, 1 }
   0x5   :  { %v7271_v15 = vld [vmem:[%s13588_s1 + $0x8] sm:$0xff]   ;;  %v7273_v18 = vld [vmem:[%s13588_s1] sm:$0xff]   ;;  %v7275_v21 = vld [vmem:[%s13588_s1 + $0x78] sm:$0xff]   ;;  %vm13621_vm2 = vcmp.lt.s32.totalorder %v7575_v14, 7  ;;  %v82_v48 = vadd.s32 8, %v7575_v14  ;;  %v85_v49 = vadd.s32 32, %v7575_v14 }
   0x6   :  { %1715 = vmatpush1.bf16.msra.mxu0 %v7261_v3  ;;  %v7272_v16 = vld [vmem:[%s13588_s1 + $0x88] sm:$0xff]   ;;  %v7274_v19 = vld [vmem:[%s13588_s1 + $0x80] sm:$0xff]   ;;  %v135_v20 = vand.u32 15, %v83_v17  ;;  %v7276_v22 = vld [vmem:[%s13588_s1 + $0xf8] sm:$0xff]   ;;  %v121_v52 = vand.u32 15, %v7575_v14  ;;  %v84_v61 = vadd.s32 24, %v7575_v14 }
   0x7   :  { %2004 = vmatpush1.bf16.msra.mxu1 %v7262_v4  ;;  %1716 = vmatprep.subr.bf16.mxu0 %v13598_v1  ;;  %v18_v23 = vld [vmem:[%s13587_s0 + $0x10] sm:$0xff]  ;;  %v19_v24 = vld [vmem:[%s13587_s0 + $0x18] sm:$0xff]  ;;  %v7611_v25 = vld [vmem:[%s13587_s0] sm:$0xff]  ;;  %v128_v57 = vand.u32 15, %v82_v48  ;;  %v149_v58 = vand.u32 15, %v85_v49  ;;  %v14043_v3 = vmov 0 }
   0x8   :  { %2005 = vmatprep.subr.bf16.mxu1 %v13598_v1  ;;  %vm7613_vm0 = vcmp.eq.s32.totalorder %v135_v20, 0  ;;  %v7618_v27 = vpack.c.bf16 %v19_v24, %v18_v23  ;;  %v7623_v28 = vld [vmem:[%s13587_s0 + $0x8] sm:$0xff]  ;;  %v7625_v29 = vrot.slane %v19_v24, 7  ;;  %v768_v30 = vrot.slane %v7611_v25, 7  ;;  %v7277_v31 = vld [vmem:[%s13588_s1 + $0x70] sm:$0xff]   ;;  %v7281_v43 = vld [vmem:[%s13588_s1 + $0x60] sm:$0xff]  }
   0x9   :  { %v14037_v26 = vsel %vm7613_vm0, 4294967295, %v14036_v26  ;;  %v769_v32 = vrot.slane %v7623_v28, 7  ;;  %v835_v33 = vrot.slane %v7611_v25, 1  ;;  %v836_v34 = vrot.slane %v7623_v28, 1  ;;  %v7278_v35 = vld [vmem:[%s13588_s1 + $0xf0] sm:$0xff]   ;;  %v7279_v40 = vld [vmem:[%s13588_s1 + $0x68] sm:$0xff]  }
   0xa   :  { %1717 = vmatpush1.bf16.msra.mxu0 %v7263_v5  ;;  %14038 = vst [vmem:[#allocation6_spill] sm:$0xff] %v14037_v26  ;;  %v831_v36 = vsel %vm13591_vm1, %v7625_v29, %v768_v30  ;;  %1744 = vmatprep.mubr.bf16.mxu0 %v7618_v27  ;;  %v7280_v42 = vld [vmem:[%s13588_s1 + $0xe8] sm:$0xff]   ;;  %v7282_v44 = vld [vmem:[%s13588_s1 + $0xe0] sm:$0xff]   ;;  %v7283_v45 = vld [vmem:[%s13588_s1 + $0x58] sm:$0xff]   ;;  %v7700_v53 = vrot.slane %v18_v23, 1  ;;  %v766_v54 = vrot.slane %v18_v23, 7 }
   0xb   :  { %2006 = vmatpush1.bf16.msra.mxu1 %v7264_v6  ;;  %1718 = vmatprep.subr.bf16.mxu0 %v13598_v1  ;;  %v7648_v37 = vsel %vm13591_vm1, %v768_v30, %v769_v32  ;;  %v7654_v38 = vsel %vm13621_vm2, %v835_v33, %v836_v34  ;;  %v7284_v46 = vld [vmem:[%s13588_s1 + $0xd8] sm:$0xff]   ;;  %v45_v47 = vld [vmem:[%s13587_s0 + $0xe8] sm:$0xff]  ;;  %v7285_v50 = vld [vmem:[%s13588_s1 + $0x50] sm:$0xff]   ;;  %v7704_v56 = vrot.slane %v19_v24, 1  ;;  %vm7715_vm3 = vcmp.eq.s32.totalorder %v121_v52, 0 }
   0xc   :  { %2007 = vmatprep.subr.bf16.mxu1 %v13598_v1  ;;  %v902_v39 = vsel %vm7613_vm0, %v7654_v38, %v831_v36  ;;  %v7286_v51 = vld [vmem:[%s13588_s1 + $0xd0] sm:$0xff]   ;;  %14039 = vst [vmem:[#allocation7_spill] sm:$0xff] %v7700_v53  ;;  %v7702_v55 = vrot.slane %v45_v47, 7  ;;  %v7287_v59 = vld [vmem:[%s13588_s1 + $0x48] sm:$0xff]   ;;  %v14041_v62 = vsel %vm7715_vm3, 4294967295, %v14040_v62  ;;  %v7732_v2 = vsel %vm13591_vm1, %v766_v54, %v7625_v29  ;;  %v7291_v23 = vld [vmem:[%s13588_s1 + $0x138] sm:$0xff]  }
   0xd   :  { %v7663_v41 = vpack.c.bf16 %v7648_v37, %v902_v39  ;;  %v7288_v60 = vld [vmem:[%s13588_s1 + $0xc8] sm:$0xff]   ;;  %14042 = vst [vmem:[#allocation8_spill] sm:$0xff] %v14041_v62  ;;  %v7726_v0 = vsel %vm13621_vm2, %v7700_v53, %v7704_v56  ;;  %vm7734_vm4 = vcmp.eq.s32.totalorder %v128_v57, 15  ;;  %v898_v4 = vsel %vm13621_vm2, %v7704_v56, %v835_v33 }
   0xe   :  { %1719 = vmatpush1.bf16.msra.mxu0 %v7265_v7  ;;  %v832_v63 = vsel %vm13591_vm1, %v7702_v55, %v766_v54  ;;  %v14044_v3 = vsel %vm7734_vm4, 4294967295, %v14043_v3  ;;  %v87_v5 = vadd.s32 48, %v7575_v14  ;;  %vm7742_vm5 = vcmp.eq.s32.totalorder %v149_v58, 0  ;;  %v7764_v11 = vld [vmem:[%s13587_s0 + $0x28] sm:$0xff] }
   0xf   :  { %2008 = vmatpush1.bf16.msra.mxu1 %v7266_v8  ;;  %1720 = vmatprep.subr.bf16.mxu0 %v13598_v1  ;;  %14045 = vst [vmem:[#allocation9_spill] sm:$0xff] %v14044_v3  ;;  %v14046_v6 = vmov 0  ;;  %v829_v7 = vsel %vm13591_vm1, %v769_v32, %v766_v54  ;;  %v7289_v8 = vld [vmem:[%s13588_s1 + $0x40] sm:$0xff]   ;;  %v86_v24 = vadd.s32 40, %v7575_v14  ;;  %v7789_v30 = vpack.c.bf16 %v7623_v28, %v7611_v25  ;;  %v7293_v54 = vld [vmem:[%s13588_s1 + $0x128] sm:$0xff]  }
  0x10   :  { %2009 = vmatprep.subr.bf16.mxu1 %v13598_v1  ;;  %2033 = vmatprep.mubr.bf16.mxu1 %v7663_v41  ;;  %v14047_v6 = vsel %vm7742_vm5, 4294967295, %v14046_v6  ;;  %v163_v17 = vand.u32 15, %v87_v5  ;;  %v14050_v32 = vmov 0  ;;  %v896_v33 = vsel %vm13621_vm2, %v836_v34, %v7700_v53  ;;  %v7292_v34 = vld [vmem:[%s13588_s1 + $0x130] sm:$0xff]   ;;  %v7294_v5 = vld [vmem:[%s13588_s1 + $0x120] sm:$0xff]  }
  0x11   :  { %14048 = vst [vmem:[#allocation10_spill] sm:$0xff] %v14047_v6  ;;  %v14053_v25 = vmov 0  ;;  %v89_v39 = vadd.s32 64, %v7575_v14  ;;  %v88_v52 = vadd.s32 56, %v7575_v14  ;;  %v91_v58 = vadd.s32 80, %v7575_v14 }
  0x12   :  { %1721 = vmatpush1.bf16.msra.mxu0 %v7267_v9  ;;  %v900_v9 = vsel %vm7715_vm3, %v7726_v0, %v832_v63  ;;  %vm7805_vm7 = vcmp.eq.s32.totalorder %v163_v17, 0 }
  0x13   :  { %2010 = vmatpush1.bf16.msra.mxu1 %v7268_v10  ;;  %1722 = vmatprep.subr.bf16.mxu0 %v13598_v1  ;;  %v7759_v10 = vld [vmem:[%s13587_s0 + $0x20] sm:$0xff]  ;;  %v14054_v25 = vsel %vm7805_vm7, 4294967295, %v14053_v25 }
  0x14   :  { %2011 = vmatprep.subr.bf16.mxu1 %v13598_v1  ;;  %v837_v20 = vrot.slane %v7759_v10, 1  ;;  %14055 = vst [vmem:[#allocation13_spill] sm:$0xff] %v14054_v25 }
  0x16   :  { %1723 = vmatpush1.bf16.msra.mxu0 %v7269_v12  ;;  %v7290_v12 = vld [vmem:[%s13588_s1 + $0xc0] sm:$0xff]  }
  0x17   :  { %2012 = vmatpush1.bf16.msra.mxu1 %v7270_v13  ;;  %1724 = vmatprep.subr.bf16.mxu0 %v13598_v1  ;;  %v937_v13 = vsel %vm7734_vm4, %v7732_v2, %v898_v4  ;;  %v170_v4 = vand.u32 15, %v88_v52 }
  0x18   :  { %2013 = vmatprep.subr.bf16.mxu1 %v13598_v1 }
  0x19   :  { %vm7921_vm10 = vcmp.eq.s32.totalorder %v170_v4, 15  ;;  %v8027_v4 = vld [vmem:[%s13587_s0 + $0x68] sm:$0xff] }
  0x1a   :  { %1725 = vmatpush1.bf16.msra.mxu0 %v7271_v15  ;;  %v142_v15 = vand.u32 15, %v84_v61  ;;  %v14107_v53 = vrot.slane %v8027_v4, 1 }
  0x1b   :  { %2014 = vmatpush1.bf16.msra.mxu1 %v7272_v16  ;;  %1726 = vmatprep.subr.bf16.mxu0 %v13598_v1  ;;  %v904_v16 = vsel %vm7742_vm5, %v7726_v0, %v829_v7 }
  0x1c   :  { %2015 = vmatprep.subr.bf16.mxu1 %v13598_v1  ;;  %vm7794_vm6 = vcmp.eq.s32.totalorder %v142_v15, 15 }
  0x1d   :  { %v14051_v32 = vsel %vm7794_vm6, 4294967295, %v14050_v32 }
  0x1e   :  { %1727 = vmatpush1.bf16.msra.mxu0 %v7273_v18  ;;  %v972_v18 = vpack.c.bf16 %v7732_v2, %v900_v9  ;;  %14052 = vst [vmem:[#allocation12_spill] sm:$0xff] %v14051_v32  ;;  %v191_v9 = vand.u32 15, %v91_v58  ;;  %v14078_v58 = vmov 0 }
  0x1f   :  { %2016 = vmatpush1.bf16.msra.mxu1 %v7274_v19  ;;  %1728 = vmatprep.subr.bf16.mxu0 %v13598_v1  ;;  %v770_v19 = vrot.slane %v7759_v10, 7 }
  0x20   :  { %2017 = vmatprep.subr.bf16.mxu1 %v13598_v1  ;;  %vm7937_vm11 = vcmp.eq.s32.totalorder %v191_v9, 0 }
  0x21   :  { %v827_v36 = vsel %vm13591_vm1, %v7625_v29, %v770_v19  ;;  %v7830_v29 = vld [vmem:[%s13587_s0 + $0x38] sm:$0xff] }
  0x22   :  { %1729 = vmatpush2.bf16.msra.mxu0 %v7275_v21  ;;  %v838_v21 = vrot.slane %v7764_v11, 1  ;;  %v773_v57 = vrot.slane %v7830_v29, 7 }
  0x23   :  { %2018 = vmatpush2.bf16.msra.mxu1 %v7276_v22  ;;  %1730 = vmatprep.subr.bf16.mxu0 %v13598_v1  ;;  %v1006_v22 = vpack.c.bf16 %v937_v13, %v7726_v0 }
  0x24   :  { %2019 = vmatprep.subr.bf16.mxu1 %v13598_v1  ;;  %v7816_v28 = vsel %vm13621_vm2, %v837_v20, %v838_v21 }
  0x26   :  { %1731 = vmatpush2.bf16.msra.mxu0 %v7277_v31  ;;  %v7792_v31 = vpack.c.bf16 %v7732_v2, %v904_v16  ;;  %v7916_v16 = vpack.c.bf16 %v7764_v11, %v7759_v10 }
  0x27   :  { %2020 = vmatpush2.bf16.msra.mxu1 %v7278_v35  ;;  %1732 = vmatprep.subr.bf16.mxu0 %v13598_v1  ;;  %v771_v35 = vrot.slane %v7764_v11, 7 }
  0x28   :  { %2021 = vmatprep.subr.bf16.mxu1 %v13598_v1  ;;  %14049 = vst [vmem:[#allocation11_spill] sm:$0xff] %v7792_v31  ;;  %14064 = vst [vmem:[#allocation18_spill] sm:$0xff] %v7916_v16 }
  0x2a   :  { %1733 = vmatpush2.bf16.msra.mxu0 %v7279_v40  ;;  %v156_v40 = vand.u32 15, %v86_v24 }
  0x2b   :  { %2022 = vmatpush2.bf16.msra.mxu1 %v7280_v42  ;;  %1734 = vmatprep.subr.bf16.mxu0 %v13598_v1  ;;  %v7825_v42 = vld [vmem:[%s13587_s0 + $0x30] sm:$0xff] }
  0x2c   :  { %2023 = vmatprep.subr.bf16.mxu1 %v13598_v1  ;;  %v772_v47 = vrot.slane %v7825_v42, 7  ;;  %v839_v48 = vrot.slane %v7825_v42, 1  ;;  %vm7851_vm8 = vcmp.eq.s32.totalorder %v156_v40, 15 }
  0x2e   :  { %1735 = vmatpush2.bf16.msra.mxu0 %v7281_v43  ;;  %v939_v43 = vsel %vm7794_vm6, %v7648_v37, %v896_v33  ;;  %v840_v37 = vrot.slane %v7830_v29, 1  ;;  %v7902_v7 = vsel %vm13591_vm1, %v772_v47, %v773_v57  ;;  %v7959_v33 = vld [vmem:[%s13587_s0 + $0x58] sm:$0xff] }
  0x2f   :  { %2024 = vmatpush2.bf16.msra.mxu1 %v7282_v44  ;;  %1736 = vmatprep.subr.bf16.mxu0 %v13598_v1  ;;  %v7839_v44 = vsel %vm13591_vm1, %v770_v19, %v771_v35  ;;  %v7849_v49 = vpack.c.bf16 %v939_v43, %v7654_v38  ;;  %v894_v38 = vsel %vm13621_vm2, %v7704_v56, %v837_v20  ;;  %v7884_v56 = vld [vmem:[%s13587_s0 + $0x40] sm:$0xff]  ;;  %v90_v19 = vadd.s32 72, %v7575_v14  ;;  %v7295_v20 = vld [vmem:[%s13588_s1 + $0x118] sm:$0xff]  }
  0x30   :  { %2025 = vmatprep.subr.bf16.mxu1 %v13598_v1  ;;  %v7879_v61 = vsel %vm13621_vm2, %v839_v48, %v840_v37  ;;  %v941_v63 = vsel %vm7851_vm8, %v7732_v2, %v894_v38  ;;  %v841_v2 = vrot.slane %v7884_v56, 1  ;;  %v14075_v38 = vmov 0 }
  0x31   :  { %v7912_v15 = vpack.c.bf16 %v941_v63, %v7726_v0  ;;  %v892_v0 = vsel %vm13621_vm2, %v838_v21, %v839_v48  ;;  %v7952_v21 = vld [vmem:[%s13587_s0 + $0x50] sm:$0xff]  ;;  %v7984_v48 = vpack.c.bf16 %v7830_v29, %v7825_v42  ;;  %v777_v42 = vrot.slane %v7959_v33, 7  ;;  %v8022_v63 = vld [vmem:[%s13587_s0 + $0x60] sm:$0xff] }
  0x32   :  { %1737 = vmatpush2.bf16.msra.mxu0 %v7283_v45  ;;  %v906_v45 = vsel %vm7805_vm7, %v7816_v28, %v827_v36  ;;  %v184_v36 = vand.u32 15, %v90_v19 }
  0x33   :  { %2026 = vmatpush2.bf16.msra.mxu1 %v7284_v46  ;;  %1738 = vmatprep.subr.bf16.mxu0 %v13598_v1  ;;  %v177_v46 = vand.u32 15, %v89_v39  ;;  %14063 = vst [vmem:[#allocation17_spill] sm:$0xff] %v7912_v15  ;;  %14073 = vst [vmem:[#allocation23_spill] sm:$0xff] %v7984_v48 }
  0x34   :  { %2027 = vmatprep.subr.bf16.mxu1 %v13598_v1  ;;  %vm7992_vm12 = vcmp.eq.s32.totalorder %v184_v36, 15  ;;  %v94_v36 = vadd.s32 104, %v7575_v14 }
  0x35   :  { %vm7869_vm9 = vcmp.eq.s32.totalorder %v177_v46, 0  ;;  %v844_v46 = vrot.slane %v7959_v33, 1  ;;  %v14076_v38 = vsel %vm7992_vm12, 4294967295, %v14075_v38 }
  0x36   :  { %1739 = vmatpush2.bf16.msra.mxu0 %v7285_v50  ;;  %v14056_v50 = vmov 0  ;;  %14077 = vst [vmem:[#allocation25_spill] sm:$0xff] %v14076_v38 }
  0x37   :  { %2028 = vmatpush2.bf16.msra.mxu1 %v7286_v51  ;;  %1740 = vmatprep.subr.bf16.mxu0 %v13598_v1  ;;  %v14057_v50 = vsel %vm7851_vm8, 4294967295, %v14056_v50  ;;  %v7856_v51 = vpack.c.bf16 %v7839_v44, %v906_v45  ;;  %v776_v45 = vrot.slane %v7952_v21, 7 }
  0x38   :  { %2029 = vmatprep.subr.bf16.mxu1 %v13598_v1  ;;  %14058 = vst [vmem:[#allocation14_spill] sm:$0xff] %v14057_v50 }
  0x39   :  { %14059 = vst [vmem:[#allocation15_spill] sm:$0xff] %v7856_v51  ;;  %v8038_v9 = vsel %vm13591_vm1, %v776_v45, %v777_v42 }
  0x3a   :  { %1741 = vmatpush2.bf16.msra.mxu0 %v7287_v59  ;;  %v14060_v59 = vmov 0 }
  0x3b   :  { %2030 = vmatpush2.bf16.msra.mxu1 %v7288_v60  ;;  %1742 = vmatprep.subr.bf16.mxu0 %v13598_v1  ;;  %v14061_v59 = vsel %vm7869_vm9, 4294967295, %v14060_v59  ;;  %v825_v60 = vsel %vm13591_vm1, %v771_v35, %v772_v47  ;;  %v943_v35 = vsel %vm7921_vm10, %v7839_v44, %v892_v0  ;;  %v843_v44 = vrot.slane %v7952_v21, 1 }
  0x3c   :  { %2031 = vmatprep.subr.bf16.mxu1 %v13598_v1  ;;  %14062 = vst [vmem:[#allocation16_spill] sm:$0xff] %v14061_v59  ;;  %v7980_v47 = vpack.c.bf16 %v943_v35, %v7816_v28  ;;  %v890_v28 = vsel %vm13621_vm2, %v840_v37, %v841_v2  ;;  %v95_v37 = vadd.s32 112, %v7575_v14  ;;  %v13596_v0 = vrot.slane %v8027_v4, 1 }
  0x3d   :  { %v8014_v29 = vsel %vm13621_vm2, %v843_v44, %v844_v46 }
  0x3e   :  { %1743 = vmatpush2.bf16.msra.mxu0 %v7289_v8  ;;  %v908_v8 = vsel %vm7869_vm9, %v7879_v61, %v825_v60  ;;  %14072 = vst [vmem:[#allocation22_spill] sm:$0xff] %v7980_v47  ;;  %v219_v19 = vand.u32 15, %v95_v37 }
  0x3f   :  { %2032 = vmatpush2.bf16.msra.mxu1 %v7290_v12  ;;  %2290 = vmatprep.subr.bf16.mxu0 %v13598_v1  ;;  %v774_v12 = vrot.slane %v7884_v56, 7  ;;  %v7919_v17 = vpack.c.bf16 %v7902_v7, %v908_v8  ;;  %v7298_v8 = vld [vmem:[%s13588_s1 + $0x100] sm:$0xff]  }
  0x40   :  { %2579 = vmatprep.subr.bf16.mxu1 %v13598_v1  ;;  %vm8073_vm15 = vcmp.eq.s32.totalorder %v219_v19, 0  ;;  %v96_v19 = vadd.s32 120, %v7575_v14 }
  0x41   :  { %1745 = vmatmul.mubr.bf16.vlgmr.msra.gmra.mxu0 %v972_v18  ;;  %14065 = vst [vmem:[#allocation19_spill] sm:$0xff] %v7919_v17  ;;  %v14066_v18 = vmov 0  ;;  %v823_v24 = vsel %vm13591_vm1, %v773_v57, %v774_v12  ;;  %v92_v57 = vadd.s32 88, %v7575_v14 }
  0x42   :  { %2034 = vmatmul.mubr.bf16.vlgmr.msra.gmra.mxu1 %v1006_v22  ;;  %2291 = vmatpush1.bf16.msra.mxu0 %v7291_v23  ;;  %v14067_v18 = vsel %vm7921_vm10, 4294967295, %v14066_v18  ;;  %v93_v22 = vadd.s32 96, %v7575_v14  ;;  %v14069_v23 = vmov 0 }
  0x43   :  { %1752 = vmatprep.mubr.bf16.mxu0 %v7789_v30  ;;  %2041 = vmatprep.mubr.bf16.mxu1 %v7792_v31  ;;  %14068 = vst [vmem:[#allocation20_spill] sm:$0xff] %v14067_v18  ;;  %v14070_v23 = vsel %vm7937_vm11, 4294967295, %v14069_v23 }
  0x44   :  { %2292 = vmatprep.subr.bf16.mxu0 %v13598_v1  ;;  %14071 = vst [vmem:[#allocation21_spill] sm:$0xff] %v14070_v23  ;;  %v205_v43 = vand.u32 15, %v93_v22 }
  0x46   :  { %2293 = vmatpush1.bf16.msra.mxu0 %v7292_v34  ;;  %v7296_v34 = vld [vmem:[%s13588_s1 + $0x110] sm:$0xff]   ;;  %vm8004_vm13 = vcmp.eq.s32.totalorder %v205_v43, 0  ;;  %v14087_v43 = vmov 0 }
  0x47   :  { %2294 = vmatprep.subr.bf16.mxu0 %v13598_v1  ;;  %v14079_v58 = vsel %vm8004_vm13, 4294967295, %v14078_v58  ;;  %v14088_v43 = vsel %vm8073_vm15, 4294967295, %v14087_v43 }
  0x48   :  { %14080 = vst [vmem:[#allocation26_spill] sm:$0xff] %v14079_v58  ;;  %14089 = vst [vmem:[#allocation31_spill] sm:$0xff] %v14088_v43 }
  0x49   :  { %1753 = vmatmul.mubr.bf16.gmra.mxu0 %v7663_v41  ;;  %v7891_v41 = vld [vmem:[%s13587_s0 + $0x48] sm:$0xff] }
  0x4a   :  { %2042 = vmatmul.mubr.bf16.gmra.mxu1 %v7849_v49  ;;  %1760 = vmatprep.mubr.bf16.mxu0 %v7618_v27  ;;  %v842_v13 = vrot.slane %v7891_v41, 1  ;;  %v775_v10 = vrot.slane %v7891_v41, 7  ;;  %v8052_v22 = vpack.c.bf16 %v7891_v41, %v7884_v56  ;;  %v97_v56 = vadd.s32 128, %v7575_v14 }
  0x4b   :  { %2049 = vmatprep.mubr.bf16.mxu1 %v7856_v51  ;;  %2295 = vmatpush1.bf16.msra.mxu0 %v7293_v54  ;;  %v7297_v54 = vld [vmem:[%s13588_s1 + $0x108] sm:$0xff]  }
  0x4c   :  { %2296 = vmatprep.subr.bf16.mxu0 %v13598_v1  ;;  %v7947_v11 = vsel %vm13621_vm2, %v841_v2, %v842_v13  ;;  %v7970_v39 = vsel %vm13591_vm1, %v774_v12, %v775_v10  ;;  %v821_v60 = vsel %vm13591_vm1, %v775_v10, %v776_v45  ;;  %v198_v2 = vand.u32 15, %v92_v57  ;;  %14082 = vst [vmem:[#allocation28_spill] sm:$0xff] %v8052_v22 }
  0x4d   :  { %v910_v40 = vsel %vm7937_vm11, %v7947_v11, %v823_v24  ;;  %v912_v12 = vsel %vm8004_vm13, %v8014_v29, %v821_v60  ;;  %v779_v24 = vrot.slane %v8027_v4, 7  ;;  %v233_v37 = vand.u32 15, %v97_v56 }
  0x4e   :  { %v7987_v52 = vpack.c.bf16 %v7970_v39, %v910_v40  ;;  %v8056_v35 = vpack.c.bf16 %v8038_v9, %v912_v12  ;;  %vm8062_vm14 = vcmp.eq.s32.totalorder %v198_v2, 15  ;;  %v14084_v40 = vmov 0 }
  0x4f   :  { %2297 = vmatpush1.bf16.msra.mxu0 %v7294_v5  ;;  %v945_v5 = vsel %vm7992_vm12, %v7902_v7, %v890_v28  ;;  %v845_v7 = vrot.slane %v8022_v63, 1  ;;  %v14085_v40 = vsel %vm8062_vm14, 4294967295, %v14084_v40  ;;  %v212_v28 = vand.u32 15, %v94_v36 }
  0x50   :  { %2298 = vmatprep.subr.bf16.mxu0 %v13598_v1  ;;  %14074 = vst [vmem:[#allocation24_spill] sm:$0xff] %v7987_v52  ;;  %v8048_v10 = vpack.c.bf16 %v945_v5, %v7879_v61  ;;  %14083 = vst [vmem:[#allocation29_spill] sm:$0xff] %v8056_v35  ;;  %v888_v61 = vsel %vm13621_vm2, %v842_v13, %v843_v44  ;;  %v8088_v13 = vld [vmem:[%s13587_s0 + $0x70] sm:$0xff]  ;;  %v8095_v44 = vld [vmem:[%s13587_s0 + $0x78] sm:$0xff]  ;;  %v8120_v2 = vpack.c.bf16 %v7959_v33, %v7952_v21 }
  0x51   :  { %1761 = vmatmul.mubr.bf16.gmra.mxu0 %v7792_v31  ;;  %14086 = vst [vmem:[#allocation30_spill] sm:$0xff] %v14085_v40  ;;  %v8083_v41 = vsel %vm13621_vm2, %v845_v7, %v13596_v0  ;;  %v780_v5 = vrot.slane %v8088_v13, 7  ;;  %v99_v36 = vadd.s32 144, %v7575_v14  ;;  %v7301_v21 = vld [vmem:[%s13588_s1 + $0x168] sm:$0xff]   ;;  %v886_v56 = vsel %vm13621_vm2, %v844_v46, %v845_v7 }
  0x52   :  { %2050 = vmatmul.mubr.bf16.gmra.mxu1 %v7912_v15  ;;  %1768 = vmatprep.mubr.bf16.mxu0 %v7916_v16  ;;  %14081 = vst [vmem:[#allocation27_spill] sm:$0xff] %v8048_v10  ;;  %14091 = vst [vmem:[#allocation33_spill] sm:$0xff] %v8120_v2  ;;  %v226_v46 = vand.u32 15, %v96_v19  ;;  %v113_v31 = vadd.s32 256, %v7575_v14 }
  0x53   :  { %2057 = vmatprep.mubr.bf16.mxu1 %v7919_v17  ;;  %2299 = vmatpush1.bf16.msra.mxu0 %v7295_v20  ;;  %v778_v20 = vrot.slane %v8022_v63, 7  ;;  %v247_v7 = vand.u32 15, %v99_v36 }
  0x54   :  { %2300 = vmatprep.subr.bf16.mxu0 %v13598_v1 }
  0x55   :  { %v819_v45 = vsel %vm13591_vm1, %v777_v42, %v778_v20  ;;  %v7300_v42 = vld [vmem:[%s13588_s1 + $0x170] sm:$0xff]   ;;  %v8106_v57 = vsel %vm13591_vm1, %v778_v20, %v779_v24  ;;  %v8126_v20 = vld [vmem:[%s13587_s0 + $0x80] sm:$0xff]  ;;  %vm8132_vm1 = vcmp.eq.s32.totalorder %v212_v28, 15  ;;  %v14096_v28 = vmov 0 }
  0x56   :  { %v914_v60 = vsel %vm8073_vm15, %v8083_v41, %v819_v45  ;;  %v781_v45 = vrot.slane %v8095_v44, 7  ;;  %vm8152_vm15 = vcmp.eq.s32.totalorder %v233_v37, 0  ;;  %v849_v37 = vrot.slane %v8126_v20, 1 }
  0x57   :  { %2301 = vmatpush1.bf16.msra.mxu0 %v7296_v34  ;;  %v7299_v34 = vld [vmem:[%s13588_s1 + $0x178] sm:$0xff]   ;;  %v14097_v28 = vsel %vm8152_vm15, 4294967295, %v14096_v28 }
  0x58   :  { %2302 = vmatprep.subr.bf16.mxu0 %v13598_v1  ;;  %14098 = vst [vmem:[#allocation36_spill] sm:$0xff] %v14097_v28 }
  0x59   :  { %1769 = vmatmul.mubr.bf16.gmra.mxu0 %v7856_v51  ;;  %v7305_v51 = vld [vmem:[%s13588_s1 + $0x1b0] sm:$0xff]  }
  0x5a   :  { %2058 = vmatmul.mubr.bf16.gmra.mxu1 %v7980_v47  ;;  %1776 = vmatprep.mubr.bf16.mxu0 %v7984_v48  ;;  %v8389_v47 = vld [vmem:[%s13587_s0 + $0xc8] sm:$0xff] }
  0x5b   :  { %2065 = vmatprep.mubr.bf16.mxu1 %v7987_v52  ;;  %2303 = vmatpush1.bf16.msra.mxu0 %v7297_v54  ;;  %v947_v54 = vsel %vm8062_vm14, %v7970_v39, %v888_v61  ;;  %v847_v39 = vrot.slane %v8088_v13, 1  ;;  %v14093_v61 = vmov 0  ;;  %vm14099_vm14 = vcmp.lt.s32.totalorder %v7575_v14, 1 }
  0x5c   :  { %2304 = vmatprep.subr.bf16.mxu0 %v13598_v1  ;;  %v8116_v12 = vpack.c.bf16 %v947_v54, %v7947_v11  ;;  %v14094_v61 = vsel %vm8132_vm1, 4294967295, %v14093_v61  ;;  %v8139_v11 = vld [vmem:[%s13587_s0 + $0x88] sm:$0xff]  ;;  %v98_v54 = vadd.s32 136, %v7575_v14 }
  0x5d   :  { %14095 = vst [vmem:[#allocation35_spill] sm:$0xff] %v14094_v61 }
  0x5e   :  { %14090 = vst [vmem:[#allocation32_spill] sm:$0xff] %v8116_v12  ;;  %v240_v36 = vand.u32 15, %v98_v54  ;;  %v8200_v54 = vld [vmem:[%s13587_s0 + $0x98] sm:$0xff] }
  0x5f   :  { %2305 = vmatpush1.bf16.msra.mxu0 %v7298_v8  ;;  %v13597_v8 = vrot.slane %v8095_v44, 1 }
  0x60   :  { %2306 = vmatprep.subr.bf16.mxu0 %v13598_v1  ;;  %vm8227_vm13 = vcmp.eq.s32.totalorder %v240_v36, 15 }
  0x61   :  { %1777 = vmatmul.mubr.bf16.gmra.mxu0 %v7919_v17  ;;  %v8162_v33 = vsel %vm13621_vm2, %v847_v39, %v13597_v8  ;;  %v8175_v8 = vsel %vm14099_vm14, %v780_v5, %v781_v45  ;;  %v14132_v17 = vrot.slane %v8139_v11, 1 }
  0x62   :  { %2066 = vmatmul.mubr.bf16.gmra.mxu1 %v8048_v10  ;;  %1784 = vmatprep.mubr.bf16.mxu0 %v8052_v22  ;;  %v105_v22 = vadd.s32 192, %v7575_v14 }
  0x63   :  { %2073 = vmatprep.mubr.bf16.mxu1 %v8056_v35  ;;  %2307 = vmatpush2.bf16.msra.mxu0 %v7299_v34  ;;  %v8130_v34 = vpack.c.bf16 %v8106_v57, %v914_v60  ;;  %v782_v60 = vrot.slane %v8126_v20, 7 }
  0x64   :  { %2308 = vmatprep.subr.bf16.mxu0 %v13598_v1 }
  0x65   :  { %14092 = vst [vmem:[#allocation34_spill] sm:$0xff] %v8130_v34 }
  0x67   :  { %2309 = vmatpush2.bf16.msra.mxu0 %v7300_v42  ;;  %v817_v42 = vsel %vm14099_vm14, %v779_v24, %v780_v5  ;;  %v949_v24 = vsel %vm8132_vm1, %v8038_v9, %v886_v56  ;;  %v101_v9 = vadd.s32 160, %v7575_v14  ;;  %v14100_v56 = vmov 0  }
  0x68   :  { %2310 = vmatprep.subr.bf16.mxu0 %v13598_v1  ;;  %v916_v19 = vsel %vm8152_vm15, %v8162_v33, %v817_v42  ;;  %v8183_v1 = vld [vmem:[%s13587_s0 + $0x90] sm:$0xff]  ;;  %v8192_v5 = vpack.c.bf16 %v8027_v4, %v8022_v63  ;;  %vm8202_vm14 = vcmp.eq.s32.totalorder %v226_v46, 15  ;;  %v14104_v42 = vmov 0 }
  0x69   :  { %1785 = vmatmul.mubr.bf16.gmra.mxu0 %v7987_v52  ;;  %v8195_v0 = vpack.c.bf16 %v8175_v8, %v916_v19  ;;  %v14105_v42 = vsel %vm8202_vm14, 4294967295, %v14104_v42  ;;  %v783_v63 = vrot.slane %v8139_v11, 7  ;;  %vm8212_vm15 = vcmp.eq.s32.totalorder %v247_v7, 0 }
  0x6a   :  { %2074 = vmatmul.mubr.bf16.gmra.mxu1 %v8116_v12  ;;  %1792 = vmatprep.mubr.bf16.mxu0 %v8120_v2  ;;  %14102 = vst [vmem:[#allocation38_spill] sm:$0xff] %v8192_v5  ;;  %14106 = vst [vmem:[#allocation40_spill] sm:$0xff] %v14105_v42  ;;  %vm14111_vm1 = vcmp.lt.s32.totalorder %v7575_v14, 1  ;;  %v14112_v46 = vrot.slane %v8139_v11, 1  ;;  %v784_v4 = vrot.slane %v8183_v1, 7  ;;  %v785_v7 = vrot.slane %v8200_v54, 7 }
  0x6b   :  { %2081 = vmatprep.mubr.bf16.mxu1 %v8130_v34  ;;  %2311 = vmatpush2.bf16.msra.mxu0 %v7301_v21  ;;  %v8188_v21 = vpack.c.bf16 %v949_v24, %v8014_v29  ;;  %14103 = vst [vmem:[#allocation39_spill] sm:$0xff] %v8195_v0  ;;  %v884_v29 = vsel %vm13621_vm2, %v14107_v53, %v847_v39  ;;  %v14108_v24 = vmov 0  ;;  %v14113_v53 = vmov 0  ;;  %v8252_v12 = vld [vmem:[%s13587_s0 + $0xa0] sm:$0xff] }
  0x6c   :  { %2312 = vmatprep.subr.bf16.mxu0 %v14100_v56  ;;  %v14109_v24 = vsel %vm8212_vm15, 4294967295, %v14108_v24  ;;  %v815_v19 = vsel %vm14111_vm1, %v781_v45, %v782_v60  ;;  %v8222_v2 = vsel %vm13621_vm2, %v849_v37, %v14112_v46  ;;  %v14114_v53 = vsel %vm8227_vm13, 4294967295, %v14113_v53  ;;  %v7302_v46 = vld [vmem:[%s13588_s1 + $0x160] sm:$0xff]  }
  0x6d   :  { %14101 = vst [vmem:[#allocation37_spill] sm:$0xff] %v8188_v21  ;;  %14110 = vst [vmem:[#allocation41_spill] sm:$0xff] %v14109_v24  ;;  %v261_v39 = vand.u32 15, %v101_v9  ;;  %v100_v45 = vadd.s32 152, %v7575_v14  ;;  %v8242_v36 = vsel %vm14111_vm1, %v782_v60, %v783_v63  ;;  %v918_v9 = vsel %vm8212_vm15, %v8222_v2, %v815_v19 }
  0x6e   :  { %14115 = vst [vmem:[#allocation42_spill] sm:$0xff] %v14114_v53  ;;  %v8260_v60 = vpack.c.bf16 %v8095_v44, %v8088_v13  ;;  %v14122_v13 = vrot.slane %v8095_v44, 1  ;;  %vm14123_vm15 = vcmp.lt.s32.totalorder %v7575_v14, 1  ;;  %v14124_v52 = vrot.slane %v8200_v54, 1 }
  0x6f   :  { %2313 = vmatpush2.bf16.msra.mxu0 %v7302_v46  ;;  %vm8262_vm1 = vcmp.eq.s32.totalorder %v261_v39, 0  ;;  %v254_v19 = vand.u32 15, %v100_v45  ;;  %v8269_v46 = vld [vmem:[%s13587_s0 + $0xa8] sm:$0xff]  ;;  %v813_v45 = vsel %vm14123_vm15, %v783_v63, %v784_v4  ;;  %v786_v44 = vrot.slane %v8252_v12, 7 }
  0x70   :  { %2314 = vmatprep.subr.bf16.mxu0 %v14100_v56  ;;  %14117 = vst [vmem:[#allocation44_spill] sm:$0xff] %v8260_v60  ;;  %v882_v39 = vsel %vm13621_vm2, %v14122_v13, %v849_v37  ;;  %v14125_v63 = vmov 0 }
  0x71   :  { %1793 = vmatmul.mubr.bf16.gmra.mxu0 %v8056_v35  ;;  %v8272_v35 = vpack.c.bf16 %v8242_v36, %v918_v9  ;;  %v953_v37 = vsel %vm8227_vm13, %v8175_v8, %v882_v39  ;;  %vm8297_vm15 = vcmp.eq.s32.totalorder %v254_v19, 15  ;;  %v8314_v19 = vld [vmem:[%s13587_s0 + $0xb0] sm:$0xff]  ;;  %vm14137_vm13 = vcmp.lt.s32.totalorder %v7575_v14, 1 }
  0x72   :  { %2082 = vmatmul.mubr.bf16.gmra.mxu1 %v8188_v21  ;;  %1800 = vmatprep.mubr.bf16.mxu0 %v8192_v5  ;;  %v951_v21 = vsel %vm8202_vm14, %v8106_v57, %v884_v29  ;;  %v851_v5 = vrot.slane %v8183_v1, 1  ;;  %v14118_v29 = vmov 0  ;;  %v14126_v63 = vsel %vm8297_vm15, 4294967295, %v14125_v63 }
  0x73   :  { %2089 = vmatprep.mubr.bf16.mxu1 %v8195_v0  ;;  %v8256_v57 = vpack.c.bf16 %v951_v21, %v8083_v41  ;;  %v14119_v29 = vsel %vm8262_vm1, 4294967295, %v14118_v29  ;;  %14121 = vst [vmem:[#allocation46_spill] sm:$0xff] %v8272_v35  ;;  %v103_v41 = vadd.s32 176, %v7575_v14  ;;  %v102_v21 = vadd.s32 168, %v7575_v14  ;;  %14127 = vst [vmem:[#allocation47_spill] sm:$0xff] %v14126_v63 }
  0x74   :  { %14120 = vst [vmem:[#allocation45_spill] sm:$0xff] %v14119_v29  ;;  %v8287_v9 = vsel %vm13621_vm2, %v851_v5, %v14124_v52  ;;  %v787_v52 = vrot.slane %v8269_v46, 7  ;;  %vm14128_vm2 = vcmp.lt.s32.totalorder %v7575_v14, 1  ;;  %v8322_v39 = vpack.c.bf16 %v953_v37, %v8162_v33 }
  0x75   :  { %14116 = vst [vmem:[#allocation43_spill] sm:$0xff] %v8256_v57  ;;  %v8304_v13 = vsel %vm14128_vm2, %v784_v4, %v785_v7  ;;  %v268_v8 = vand.u32 15, %v102_v21  ;;  %v8319_v4 = vld [vmem:[%s13587_s0 + $0xb8] sm:$0xff]  ;;  %v104_v21 = vadd.s32 184, %v7575_v14  ;;  %vm14133_vm2 = vcmp.lt.s32.totalorder %v7575_v14, 7 }
  0x76   :  { %14129 = vst [vmem:[#allocation48_spill] sm:$0xff] %v8322_v39  ;;  %v880_v48 = vsel %vm14133_vm2, %v14132_v17, %v851_v5  ;;  %v14134_v33 = vmov 0  ;;  %vm14139_vm14 = vmmov %vm14133_vm2  ;;  %v788_v17 = vrot.slane %v8314_v19, 7  ;;  %v855_v5 = vrot.slane %v8314_v19, 1 }
  0x77   :  { %v14140_v37 = vmov 0 }
  0x79   :  { %1801 = vmatmul.mubr.bf16.gmra.mxu0 %v8130_v34  ;;  %v853_v34 = vrot.slane %v8252_v12, 1 }
  0x7a   :  { %2090 = vmatmul.mubr.bf16.gmra.mxu1 %v8256_v57  ;;  %1808 = vmatprep.mubr.bf16.mxu0 %v8260_v60  ;;  %v920_v60 = vsel %vm8262_vm1, %v8287_v9, %v813_v45  ;;  %v275_v57 = vand.u32 15, %v103_v41  ;;  %v8326_v41 = vpack.c.bf16 %v8139_v11, %v8126_v20  ;;  %v289_v45 = vand.u32 15, %v105_v22 }
  0x7b   :  { %2097 = vmatprep.mubr.bf16.mxu1 %v8272_v35  ;;  %v8330_v10 = vpack.c.bf16 %v8304_v13, %v920_v60  ;;  %v811_v20 = vsel %vm14137_vm13, %v785_v7, %v786_v44  ;;  %v14138_v22 = vrot.slane %v8269_v46, 1  ;;  %v789_v11 = vrot.slane %v8319_v4, 7 }
  0x7c   :  { %14130 = vst [vmem:[#allocation49_spill] sm:$0xff] %v8326_v41  ;;  %vm8337_vm1 = vcmp.eq.s32.totalorder %v275_v57, 0  ;;  %v955_v7 = vsel %vm8297_vm15, %v8242_v36, %v880_v48  ;;  %vm8359_vm13 = vcmp.eq.s32.totalorder %v268_v8, 15  ;;  %v7304_v57 = vld [vmem:[%s13588_s1 + $0x1b8] sm:$0xff]   ;;  %vm8377_vm2 = vcmp.eq.s32.totalorder %v289_v45, 0 }
  0x7d   :  { %14131 = vst [vmem:[#allocation50_spill] sm:$0xff] %v8330_v10  ;;  %v14135_v33 = vsel %vm8337_vm1, 4294967295, %v14134_v33  ;;  %v8347_v60 = vsel %vm14139_vm14, %v853_v34, %v14138_v22  ;;  %v14141_v37 = vsel %vm8359_vm13, 4294967295, %v14140_v37  ;;  %v107_v22 = vadd.s32 208, %v7575_v14  ;;  %2580 = vmatpush1.bf16.msra.mxu1 %v7304_v57 }
  0x7e   :  { %14136 = vst [vmem:[#allocation51_spill] sm:$0xff] %v14135_v33  ;;  %14142 = vst [vmem:[#allocation52_spill] sm:$0xff] %v14141_v37  ;;  %vm14143_vm14 = vcmp.lt.s32.totalorder %v7575_v14, 1  ;;  %v922_v48 = vsel %vm8337_vm1, %v8347_v60, %v811_v20  ;;  %v14144_v36 = vmov 0  ;;  %v282_v8 = vand.u32 15, %v104_v21  ;;  %2581 = vmatprep.subr.bf16.mxu1 %v14100_v56 }
  0x7f   :  { %v14145_v36 = vsel %vm8377_vm2, 4294967295, %v14144_v36  ;;  %v8396_v45 = vpack.c.bf16 %v8200_v54, %v8183_v1  ;;  %v303_v20 = vand.u32 15, %v107_v22  ;;  %vm14152_vm1 = vcmp.lt.s32.totalorder %v7575_v14, 1 }
  0x80   :  { %14146 = vst [vmem:[#allocation53_spill] sm:$0xff] %v14145_v36  ;;  %v809_v1 = vsel %vm14152_vm1, %v787_v52, %v788_v17  ;;  %v14153_v57 = vrot.slane %v8319_v4, 1  ;;  %vm8427_vm1 = vcmp.eq.s32.totalorder %v282_v8, 15  ;;  %v14155_v22 = vmov 0 }
  0x81   :  { %1809 = vmatmul.mubr.bf16.gmra.mxu0 %v8195_v0  ;;  %v8384_v0 = vld [vmem:[%s13587_s0 + $0xc0] sm:$0xff]  ;;  %14148 = vst [vmem:[#allocation55_spill] sm:$0xff] %v8396_v45  ;;  %2582 = vmatpush1.bf16.msra.mxu1 %v7305_v51  ;;  %v14156_v22 = vsel %vm8427_vm1, 4294967295, %v14155_v22  ;;  %v14159_v8 = vmov 0 }
  0x82   :  { %2098 = vmatmul.mubr.bf16.gmra.mxu1 %v8322_v39  ;;  %1816 = vmatprep.mubr.bf16.mxu0 %v8326_v41  ;;  %v7303_v41 = vld [vmem:[%s13588_s1 + $0x158] sm:$0xff]   ;;  %v8372_v39 = vsel %vm14143_vm14, %v786_v44, %v787_v52  ;;  %v8392_v44 = vpack.c.bf16 %v955_v7, %v8222_v2  ;;  %vm14151_vm14 = vcmp.lt.s32.totalorder %v7575_v14, 7  ;;  %14157 = vst [vmem:[#allocation57_spill] sm:$0xff] %v14156_v22  ;;  %v857_v51 = vrot.slane %v8384_v0, 1 }
  0x83   :  { %2105 = vmatprep.mubr.bf16.mxu1 %v8330_v10  ;;  %2315 = vmatpush2.bf16.msra.mxu0 %v7303_v41  ;;  %v8400_v21 = vpack.c.bf16 %v8372_v39, %v922_v48  ;;  %v14150_v41 = vrot.slane %v8200_v54, 1  ;;  %vm14154_vm15 = vmmov %vm14151_vm14  ;;  %v790_v54 = vrot.slane %v8384_v0, 7 }
  0x84   :  { %14147 = vst [vmem:[#allocation54_spill] sm:$0xff] %v8392_v44  ;;  %2316 = vmatprep.subr.bf16.mxu0 %v14100_v56  ;;  %v8417_v7 = vsel %vm14154_vm15, %v855_v5, %v14153_v57  ;;  %2583 = vmatprep.subr.bf16.mxu1 %v14100_v56  ;;  %vm14158_vm15 = vcmp.lt.s32.totalorder %v7575_v14, 1 }
  0x85   :  { %14149 = vst [vmem:[#allocation56_spill] sm:$0xff] %v8400_v21  ;;  %v878_v2 = vsel %vm14151_vm14, %v14150_v41, %v853_v34  ;;  %v791_v34 = vrot.slane %v8389_v47, 7  ;;  %v7306_v41 = vld [vmem:[%s13588_s1 + $0x1a8] sm:$0xff]   ;;  %v8439_v57 = vsel %vm14158_vm15, %v788_v17, %v789_v11  ;;  %vm8444_vm14 = vcmp.eq.s32.totalorder %v303_v20, 0  ;;  %v8459_v17 = vld [vmem:[%s13587_s0 + $0xd0] sm:$0xff]  ;;  %v8464_v20 = vld [vmem:[%s13587_s0 + $0xd8] sm:$0xff] }
  0x86   :  { %v957_v52 = vsel %vm8359_vm13, %v8304_v13, %v878_v2  ;;  %v924_v13 = vsel %vm8377_vm2, %v8417_v7, %v809_v1  ;;  %v14160_v8 = vsel %vm8444_vm14, 4294967295, %v14159_v8  ;;  %v106_v2 = vadd.s32 200, %v7575_v14  ;;  %2584 = vmatpush1.bf16.msra.mxu1 %v7306_v41  ;;  %v7307_v41 = vld [vmem:[%s13588_s1 + $0x1a0] sm:$0xff]  }
  0x87   :  { %14161 = vst [vmem:[#allocation58_spill] sm:$0xff] %v14160_v8  ;;  %v8450_v48 = vpack.c.bf16 %v957_v52, %v8287_v9  ;;  %2585 = vmatprep.subr.bf16.mxu1 %v14100_v56  ;;  %v8468_v1 = vpack.c.bf16 %v8439_v57, %v924_v13  ;;  %v14165_v9 = vrot.slane %v8269_v46, 1  ;;  %vm14166_vm15 = vcmp.lt.s32.totalorder %v7575_v14, 7 }
  0x88   :  { %v109_v52 = vadd.s32 224, %v7575_v14  ;;  %vm14167_vm2 = vcmp.lt.s32.totalorder %v7575_v14, 1  ;;  %vm14169_vm13 = vmmov %vm14166_vm15 }
  0x89   :  { %1817 = vmatmul.mubr.bf16.gmra.mxu0 %v8272_v35  ;;  %14162 = vst [vmem:[#allocation59_spill] sm:$0xff] %v8450_v48  ;;  %14164 = vst [vmem:[#allocation61_spill] sm:$0xff] %v8468_v1  ;;  %v14168_v35 = vrot.slane %v8389_v47, 1 }
  0x8a   :  { %2106 = vmatmul.mubr.bf16.gmra.mxu1 %v8392_v44  ;;  %1824 = vmatprep.mubr.bf16.mxu0 %v8396_v45  ;;  %v8454_v45 = vpack.c.bf16 %v8269_v46, %v8252_v12  ;;  %v876_v12 = vsel %vm14166_vm15, %v14165_v9, %v855_v5  ;;  %v807_v44 = vsel %vm14167_vm2, %v789_v11, %v790_v54  ;;  %v296_v5 = vand.u32 15, %v106_v2 }
  0x8b   :  { %2113 = vmatprep.mubr.bf16.mxu1 %v8400_v21  ;;  %v8485_v13 = vsel %vm14169_vm13, %v857_v51, %v14168_v35  ;;  %2586 = vmatpush1.bf16.msra.mxu1 %v7307_v41  ;;  %v959_v46 = vsel %vm8427_vm1, %v8372_v39, %v876_v12  ;;  %v792_v11 = vrot.slane %v8459_v17, 7  ;;  %v859_v9 = vrot.slane %v8459_v17, 1  ;;  %v7308_v35 = vld [vmem:[%s13588_s1 + $0x150] sm:$0xff]   ;;  %v7309_v41 = vld [vmem:[%s13588_s1 + $0x198] sm:$0xff]   ;;  %vm14170_vm13 = vmmov %vm14167_vm2 }
  0x8c   :  { %14163 = vst [vmem:[#allocation60_spill] sm:$0xff] %v8454_v45  ;;  %2587 = vmatprep.subr.bf16.mxu1 %v14100_v56  ;;  %v8505_v39 = vsel %vm14170_vm13, %v790_v54, %v791_v34  ;;  %v926_v2 = vsel %vm8444_vm14, %v8485_v13, %v807_v44  ;;  %v317_v12 = vand.u32 15, %v109_v52  ;;  %2317 = vmatpush2.bf16.msra.mxu0 %v7308_v35  ;;  %v8521_v54 = vld [vmem:[%s13587_s0 + $0xe0] sm:$0xff]  ;;  %v793_v52 = vrot.slane %v8464_v20, 7  ;;  %vm14183_vm1 = vmmov %vm14166_vm15 }
  0x8d   :  { %2318 = vmatprep.subr.bf16.mxu0 %v14100_v56  ;;  %v8526_v44 = vpack.c.bf16 %v8505_v39, %v926_v2  ;;  %vm8532_vm2 = vcmp.eq.s32.totalorder %v296_v5, 15  ;;  %v14178_v2 = vmov 0  ;;  %vm14181_vm14 = vcmp.lt.s32.totalorder %v7575_v14, 1 }
  0x8e   :  { %vm8542_vm13 = vcmp.eq.s32.totalorder %v317_v12, 0  ;;  %v805_v16 = vsel %vm14181_vm14, %v791_v34, %v792_v11  ;;  %v14182_v5 = vrot.slane %v8464_v20, 1  ;;  %v8561_v34 = vrot.slane %v8521_v54, 7 }
  0x8f   :  { %2588 = vmatpush1.bf16.msra.mxu1 %v7309_v41  ;;  %14173 = vst [vmem:[#allocation64_spill] sm:$0xff] %v8526_v44  ;;  %v111_v41 = vadd.s32 240, %v7575_v14  ;;  %v14179_v2 = vsel %vm8542_vm13, 4294967295, %v14178_v2  ;;  %v8564_v12 = vrot.slane %v8521_v54, 1 }
  0x90   :  { %2589 = vmatprep.subr.bf16.mxu1 %v14100_v56  ;;  %14180 = vst [vmem:[#allocation66_spill] sm:$0xff] %v14179_v2  ;;  %v8552_v15 = vsel %vm14183_vm1, %v859_v9, %v14182_v5  ;;  %14184 = vst [vmem:[#allocation67_spill] sm:$0xff] %v8561_v34 }
  0x91   :  { %1825 = vmatmul.mubr.bf16.gmra.mxu0 %v8330_v10  ;;  %v108_v10 = vadd.s32 216, %v7575_v14  ;;  %14185 = vst [vmem:[#allocation68_spill] sm:$0xff] %v8564_v12  ;;  %vm14187_vm1 = vmmov %vm14181_vm14  ;;  %v331_v5 = vand.u32 15, %v111_v41  ;;  %v14191_v41 = vmov 0 }
  0x92   :  { %2114 = vmatmul.mubr.bf16.gmra.mxu1 %v8450_v48  ;;  %1832 = vmatprep.mubr.bf16.mxu0 %v8454_v45  ;;  %v8512_v45 = vpack.c.bf16 %v959_v46, %v8347_v60  ;;  %v8516_v48 = vpack.c.bf16 %v8319_v4, %v8314_v19  ;;  %v7310_v60 = vld [vmem:[%s13588_s1 + $0x190] sm:$0xff]   ;;  %v14174_v19 = vmov 0  ;;  %v14177_v46 = vrot.slane %v8319_v4, 1 }
  0x93   :  { %2121 = vmatprep.mubr.bf16.mxu1 %v8468_v1  ;;  %v14175_v19 = vsel %vm8532_vm2, 4294967295, %v14174_v19  ;;  %2590 = vmatpush1.bf16.msra.mxu1 %v7310_v60  ;;  %v310_v4 = vand.u32 15, %v108_v10  ;;  %v8569_v60 = vld [vmem:[%s13587_s0 + $0xe8] sm:$0xff] }
  0x94   :  { %14171 = vst [vmem:[#allocation62_spill] sm:$0xff] %v8512_v45  ;;  %14172 = vst [vmem:[#allocation63_spill] sm:$0xff] %v8516_v48  ;;  %v874_v35 = vsel %vm14166_vm15, %v14177_v46, %v857_v51  ;;  %v8572_v46 = vrot.slane %v8569_v60, 1  ;;  %2591 = vmatprep.subr.bf16.mxu1 %v14100_v56  ;;  %v7311_v10 = vld [vmem:[%s13588_s1 + $0x188] sm:$0xff]  }
  0x95   :  { %14176 = vst [vmem:[#allocation65_spill] sm:$0xff] %v14175_v19  ;;  %v961_v51 = vsel %vm8532_vm2, %v8439_v57, %v874_v35  ;;  %v8580_v57 = vsel %vm14187_vm1, %v792_v11, %v793_v52  ;;  %v928_v35 = vsel %vm8542_vm13, %v8552_v15, %v805_v16  ;;  %v7312_v16 = vld [vmem:[%s13588_s1 + $0x180] sm:$0xff]   ;;  %vm8601_vm14 = vcmp.eq.s32.totalorder %v310_v4, 15  ;;  %vm14199_vm2 = vmmov %vm14166_vm15 }
  0x96   :  { %14186 = vst [vmem:[#allocation69_spill] sm:$0xff] %v8572_v46  ;;  %v8595_v11 = vpack.c.bf16 %v8580_v57, %v928_v35  ;;  %v14192_v41 = vsel %vm8601_vm14, 4294967295, %v14191_v41  ;;  %vm8615_vm1 = vcmp.eq.s32.totalorder %v331_v5, 0  ;;  %vm14198_vm13 = vcmp.lt.s32.totalorder %v7575_v14, 1 }
  0x97   :  { %2592 = vmatpush1.bf16.msra.mxu1 %v7311_v10  ;;  %14193 = vst [vmem:[#allocation73_spill] sm:$0xff] %v14192_v41  ;;  %v14195_v10 = vmov 0  ;;  %v803_v4 = vsel %vm14198_vm13, %v793_v52, %v8561_v34  ;;  %v345_v5 = vand.u32 15, %v113_v31 }
  0x98   :  { %2593 = vmatprep.subr.bf16.mxu1 %v14100_v56  ;;  %14190 = vst [vmem:[#allocation72_spill] sm:$0xff] %v8595_v11  ;;  %v14196_v10 = vsel %vm8615_vm1, 4294967295, %v14195_v10 }
  0x99   :  { %1833 = vmatmul.mubr.bf16.gmra.mxu0 %v8400_v21  ;;  %v8591_v21 = vpack.c.bf16 %v8389_v47, %v8384_v0  ;;  %14197 = vst [vmem:[#allocation74_spill] sm:$0xff] %v14196_v10 }
  0x9a   :  { %2122 = vmatmul.mubr.bf16.gmra.mxu1 %v8512_v45  ;;  %1840 = vmatprep.mubr.bf16.mxu0 %v8516_v48  ;;  %v110_v48 = vadd.s32 232, %v7575_v14  ;;  %v8587_v45 = vpack.c.bf16 %v961_v51, %v8417_v7  ;;  %v14194_v7 = vrot.slane %v8389_v47, 1  ;;  %v8612_v51 = vld [vmem:[%s13587_s0 + $0xf0] sm:$0xff]  ;;  %v8626_v47 = vsel %vm14199_vm2, %v8564_v12, %v8572_v46  ;;  %vm14202_vm2 = vmmov %vm14198_vm13 }
  0x9b   :  { %2129 = vmatprep.mubr.bf16.mxu1 %v8526_v44  ;;  %14189 = vst [vmem:[#allocation71_spill] sm:$0xff] %v8591_v21  ;;  %14200 = vst [vmem:[#allocation75_spill] sm:$0xff] %v8626_v47  ;;  %2594 = vmatpush1.bf16.msra.mxu1 %v7312_v16  ;;  %v7314_v16 = vld [vmem:[%s13588_s1 + $0x1f8] sm:$0xff]   ;;  %v930_v31 = vsel %vm8615_vm1, %v8626_v47, %v803_v4 }
  0x9c   :  { %14188 = vst [vmem:[#allocation70_spill] sm:$0xff] %v8587_v45  ;;  %v872_v0 = vsel %vm14166_vm15, %v14194_v7, %v859_v9  ;;  %v8631_v9 = vld [vmem:[%s13587_s0 + $0xf8] sm:$0xff]  ;;  %v324_v35 = vand.u32 15, %v110_v48  ;;  %v796_v7 = vrot.slane %v8612_v51, 7  ;;  %2595 = vmatprep.subr.bf16.mxu1 %v14100_v56  ;;  %v8651_v48 = vsel %vm14202_vm2, %v8561_v34, %v7702_v55 }
  0x9d   :  { %14201 = vst [vmem:[#allocation76_spill] sm:$0xff] %v8631_v9  ;;  %v963_v52 = vsel %vm8601_vm14, %v8505_v39, %v872_v0  ;;  %14203 = vst [vmem:[#allocation77_spill] sm:$0xff] %v8651_v48  ;;  %v863_v39 = vrot.slane %v8612_v51, 1  ;;  %v13691_v0 = vrot.slane %v8631_v9, 1 }
  0x9f   :  { %2596 = vmatpush2.bf16.msra.mxu1 %v7314_v16 }
  0xa0   :  { %2597 = vmatprep.subr.bf16.mxu1 %v14100_v56 }
  0xa1   :  { %1841 = vmatmul.mubr.bf16.gmra.mxu0 %v8468_v1  ;;  %v7313_v1 = vld [vmem:[%s13588_s1 + $0x148] sm:$0xff]  }
  0xa2   :  { %2130 = vmatmul.mubr.bf16.gmra.mxu1 %v8587_v45  ;;  %1848 = vmatprep.mubr.bf16.mxu0 %v8591_v21  ;;  %v8659_v21 = vpack.c.bf16 %v963_v52, %v8485_v13  ;;  %v8663_v45 = vpack.c.bf16 %v8464_v20, %v8459_v17 }
  0xa3   :  { %2137 = vmatprep.mubr.bf16.mxu1 %v8595_v11  ;;  %2319 = vmatpush2.bf16.msra.mxu0 %v7313_v1 }
  0xa4   :  { %14204 = vst [vmem:[#allocation78_spill] sm:$0xff] %v8659_v21  ;;  %14205 = vst [vmem:[#allocation79_spill] sm:$0xff] %v8663_v45  ;;  %2320 = vmatprep.subr.bf16.mxu0 %v14100_v56 }
  0xa5   :  { %8 = vsyncpa [#allocation3], 0  ;;  %v8668_v4 = vpack.c.bf16 %v8651_v48, %v930_v31  ;;  %v7315_v1 = vld [vmem:[%s13588_s1 + $0x1f0] sm:$0xff]   ;;  %vm8673_vm13 = vcmp.eq.s32.totalorder %v324_v35, 15  ;;  %v14207_v51 = vmov 0  ;;  %v14210_v17 = vrot.slane %v8464_v20, 1 }
  0xa6   :  { %v14208_v51 = vsel %vm8673_vm13, 4294967295, %v14207_v51  ;;  %v13703_v52 = vrot.slane %v8631_v9, 7  ;;  %v112_v16 = vadd.s32 248, %v7575_v14  ;;  %vm8685_vm2 = vcmp.eq.s32.totalorder %v345_v5, 0  ;;  %vm14215_vm14 = vmmov %vm14166_vm15  ;;  %2598 = vmatpush2.bf16.msra.mxu1 %v7315_v1  ;;  %v51_v5 = vld [vmem:[%s13587_s0 + $0x118] sm:$0xff]  ;;  %s7504_s27 = smov [#allocation2]  }
  0xa7   :  { %14206 = vst [vmem:[#allocation80_spill] sm:$0xff] %v8668_v4  ;;  %14209 = vst [vmem:[#allocation81_spill] sm:$0xff] %v14208_v51  ;;  %v870_v13 = vsel %vm14166_vm15, %v14210_v17, %v8564_v12  ;;  %v14211_v31 = vmov 0  ;;  %vm14214_vm1 = vcmp.lt.s32.totalorder %v7575_v14, 1  ;;  %v8696_v20 = vsel %vm14215_vm14, %v863_v39, %v13691_v0  ;;  %v8706_v17 = vld [vmem:[%s13587_s0 + $0x100] sm:$0xff]  ;;  %2599 = vmatprep.subr.bf16.mxu1 %v14100_v56  ;;  %v7316_v0 = vld [vmem:[%s13588_s1 + $0x1e8] sm:$0xff]  }
  0xa8   :  { %v14212_v31 = vsel %vm8685_vm2, 4294967295, %v14211_v31  ;;  %v802_v35 = vsel %vm14214_vm1, %v7702_v55, %v796_v7  ;;  %14216 = vst [vmem:[#allocation83_spill] sm:$0xff] %v8696_v20  ;;  %v8711_v55 = vld [vmem:[%s13587_s0 + $0x108] sm:$0xff]  ;;  %v965_v1 = vsel %vm8673_vm13, %v8580_v57, %v870_v13  ;;  %vm14217_vm14 = vmmov %vm14214_vm1  ;;  %v1026_v57 = vrot.slane %v8706_v17, 7  ;;  %s13526_s28 = sshll.u32 %s7504_s27, 4  ;;  %s6717_s28 = int_to_ptr.vmem [resolvable:$true] %s13526_s28 }
  0xa9   :  { %1849 = vmatmul.mubr.bf16.gmra.mxu0 %v8526_v44  ;;  %14213 = vst [vmem:[#allocation82_spill] sm:$0xff] %v14212_v31  ;;  %v8725_v34 = vsel %vm14217_vm14, %v796_v7, %v13703_v52  ;;  %v932_v12 = vsel %vm8685_vm2, %v8696_v20, %v802_v35  ;;  %v1092_v13 = vrot.slane %v8706_v17, 1  ;;  %v13707_v44 = vrot.slane %v8711_v55, 1  ;;  %v50_v35 = vld [vmem:[%s13587_s0 + $0x110] sm:$0xff]  ;;  %vm14225_vm2 = vmmov %vm14166_vm15  ;;  %s7481_s22 = scalar_lea.vmem %s6717_s28, 8192  ;;  %p7486_p1 = scmp.lt.s32.totalorder %s6717_s28, %s6717_s28 }
  0xaa   :  { %2138 = vmatmul.mubr.bf16.gmra.mxu1 %v8659_v21  ;;  %1856 = vmatprep.mubr.bf16.mxu0 %v8663_v45  ;;  %14218 = vst [vmem:[#allocation84_spill] sm:$0xff] %v8725_v34  ;;  %v338_v45 = vand.u32 15, %v112_v16  ;;  %v8730_v21 = vrot.slane %v51_v5, 7  ;;  %v8736_v9 = vpack.c.bf16 %v965_v1, %v8552_v15  ;;  %v8740_v7 = vpack.c.bf16 %v8569_v60, %v8521_v54  ;;  %p7482_p0 = scmp.ne.s32.totalorder %s6717_s28, %s7481_s22  ;;  %p7487_p2 = scmp.lt.s32.totalorder %s7481_s22, %s7481_s22 }
  0xab   :  { %2145 = vmatprep.mubr.bf16.mxu1 %v8668_v4  ;;  %2600 = vmatpush2.bf16.msra.mxu1 %v7316_v0  ;;  %v8744_v16 = vpack.c.bf16 %v8725_v34, %v932_v12  ;;  %v7317_v0 = vld [vmem:[%s13588_s1 + $0x1e0] sm:$0xff]   ;;  %v14222_v15 = vmov 0  ;;  %v869_v54 = vsel %vm14166_vm15, %v8572_v46, %v863_v39  ;;  %v1027_v60 = vrot.slane %v8711_v55, 7  ;;  %v8763_v12 = vld [vmem:[%s13587_s0 + $0x1e8] sm:$0xff] }
  0xac   :  { %14219 = vst [vmem:[#allocation85_spill] sm:$0xff] %v8736_v9  ;;  %14220 = vst [vmem:[#allocation86_spill] sm:$0xff] %v8740_v7  ;;  %2601 = vmatprep.subr.bf16.mxu1 %v14100_v56  ;;  %vm8752_vm1 = vcmp.eq.s32.totalorder %v338_v45, 15  ;;  %v1088_v45 = vsel %vm14217_vm14, %v8730_v21, %v1026_v57  ;;  %v8773_v1 = vsel %vm14225_vm2, %v1092_v13, %v13707_v44  ;;  %v1024_v39 = vrot.slane %v50_v35, 7  ;;  %v7319_v44 = vld [vmem:[%s13588_s1 + $0x1d8] sm:$0xff]   ;;  %p7488_p3 = por %p7487_p2, %p7486_p1 }
  0xad   :  { %14221 = vst [vmem:[#allocation87_spill] sm:$0xff] %v8744_v16  ;;  %v14223_v15 = vsel %vm8752_vm1, 4294967295, %v14222_v15  ;;  %v967_v52 = vsel %vm8752_vm1, %v8651_v48, %v869_v54  ;;  %v8782_v46 = vrot.slane %v8763_v12, 7  ;;  %v8784_v20 = vrot.slane %v50_v35, 1  ;;  %vm14227_vm2 = vmmov %vm14217_vm14 }
  0xae   :  { %14224 = vst [vmem:[#allocation88_spill] sm:$0xff] %v14223_v15  ;;  %v8786_v34 = vrot.slane %v51_v5, 1  ;;  %v1087_v54 = vsel %vm14227_vm2, %v1026_v57, %v1027_v60  ;;  %v1158_v48 = vsel %vm7613_vm0, %v8773_v1, %v1088_v45  ;;  %vm14230_vm15 = vmmov %vm14227_vm2  ;;  %vm14231_vm14 = vcmp.lt.s32.totalorder %v7575_v14, 7  ;;  %v52_v45 = vld [vmem:[%s13587_s0 + $0x120] sm:$0xff]  ;;  %p7489_p4 = pnand %p7488_p3, %p7482_p0 }
  0xaf   :  { %2602 = vmatpush2.bf16.msra.mxu1 %v7317_v0  ;;  %14226 = vst [vmem:[#allocation89_spill] sm:$0xff] %v8784_v20  ;;  %v7318_v0 = vld [vmem:[%s13588_s1 + $0x140] sm:$0xff]   ;;  %vm14232_vm0 = vmmov %vm14231_vm14  ;;  %v1094_v26 = vrot.slane %v52_v45, 1 }
  0xb0   :  { %2603 = vmatprep.subr.bf16.mxu1 %v14100_v56  ;;  %2321 = vmatpush2.bf16.msra.mxu0 %v7318_v0  ;;  %v8813_v57 = vsel %vm14231_vm14, %v8784_v20, %v8786_v34  ;;  %vm14236_vm14 = vmmov %vm14227_vm2 }
  0xb1   :  { %1857 = vmatmul.mubr.bf16.gmra.mxu0 %v8595_v11  ;;  %v1089_v11 = vsel %vm14230_vm15, %v8782_v46, %v1024_v39  ;;  %vm14233_vm15 = vmmov %vm14227_vm2  ;;  %v1150_v32 = vsel %vm14232_vm0, %v8786_v34, %v1094_v26 }
  0xb2   :  { %2146 = vmatmul.mubr.bf16.gmra.mxu1 %v8736_v9  ;;  %1864 = vmatprep.mubr.bf16.mxu0 %v8740_v7  ;;  %v8803_v7 = vpack.c.bf16 %v51_v5, %v50_v35  ;;  %v1229_v9 = vpack.c.bf16 %v1087_v54, %v1158_v48  ;;  %v1154_v48 = vsel %vm14232_vm0, %v8786_v34, %v1092_v13  ;;  %v53_v13 = vld [vmem:[%s13587_s0 + $0x128] sm:$0xff] }
  0xb3   :  { %2153 = vmatprep.mubr.bf16.mxu1 %v8744_v16  ;;  %2604 = vmatpush2.bf16.msra.mxu1 %v7319_v44  ;;  %v8801_v16 = vpack.c.bf16 %v967_v52, %v8626_v47  ;;  %v7320_v44 = vld [vmem:[%s13588_s1 + $0x1d0] sm:$0xff]   ;;  %v8821_v52 = vsel %vm14227_vm2, %v1024_v39, %v8730_v21  ;;  %v1086_v5 = vsel %vm14233_vm15, %v1027_v60, %v1024_v39  ;;  %v7321_v39 = vld [vmem:[%s13588_s1 + $0x1c8] sm:$0xff]   ;;  %v1095_v62 = vrot.slane %v53_v13, 1  ;;  %vm14237_vm2 = vmmov %vm14232_vm0 }
  0xb4   :  { %14229 = vst [vmem:[#allocation91_spill] sm:$0xff] %v8803_v7  ;;  %2605 = vmatprep.subr.bf16.mxu1 %v14100_v56  ;;  %v1156_v35 = vsel %vm7715_vm3, %v8813_v57, %v1089_v11  ;;  %v1193_v60 = vsel %vm7734_vm4, %v8821_v52, %v1154_v48  ;;  %v1160_v11 = vsel %vm7742_vm5, %v8813_v57, %v1086_v5  ;;  %v7322_v5 = vld [vmem:[%s13588_s1 + $0x1c0] sm:$0xff]   ;;  %vm14238_vm15 = vmmov %vm14236_vm14 }
  0xb5   :  { %14228 = vst [vmem:[#allocation90_spill] sm:$0xff] %v8801_v16  ;;  %v1228_v0 = vpack.c.bf16 %v8821_v52, %v1156_v35  ;;  %v1262_v47 = vpack.c.bf16 %v1193_v60, %v8813_v57  ;;  %v8854_v48 = vpack.c.bf16 %v8711_v55, %v8706_v17  ;;  %v8858_v3 = vpack.c.bf16 %v8821_v52, %v1160_v11 }
  0xb6   :  { %v14235_v35 = vrot.slane %v8711_v55, 1  ;;  %v1029_v60 = vrot.slane %v53_v13, 7  ;;  %v1149_v11 = vsel %vm14237_vm2, %v1094_v26, %v1095_v62  ;;  %v54_v55 = vld [vmem:[%s13587_s0 + $0x130] sm:$0xff]  ;;  %vm14240_vm2 = vmmov %vm14232_vm0  ;;  %v57_v26 = vld [vmem:[%s13587_s0 + $0x148] sm:$0xff]  ;;  %v1197_v34 = vsel %vm7851_vm8, %v8821_v52, %v1150_v32 }
  0xb7   :  { %2606 = vmatpush2.bf16.msra.mxu1 %v7320_v44  ;;  %v1028_v44 = vrot.slane %v52_v45, 7  ;;  %14234 = vst [vmem:[#allocation92_spill] sm:$0xff] %v8854_v48  ;;  %v1030_v6 = vrot.slane %v54_v55, 7  ;;  %v1099_v25 = vrot.slane %v57_v26, 1  ;;  %v1033_v32 = vrot.slane %v57_v26, 7 }
  0xb8   :  { %2607 = vmatprep.subr.bf16.mxu1 %v14100_v56 }
  0xb9   :  { %1865 = vmatmul.mubr.bf16.gmra.mxu0 %v8668_v4  ;;  %v1084_v17 = vsel %vm14236_vm14, %v8730_v21, %v1028_v44 }
  0xba   :  { %2154 = vmatmul.mubr.bf16.gmra.mxu1 %v8801_v16  ;;  %1872 = vmatprep.mubr.bf16.mxu0 %v8803_v7 }
  0xbb   :  { %2161 = vmatprep.mubr.bf16.mxu1 %v1229_v9  ;;  %2608 = vmatpush2.bf16.msra.mxu1 %v7321_v39  ;;  %v1152_v39 = vsel %vm14232_vm0, %v14235_v35, %v8784_v20  ;;  %v55_v35 = vld [vmem:[%s13587_s0 + $0x138] sm:$0xff]  ;;  %v1096_v20 = vrot.slane %v54_v55, 1 }
  0xbc   :  { %2609 = vmatprep.subr.bf16.mxu1 %v14100_v56  ;;  %v1195_v21 = vsel %vm7794_vm6, %v1087_v54, %v1152_v39  ;;  %v1031_v16 = vrot.slane %v55_v35, 7  ;;  %v8953_v59 = vpack.c.bf16 %v55_v35, %v54_v55 }
  0xbd   :  { %v8895_v54 = vpack.c.bf16 %v1195_v21, %v8773_v1  ;;  %v56_v1 = vld [vmem:[%s13587_s0 + $0x140] sm:$0xff]  ;;  %v1148_v50 = vsel %vm14232_vm0, %v1095_v62, %v1096_v20  ;;  %v59_v62 = vld [vmem:[%s13587_s0 + $0x158] sm:$0xff] }
  0xbe   :  { %v1032_v21 = vrot.slane %v56_v1, 7  ;;  %14246 = vst [vmem:[#allocation96_spill] sm:$0xff] %v8953_v59  ;;  %v1035_v18 = vrot.slane %v59_v62, 7 }
  0xbf   :  { %2610 = vmatpush2.bf16.msra.mxu1 %v7322_v5  ;;  %v1162_v5 = vsel %vm7805_vm7, %v1149_v11, %v1084_v17  ;;  %14239 = vst [vmem:[#allocation93_spill] sm:$0xff] %v8895_v54 }
  0xc0   :  { %4692 = vmatprep.subr.bf16.mxu1 %v14100_v56 }
  0xc1   :  { %1873 = vmatmul.mubr.bf16.gmra.mxu0 %v1228_v0  ;;  %v8886_v0 = vld [vmem:[%s13588_s1 + $0x238] sm:$0xff]  }
  0xc2   :  { %2162 = vmatmul.mubr.bf16.gmra.mxu1 %v1262_v47  ;;  %1880 = vmatprep.mubr.bf16.mxu0 %v8854_v48  ;;  %v1083_v47 = vsel %vm14238_vm15, %v1028_v44, %v1029_v60  ;;  %v1097_v48 = vrot.slane %v55_v35, 1  ;;  %v1082_v44 = vsel %vm14236_vm14, %v1029_v60, %v1030_v6  ;;  %vm14241_vm15 = vmmov %vm14236_vm14 }
  0xc3   :  { %2169 = vmatprep.mubr.bf16.mxu1 %v8858_v3  ;;  %7095 = vmatprep.subr.bf16.mxu0 %v8886_v0  ;;  %v8897_v39 = vpack.c.bf16 %v1083_v47, %v1162_v5  ;;  %v1098_v5 = vrot.slane %v56_v1, 1 }
  0xc4   :  { %v1147_v17 = vsel %vm14240_vm2, %v1096_v20, %v1097_v48  ;;  %vm14244_vm2 = vmmov %vm14232_vm0  ;;  %v1199_v20 = vsel %vm7921_vm10, %v1083_v47, %v1148_v50 }
  0xc5   :  { %v1164_v60 = vsel %vm7869_vm9, %v1147_v17, %v1082_v44  ;;  %v1145_v52 = vsel %vm14244_vm2, %v1098_v5, %v1099_v25  ;;  %vm14247_vm2 = vmmov %vm14232_vm0 }
  0xc9   :  { %1881 = vmatmul.mubr.bf16.gmra.mxu0 %v1229_v9  ;;  %v1081_v9 = vsel %vm14241_vm15, %v1030_v6, %v1031_v16  ;;  %v1080_v6 = vsel %vm14236_vm14, %v1031_v16, %v1032_v21  ;;  %vm14245_vm15 = vmmov %vm14236_vm14 }
  0xca   :  { %2170 = vmatmul.mubr.bf16.gmra.mxu1 %v8895_v54  ;;  %1888 = vmatprep.mubr.bf16.mxu0 %v8803_v7  ;;  %v8923_v7 = vpack.c.bf16 %v1197_v34, %v8813_v57  ;;  %v8925_v54 = vpack.c.bf16 %v53_v13, %v52_v45  ;;  %v8927_v4 = vpack.c.bf16 %v1081_v9, %v1164_v60  ;;  %v58_v57 = vld [vmem:[%s13587_s0 + $0x150] sm:$0xff]  ;;  %v1101_v34 = vrot.slane %v59_v62, 1 }
  0xcb   :  { %2177 = vmatprep.mubr.bf16.mxu1 %v8897_v39  ;;  %v1079_v16 = vsel %vm14245_vm15, %v1032_v21, %v1033_v32  ;;  %v1166_v45 = vsel %vm7937_vm11, %v1145_v52, %v1080_v6  ;;  %v1034_v13 = vrot.slane %v58_v57, 7  ;;  %v1100_v44 = vrot.slane %v58_v57, 1  ;;  %vm14248_vm15 = vmmov %vm14236_vm14 }
  0xcc   :  { %14242 = vst [vmem:[#allocation94_spill] sm:$0xff] %v8923_v7  ;;  %14243 = vst [vmem:[#allocation95_spill] sm:$0xff] %v8925_v54  ;;  %v8951_v60 = vpack.c.bf16 %v1199_v20, %v1149_v11  ;;  %v60_v11 = vld [vmem:[%s13587_s0 + $0x160] sm:$0xff] }
  0xcd   :  { %v1078_v50 = vsel %vm14236_vm14, %v1033_v32, %v1034_v13  ;;  %v1143_v47 = vsel %vm14247_vm2, %v1100_v44, %v1101_v34  ;;  %v1077_v35 = vsel %vm14248_vm15, %v1034_v13, %v1035_v18  ;;  %v1102_v32 = vrot.slane %v60_v11, 1  ;;  %vm14251_vm14 = vmmov %vm14247_vm2 }
  0xce   :  { %vm14252_vm2 = vmmov %vm14248_vm15 }
  0xcf   :  { %vm14253_vm15 = vmmov %vm14251_vm14 }
  0xd1   :  { %1889 = vmatmul.mubr.bf16.gmra.mxu0 %v8858_v3 }
  0xd2   :  { %2178 = vmatmul.mubr.bf16.gmra.mxu1 %v8923_v7  ;;  %1896 = vmatprep.mubr.bf16.mxu0 %v8925_v54  ;;  %v8955_v54 = vpack.c.bf16 %v1079_v16, %v1166_v45  ;;  %v1146_v7 = vsel %vm14232_vm0, %v1097_v48, %v1098_v5  ;;  %v61_v48 = vld [vmem:[%s13587_s0 + $0x168] sm:$0xff]  ;;  %vm14249_vm0 = vnez %v14079_v58  ;;  %v1036_v5 = vrot.slane %v60_v11, 7 }
  0xd3   :  { %2185 = vmatprep.mubr.bf16.mxu1 %v8927_v4  ;;  %v1201_v55 = vsel %vm7992_vm12, %v1081_v9, %v1146_v7  ;;  %v1168_v21 = vsel %vm14249_vm0, %v1143_v47, %v1078_v50  ;;  %v1103_v6 = vrot.slane %v61_v48, 1  ;;  %v8981_v45 = vpack.c.bf16 %v57_v26, %v56_v1 }
  0xd4   :  { %v8979_v20 = vpack.c.bf16 %v1201_v55, %v1147_v17  ;;  %v8983_v23 = vpack.c.bf16 %v1077_v35, %v1168_v21  ;;  %v1037_v38 = vrot.slane %v61_v48, 7  ;;  %v1076_v7 = vsel %vm14252_vm2, %v1035_v18, %v1036_v5  ;;  %v62_v17 = vld [vmem:[%s13587_s0 + $0x170] sm:$0xff] }
  0xd5   :  { %14250 = vst [vmem:[#allocation97_spill] sm:$0xff] %v8981_v45  ;;  %v1141_v9 = vsel %vm14253_vm15, %v1102_v32, %v1103_v6  ;;  %vm14255_vm15 = vnez %v14088_v43  ;;  %v1038_v13 = vrot.slane %v62_v17, 7  ;;  %v9009_v21 = vpack.c.bf16 %v59_v62, %v58_v57  ;;  %v65_v57 = vld [vmem:[%s13587_s0 + $0x188] sm:$0xff] }
  0xd6   :  { %v1075_v1 = vsel %vm14252_vm2, %v1036_v5, %v1037_v38  ;;  %v1170_v26 = vsel %vm14255_vm15, %v1141_v9, %v1076_v7  ;;  %vm14257_vm0 = vcmp.lt.s32.totalorder %v7575_v14, 7  ;;  %v1107_v7 = vrot.slane %v65_v57, 1 }
  0xd7   :  { %14256 = vst [vmem:[#allocation98_spill] sm:$0xff] %v9009_v21  ;;  %v9011_v58 = vpack.c.bf16 %v1075_v1, %v1170_v26  ;;  %vm14258_vm15 = vmmov %vm14257_vm0  ;;  %v9037_v26 = vpack.c.bf16 %v61_v48, %v60_v11  ;;  %v67_v11 = vld [vmem:[%s13587_s0 + $0x198] sm:$0xff] }
  0xd9   :  { %1897 = vmatmul.mubr.bf16.gmra.mxu0 %v8897_v39  ;;  %14261 = vst [vmem:[#allocation99_spill] sm:$0xff] %v9037_v26 }
  0xda   :  { %2186 = vmatmul.mubr.bf16.gmra.mxu1 %v8951_v60  ;;  %1904 = vmatprep.mubr.bf16.mxu0 %v8953_v59  ;;  %v1144_v59 = vsel %vm14251_vm14, %v1099_v25, %v1100_v44  ;;  %v63_v25 = vld [vmem:[%s13587_s0 + $0x178] sm:$0xff]  ;;  %vm14254_vm14 = vnez %v14085_v40  ;;  %v1104_v44 = vrot.slane %v62_v17, 1 }
  0xdb   :  { %2193 = vmatprep.mubr.bf16.mxu1 %v8955_v54  ;;  %v1203_v18 = vsel %vm14254_vm14, %v1079_v16, %v1144_v59  ;;  %v1105_v50 = vrot.slane %v63_v25, 1  ;;  %v1039_v40 = vrot.slane %v63_v25, 7  ;;  %v1074_v59 = vsel %vm14252_vm2, %v1037_v38, %v1038_v13 }
  0xdc   :  { %v9007_v55 = vpack.c.bf16 %v1203_v18, %v1145_v52  ;;  %v64_v52 = vld [vmem:[%s13587_s0 + $0x180] sm:$0xff]  ;;  %vm14262_vm14 = vcmp.lt.s32.totalorder %v7575_v14, 7 }
  0xdd   :  { %v1139_v16 = vsel %vm14258_vm15, %v1104_v44, %v1105_v50  ;;  %v1073_v62 = vsel %vm14252_vm2, %v1038_v13, %v1039_v40  ;;  %vm14260_vm15 = vnez %v14097_v28  ;;  %v1040_v5 = vrot.slane %v64_v52, 7 }
  0xe1   :  { %1905 = vmatmul.mubr.bf16.gmra.mxu0 %v8927_v4 }
  0xe2   :  { %2194 = vmatmul.mubr.bf16.gmra.mxu1 %v8979_v20  ;;  %1912 = vmatprep.mubr.bf16.mxu0 %v8981_v45  ;;  %v1142_v45 = vsel %vm14257_vm0, %v1101_v34, %v1102_v32  ;;  %vm14259_vm0 = vnez %v14094_v61  ;;  %v1172_v34 = vsel %vm14260_vm15, %v1139_v16, %v1074_v59  ;;  %v1106_v32 = vrot.slane %v64_v52, 1  ;;  %vm14263_vm15 = vmmov %vm14262_vm14 }
  0xe3   :  { %2201 = vmatprep.mubr.bf16.mxu1 %v8983_v23  ;;  %v1205_v38 = vsel %vm14259_vm0, %v1077_v35, %v1142_v45  ;;  %v9039_v43 = vpack.c.bf16 %v1073_v62, %v1172_v34  ;;  %v1041_v61 = vrot.slane %v65_v57, 7  ;;  %v1072_v35 = vsel %vm14252_vm2, %v1039_v40, %v1040_v5 }
  0xe4   :  { %v9035_v18 = vpack.c.bf16 %v1205_v38, %v1143_v47  ;;  %v1137_v45 = vsel %vm14263_vm15, %v1106_v32, %v1107_v7  ;;  %v66_v47 = vld [vmem:[%s13587_s0 + $0x190] sm:$0xff]  ;;  %vm14265_vm15 = vnez %v14109_v24  ;;  %v1109_v59 = vrot.slane %v67_v11, 1 }
  0xe5   :  { %v1071_v48 = vsel %vm14252_vm2, %v1040_v5, %v1041_v61  ;;  %v1042_v13 = vrot.slane %v66_v47, 7  ;;  %v9065_v34 = vpack.c.bf16 %v63_v25, %v62_v17  ;;  %vm14266_vm0 = vcmp.lt.s32.totalorder %v7575_v14, 7  ;;  %v9088_v17 = vld [vmem:[%s13587_s0 + $0x1a8] sm:$0xff] }
  0xe9   :  { %1913 = vmatmul.mubr.bf16.gmra.mxu0 %v8955_v54 }
  0xea   :  { %2202 = vmatmul.mubr.bf16.gmra.mxu1 %v9007_v55  ;;  %1920 = vmatprep.mubr.bf16.mxu0 %v9009_v21  ;;  %v1140_v21 = vsel %vm14262_vm14, %v1103_v6, %v1104_v44  ;;  %vm14264_vm14 = vnez %v14105_v42  ;;  %v1174_v6 = vsel %vm14265_vm15, %v1137_v45, %v1072_v35  ;;  %v1108_v44 = vrot.slane %v66_v47, 1  ;;  %vm14267_vm15 = vmmov %vm14266_vm0 }
  0xeb   :  { %2209 = vmatprep.mubr.bf16.mxu1 %v9011_v58  ;;  %v1207_v40 = vsel %vm14264_vm14, %v1075_v1, %v1140_v21  ;;  %v9067_v28 = vpack.c.bf16 %v1071_v48, %v1174_v6  ;;  %v1043_v42 = vrot.slane %v67_v11, 7  ;;  %v1070_v1 = vsel %vm14252_vm2, %v1041_v61, %v1042_v13 }
  0xec   :  { %v9063_v38 = vpack.c.bf16 %v1207_v40, %v1141_v9  ;;  %v9076_v21 = vsel %vm14267_vm15, %v1108_v44, %v1109_v59  ;;  %v9083_v9 = vld [vmem:[%s13587_s0 + $0x1a0] sm:$0xff]  ;;  %vm14269_vm15 = vmmov %vm14252_vm2  ;;  %vm14270_vm2 = vnez %v14119_v29  ;;  %v13776_v35 = vrot.slane %v9088_v17, 1 }
  0xed   :  { %v1069_v25 = vsel %vm14269_vm15, %v1042_v13, %v1043_v42  ;;  %v1044_v5 = vrot.slane %v9083_v9, 7  ;;  %v9103_v6 = vpack.c.bf16 %v65_v57, %v64_v52  ;;  %v9124_v57 = vld [vmem:[%s13587_s0 + $0x1b0] sm:$0xff] }
  0xef   :  { %14272 = vst [vmem:[#allocation101_spill] sm:$0xff] %v9103_v6 }
  0xf1   :  { %1921 = vmatmul.mubr.bf16.gmra.mxu0 %v8983_v23 }
  0xf2   :  { %2210 = vmatmul.mubr.bf16.gmra.mxu1 %v9035_v18  ;;  %1928 = vmatprep.mubr.bf16.mxu0 %v9037_v26  ;;  %v1138_v26 = vsel %vm14266_vm0, %v1105_v50, %v1106_v32  ;;  %vm14268_vm0 = vnez %v14114_v53  ;;  %v1176_v50 = vsel %vm14270_vm2, %v9076_v21, %v1070_v1  ;;  %v1110_v32 = vrot.slane %v9083_v9, 1 }
  0xf3   :  { %2217 = vmatprep.mubr.bf16.mxu1 %v9039_v43  ;;  %v1209_v61 = vsel %vm14268_vm0, %v1073_v62, %v1138_v26  ;;  %v9105_v24 = vpack.c.bf16 %v1069_v25, %v1176_v50  ;;  %vm14273_vm0 = vcmp.lt.s32.totalorder %v7575_v14, 7  ;;  %v1045_v26 = vrot.slane %v9088_v17, 7 }
  0xf4   :  { %v9101_v40 = vpack.c.bf16 %v1209_v61, %v1139_v16  ;;  %v1136_v62 = vsel %vm14273_vm0, %v1107_v7, %v1108_v44  ;;  %v1068_v1 = vsel %vm14269_vm15, %v1043_v42, %v1044_v5  ;;  %vm14274_vm2 = vmmov %vm14273_vm0  ;;  %v9129_v42 = vld [vmem:[%s13587_s0 + $0x1b8] sm:$0xff]  ;;  %vm14276_vm0 = vnez %v14126_v63 }
  0xf5   :  { %v9117_v16 = vsel %vm14274_vm2, %v1110_v32, %v13776_v35  ;;  %v1211_v61 = vsel %vm14276_vm0, %v1071_v48, %v1136_v62  ;;  %vm14277_vm2 = vmmov %vm14269_vm15  ;;  %vm14278_vm15 = vnez %v14135_v33  ;;  %v9148_v48 = vpack.c.bf16 %v67_v11, %v66_v47  ;;  %v9177_v47 = vld [vmem:[%s13587_s0 + $0x1c8] sm:$0xff] }
  0xf6   :  { %14271 = vst [vmem:[#allocation100_spill] sm:$0xff] %v9101_v40  ;;  %v9138_v35 = vsel %vm14277_vm2, %v1044_v5, %v1045_v26  ;;  %v1178_v29 = vsel %vm14278_vm15, %v9117_v16, %v1068_v1  ;;  %vm14280_vm2 = vcmp.lt.s32.totalorder %v7575_v14, 7  ;;  %v1047_v63 = vrot.slane %v9129_v42, 7 }
  0xf7   :  { %v1134_v1 = vsel %vm14280_vm2, %v1109_v59, %v1110_v32  ;;  %vm14281_vm15 = vcmp.lt.s32.totalorder %v7575_v14, 1  ;;  %vm14282_vm0 = vmmov %vm14280_vm2  ;;  %vm14285_vm2 = vnez %v14145_v36  ;;  %v14287_v36 = vrot.slane %v9088_v17, 1 }
  0xf9   :  { %1929 = vmatmul.mubr.bf16.gmra.mxu0 %v9011_v58 }
  0xfa   :  { %2218 = vmatmul.mubr.bf16.gmra.mxu1 %v9063_v38  ;;  %1936 = vmatprep.mubr.bf16.mxu0 %v9065_v34 }
  0xfb   :  { %2225 = vmatprep.mubr.bf16.mxu1 %v9067_v28 }
 0x101   :  { %v1746_v13 = vpop.f32.mrf.mxu0  ;;  %1937 = vmatmul.mubr.bf16.gmra.mxu0 %v9039_v43 }
 0x102   :  { %v2035_v52 = vpop.f32.mrf.mxu1  ;;  %2226 = vmatmul.mubr.bf16.gmra.mxu1 %v9101_v40  ;;  %1944 = vmatprep.mubr.bf16.mxu0 %v9103_v6  ;;  %v1046_v6 = vrot.slane %v9124_v57, 7 }
 0x103   :  { %v9131_v7 = vadd.f32 %v2035_v52, %v1746_v13  ;;  %v1748_v44 = vpop.f32.mrf.mxu0  ;;  %2233 = vmatprep.mubr.bf16.mxu1 %v9105_v24  ;;  %v1112_v13 = vrot.slane %v9124_v57, 1  ;;  %v13789_v52 = vrot.slane %v9129_v42, 1 }
 0x104   :  { %v2037_v50 = vpop.f32.mrf.mxu1 }
 0x105   :  { %14275 = vst [vmem:[#allocation102_spill] sm:$0xff] %v9131_v7  ;;  %v1749_v53 = vpop.f32.mrf.mxu0  ;;  %v9146_v7 = vpack.c.bf16 %v1211_v61, %v1137_v45  ;;  %v9153_v50 = vpack.c.bf16 %v9138_v35, %v1178_v29  ;;  %v1066_v45 = vsel %vm14281_vm15, %v1045_v26, %v1046_v6  ;;  %v9186_v61 = vsel %vm14281_vm15, %v1046_v6, %v1047_v63 }
 0x106   :  { %v2038_v44 = vpop.f32.mrf.mxu1  ;;  %vm14288_vm15 = vcmp.lt.s32.totalorder %v7575_v14, 7 }
 0x107   :  { %v9150_v62 = vadd.f32 %v2038_v44, %v1749_v53  ;;  %v1751_v5 = vpop.f32.mrf.mxu0  ;;  %v9165_v53 = vsel %vm14282_vm0, %v1112_v13, %v13789_v52  ;;  %vm14284_vm0 = vnez %v14141_v37 }
 0x108   :  { %v2040_v33 = vpop.f32.mrf.mxu1  ;;  %v1213_v32 = vsel %vm14284_vm0, %v1069_v25, %v1134_v1  ;;  %v1180_v44 = vsel %vm14285_vm2, %v9165_v53, %v1066_v45  ;;  %v9199_v25 = vpack.c.bf16 %v9088_v17, %v9083_v9  ;;  %vm14289_vm2 = vcmp.lt.s32.totalorder %v7575_v14, 1  ;;  %vm14291_vm0 = vmmov %vm14288_vm15 }
 0x109   :  { %14279 = vst [vmem:[#allocation103_spill] sm:$0xff] %v9150_v62  ;;  %v1754_v40 = vpop.f32.mrf.mxu0  ;;  %1945 = vmatmul.mubr.bf16.gmra.mxu0 %v9067_v28  ;;  %v9172_v33 = vld [vmem:[%s13587_s0 + $0x1c0] sm:$0xff]  ;;  %v9195_v37 = vpack.c.bf16 %v1213_v32, %v9076_v21  ;;  %v9204_v45 = vpack.c.bf16 %v9186_v61, %v1180_v44  ;;  %v14290_v32 = vrot.slane %v9177_v47, 1 }
 0x10a   :  { %v2043_v29 = vpop.f32.mrf.mxu1  ;;  %2234 = vmatmul.mubr.bf16.gmra.mxu1 %v9146_v7  ;;  %1952 = vmatprep.mubr.bf16.mxu0 %v9148_v48  ;;  %v1114_v52 = vrot.slane %v9172_v33, 1 }
 0x10b   :  { %v9179_v11 = vadd.f32 %v2043_v29, %v1754_v40  ;;  %v1756_v59 = vpop.f32.mrf.mxu0  ;;  %2241 = vmatprep.mubr.bf16.mxu1 %v9153_v50  ;;  %v1048_v40 = vrot.slane %v9172_v33, 7  ;;  %v1132_v29 = vsel %vm14288_vm15, %v14287_v36, %v1112_v13  ;;  %v9225_v36 = vld [vmem:[%s13587_s0 + $0x1d0] sm:$0xff]  ;;  %vm14294_vm15 = vnez %v14160_v8 }
 0x10c   :  { %v2045_v26 = vpop.f32.mrf.mxu1  ;;  %v9218_v44 = vsel %vm14291_vm0, %v1114_v52, %v14290_v32  ;;  %vm14293_vm0 = vnez %v14156_v22  ;;  %v14297_v8 = vrot.slane %v9129_v42, 1 }
 0x10d   :  { %14283 = vst [vmem:[#allocation104_spill] sm:$0xff] %v9179_v11  ;;  %v1757_v5 = vpop.f32.mrf.mxu0  ;;  %v1049_v11 = vrot.slane %v9177_v47, 7  ;;  %v1064_v9 = vsel %vm14289_vm2, %v1047_v63, %v1048_v40  ;;  %v9230_v63 = vld [vmem:[%s13587_s0 + $0x1d8] sm:$0xff] }
 0x10e   :  { %v2046_v59 = vpop.f32.mrf.mxu1  ;;  %v1182_v32 = vsel %vm14294_vm15, %v9218_v44, %v1064_v9  ;;  %v1051_v62 = vrot.slane %v9230_v63, 7  ;;  %vm14299_vm15 = vcmp.lt.s32.totalorder %v7575_v14, 1 }
 0x10f   :  { %v9201_v6 = vadd.f32 %v2046_v59, %v1757_v5  ;;  %v1759_v1 = vpop.f32.mrf.mxu0  ;;  %v1215_v59 = vsel %vm14293_vm0, %v9138_v35, %v1132_v29  ;;  %v9253_v35 = vpack.c.bf16 %v9129_v42, %v9124_v57 }
 0x110   :  { %v2048_v26 = vpop.f32.mrf.mxu1  ;;  %v9249_v22 = vpack.c.bf16 %v1215_v59, %v9117_v16 }
 0x111   :  { %14286 = vst [vmem:[#allocation105_spill] sm:$0xff] %v9201_v6  ;;  %v1762_v21 = vpop.f32.mrf.mxu0  ;;  %1953 = vmatmul.mubr.bf16.gmra.mxu0 %v9105_v24  ;;  %v9240_v26 = vsel %vm14289_vm2, %v1048_v40, %v1049_v11  ;;  %14295 = vst [vmem:[#allocation107_spill] sm:$0xff] %v9253_v35  ;;  %vm14298_vm2 = vcmp.lt.s32.totalorder %v7575_v14, 7 }
 0x112   :  { %v2051_v5 = vpop.f32.mrf.mxu1  ;;  %2242 = vmatmul.mubr.bf16.gmra.mxu1 %v9195_v37  ;;  %1960 = vmatprep.mubr.bf16.mxu0 %v9199_v25  ;;  %v9258_v9 = vpack.c.bf16 %v9240_v26, %v1182_v32  ;;  %vm14301_vm0 = vmmov %vm14298_vm2 }
 0x113   :  { %v9232_v17 = vadd.f32 %v2051_v5, %v1762_v21  ;;  %v1764_v13 = vpop.f32.mrf.mxu0  ;;  %2249 = vmatprep.mubr.bf16.mxu1 %v9204_v45  ;;  %v1116_v21 = vrot.slane %v9225_v36, 1  ;;  %v1050_v5 = vrot.slane %v9225_v36, 7 }
 0x114   :  { %v2053_v1 = vpop.f32.mrf.mxu1  ;;  %v1130_v13 = vsel %vm14298_vm2, %v14297_v8, %v1114_v52  ;;  %v9279_v8 = vld [vmem:[%s13587_s0 + $0x1e0] sm:$0xff]  ;;  %vm14302_vm2 = vnez %v14175_v19 }
 0x115   :  { %14292 = vst [vmem:[#allocation106_spill] sm:$0xff] %v9232_v17  ;;  %v1765_v6 = vpop.f32.mrf.mxu0  ;;  %v1062_v57 = vsel %vm14299_vm15, %v1049_v11, %v1050_v5  ;;  %v1217_v42 = vsel %vm14302_vm2, %v9186_v61, %v1130_v13  ;;  %v9296_v19 = vrot.slane %v9279_v8, 7  ;;  %v9299_v61 = vrot.slane %v8763_v12, 1 }
 0x116   :  { %v2054_v17 = vpop.f32.mrf.mxu1 }
 0x117   :  { %v9255_v40 = vadd.f32 %v2054_v17, %v1765_v6  ;;  %v1767_v29 = vpop.f32.mrf.mxu0  ;;  %v14300_v6 = vrot.slane %v9230_v63, 1  ;;  %14307 = vst [vmem:[#allocation111_spill] sm:$0xff] %v9296_v19  ;;  %14308 = vst [vmem:[#allocation112_spill] sm:$0xff] %v9299_v61 }
 0x118   :  { %v2056_v1 = vpop.f32.mrf.mxu1 }
 0x119   :  { %14296 = vst [vmem:[#allocation108_spill] sm:$0xff] %v9255_v40  ;;  %v1770_v16 = vpop.f32.mrf.mxu0  ;;  %1961 = vmatmul.mubr.bf16.gmra.mxu0 %v9153_v50  ;;  %v9272_v17 = vsel %vm14301_vm0, %v1116_v21, %v14300_v6  ;;  %vm14304_vm0 = vmmov %vm14299_vm15  ;;  %vm14305_vm15 = vnez %v14179_v2  ;;  %v9293_v40 = vrot.slane %v9279_v8, 1  ;;  %v14310_v2 = vrot.slane %v9177_v47, 1 }
 0x11a   :  { %v2059_v59 = vpop.f32.mrf.mxu1  ;;  %2250 = vmatmul.mubr.bf16.gmra.mxu1 %v9249_v22  ;;  %1968 = vmatprep.mubr.bf16.mxu0 %v9253_v35  ;;  %v1061_v29 = vsel %vm14304_vm0, %v1050_v5, %v1051_v62  ;;  %v1184_v1 = vsel %vm14305_vm15, %v9272_v17, %v1062_v57  ;;  %v9306_v5 = vpack.c.bf16 %v9177_v47, %v9172_v33  ;;  %vm14311_vm0 = vcmp.lt.s32.totalorder %v7575_v14, 7  ;;  %v9334_v47 = vld [vmem:[%s13587_s0 + $0x1f8] sm:$0xff] }
 0x11b   :  { %v9284_v52 = vadd.f32 %v2059_v59, %v1770_v16  ;;  %v1772_v11 = vpop.f32.mrf.mxu0  ;;  %2257 = vmatprep.mubr.bf16.mxu1 %v9258_v9  ;;  %14306 = vst [vmem:[#allocation110_spill] sm:$0xff] %v9293_v40  ;;  %v9302_v16 = vpack.c.bf16 %v1217_v42, %v9165_v53  ;;  %vm14312_vm15 = vcmp.lt.s32.totalorder %v7575_v14, 1  ;;  %vm14313_vm2 = vmmov %vm14311_vm0 }
 0x11c   :  { %v2061_v32 = vpop.f32.mrf.mxu1  ;;  %v9310_v11 = vpack.c.bf16 %v1061_v29, %v1184_v1  ;;  %v1060_v53 = vsel %vm14312_vm15, %v1051_v62, %v9296_v19  ;;  %v9324_v33 = vsel %vm14313_vm2, %v9293_v40, %v9299_v61  ;;  %vm14315_vm15 = vnez %v14192_v41 }
 0x11d   :  { %14303 = vst [vmem:[#allocation109_spill] sm:$0xff] %v9284_v52  ;;  %v1773_v6 = vpop.f32.mrf.mxu0  ;;  %v1128_v52 = vsel %vm14311_vm0, %v14310_v2, %v1116_v21  ;;  %14314 = vst [vmem:[#allocation114_spill] sm:$0xff] %v9324_v33  ;;  %v78_v2 = vld [vmem:[%s13587_s0 + $0x1f0] sm:$0xff]  ;;  %vm14316_vm2 = vcmp.lt.s32.totalorder %v7575_v14, 1  ;;  %vm14318_vm0 = vnez %v14196_v10 }
 0x11e   :  { %v2062_v13 = vpop.f32.mrf.mxu1  ;;  %v1219_v62 = vsel %vm14315_vm15, %v9240_v26, %v1128_v52  ;;  %v1120_v41 = vrot.slane %v78_v2, 1 }
 0x11f   :  { %v9308_v59 = vadd.f32 %v2062_v13, %v1773_v6  ;;  %v1775_v57 = vpop.f32.mrf.mxu0  ;;  %v9346_v13 = vsel %vm14316_vm2, %v9296_v19, %v8782_v46  ;;  %v9353_v52 = vpack.c.bf16 %v1219_v62, %v9218_v44  ;;  %vm14320_vm2 = vcmp.lt.s32.totalorder %v7575_v14, 7 }
 0x120   :  { %v2064_v32 = vpop.f32.mrf.mxu1  ;;  %14317 = vst [vmem:[#allocation115_spill] sm:$0xff] %v9346_v13  ;;  %v1186_v57 = vsel %vm14318_vm0, %v9324_v33, %v1060_v53  ;;  %v13810_v44 = vrot.slane %v9334_v47, 7  ;;  %vm14321_vm0 = vcmp.lt.s32.totalorder %v7575_v14, 1  ;;  %vm14323_vm15 = vmmov %vm14320_vm2 }
 0x121   :  { %14309 = vst [vmem:[#allocation113_spill] sm:$0xff] %v9308_v59  ;;  %v1778_v35 = vpop.f32.mrf.mxu0  ;;  %1969 = vmatmul.mubr.bf16.gmra.mxu0 %v9204_v45  ;;  %v1054_v59 = vrot.slane %v78_v2, 7  ;;  %v9362_v19 = vpack.c.bf16 %v9346_v13, %v1186_v57  ;;  %v14319_v2 = vrot.slane %v9230_v63, 1 }
 0x122   :  { %v2067_v42 = vpop.f32.mrf.mxu1  ;;  %2258 = vmatmul.mubr.bf16.gmra.mxu1 %v9302_v16  ;;  %1976 = vmatprep.mubr.bf16.mxu0 %v9306_v5 }
 0x123   :  { %v9339_v21 = vadd.f32 %v2067_v42, %v1778_v35  ;;  %v1780_v1 = vpop.f32.mrf.mxu0  ;;  %2265 = vmatprep.mubr.bf16.mxu1 %v9310_v11  ;;  %v9357_v42 = vpack.c.bf16 %v9230_v63, %v9225_v36  ;;  %v1126_v26 = vsel %vm14320_vm2, %v14319_v2, %v9293_v40  ;;  %v1059_v36 = vsel %vm14321_vm0, %v8782_v46, %v1054_v59 }
 0x124   :  { %v2069_v6 = vpop.f32.mrf.mxu1  ;;  %v1221_v63 = vsel %vm8673_vm13, %v1061_v29, %v1126_v26  ;;  %v9391_v2 = vsel %vm14321_vm0, %v1054_v59, %v13810_v44  ;;  %v9401_v26 = vpack.c.bf16 %v8763_v12, %v9279_v8 }
 0x125   :  { %v1781_v32 = vpop.f32.mrf.mxu0  ;;  %v9397_v29 = vpack.c.bf16 %v1221_v63, %v9272_v17 }
 0x126   :  { %v2070_v35 = vpop.f32.mrf.mxu1 }
 0x127   :  { %v9359_v1 = vadd.f32 %v2070_v35, %v1781_v32  ;;  %v1783_v6 = vpop.f32.mrf.mxu0  ;;  %v14322_v32 = vrot.slane %v9334_v47, 1 }
 0x128   :  { %v2072_v53 = vpop.f32.mrf.mxu1 }
 0x129   :  { %v1786_v62 = vpop.f32.mrf.mxu0  ;;  %1977 = vmatmul.mubr.bf16.gmra.mxu0 %v9258_v9  ;;  %v9378_v57 = vsel %vm14323_vm15, %v1120_v41, %v14322_v32  ;;  %vm14324_vm15 = vnez %v14212_v31 }
 0x12a   :  { %v2075_v35 = vpop.f32.mrf.mxu1  ;;  %2266 = vmatmul.mubr.bf16.gmra.mxu1 %v9353_v52  ;;  %1984 = vmatprep.mubr.bf16.mxu0 %v9357_v42  ;;  %v1188_v32 = vsel %vm14324_vm15, %v9378_v57, %v1059_v36  ;;  %v1125_v36 = vsel %vm14320_vm2, %v9299_v61, %v1120_v41  ;;  %v14334_v61 = vld [vmem:[#allocation15_spill] sm:$0xff] }
 0x12b   :  { %v9384_v6 = vadd.f32 %v2075_v35, %v1786_v62  ;;  %v1788_v53 = vpop.f32.mrf.mxu0  ;;  %2273 = vmatprep.mubr.bf16.mxu1 %v9362_v19 }
 0x12c   :  { %v2077_v46 = vpop.f32.mrf.mxu1  ;;  %v9406_v53 = vpack.c.bf16 %v9391_v2, %v1188_v32 }
 0x12d   :  { %v1789_v10 = vpop.f32.mrf.mxu0 }
 0x12e   :  { %v2078_v40 = vpop.f32.mrf.mxu1  ;;  %14325 = vst [vmem:[#allocation116_spill] sm:$0xff] %v9406_v53 }
 0x12f   :  { %v9403_v62 = vadd.f32 %v2078_v40, %v1789_v10  ;;  %v1791_v35 = vpop.f32.mrf.mxu0  ;;  %v1223_v40 = vsel %vm8752_vm1, %v9346_v13, %v1125_v36  ;;  %vm14412_vm1 = vcmp.lt.s32.totalorder %v7575_v14, 1 }
 0x130   :  { %v2080_v59 = vpop.f32.mrf.mxu1  ;;  %v9421_v32 = vpack.c.bf16 %v1223_v40, %v9324_v33 }
 0x131   :  { %v1794_v46 = vpop.f32.mrf.mxu0  ;;  %1985 = vmatmul.mubr.bf16.gmra.mxu0 %v9310_v11 }
 0x132   :  { %v2083_v17 = vpop.f32.mrf.mxu1  ;;  %2274 = vmatmul.mubr.bf16.gmra.mxu1 %v9397_v29  ;;  %1992 = vmatprep.mubr.bf16.mxu0 %v9401_v26 }
 0x133   :  { %v9414_v12 = vadd.f32 %v2083_v17, %v1794_v46  ;;  %v1796_v10 = vpop.f32.mrf.mxu0  ;;  %2281 = vmatprep.mubr.bf16.mxu1 %v9406_v53 }
 0x134   :  { %v2085_v8 = vpop.f32.mrf.mxu1 }
 0x135   :  { %v1797_v63 = vpop.f32.mrf.mxu0 }
 0x136   :  { %v2086_v41 = vpop.f32.mrf.mxu1 }
 0x137   :  { %v9423_v35 = vadd.f32 %v2086_v41, %v1797_v63  ;;  %v1799_v59 = vpop.f32.mrf.mxu0 }
 0x138   :  { %v2088_v44 = vpop.f32.mrf.mxu1  ;;  %v7324_v59 = vld [vmem:[%s13588_s1 + $0x230] sm:$0xff]  }
 0x139   :  { %14326 = vst [vmem:[#allocation117_spill] sm:$0xff] %v9423_v35  ;;  %v1802_v31 = vpop.f32.mrf.mxu0  ;;  %1993 = vmatmul.mubr.bf16.gmra.mxu0 %v9362_v19  ;;  %v14404_v35 = vld [vmem:[#allocation83_spill] sm:$0xff] }
 0x13a   :  { %v2091_v46 = vpop.f32.mrf.mxu1  ;;  %2282 = vmatmul.mubr.bf16.gmra.mxu1 %v9421_v32  ;;  %2322 = vmatprep.mubr.bf16.mxu0 %v7849_v49 }
 0x13b   :  { %v9428_v17 = vadd.f32 %v2091_v46, %v1802_v31  ;;  %v1804_v36 = vpop.f32.mrf.mxu0  ;;  %2611 = vmatprep.mubr.bf16.mxu1 %v7618_v27  ;;  %v14329_v31 = vld [vmem:[#allocation11_spill] sm:$0xff] }
 0x13c   :  { %v2093_v10 = vpop.f32.mrf.mxu1 }
 0x13d   :  { %14327 = vst [vmem:[#allocation118_spill] sm:$0xff] %v9428_v17  ;;  %v1805_v40 = vpop.f32.mrf.mxu0  ;;  %v14331_v10 = vld [vmem:[#allocation17_spill] sm:$0xff] }
 0x13e   :  { %v2094_v8 = vpop.f32.mrf.mxu1 }
 0x13f   :  { %v9431_v63 = vadd.f32 %v2094_v8, %v1805_v40  ;;  %v1807_v41 = vpop.f32.mrf.mxu0  ;;  %v14332_v40 = vld [vmem:[#allocation18_spill] sm:$0xff] }
 0x140   :  { %v2096_v44 = vpop.f32.mrf.mxu1  ;;  %v7325_v8 = vld [vmem:[%s13588_s1 + $0x228] sm:$0xff]  }
 0x141   :  { %14328 = vst [vmem:[#allocation119_spill] sm:$0xff] %v9431_v63  ;;  %v1810_v15 = vpop.f32.mrf.mxu0  ;;  %2323 = vmatmul.mubr.bf16.vlgmr.msra.gmra.mxu0 %v7789_v30 }
 0x142   :  { %v2099_v49 = vpop.f32.mrf.mxu1  ;;  %7096 = vmatpush3.bf16.msra.mxu0 %v8886_v0  ;;  %2612 = vmatmul.mubr.bf16.vlgmr.msra.gmra.mxu1 %v14329_v31 }
 0x143   :  { %v9439_v46 = vadd.f32 %v2099_v49, %v1810_v15  ;;  %v1812_v36 = vpop.f32.mrf.mxu0  ;;  %2330 = vmatprep.mubr.bf16.mxu0 %v14331_v10  ;;  %2619 = vmatprep.mubr.bf16.mxu1 %v14332_v40  ;;  %v7326_v49 = vld [vmem:[%s13588_s1 + $0x220] sm:$0xff]  }
 0x144   :  { %v2101_v41 = vpop.f32.mrf.mxu1  ;;  %7097 = vmatprep.subr.bf16.mxu0 %v7324_v59 }
 0x145   :  { %14330 = vst [vmem:[#allocation11_spill] sm:$0xff] %v9439_v46  ;;  %v1813_v44 = vpop.f32.mrf.mxu0  ;;  %v14335_v41 = vld [vmem:[#allocation22_spill] sm:$0xff] }
 0x146   :  { %v2102_v30 = vpop.f32.mrf.mxu1  ;;  %7098 = vmatpush3.bf16.msra.mxu0 %v7324_v59 }
 0x147   :  { %v9446_v51 = vadd.f32 %v2102_v30, %v1813_v44  ;;  %v1815_v0 = vpop.f32.mrf.mxu0  ;;  %7099 = vmatprep.subr.bf16.mxu0 %v7325_v8  ;;  %v14337_v44 = vld [vmem:[#allocation23_spill] sm:$0xff] }
 0x148   :  { %v2104_v15 = vpop.f32.mrf.mxu1  ;;  %v7327_v0 = vld [vmem:[%s13588_s1 + $0x218] sm:$0xff]  }
 0x149   :  { %14333 = vst [vmem:[#allocation18_spill] sm:$0xff] %v9446_v51  ;;  %v1818_v31 = vpop.f32.mrf.mxu0  ;;  %2331 = vmatmul.mubr.bf16.gmra.mxu0 %v7618_v27 }
 0x14a   :  { %v2107_v36 = vpop.f32.mrf.mxu1  ;;  %2620 = vmatmul.mubr.bf16.gmra.mxu1 %v14334_v61  ;;  %2338 = vmatprep.mubr.bf16.mxu0 %v14335_v41  ;;  %v14342_v41 = vld [vmem:[#allocation28_spill] sm:$0xff] }
 0x14b   :  { %v9454_v46 = vadd.f32 %v2107_v36, %v1818_v31  ;;  %v1820_v59 = vpop.f32.mrf.mxu0  ;;  %2627 = vmatprep.mubr.bf16.mxu1 %v14337_v44  ;;  %7100 = vmatpush3.bf16.msra.mxu0 %v7325_v8  ;;  %v14340_v8 = vld [vmem:[#allocation27_spill] sm:$0xff] }
 0x14c   :  { %v2109_v30 = vpop.f32.mrf.mxu1  ;;  %7101 = vmatprep.subr.bf16.mxu0 %v7326_v49  ;;  %v14339_v59 = vld [vmem:[#allocation19_spill] sm:$0xff] }
 0x14d   :  { %14336 = vst [vmem:[#allocation15_spill] sm:$0xff] %v9454_v46  ;;  %v1821_v15 = vpop.f32.mrf.mxu0 }
 0x14e   :  { %v2110_v51 = vpop.f32.mrf.mxu1 }
 0x14f   :  { %v9460_v27 = vadd.f32 %v2110_v51, %v1821_v15  ;;  %v1823_v63 = vpop.f32.mrf.mxu0  ;;  %7102 = vmatpush3.bf16.msra.mxu0 %v7326_v49 }
 0x150   :  { %v2112_v61 = vpop.f32.mrf.mxu1  ;;  %7103 = vmatprep.subr.bf16.mxu0 %v7327_v0 }
 0x151   :  { %14338 = vst [vmem:[#allocation23_spill] sm:$0xff] %v9460_v27  ;;  %v1826_v31 = vpop.f32.mrf.mxu0  ;;  %2339 = vmatmul.mubr.bf16.gmra.mxu0 %v14332_v40 }
 0x152   :  { %v2115_v36 = vpop.f32.mrf.mxu1  ;;  %2628 = vmatmul.mubr.bf16.gmra.mxu1 %v14339_v59  ;;  %2346 = vmatprep.mubr.bf16.mxu0 %v14340_v8  ;;  %v14344_v59 = vld [vmem:[#allocation24_spill] sm:$0xff] }
 0x153   :  { %v9465_v30 = vadd.f32 %v2115_v36, %v1826_v31  ;;  %v1828_v46 = vpop.f32.mrf.mxu0  ;;  %2635 = vmatprep.mubr.bf16.mxu1 %v14342_v41  ;;  %7104 = vmatpush3.bf16.msra.mxu0 %v7327_v0  ;;  %v14345_v8 = vld [vmem:[#allocation32_spill] sm:$0xff]  ;;  %v14347_v36 = vld [vmem:[#allocation33_spill] sm:$0xff] }
 0x154   :  { %v2117_v51 = vpop.f32.mrf.mxu1 }
 0x155   :  { %14341 = vst [vmem:[#allocation19_spill] sm:$0xff] %v9465_v30  ;;  %v1829_v15 = vpop.f32.mrf.mxu0 }
 0x156   :  { %v2118_v63 = vpop.f32.mrf.mxu1 }
 0x157   :  { %v9468_v49 = vadd.f32 %v2118_v63, %v1829_v15  ;;  %v1831_v61 = vpop.f32.mrf.mxu0 }
 0x158   :  { %v2120_v27 = vpop.f32.mrf.mxu1 }
 0x159   :  { %14343 = vst [vmem:[#allocation28_spill] sm:$0xff] %v9468_v49  ;;  %v1834_v10 = vpop.f32.mrf.mxu0  ;;  %2347 = vmatmul.mubr.bf16.gmra.mxu0 %v14337_v44  ;;  %v14349_v49 = vld [vmem:[#allocation29_spill] sm:$0xff] }
 0x15a   :  { %v2123_v40 = vpop.f32.mrf.mxu1  ;;  %2636 = vmatmul.mubr.bf16.gmra.mxu1 %v14344_v59  ;;  %2354 = vmatprep.mubr.bf16.mxu0 %v14345_v8  ;;  %v14350_v59 = vld [vmem:[#allocation37_spill] sm:$0xff] }
 0x15b   :  { %v9473_v31 = vadd.f32 %v2123_v40, %v1834_v10  ;;  %v1836_v46 = vpop.f32.mrf.mxu0  ;;  %2643 = vmatprep.mubr.bf16.mxu1 %v14347_v36 }
 0x15c   :  { %v2125_v0 = vpop.f32.mrf.mxu1  ;;  %v14352_v46 = vld [vmem:[#allocation38_spill] sm:$0xff] }
 0x15d   :  { %14346 = vst [vmem:[#allocation24_spill] sm:$0xff] %v9473_v31  ;;  %v1837_v51 = vpop.f32.mrf.mxu0 }
 0x15e   :  { %v2126_v30 = vpop.f32.mrf.mxu1 }
 0x15f   :  { %v9476_v15 = vadd.f32 %v2126_v30, %v1837_v51  ;;  %v1839_v63 = vpop.f32.mrf.mxu0  ;;  %v7328_v30 = vld [vmem:[%s13588_s1 + $0x210] sm:$0xff]  }
 0x160   :  { %v2128_v27 = vpop.f32.mrf.mxu1  ;;  %7105 = vmatprep.subr.bf16.mxu0 %v7328_v30 }
 0x161   :  { %14348 = vst [vmem:[#allocation33_spill] sm:$0xff] %v9476_v15  ;;  %v1842_v61 = vpop.f32.mrf.mxu0  ;;  %2355 = vmatmul.mubr.bf16.gmra.mxu0 %v14342_v41 }
 0x162   :  { %v2131_v44 = vpop.f32.mrf.mxu1  ;;  %2644 = vmatmul.mubr.bf16.gmra.mxu1 %v14349_v49  ;;  %2362 = vmatprep.mubr.bf16.mxu0 %v14350_v59 }
 0x163   :  { %v9481_v10 = vadd.f32 %v2131_v44, %v1842_v61  ;;  %v1844_v40 = vpop.f32.mrf.mxu0  ;;  %2651 = vmatprep.mubr.bf16.mxu1 %v14352_v46  ;;  %7106 = vmatpush3.bf16.msra.mxu0 %v7328_v30  ;;  %v14354_v44 = vld [vmem:[#allocation34_spill] sm:$0xff] }
 0x164   :  { %v2133_v0 = vpop.f32.mrf.mxu1  ;;  %v14355_v40 = vld [vmem:[#allocation43_spill] sm:$0xff] }
 0x165   :  { %14351 = vst [vmem:[#allocation29_spill] sm:$0xff] %v9481_v10  ;;  %v1845_v51 = vpop.f32.mrf.mxu0  ;;  %v14357_v0 = vld [vmem:[#allocation44_spill] sm:$0xff] }
 0x166   :  { %v2134_v63 = vpop.f32.mrf.mxu1 }
 0x167   :  { %v9487_v41 = vadd.f32 %v2134_v63, %v1845_v51  ;;  %v1847_v27 = vpop.f32.mrf.mxu0 }
 0x168   :  { %v2136_v49 = vpop.f32.mrf.mxu1 }
 0x169   :  { %14353 = vst [vmem:[#allocation38_spill] sm:$0xff] %v9487_v41  ;;  %v1850_v15 = vpop.f32.mrf.mxu0  ;;  %2363 = vmatmul.mubr.bf16.gmra.mxu0 %v14347_v36  ;;  %v14359_v41 = vld [vmem:[#allocation39_spill] sm:$0xff] }
 0x16a   :  { %v2139_v61 = vpop.f32.mrf.mxu1  ;;  %2652 = vmatmul.mubr.bf16.gmra.mxu1 %v14354_v44  ;;  %2370 = vmatprep.mubr.bf16.mxu0 %v14355_v40  ;;  %v14360_v44 = vld [vmem:[#allocation48_spill] sm:$0xff] }
 0x16b   :  { %v9492_v10 = vadd.f32 %v2139_v61, %v1850_v15  ;;  %v1852_v31 = vpop.f32.mrf.mxu0  ;;  %2659 = vmatprep.mubr.bf16.mxu1 %v14357_v0  ;;  %v14362_v61 = vld [vmem:[#allocation49_spill] sm:$0xff] }
 0x16c   :  { %v2141_v59 = vpop.f32.mrf.mxu1 }
 0x16d   :  { %14356 = vst [vmem:[#allocation34_spill] sm:$0xff] %v9492_v10  ;;  %v1853_v8 = vpop.f32.mrf.mxu0 }
 0x16e   :  { %v2142_v30 = vpop.f32.mrf.mxu1 }
 0x16f   :  { %v9495_v51 = vadd.f32 %v2142_v30, %v1853_v8  ;;  %v1855_v63 = vpop.f32.mrf.mxu0 }
 0x170   :  { %v2144_v27 = vpop.f32.mrf.mxu1 }
 0x171   :  { %14358 = vst [vmem:[#allocation44_spill] sm:$0xff] %v9495_v51  ;;  %v1858_v49 = vpop.f32.mrf.mxu0  ;;  %2371 = vmatmul.mubr.bf16.gmra.mxu0 %v14352_v46  ;;  %v14364_v51 = vld [vmem:[#allocation46_spill] sm:$0xff] }
 0x172   :  { %v2147_v36 = vpop.f32.mrf.mxu1  ;;  %2660 = vmatmul.mubr.bf16.gmra.mxu1 %v14359_v41  ;;  %2378 = vmatprep.mubr.bf16.mxu0 %v14360_v44  ;;  %v14365_v41 = vld [vmem:[#allocation54_spill] sm:$0xff] }
 0x173   :  { %v9500_v15 = vadd.f32 %v2147_v36, %v1858_v49  ;;  %v1860_v31 = vpop.f32.mrf.mxu0  ;;  %2667 = vmatprep.mubr.bf16.mxu1 %v14362_v61 }
 0x174   :  { %v2149_v59 = vpop.f32.mrf.mxu1  ;;  %v14367_v31 = vld [vmem:[#allocation55_spill] sm:$0xff] }
 0x175   :  { %14361 = vst [vmem:[#allocation39_spill] sm:$0xff] %v9500_v15  ;;  %v1861_v10 = vpop.f32.mrf.mxu0 }
 0x176   :  { %v2150_v40 = vpop.f32.mrf.mxu1 }
 0x177   :  { %v9503_v8 = vadd.f32 %v2150_v40, %v1861_v10  ;;  %v1863_v30 = vpop.f32.mrf.mxu0 }
 0x178   :  { %v2152_v63 = vpop.f32.mrf.mxu1 }
 0x179   :  { %14363 = vst [vmem:[#allocation49_spill] sm:$0xff] %v9503_v8  ;;  %v1866_v27 = vpop.f32.mrf.mxu0  ;;  %2379 = vmatmul.mubr.bf16.gmra.mxu0 %v14357_v0  ;;  %v14369_v8 = vld [vmem:[#allocation50_spill] sm:$0xff] }
 0x17a   :  { %v2155_v46 = vpop.f32.mrf.mxu1  ;;  %2668 = vmatmul.mubr.bf16.gmra.mxu1 %v14364_v51  ;;  %2386 = vmatprep.mubr.bf16.mxu0 %v14365_v41  ;;  %v14370_v51 = vld [vmem:[#allocation59_spill] sm:$0xff] }
 0x17b   :  { %v9508_v49 = vadd.f32 %v2155_v46, %v1866_v27  ;;  %v1868_v36 = vpop.f32.mrf.mxu0  ;;  %2675 = vmatprep.mubr.bf16.mxu1 %v14367_v31  ;;  %v7329_v27 = vld [vmem:[%s13588_s1 + $0x208] sm:$0xff]  }
 0x17c   :  { %v2157_v59 = vpop.f32.mrf.mxu1  ;;  %7107 = vmatprep.subr.bf16.mxu0 %v7329_v27 }
 0x17d   :  { %14366 = vst [vmem:[#allocation46_spill] sm:$0xff] %v9508_v49  ;;  %v1869_v15 = vpop.f32.mrf.mxu0  ;;  %v14372_v59 = vld [vmem:[#allocation60_spill] sm:$0xff]  ;;  %7108 = vmatpush3.bf16.msra.mxu0 %v7329_v27 }
 0x17e   :  { %v2158_v44 = vpop.f32.mrf.mxu1 }
 0x17f   :  { %v9511_v10 = vadd.f32 %v2158_v44, %v1869_v15  ;;  %v1871_v40 = vpop.f32.mrf.mxu0 }
 0x180   :  { %v2160_v30 = vpop.f32.mrf.mxu1 }
 0x181   :  { %14368 = vst [vmem:[#allocation55_spill] sm:$0xff] %v9511_v10  ;;  %v1874_v63 = vpop.f32.mrf.mxu0  ;;  %2387 = vmatmul.mubr.bf16.gmra.mxu0 %v14362_v61 }
 0x182   :  { %v2163_v0 = vpop.f32.mrf.mxu1  ;;  %2676 = vmatmul.mubr.bf16.gmra.mxu1 %v14369_v8  ;;  %2394 = vmatprep.mubr.bf16.mxu0 %v14370_v51  ;;  %v14374_v51 = vld [vmem:[#allocation56_spill] sm:$0xff] }
 0x183   :  { %v9519_v46 = vadd.f32 %v2163_v0, %v1874_v63  ;;  %v1876_v36 = vpop.f32.mrf.mxu0  ;;  %2683 = vmatprep.mubr.bf16.mxu1 %v14372_v59  ;;  %v14375_v63 = vld [vmem:[#allocation62_spill] sm:$0xff] }
 0x184   :  { %v2165_v44 = vpop.f32.mrf.mxu1 }
 0x185   :  { %14371 = vst [vmem:[#allocation50_spill] sm:$0xff] %v9519_v46  ;;  %v1877_v15 = vpop.f32.mrf.mxu0  ;;  %v14377_v44 = vld [vmem:[#allocation63_spill] sm:$0xff] }
 0x186   :  { %v2166_v40 = vpop.f32.mrf.mxu1 }
 0x187   :  { %v9522_v61 = vadd.f32 %v2166_v40, %v1877_v15  ;;  %v1879_v30 = vpop.f32.mrf.mxu0 }
 0x188   :  { %v2168_v8 = vpop.f32.mrf.mxu1 }
 0x189   :  { %14373 = vst [vmem:[#allocation60_spill] sm:$0xff] %v9522_v61  ;;  %v1882_v10 = vpop.f32.mrf.mxu0  ;;  %2395 = vmatmul.mubr.bf16.gmra.mxu0 %v14367_v31  ;;  %v14379_v61 = vld [vmem:[#allocation61_spill] sm:$0xff] }
 0x18a   :  { %v2171_v49 = vpop.f32.mrf.mxu1  ;;  %2684 = vmatmul.mubr.bf16.gmra.mxu1 %v14374_v51  ;;  %2402 = vmatprep.mubr.bf16.mxu0 %v14375_v63  ;;  %v14380_v51 = vld [vmem:[#allocation70_spill] sm:$0xff] }
 0x18b   :  { %v9527_v0 = vadd.f32 %v2171_v49, %v1882_v10  ;;  %v1884_v36 = vpop.f32.mrf.mxu0  ;;  %2691 = vmatprep.mubr.bf16.mxu1 %v14377_v44 }
 0x18c   :  { %v2173_v46 = vpop.f32.mrf.mxu1  ;;  %v14382_v36 = vld [vmem:[#allocation71_spill] sm:$0xff] }
 0x18d   :  { %14376 = vst [vmem:[#allocation56_spill] sm:$0xff] %v9527_v0  ;;  %v1885_v27 = vpop.f32.mrf.mxu0 }
 0x18e   :  { %v2174_v41 = vpop.f32.mrf.mxu1 }
 0x18f   :  { %v9530_v15 = vadd.f32 %v2174_v41, %v1885_v27  ;;  %v1887_v40 = vpop.f32.mrf.mxu0 }
 0x190   :  { %v2176_v30 = vpop.f32.mrf.mxu1 }
 0x191   :  { %14378 = vst [vmem:[#allocation63_spill] sm:$0xff] %v9530_v15  ;;  %v1890_v8 = vpop.f32.mrf.mxu0  ;;  %2403 = vmatmul.mubr.bf16.gmra.mxu0 %v14372_v59  ;;  %v14384_v15 = vld [vmem:[#allocation64_spill] sm:$0xff] }
 0x192   :  { %v2179_v31 = vpop.f32.mrf.mxu1  ;;  %2692 = vmatmul.mubr.bf16.gmra.mxu1 %v14379_v61  ;;  %2410 = vmatprep.mubr.bf16.mxu0 %v14380_v51  ;;  %v14385_v61 = vld [vmem:[#allocation78_spill] sm:$0xff] }
 0x193   :  { %v9535_v49 = vadd.f32 %v2179_v31, %v1890_v8  ;;  %v1892_v10 = vpop.f32.mrf.mxu0  ;;  %2699 = vmatprep.mubr.bf16.mxu1 %v14382_v36 }
 0x194   :  { %v2181_v46 = vpop.f32.mrf.mxu1  ;;  %v14387_v10 = vld [vmem:[#allocation79_spill] sm:$0xff] }
 0x195   :  { %14381 = vst [vmem:[#allocation61_spill] sm:$0xff] %v9535_v49  ;;  %v1893_v0 = vpop.f32.mrf.mxu0 }
 0x196   :  { %v2182_v63 = vpop.f32.mrf.mxu1 }
 0x197   :  { %v9538_v41 = vadd.f32 %v2182_v63, %v1893_v0  ;;  %v1895_v27 = vpop.f32.mrf.mxu0 }
 0x198   :  { %v2184_v40 = vpop.f32.mrf.mxu1 }
 0x199   :  { %14383 = vst [vmem:[#allocation71_spill] sm:$0xff] %v9538_v41  ;;  %v1898_v30 = vpop.f32.mrf.mxu0  ;;  %2411 = vmatmul.mubr.bf16.gmra.mxu0 %v14377_v44  ;;  %v114_v40 = vadd.s32 264, %v7575_v14  ;;  %v14389_v41 = vld [vmem:[#allocation72_spill] sm:$0xff] }
 0x19a   :  { %v2187_v59 = vpop.f32.mrf.mxu1  ;;  %2700 = vmatmul.mubr.bf16.gmra.mxu1 %v14384_v15  ;;  %2418 = vmatprep.mubr.bf16.mxu0 %v14385_v61 }
 0x19b   :  { %v9543_v8 = vadd.f32 %v2187_v59, %v1898_v30  ;;  %v1900_v31 = vpop.f32.mrf.mxu0  ;;  %2707 = vmatprep.mubr.bf16.mxu1 %v14387_v10  ;;  %v14390_v30 = vld [vmem:[#allocation85_spill] sm:$0xff] }
 0x19c   :  { %v2189_v46 = vpop.f32.mrf.mxu1  ;;  %v7330_v59 = vld [vmem:[%s13588_s1 + $0x200] sm:$0xff]  }
 0x19d   :  { %14386 = vst [vmem:[#allocation64_spill] sm:$0xff] %v9543_v8  ;;  %v1901_v49 = vpop.f32.mrf.mxu0  ;;  %7109 = vmatprep.subr.bf16.mxu0 %v7330_v59  ;;  %v7412_v8 = vld [vmem:[%s13587_s0 + $0xf0] sm:$0xff] }
 0x19e   :  { %v2190_v51 = vpop.f32.mrf.mxu1  ;;  %7110 = vmatpush3.bf16.msra.mxu0 %v7330_v59  ;;  %v14397_v59 = vld [vmem:[#allocation68_spill] sm:$0xff] }
 0x19f   :  { %v9546_v63 = vadd.f32 %v2190_v51, %v1901_v49  ;;  %v1903_v0 = vpop.f32.mrf.mxu0  ;;  %v14392_v49 = vld [vmem:[#allocation86_spill] sm:$0xff]  ;;  %4981 = vmatprep.subr.bf16.mxu0 %v14100_v56 }
 0x1a0   :  { %v2192_v27 = vpop.f32.mrf.mxu1  ;;  %v352_v0 = vand.u32 15, %v114_v40  ;;  %v14394_v40 = vmov 0 }
 0x1a1   :  { %14388 = vst [vmem:[#allocation79_spill] sm:$0xff] %v9546_v63  ;;  %v1906_v44 = vpop.f32.mrf.mxu0  ;;  %2419 = vmatmul.mubr.bf16.gmra.mxu0 %v14382_v36 }
 0x1a2   :  { %v2195_v15 = vpop.f32.mrf.mxu1  ;;  %2708 = vmatmul.mubr.bf16.gmra.mxu1 %v14389_v41  ;;  %2426 = vmatprep.mubr.bf16.mxu0 %v14390_v30  ;;  %vm9567_vm0 = vcmp.eq.s32.totalorder %v352_v0, 15  ;;  %v14400_v30 = vld [vmem:[#allocation80_spill] sm:$0xff] }
 0x1a3   :  { %v9555_v31 = vadd.f32 %v2195_v15, %v1906_v44  ;;  %v1908_v51 = vpop.f32.mrf.mxu0  ;;  %2715 = vmatprep.mubr.bf16.mxu1 %v14392_v49  ;;  %v7413_v44 = vld [vmem:[%s13587_s0 + $0xf8] sm:$0xff]  ;;  %v14395_v40 = vsel %vm9567_vm0, 4294967295, %v14394_v40 }
 0x1a4   :  { %v2197_v46 = vpop.f32.mrf.mxu1  ;;  %v1005_v15 = vpack.c.bf16 %v7413_v44, %v7412_v8  ;;  %14396 = vst [vmem:[#allocation120_spill] sm:$0xff] %v14395_v40  ;;  %v14401_v8 = vld [vmem:[#allocation90_spill] sm:$0xff] }
 0x1a5   :  { %14391 = vst [vmem:[#allocation72_spill] sm:$0xff] %v9555_v31  ;;  %v1909_v27 = vpop.f32.mrf.mxu0  ;;  %v14398_v46 = vld [vmem:[#allocation76_spill] sm:$0xff] }
 0x1a6   :  { %v2198_v36 = vpop.f32.mrf.mxu1  ;;  %v14399_v31 = vrot.slane %v14398_v46, 1 }
 0x1a7   :  { %v9559_v41 = vadd.f32 %v2198_v36, %v1909_v27  ;;  %v1911_v63 = vpop.f32.mrf.mxu0  ;;  %v115_v27 = vadd.s32 272, %v7575_v14 }
 0x1a8   :  { %v2200_v51 = vpop.f32.mrf.mxu1  ;;  %v867_v63 = vsel %vm14320_vm2, %v14399_v31, %v14397_v59 }
 0x1a9   :  { %14393 = vst [vmem:[#allocation86_spill] sm:$0xff] %v9559_v41  ;;  %v1914_v36 = vpop.f32.mrf.mxu0  ;;  %2427 = vmatmul.mubr.bf16.gmra.mxu0 %v14387_v10  ;;  %v14403_v51 = vld [vmem:[#allocation84_spill] sm:$0xff]  ;;  %v359_v31 = vand.u32 15, %v115_v27 }
 0x1aa   :  { %v2203_v41 = vpop.f32.mrf.mxu1  ;;  %2716 = vmatmul.mubr.bf16.gmra.mxu1 %v14400_v30  ;;  %2434 = vmatprep.mubr.bf16.mxu0 %v14401_v8  ;;  %v969_v61 = vsel %vm9567_vm0, %v14403_v51, %v867_v63 }
 0x1ab   :  { %v9580_v0 = vadd.f32 %v2203_v41, %v1914_v36  ;;  %v1916_v44 = vpop.f32.mrf.mxu0  ;;  %2723 = vmatprep.mubr.bf16.mxu1 %v1005_v15  ;;  %v9586_v33 = vpack.c.bf16 %v969_v61, %v14404_v35  ;;  %vm9590_vm2 = vcmp.eq.s32.totalorder %v359_v31, 0  ;;  %v14407_v41 = vmov 0  ;;  %v14410_v36 = vld [vmem:[#allocation67_spill] sm:$0xff] }
 0x1ac   :  { %v2205_v17 = vpop.f32.mrf.mxu1  ;;  %v14408_v41 = vsel %vm9590_vm2, 4294967295, %v14407_v41  ;;  %v14411_v44 = vrot.slane %v14398_v46, 7  ;;  %v14413_v35 = vld [vmem:[#allocation87_spill] sm:$0xff] }
 0x1ad   :  { %14402 = vst [vmem:[#allocation68_spill] sm:$0xff] %v9580_v0  ;;  %v1917_v59 = vpop.f32.mrf.mxu0  ;;  %14405 = vst [vmem:[#allocation76_spill] sm:$0xff] %v9586_v33  ;;  %v14415_v61 = vld [vmem:[#allocation75_spill] sm:$0xff] }
 0x1ae   :  { %v2206_v13 = vpop.f32.mrf.mxu1  ;;  %14409 = vst [vmem:[#allocation90_spill] sm:$0xff] %v14408_v41  ;;  %v800_v17 = vsel %vm14412_vm1, %v14411_v44, %v14410_v36  ;;  %vm14449_vm1 = vcmp.lt.s32.totalorder %v7575_v14, 7  ;;  %v14463_v41 = vld [vmem:[#allocation27_spill] sm:$0xff] }
 0x1af   :  { %v9588_v10 = vadd.f32 %v2206_v13, %v1917_v59  ;;  %v1919_v30 = vpop.f32.mrf.mxu0  ;;  %v934_v46 = vsel %vm9590_vm2, %v14415_v61, %v800_v17 }
 0x1b0   :  { %v2208_v53 = vpop.f32.mrf.mxu1  ;;  %v14416_v30 = vld [vmem:[#allocation77_spill] sm:$0xff] }
 0x1b1   :  { %14406 = vst [vmem:[#allocation80_spill] sm:$0xff] %v9588_v10  ;;  %v1922_v63 = vpop.f32.mrf.mxu0  ;;  %2435 = vmatmul.mubr.bf16.gmra.mxu0 %v14392_v49  ;;  %v989_v36 = vpack.c.bf16 %v14416_v30, %v934_v46 }
 0x1b2   :  { %v2211_v27 = vpop.f32.mrf.mxu1  ;;  %2724 = vmatmul.mubr.bf16.gmra.mxu1 %v14413_v35  ;;  %2442 = vmatprep.mubr.bf16.mxu0 %v9586_v33 }
 0x1b3   :  { %v9602_v13 = vadd.f32 %v2211_v27, %v1922_v63  ;;  %v1924_v53 = vpop.f32.mrf.mxu0  ;;  %2731 = vmatprep.mubr.bf16.mxu1 %v14392_v49  ;;  %v14417_v27 = vld [vmem:[#allocation93_spill] sm:$0xff] }
 0x1b4   :  { %v2213_v51 = vpop.f32.mrf.mxu1 }
 0x1b5   :  { %14414 = vst [vmem:[#allocation84_spill] sm:$0xff] %v9602_v13  ;;  %v1925_v31 = vpop.f32.mrf.mxu0  ;;  %v14418_v13 = vld [vmem:[#allocation91_spill] sm:$0xff] }
 0x1b6   :  { %v2214_v59 = vpop.f32.mrf.mxu1 }
 0x1b7   :  { %v9609_v44 = vadd.f32 %v2214_v59, %v1925_v31  ;;  %v1927_v10 = vpop.f32.mrf.mxu0  ;;  %v14419_v59 = vld [vmem:[#allocation92_spill] sm:$0xff] }
 0x1b8   :  { %v2216_v35 = vpop.f32.mrf.mxu1 }
 0x1b9   :  { %v1930_v0 = vpop.f32.mrf.mxu0  ;;  %2443 = vmatmul.mubr.bf16.gmra.mxu0 %v1005_v15 }
 0x1ba   :  { %v2219_v63 = vpop.f32.mrf.mxu1  ;;  %2732 = vmatmul.mubr.bf16.gmra.mxu1 %v989_v36  ;;  %2450 = vmatprep.mubr.bf16.mxu0 %v14417_v27  ;;  %v14420_v36 = vld [vmem:[#allocation94_spill] sm:$0xff] }
 0x1bb   :  { %v9612_v49 = vadd.f32 %v2219_v63, %v1930_v0  ;;  %v1932_v53 = vpop.f32.mrf.mxu0  ;;  %2739 = vmatprep.mubr.bf16.mxu1 %v14418_v13  ;;  %v14422_v63 = vld [vmem:[#allocation95_spill] sm:$0xff] }
 0x1bc   :  { %v2221_v17 = vpop.f32.mrf.mxu1 }
 0x1bd   :  { %v1933_v51 = vpop.f32.mrf.mxu0 }
 0x1be   :  { %v2222_v61 = vpop.f32.mrf.mxu1 }
 0x1bf   :  { %v9615_v33 = vadd.f32 %v2222_v61, %v1933_v51  ;;  %v1935_v46 = vpop.f32.mrf.mxu0 }
 0x1c0   :  { %v2224_v31 = vpop.f32.mrf.mxu1 }
 0x1c1   :  { %v1938_v10 = vpop.f32.mrf.mxu0  ;;  %2451 = vmatmul.mubr.bf16.gmra.mxu0 %v14419_v59 }
 0x1c2   :  { %v2227_v15 = vpop.f32.mrf.mxu1  ;;  %2740 = vmatmul.mubr.bf16.gmra.mxu1 %v8858_v3  ;;  %2458 = vmatprep.mubr.bf16.mxu0 %v14420_v36 }
 0x1c3   :  { %v9620_v0 = vadd.f32 %v2227_v15, %v1938_v10  ;;  %v1940_v35 = vpop.f32.mrf.mxu0  ;;  %2747 = vmatprep.mubr.bf16.mxu1 %v14422_v63  ;;  %v14424_v15 = vld [vmem:[#allocation96_spill] sm:$0xff] }
 0x1c4   :  { %v2229_v27 = vpop.f32.mrf.mxu1 }
 0x1c5   :  { %14421 = vst [vmem:[#allocation83_spill] sm:$0xff] %v9620_v0  ;;  %v1941_v53 = vpop.f32.mrf.mxu0 }
 0x1c6   :  { %v2230_v17 = vpop.f32.mrf.mxu1 }
 0x1c7   :  { %v9623_v61 = vadd.f32 %v2230_v17, %v1941_v53  ;;  %v1943_v51 = vpop.f32.mrf.mxu0 }
 0x1c8   :  { %v2232_v46 = vpop.f32.mrf.mxu1 }
 0x1c9   :  { %v1946_v31 = vpop.f32.mrf.mxu0  ;;  %2459 = vmatmul.mubr.bf16.gmra.mxu0 %v14418_v13 }
 0x1ca   :  { %v2235_v59 = vpop.f32.mrf.mxu1  ;;  %2748 = vmatmul.mubr.bf16.gmra.mxu1 %v8897_v39  ;;  %2466 = vmatprep.mubr.bf16.mxu0 %v8951_v60 }
 0x1cb   :  { %v9628_v3 = vadd.f32 %v2235_v59, %v1946_v31  ;;  %v1948_v10 = vpop.f32.mrf.mxu0  ;;  %2755 = vmatprep.mubr.bf16.mxu1 %v14424_v15  ;;  %v14426_v59 = vld [vmem:[#allocation97_spill] sm:$0xff] }
 0x1cc   :  { %v2237_v35 = vpop.f32.mrf.mxu1 }
 0x1cd   :  { %14423 = vst [vmem:[#allocation67_spill] sm:$0xff] %v9628_v3  ;;  %v1949_v27 = vpop.f32.mrf.mxu0 }
 0x1ce   :  { %v2238_v0 = vpop.f32.mrf.mxu1 }
 0x1cf   :  { %v9631_v53 = vadd.f32 %v2238_v0, %v1949_v27  ;;  %v1951_v17 = vpop.f32.mrf.mxu0 }
 0x1d0   :  { %v2240_v51 = vpop.f32.mrf.mxu1 }
 0x1d1   :  { %v1954_v46 = vpop.f32.mrf.mxu0  ;;  %2467 = vmatmul.mubr.bf16.gmra.mxu0 %v14422_v63 }
 0x1d2   :  { %v2243_v13 = vpop.f32.mrf.mxu1  ;;  %2756 = vmatmul.mubr.bf16.gmra.mxu1 %v8927_v4  ;;  %2474 = vmatprep.mubr.bf16.mxu0 %v8979_v20 }
 0x1d3   :  { %v9636_v39 = vadd.f32 %v2243_v13, %v1954_v46  ;;  %v1956_v31 = vpop.f32.mrf.mxu0  ;;  %2763 = vmatprep.mubr.bf16.mxu1 %v14426_v59  ;;  %v14428_v13 = vld [vmem:[#allocation98_spill] sm:$0xff] }
 0x1d4   :  { %v2245_v10 = vpop.f32.mrf.mxu1 }
 0x1d5   :  { %14425 = vst [vmem:[#allocation87_spill] sm:$0xff] %v9636_v39  ;;  %v1957_v35 = vpop.f32.mrf.mxu0 }
 0x1d6   :  { %v2246_v3 = vpop.f32.mrf.mxu1 }
 0x1d7   :  { %v9639_v0 = vadd.f32 %v2246_v3, %v1957_v35  ;;  %v1959_v27 = vpop.f32.mrf.mxu0 }
 0x1d8   :  { %v2248_v17 = vpop.f32.mrf.mxu1 }
 0x1d9   :  { %v1962_v51 = vpop.f32.mrf.mxu0  ;;  %2475 = vmatmul.mubr.bf16.gmra.mxu0 %v14424_v15 }
 0x1da   :  { %v2251_v63 = vpop.f32.mrf.mxu1  ;;  %2764 = vmatmul.mubr.bf16.gmra.mxu1 %v8955_v54  ;;  %2482 = vmatprep.mubr.bf16.mxu0 %v9007_v55 }
 0x1db   :  { %v9644_v4 = vadd.f32 %v2251_v63, %v1962_v51  ;;  %v1964_v46 = vpop.f32.mrf.mxu0  ;;  %2771 = vmatprep.mubr.bf16.mxu1 %v14428_v13  ;;  %v14429_v63 = vld [vmem:[#allocation99_spill] sm:$0xff] }
 0x1dc   :  { %v2253_v31 = vpop.f32.mrf.mxu1 }
 0x1dd   :  { %14427 = vst [vmem:[#allocation77_spill] sm:$0xff] %v9644_v4  ;;  %v1965_v10 = vpop.f32.mrf.mxu0 }
 0x1de   :  { %v2254_v39 = vpop.f32.mrf.mxu1 }
 0x1df   :  { %v9647_v3 = vadd.f32 %v2254_v39, %v1965_v10  ;;  %v1967_v35 = vpop.f32.mrf.mxu0 }
 0x1e0   :  { %v2256_v27 = vpop.f32.mrf.mxu1 }
 0x1e1   :  { %v1970_v17 = vpop.f32.mrf.mxu0  ;;  %2483 = vmatmul.mubr.bf16.gmra.mxu0 %v14426_v59 }
 0x1e2   :  { %v2259_v15 = vpop.f32.mrf.mxu1  ;;  %2772 = vmatmul.mubr.bf16.gmra.mxu1 %v8983_v23  ;;  %2490 = vmatprep.mubr.bf16.mxu0 %v9035_v18 }
 0x1e3   :  { %v9652_v54 = vadd.f32 %v2259_v15, %v1970_v17  ;;  %v1972_v51 = vpop.f32.mrf.mxu0  ;;  %2779 = vmatprep.mubr.bf16.mxu1 %v14429_v63 }
 0x1e4   :  { %v2261_v46 = vpop.f32.mrf.mxu1 }
 0x1e5   :  { %v1973_v31 = vpop.f32.mrf.mxu0 }
 0x1e6   :  { %v2262_v4 = vpop.f32.mrf.mxu1 }
 0x1e7   :  { %v9655_v39 = vadd.f32 %v2262_v4, %v1973_v31  ;;  %v1975_v10 = vpop.f32.mrf.mxu0 }
 0x1e8   :  { %v2264_v35 = vpop.f32.mrf.mxu1 }
 0x1e9   :  { %14430 = vst [vmem:[#allocation93_spill] sm:$0xff] %v9655_v39  ;;  %v1978_v27 = vpop.f32.mrf.mxu0  ;;  %2491 = vmatmul.mubr.bf16.gmra.mxu0 %v14428_v13 }
 0x1ea   :  { %v2267_v59 = vpop.f32.mrf.mxu1  ;;  %2780 = vmatmul.mubr.bf16.gmra.mxu1 %v9011_v58  ;;  %2498 = vmatprep.mubr.bf16.mxu0 %v9063_v38  ;;  %v14432_v58 = vld [vmem:[#allocation100_spill] sm:$0xff] }
 0x1eb   :  { %v9660_v23 = vadd.f32 %v2267_v59, %v1978_v27  ;;  %v1980_v17 = vpop.f32.mrf.mxu0  ;;  %2787 = vmatprep.mubr.bf16.mxu1 %v9065_v34 }
 0x1ec   :  { %v2269_v15 = vpop.f32.mrf.mxu1  ;;  %v14433_v17 = vld [vmem:[#allocation101_spill] sm:$0xff] }
 0x1ed   :  { %14431 = vst [vmem:[#allocation91_spill] sm:$0xff] %v9660_v23  ;;  %v1981_v51 = vpop.f32.mrf.mxu0 }
 0x1ee   :  { %v2270_v46 = vpop.f32.mrf.mxu1 }
 0x1ef   :  { %v9663_v4 = vadd.f32 %v2270_v46, %v1981_v51  ;;  %v1983_v31 = vpop.f32.mrf.mxu0 }
 0x1f0   :  { %v2272_v10 = vpop.f32.mrf.mxu1 }
 0x1f1   :  { %v1986_v35 = vpop.f32.mrf.mxu0  ;;  %2499 = vmatmul.mubr.bf16.gmra.mxu0 %v14429_v63 }
 0x1f2   :  { %v2275_v13 = vpop.f32.mrf.mxu1  ;;  %2788 = vmatmul.mubr.bf16.gmra.mxu1 %v9039_v43  ;;  %2506 = vmatprep.mubr.bf16.mxu0 %v14432_v58 }
 0x1f3   :  { %v9668_v27 = vadd.f32 %v2275_v13, %v1986_v35  ;;  %v1988_v59 = vpop.f32.mrf.mxu0  ;;  %2795 = vmatprep.mubr.bf16.mxu1 %v14433_v17 }
 0x1f4   :  { %v2277_v15 = vpop.f32.mrf.mxu1 }
 0x1f5   :  { %v1989_v23 = vpop.f32.mrf.mxu0 }
 0x1f6   :  { %v2278_v39 = vpop.f32.mrf.mxu1 }
 0x1f7   :  { %v9671_v51 = vadd.f32 %v2278_v39, %v1989_v23  ;;  %v1991_v46 = vpop.f32.mrf.mxu0 }
 0x1f8   :  { %v2280_v31 = vpop.f32.mrf.mxu1 }
 0x1f9   :  { %14434 = vst [vmem:[#allocation92_spill] sm:$0xff] %v9671_v51  ;;  %v1994_v10 = vpop.f32.mrf.mxu0  ;;  %2507 = vmatmul.mubr.bf16.gmra.mxu0 %v9065_v34  ;;  %v14437_v34 = vld [vmem:[#allocation102_spill] sm:$0xff] }
 0x1fa   :  { %v2283_v63 = vpop.f32.mrf.mxu1  ;;  %2796 = vmatmul.mubr.bf16.gmra.mxu1 %v9067_v28  ;;  %2514 = vmatprep.mubr.bf16.mxu0 %v9146_v7 }
 0x1fb   :  { %v9676_v43 = vadd.f32 %v2283_v63, %v1994_v10  ;;  %v1996_v35 = vpop.f32.mrf.mxu0  ;;  %2803 = vmatprep.mubr.bf16.mxu1 %v9148_v48  ;;  %v7331_v10 = vld [vmem:[%s13588_s1 + $0x278] sm:$0xff]  }
 0x1fc   :  { %v2285_v13 = vpop.f32.mrf.mxu1  ;;  %4693 = vmatpush1.bf16.msra.mxu1 %v7331_v10 }
 0x1fd   :  { %14435 = vst [vmem:[#allocation94_spill] sm:$0xff] %v9676_v43  ;;  %v1997_v59 = vpop.f32.mrf.mxu0  ;;  %4694 = vmatprep.subr.bf16.mxu1 %v14100_v56 }
 0x1fe   :  { %v2286_v15 = vpop.f32.mrf.mxu1 }
 0x1ff   :  { %v9679_v39 = vadd.f32 %v2286_v15, %v1997_v59  ;;  %v1999_v23 = vpop.f32.mrf.mxu0 }
 0x200   :  { %v2288_v46 = vpop.f32.mrf.mxu1 }
 0x201   :  { %14436 = vst [vmem:[#allocation95_spill] sm:$0xff] %v9679_v39  ;;  %v2324_v31 = vpop.f32.mrf.mxu0  ;;  %2515 = vmatmul.mubr.bf16.gmra.mxu0 %v14433_v17  ;;  %v14438_v17 = vld [vmem:[#allocation103_spill] sm:$0xff] }
 0x202   :  { %v2325_v51 = vadd.f32 %v2324_v31, %v14437_v34  ;;  %v2613_v28 = vpop.f32.mrf.mxu1  ;;  %2804 = vmatmul.mubr.bf16.gmra.mxu1 %v9105_v24  ;;  %2522 = vmatprep.mubr.bf16.mxu0 %v9195_v37 }
 0x203   :  { %v2326_v63 = vpop.f32.mrf.mxu0  ;;  %2811 = vmatprep.mubr.bf16.mxu1 %v9199_v25 }
 0x204   :  { %v9689_v35 = vadd.f32 %v2613_v28, %v2325_v51  ;;  %v2615_v13 = vpop.f32.mrf.mxu1  ;;  %v14440_v63 = vld [vmem:[#allocation104_spill] sm:$0xff]  ;;  %v14441_v28 = vld [vmem:[#allocation107_spill] sm:$0xff] }
 0x205   :  { %v2327_v59 = vpop.f32.mrf.mxu0 }
 0x206   :  { %v2328_v15 = vadd.f32 %v2327_v59, %v14438_v17  ;;  %v2616_v23 = vpop.f32.mrf.mxu1  ;;  %v14442_v17 = vld [vmem:[#allocation105_spill] sm:$0xff] }
 0x207   :  { %v2329_v24 = vpop.f32.mrf.mxu0 }
 0x208   :  { %v9693_v46 = vadd.f32 %v2616_v23, %v2328_v15  ;;  %v2618_v31 = vpop.f32.mrf.mxu1 }
 0x209   :  { %v2332_v34 = vpop.f32.mrf.mxu0  ;;  %2523 = vmatmul.mubr.bf16.gmra.mxu0 %v9148_v48 }
 0x20a   :  { %14439 = vst [vmem:[#allocation96_spill] sm:$0xff] %v9693_v46  ;;  %v2333_v39 = vadd.f32 %v2332_v34, %v14440_v63  ;;  %v2621_v43 = vpop.f32.mrf.mxu1  ;;  %2812 = vmatmul.mubr.bf16.gmra.mxu1 %v9153_v50  ;;  %2530 = vmatprep.mubr.bf16.mxu0 %v9249_v22  ;;  %v14443_v50 = vld [vmem:[#allocation106_spill] sm:$0xff] }
 0x20b   :  { %v2334_v51 = vpop.f32.mrf.mxu0  ;;  %2819 = vmatprep.mubr.bf16.mxu1 %v14441_v28 }
 0x20c   :  { %v9700_v10 = vadd.f32 %v2621_v43, %v2333_v39  ;;  %v2623_v13 = vpop.f32.mrf.mxu1  ;;  %v7332_v43 = vld [vmem:[%s13588_s1 + $0x270] sm:$0xff]  }
 0x20d   :  { %v2335_v59 = vpop.f32.mrf.mxu0  ;;  %4695 = vmatpush1.bf16.msra.mxu1 %v7332_v43 }
 0x20e   :  { %v2336_v15 = vadd.f32 %v2335_v59, %v14442_v17  ;;  %v2624_v23 = vpop.f32.mrf.mxu1  ;;  %4696 = vmatprep.subr.bf16.mxu1 %v14100_v56 }
 0x20f   :  { %v2337_v24 = vpop.f32.mrf.mxu0 }
 0x210   :  { %v9703_v31 = vadd.f32 %v2624_v23, %v2336_v15  ;;  %v2626_v48 = vpop.f32.mrf.mxu1 }
 0x211   :  { %v2340_v34 = vpop.f32.mrf.mxu0  ;;  %2531 = vmatmul.mubr.bf16.gmra.mxu0 %v9199_v25  ;;  %v14444_v25 = vld [vmem:[#allocation108_spill] sm:$0xff] }
 0x212   :  { %v2341_v63 = vadd.f32 %v2340_v34, %v14443_v50  ;;  %v2629_v46 = vpop.f32.mrf.mxu1  ;;  %2820 = vmatmul.mubr.bf16.gmra.mxu1 %v9204_v45  ;;  %2538 = vmatprep.mubr.bf16.mxu0 %v9302_v16  ;;  %v14445_v34 = vld [vmem:[#allocation109_spill] sm:$0xff] }
 0x213   :  { %v2342_v39 = vpop.f32.mrf.mxu0  ;;  %2827 = vmatprep.mubr.bf16.mxu1 %v9306_v5 }
 0x214   :  { %v9713_v51 = vadd.f32 %v2629_v46, %v2341_v63  ;;  %v2631_v13 = vpop.f32.mrf.mxu1 }
 0x215   :  { %v2343_v59 = vpop.f32.mrf.mxu0 }
 0x216   :  { %v2344_v17 = vadd.f32 %v2343_v59, %v14444_v25  ;;  %v2632_v15 = vpop.f32.mrf.mxu1  ;;  %v14446_v59 = vld [vmem:[#allocation113_spill] sm:$0xff] }
 0x217   :  { %v2345_v45 = vpop.f32.mrf.mxu0 }
 0x218   :  { %v9717_v23 = vadd.f32 %v2632_v15, %v2344_v17  ;;  %v2634_v24 = vpop.f32.mrf.mxu1 }
 0x219   :  { %v2348_v48 = vpop.f32.mrf.mxu0  ;;  %2539 = vmatmul.mubr.bf16.gmra.mxu0 %v14441_v28 }
 0x21a   :  { %v2349_v50 = vadd.f32 %v2348_v48, %v14445_v34  ;;  %v2637_v39 = vpop.f32.mrf.mxu1  ;;  %2828 = vmatmul.mubr.bf16.gmra.mxu1 %v9258_v9  ;;  %2546 = vmatprep.mubr.bf16.mxu0 %v9353_v52  ;;  %v7333_v34 = vld [vmem:[%s13588_s1 + $0x268] sm:$0xff]  }
 0x21b   :  { %v2350_v46 = vpop.f32.mrf.mxu0  ;;  %2835 = vmatprep.mubr.bf16.mxu1 %v9357_v42  ;;  %4697 = vmatpush1.bf16.msra.mxu1 %v7333_v34 }
 0x21c   :  { %v9724_v63 = vadd.f32 %v2637_v39, %v2349_v50  ;;  %v2639_v43 = vpop.f32.mrf.mxu1  ;;  %4698 = vmatprep.subr.bf16.mxu1 %v14100_v56 }
 0x21d   :  { %v2351_v13 = vpop.f32.mrf.mxu0 }
 0x21e   :  { %v2352_v25 = vadd.f32 %v2351_v13, %v14446_v59  ;;  %v2640_v17 = vpop.f32.mrf.mxu1  ;;  %v7414_v13 = vld [vmem:[%s13587_s0 + $0x1f0] sm:$0xff]  ;;  %v7415_v59 = vld [vmem:[%s13587_s0 + $0x1f8] sm:$0xff] }
 0x21f   :  { %v2353_v15 = vpop.f32.mrf.mxu0 }
 0x220   :  { %v9727_v45 = vadd.f32 %v2640_v17, %v2352_v25  ;;  %v2642_v28 = vpop.f32.mrf.mxu1  ;;  %v1261_v25 = vpack.c.bf16 %v7415_v59, %v7414_v13 }
 0x221   :  { %v2356_v24 = vpop.f32.mrf.mxu0  ;;  %2547 = vmatmul.mubr.bf16.gmra.mxu0 %v9306_v5  ;;  %v14447_v28 = vld [vmem:[#allocation110_spill] sm:$0xff] }
 0x222   :  { %v2357_v9 = vadd.f32 %v2356_v24, %v9339_v21  ;;  %v2645_v48 = vpop.f32.mrf.mxu1  ;;  %2836 = vmatmul.mubr.bf16.gmra.mxu1 %v9310_v11  ;;  %2554 = vmatprep.mubr.bf16.mxu0 %v9397_v29  ;;  %v14448_v24 = vrot.slane %v9334_v47, 1 }
 0x223   :  { %v2358_v50 = vpop.f32.mrf.mxu0  ;;  %2843 = vmatprep.mubr.bf16.mxu1 %v9401_v26 }
 0x224   :  { %v9737_v39 = vadd.f32 %v2645_v48, %v2357_v9  ;;  %v2647_v46 = vpop.f32.mrf.mxu1 }
 0x225   :  { %v2359_v43 = vpop.f32.mrf.mxu0 }
 0x226   :  { %v2360_v5 = vadd.f32 %v2359_v43, %v9359_v1  ;;  %v2648_v21 = vpop.f32.mrf.mxu1  ;;  %v1123_v1 = vsel %vm14449_vm1, %v14448_v24, %v14447_v28  ;;  %v14451_v28 = vrot.slane %v9334_v47, 7  ;;  %vm14452_vm1 = vcmp.lt.s32.totalorder %v7575_v14, 1  ;;  %v14454_v47 = vld [vmem:[#allocation114_spill] sm:$0xff] }
 0x227   :  { %v2361_v11 = vpop.f32.mrf.mxu0  ;;  %v1225_v46 = vsel %vm9567_vm0, %v9391_v2, %v1123_v1 }
 0x228   :  { %v9747_v17 = vadd.f32 %v2648_v21, %v2360_v5  ;;  %v2650_v15 = vpop.f32.mrf.mxu1 }
 0x229   :  { %v2364_v9 = vpop.f32.mrf.mxu0  ;;  %2555 = vmatmul.mubr.bf16.gmra.mxu0 %v9357_v42  ;;  %v14450_v15 = vld [vmem:[#allocation111_spill] sm:$0xff] }
 0x22a   :  { %v2365_v48 = vadd.f32 %v2364_v9, %v9384_v6  ;;  %v2653_v34 = vpop.f32.mrf.mxu1  ;;  %2844 = vmatmul.mubr.bf16.gmra.mxu1 %v9362_v19  ;;  %2562 = vmatprep.mubr.bf16.mxu0 %v9421_v32  ;;  %v9765_v6 = vpack.c.bf16 %v1225_v46, %v9378_v57  ;;  %v1057_v2 = vsel %vm14452_vm1, %v14451_v28, %v14450_v15  ;;  %v14453_v9 = vld [vmem:[#allocation116_spill] sm:$0xff]  ;;  %v7334_v57 = vld [vmem:[%s13588_s1 + $0x260] sm:$0xff]  }
 0x22b   :  { %v2366_v50 = vpop.f32.mrf.mxu0  ;;  %2851 = vmatprep.mubr.bf16.mxu1 %v1261_v25  ;;  %4699 = vmatpush1.bf16.msra.mxu1 %v7334_v57 }
 0x22c   :  { %v9761_v43 = vadd.f32 %v2653_v34, %v2365_v48  ;;  %v2655_v5 = vpop.f32.mrf.mxu1  ;;  %v1190_v34 = vsel %vm9590_vm2, %v14454_v47, %v1057_v2  ;;  %4700 = vmatprep.subr.bf16.mxu1 %v14100_v56  ;;  %vm14499_vm2 = vcmp.lt.s32.totalorder %v7575_v14, 7 }
 0x22d   :  { %v2367_v21 = vpop.f32.mrf.mxu0  ;;  %v14455_v5 = vld [vmem:[#allocation117_spill] sm:$0xff] }
 0x22e   :  { %v2368_v11 = vadd.f32 %v2367_v21, %v9403_v62  ;;  %v2656_v42 = vpop.f32.mrf.mxu1 }
 0x22f   :  { %v2369_v13 = vpop.f32.mrf.mxu0 }
 0x230   :  { %v9767_v19 = vadd.f32 %v2656_v42, %v2368_v11  ;;  %v2658_v59 = vpop.f32.mrf.mxu1  ;;  %v14456_v42 = vld [vmem:[#allocation115_spill] sm:$0xff] }
 0x231   :  { %v2372_v24 = vpop.f32.mrf.mxu0  ;;  %2563 = vmatmul.mubr.bf16.gmra.mxu0 %v9401_v26  ;;  %v1245_v13 = vpack.c.bf16 %v14456_v42, %v1190_v34 }
 0x232   :  { %v2373_v1 = vadd.f32 %v2372_v24, %v9414_v12  ;;  %v2661_v62 = vpop.f32.mrf.mxu1  ;;  %2852 = vmatmul.mubr.bf16.gmra.mxu1 %v14453_v9  ;;  %2570 = vmatprep.mubr.bf16.mxu0 %v9765_v6  ;;  %v14457_v24 = vld [vmem:[#allocation118_spill] sm:$0xff] }
 0x233   :  { %v2374_v48 = vpop.f32.mrf.mxu0  ;;  %2859 = vmatprep.mubr.bf16.mxu1 %v9401_v26 }
 0x234   :  { %v9785_v50 = vadd.f32 %v2661_v62, %v2373_v1  ;;  %v2663_v46 = vpop.f32.mrf.mxu1  ;;  %v14458_v62 = vld [vmem:[#allocation17_spill] sm:$0xff] }
 0x235   :  { %v2375_v12 = vpop.f32.mrf.mxu0 }
 0x236   :  { %v2376_v21 = vadd.f32 %v2375_v12, %v14455_v5  ;;  %v2664_v11 = vpop.f32.mrf.mxu1  ;;  %v14459_v12 = vld [vmem:[#allocation119_spill] sm:$0xff] }
 0x237   :  { %v2377_v59 = vpop.f32.mrf.mxu0 }
 0x238   :  { %v9790_v15 = vadd.f32 %v2664_v11, %v2376_v21  ;;  %v2666_v26 = vpop.f32.mrf.mxu1 }
 0x239   :  { %v2380_v28 = vpop.f32.mrf.mxu0  ;;  %2571 = vmatmul.mubr.bf16.gmra.mxu0 %v1261_v25  ;;  %v14461_v25 = vld [vmem:[#allocation22_spill] sm:$0xff] }
 0x23a   :  { %v2381_v2 = vadd.f32 %v2380_v28, %v14457_v24  ;;  %v2669_v1 = vpop.f32.mrf.mxu1  ;;  %2860 = vmatmul.mubr.bf16.gmra.mxu1 %v1245_v13  ;;  %7111 = vmatprep.mubr.bf16.mxu0 %v14458_v62  ;;  %v14462_v28 = vld [vmem:[#allocation11_spill] sm:$0xff] }
 0x23b   :  { %v2382_v9 = vpop.f32.mrf.mxu0 }
 0x23c   :  { %v9794_v57 = vadd.f32 %v2669_v1, %v2381_v2  ;;  %v2671_v48 = vpop.f32.mrf.mxu1  ;;  %v7335_v2 = vld [vmem:[%s13588_s1 + $0x258] sm:$0xff]  }
 0x23d   :  { %v2383_v46 = vpop.f32.mrf.mxu0  ;;  %4701 = vmatpush1.bf16.msra.mxu1 %v7335_v2 }
 0x23e   :  { %v2384_v5 = vadd.f32 %v2383_v46, %v14459_v12  ;;  %v2672_v34 = vpop.f32.mrf.mxu1  ;;  %4702 = vmatprep.subr.bf16.mxu1 %v14100_v56  ;;  %v14465_v46 = vld [vmem:[#allocation18_spill] sm:$0xff] }
 0x23f   :  { %v2385_v59 = vpop.f32.mrf.mxu0 }
 0x240   :  { %v9797_v21 = vadd.f32 %v2672_v34, %v2384_v5  ;;  %v2674_v11 = vpop.f32.mrf.mxu1 }
 0x241   :  { %v2388_v26 = vpop.f32.mrf.mxu0  ;;  %7112 = vmatmul.mubr.bf16.vlgmr.msra.gmra.mxu0 %v14461_v25  ;;  %v14468_v25 = vld [vmem:[#allocation15_spill] sm:$0xff] }
 0x242   :  { %14460 = vst [vmem:[#allocation97_spill] sm:$0xff] %v9797_v21  ;;  %v2389_v24 = vadd.f32 %v2388_v26, %v14462_v28  ;;  %v2677_v13 = vpop.f32.mrf.mxu1  ;;  %7115 = vmatprep.mubr.bf16.mxu0 %v14463_v41  ;;  %v14467_v26 = vld [vmem:[#allocation32_spill] sm:$0xff] }
 0x243   :  { %v2390_v1 = vpop.f32.mrf.mxu0  ;;  %v14475_v21 = vld [vmem:[#allocation48_spill] sm:$0xff] }
 0x244   :  { %v9805_v62 = vadd.f32 %v2677_v13, %v2389_v24  ;;  %v2679_v9 = vpop.f32.mrf.mxu1  ;;  %v14469_v24 = vld [vmem:[#allocation37_spill] sm:$0xff] }
 0x245   :  { %v2391_v48 = vpop.f32.mrf.mxu0 }
 0x246   :  { %14464 = vst [vmem:[#allocation98_spill] sm:$0xff] %v9805_v62  ;;  %v2392_v12 = vadd.f32 %v2391_v48, %v14465_v46  ;;  %v2680_v5 = vpop.f32.mrf.mxu1  ;;  %v14471_v62 = vld [vmem:[#allocation23_spill] sm:$0xff] }
 0x247   :  { %v2393_v34 = vpop.f32.mrf.mxu0 }
 0x248   :  { %v9809_v59 = vadd.f32 %v2680_v5, %v2392_v12  ;;  %v2682_v11 = vpop.f32.mrf.mxu1 }
 0x249   :  { %v2396_v41 = vpop.f32.mrf.mxu0  ;;  %7116 = vmatmul.mubr.bf16.gmra.mxu0 %v14467_v26  ;;  %v14474_v26 = vld [vmem:[#allocation19_spill] sm:$0xff] }
 0x24a   :  { %14466 = vst [vmem:[#allocation99_spill] sm:$0xff] %v9809_v59  ;;  %v2397_v28 = vadd.f32 %v2396_v41, %v14468_v25  ;;  %v2685_v1 = vpop.f32.mrf.mxu1  ;;  %7119 = vmatprep.mubr.bf16.mxu0 %v14469_v24  ;;  %v14473_v59 = vld [vmem:[#allocation43_spill] sm:$0xff] }
 0x24b   :  { %v2398_v13 = vpop.f32.mrf.mxu0 }
 0x24c   :  { %v9814_v2 = vadd.f32 %v2685_v1, %v2397_v28  ;;  %v2687_v9 = vpop.f32.mrf.mxu1  ;;  %v7336_v28 = vld [vmem:[%s13588_s1 + $0x250] sm:$0xff]   ;;  %v14477_v13 = vld [vmem:[#allocation28_spill] sm:$0xff] }
 0x24d   :  { %v2399_v40 = vpop.f32.mrf.mxu0  ;;  %4703 = vmatpush1.bf16.msra.mxu1 %v7336_v28 }
 0x24e   :  { %14470 = vst [vmem:[#allocation100_spill] sm:$0xff] %v9814_v2  ;;  %v2400_v48 = vadd.f32 %v2399_v40, %v14471_v62  ;;  %v2688_v46 = vpop.f32.mrf.mxu1  ;;  %4704 = vmatprep.subr.bf16.mxu1 %v14100_v56  ;;  %v14487_v2 = vld [vmem:[#allocation70_spill] sm:$0xff] }
 0x24f   :  { %v2401_v34 = vpop.f32.mrf.mxu0 }
 0x250   :  { %v9817_v12 = vadd.f32 %v2688_v46, %v2400_v48  ;;  %v2690_v5 = vpop.f32.mrf.mxu1 }
 0x251   :  { %v2404_v11 = vpop.f32.mrf.mxu0  ;;  %7120 = vmatmul.mubr.bf16.gmra.mxu0 %v14473_v59  ;;  %v14479_v5 = vld [vmem:[#allocation54_spill] sm:$0xff] }
 0x252   :  { %14472 = vst [vmem:[#allocation101_spill] sm:$0xff] %v9817_v12  ;;  %v2405_v41 = vadd.f32 %v2404_v11, %v14474_v26  ;;  %v2693_v25 = vpop.f32.mrf.mxu1  ;;  %7123 = vmatprep.mubr.bf16.mxu0 %v14475_v21  ;;  %v14480_v11 = vld [vmem:[#allocation24_spill] sm:$0xff]  ;;  %v14483_v12 = vld [vmem:[#allocation33_spill] sm:$0xff] }
 0x253   :  { %v2406_v1 = vpop.f32.mrf.mxu0 }
 0x254   :  { %v9825_v24 = vadd.f32 %v2693_v25, %v2405_v41  ;;  %v2695_v40 = vpop.f32.mrf.mxu1  ;;  %v14481_v41 = vld [vmem:[#allocation59_spill] sm:$0xff] }
 0x255   :  { %v2407_v62 = vpop.f32.mrf.mxu0 }
 0x256   :  { %14476 = vst [vmem:[#allocation102_spill] sm:$0xff] %v9825_v24  ;;  %v2408_v9 = vadd.f32 %v2407_v62, %v14477_v13  ;;  %v2696_v59 = vpop.f32.mrf.mxu1 }
 0x257   :  { %v2409_v48 = vpop.f32.mrf.mxu0 }
 0x258   :  { %v9829_v46 = vadd.f32 %v2696_v59, %v2408_v9  ;;  %v2698_v34 = vpop.f32.mrf.mxu1 }
 0x259   :  { %v2412_v21 = vpop.f32.mrf.mxu0  ;;  %7124 = vmatmul.mubr.bf16.gmra.mxu0 %v14479_v5  ;;  %v14486_v5 = vld [vmem:[#allocation29_spill] sm:$0xff] }
 0x25a   :  { %14478 = vst [vmem:[#allocation103_spill] sm:$0xff] %v9829_v46  ;;  %v2413_v26 = vadd.f32 %v2412_v21, %v14480_v11  ;;  %v2701_v1 = vpop.f32.mrf.mxu1  ;;  %7127 = vmatprep.mubr.bf16.mxu0 %v14481_v41  ;;  %v14485_v46 = vld [vmem:[#allocation62_spill] sm:$0xff] }
 0x25b   :  { %v2414_v25 = vpop.f32.mrf.mxu0 }
 0x25c   :  { %v9834_v28 = vadd.f32 %v2701_v1, %v2413_v26  ;;  %v2703_v40 = vpop.f32.mrf.mxu1  ;;  %v7337_v26 = vld [vmem:[%s13588_s1 + $0x248] sm:$0xff]  }
 0x25d   :  { %v2415_v24 = vpop.f32.mrf.mxu0  ;;  %4705 = vmatpush1.bf16.msra.mxu1 %v7337_v26  ;;  %v14489_v25 = vld [vmem:[#allocation38_spill] sm:$0xff] }
 0x25e   :  { %14482 = vst [vmem:[#allocation104_spill] sm:$0xff] %v9834_v28  ;;  %v2416_v62 = vadd.f32 %v2415_v24, %v14483_v12  ;;  %v2704_v13 = vpop.f32.mrf.mxu1  ;;  %4706 = vmatprep.subr.bf16.mxu1 %v14100_v56 }
 0x25f   :  { %v2417_v48 = vpop.f32.mrf.mxu0 }
 0x260   :  { %v9837_v9 = vadd.f32 %v2704_v13, %v2416_v62  ;;  %v2706_v59 = vpop.f32.mrf.mxu1  ;;  %v116_v13 = vadd.s32 280, %v7575_v14 }
 0x261   :  { %v2420_v34 = vpop.f32.mrf.mxu0  ;;  %7128 = vmatmul.mubr.bf16.gmra.mxu0 %v14485_v46 }
 0x262   :  { %14484 = vst [vmem:[#allocation107_spill] sm:$0xff] %v9837_v9  ;;  %v2421_v21 = vadd.f32 %v2420_v34, %v14486_v5  ;;  %v2709_v11 = vpop.f32.mrf.mxu1  ;;  %7131 = vmatprep.mubr.bf16.mxu0 %v14487_v2  ;;  %v14490_v34 = vld [vmem:[#allocation78_spill] sm:$0xff] }
 0x263   :  { %v2422_v1 = vpop.f32.mrf.mxu0  ;;  %v14491_v5 = vld [vmem:[#allocation34_spill] sm:$0xff] }
 0x264   :  { %v9845_v41 = vadd.f32 %v2709_v11, %v2421_v21  ;;  %v2711_v12 = vpop.f32.mrf.mxu1  ;;  %v14492_v1 = vld [vmem:[#allocation85_spill] sm:$0xff] }
 0x265   :  { %v2423_v24 = vpop.f32.mrf.mxu0  ;;  %v366_v12 = vand.u32 15, %v116_v13 }
 0x266   :  { %14488 = vst [vmem:[#allocation105_spill] sm:$0xff] %v9845_v41  ;;  %v2424_v40 = vadd.f32 %v2423_v24, %v14489_v25  ;;  %v2712_v46 = vpop.f32.mrf.mxu1 }
 0x267   :  { %v2425_v62 = vpop.f32.mrf.mxu0  ;;  %vm9858_vm1 = vcmp.eq.s32.totalorder %v366_v12, 15 }
 0x268   :  { %v9850_v48 = vadd.f32 %v2712_v46, %v2424_v40  ;;  %v2714_v2 = vpop.f32.mrf.mxu1  ;;  %v14493_v62 = vld [vmem:[#allocation44_spill] sm:$0xff]  ;;  %v14494_v46 = vmov 0 }
 0x269   :  { %v2428_v59 = vpop.f32.mrf.mxu0  ;;  %7132 = vmatmul.mubr.bf16.gmra.mxu0 %v14490_v34  ;;  %v14495_v46 = vsel %vm9858_vm1, 4294967295, %v14494_v46  ;;  %v14497_v2 = vld [vmem:[#allocation7_spill] sm:$0xff]  ;;  %v14498_v34 = vld [vmem:[#allocation69_spill] sm:$0xff] }
 0x26a   :  { %v2429_v21 = vadd.f32 %v2428_v59, %v14491_v5  ;;  %v2717_v11 = vpop.f32.mrf.mxu1  ;;  %7135 = vmatprep.mubr.bf16.mxu0 %v14492_v1  ;;  %14496 = vst [vmem:[#allocation106_spill] sm:$0xff] %v14495_v46  ;;  %v899_v59 = vsel %vm14499_vm2, %v14498_v34, %v14497_v2  ;;  %v14505_v34 = vld [vmem:[#allocation49_spill] sm:$0xff] }
 0x26b   :  { %v2430_v26 = vpop.f32.mrf.mxu0  ;;  %v971_v12 = vsel %vm9858_vm1, %v14416_v30, %v899_v59 }
 0x26c   :  { %v9855_v41 = vadd.f32 %v2717_v11, %v2429_v21  ;;  %v2719_v24 = vpop.f32.mrf.mxu1  ;;  %v14501_v11 = vld [vmem:[#allocation39_spill] sm:$0xff] }
 0x26d   :  { %v2431_v25 = vpop.f32.mrf.mxu0  ;;  %v14502_v24 = vld [vmem:[#allocation76_spill] sm:$0xff] }
 0x26e   :  { %v2432_v9 = vadd.f32 %v2431_v25, %v14493_v62  ;;  %v2720_v28 = vpop.f32.mrf.mxu1  ;;  %v7338_v25 = vld [vmem:[%s13588_s1 + $0x240] sm:$0xff]  }
 0x26f   :  { %v2433_v40 = vpop.f32.mrf.mxu0  ;;  %4707 = vmatpush1.bf16.msra.mxu1 %v7338_v25 }
 0x270   :  { %v9866_v5 = vadd.f32 %v2720_v28, %v2432_v9  ;;  %v2722_v13 = vpop.f32.mrf.mxu1  ;;  %4708 = vmatprep.subr.bf16.mxu1 %v14100_v56 }
 0x271   :  { %v2436_v21 = vpop.f32.mrf.mxu0  ;;  %7136 = vmatmul.mubr.bf16.gmra.mxu0 %v14401_v8  ;;  %v14504_v8 = vld [vmem:[#allocation75_spill] sm:$0xff] }
 0x272   :  { %14500 = vst [vmem:[#allocation108_spill] sm:$0xff] %v9866_v5  ;;  %v2437_v1 = vadd.f32 %v2436_v21, %v14501_v11  ;;  %v2725_v26 = vpop.f32.mrf.mxu1  ;;  %7139 = vmatprep.mubr.bf16.mxu0 %v14502_v24  ;;  %v1023_v2 = vpack.c.bf16 %v971_v12, %v14504_v8  ;;  %v14506_v5 = vld [vmem:[#allocation46_spill] sm:$0xff]  ;;  %v14507_v8 = vld [vmem:[#allocation55_spill] sm:$0xff] }
 0x273   :  { %v2438_v62 = vpop.f32.mrf.mxu0 }
 0x274   :  { %v9877_v28 = vadd.f32 %v2725_v26, %v2437_v1  ;;  %v2727_v9 = vpop.f32.mrf.mxu1 }
 0x275   :  { %v2439_v40 = vpop.f32.mrf.mxu0 }
 0x276   :  { %14503 = vst [vmem:[#allocation109_spill] sm:$0xff] %v9877_v28  ;;  %v2440_v13 = vadd.f32 %v2439_v40, %v14505_v34  ;;  %v2728_v21 = vpop.f32.mrf.mxu1 }
 0x277   :  { %v2441_v11 = vpop.f32.mrf.mxu0 }
 0x278   :  { %v9882_v24 = vadd.f32 %v2728_v21, %v2440_v13  ;;  %v2730_v30 = vpop.f32.mrf.mxu1 }
 0x279   :  { %v2444_v59 = vpop.f32.mrf.mxu0  ;;  %7140 = vmatmul.mubr.bf16.gmra.mxu0 %v1023_v2  ;;  %v14508_v2 = vld [vmem:[#allocation50_spill] sm:$0xff] }
 0x27a   :  { %v2445_v62 = vadd.f32 %v2444_v59, %v14506_v5  ;;  %v2733_v1 = vpop.f32.mrf.mxu1  ;;  %7143 = vmatprep.mubr.bf16.mxu0 %v14420_v36 }
 0x27b   :  { %v2446_v26 = vpop.f32.mrf.mxu0 }
 0x27c   :  { %v9886_v25 = vadd.f32 %v2733_v1, %v2445_v62  ;;  %v2735_v12 = vpop.f32.mrf.mxu1  ;;  %v7339_v1 = vld [vmem:[%s13588_s1 + $0x2b8] sm:$0xff]  }
 0x27d   :  { %v2447_v9 = vpop.f32.mrf.mxu0  ;;  %4709 = vmatpush2.bf16.msra.mxu1 %v7339_v1 }
 0x27e   :  { %v2448_v28 = vadd.f32 %v2447_v9, %v14507_v8  ;;  %v2736_v40 = vpop.f32.mrf.mxu1  ;;  %4710 = vmatprep.subr.bf16.mxu1 %v14100_v56 }
 0x27f   :  { %v2449_v34 = vpop.f32.mrf.mxu0 }
 0x280   :  { %v9889_v11 = vadd.f32 %v2736_v40, %v2448_v28  ;;  %v2738_v13 = vpop.f32.mrf.mxu1  ;;  %v14509_v28 = vld [vmem:[#allocation60_spill] sm:$0xff] }
 0x281   :  { %v2452_v21 = vpop.f32.mrf.mxu0  ;;  %7144 = vmatmul.mubr.bf16.gmra.mxu0 %v8951_v60  ;;  %v14510_v34 = vld [vmem:[#allocation56_spill] sm:$0xff] }
 0x282   :  { %v2453_v5 = vadd.f32 %v2452_v21, %v14508_v2  ;;  %v2741_v30 = vpop.f32.mrf.mxu1  ;;  %7147 = vmatprep.mubr.bf16.mxu0 %v8979_v20 }
 0x283   :  { %v2454_v36 = vpop.f32.mrf.mxu0 }
 0x284   :  { %v9894_v59 = vadd.f32 %v2741_v30, %v2453_v5  ;;  %v2743_v62 = vpop.f32.mrf.mxu1 }
 0x285   :  { %v2455_v26 = vpop.f32.mrf.mxu0  ;;  %v14511_v62 = vld [vmem:[#allocation63_spill] sm:$0xff] }
 0x286   :  { %v2456_v12 = vadd.f32 %v2455_v26, %v14509_v28  ;;  %v2744_v9 = vpop.f32.mrf.mxu1 }
 0x287   :  { %v2457_v8 = vpop.f32.mrf.mxu0 }
 0x288   :  { %v9901_v60 = vadd.f32 %v2744_v9, %v2456_v12  ;;  %v2746_v40 = vpop.f32.mrf.mxu1 }
 0x289   :  { %v2460_v20 = vpop.f32.mrf.mxu0  ;;  %7148 = vmatmul.mubr.bf16.gmra.mxu0 %v9007_v55  ;;  %v14512_v55 = vld [vmem:[#allocation61_spill] sm:$0xff] }
 0x28a   :  { %v2461_v13 = vadd.f32 %v2460_v20, %v14510_v34  ;;  %v2749_v21 = vpop.f32.mrf.mxu1  ;;  %7151 = vmatprep.mubr.bf16.mxu0 %v9035_v18 }
 0x28b   :  { %v2462_v2 = vpop.f32.mrf.mxu0 }
 0x28c   :  { %v9906_v5 = vadd.f32 %v2749_v21, %v2461_v13  ;;  %v2751_v30 = vpop.f32.mrf.mxu1  ;;  %v14513_v2 = vld [vmem:[#allocation71_spill] sm:$0xff] }
 0x28d   :  { %v2463_v36 = vpop.f32.mrf.mxu0 }
 0x28e   :  { %v2464_v1 = vadd.f32 %v2463_v36, %v14511_v62  ;;  %v2752_v26 = vpop.f32.mrf.mxu1  ;;  %v7340_v62 = vld [vmem:[%s13588_s1 + $0x2b0] sm:$0xff]  }
 0x28f   :  { %v2465_v28 = vpop.f32.mrf.mxu0  ;;  %4711 = vmatpush2.bf16.msra.mxu1 %v7340_v62 }
 0x290   :  { %v9909_v12 = vadd.f32 %v2752_v26, %v2464_v1  ;;  %v2754_v9 = vpop.f32.mrf.mxu1  ;;  %4712 = vmatprep.subr.bf16.mxu1 %v14100_v56 }
 0x291   :  { %v2468_v8 = vpop.f32.mrf.mxu0  ;;  %7152 = vmatmul.mubr.bf16.gmra.mxu0 %v9063_v38 }
 0x292   :  { %v2469_v40 = vadd.f32 %v2468_v8, %v14512_v55  ;;  %v2757_v20 = vpop.f32.mrf.mxu1  ;;  %7155 = vmatprep.mubr.bf16.mxu0 %v14432_v58  ;;  %v14514_v58 = vld [vmem:[#allocation64_spill] sm:$0xff] }
 0x293   :  { %v2470_v18 = vpop.f32.mrf.mxu0 }
 0x294   :  { %v9914_v34 = vadd.f32 %v2757_v20, %v2469_v40  ;;  %v2759_v13 = vpop.f32.mrf.mxu1 }
 0x295   :  { %v2471_v21 = vpop.f32.mrf.mxu0  ;;  %v14515_v13 = vld [vmem:[#allocation79_spill] sm:$0xff] }
 0x296   :  { %v2472_v30 = vadd.f32 %v2471_v21, %v14513_v2  ;;  %v2760_v36 = vpop.f32.mrf.mxu1 }
 0x297   :  { %v2473_v1 = vpop.f32.mrf.mxu0 }
 0x298   :  { %v9920_v26 = vadd.f32 %v2760_v36, %v2472_v30  ;;  %v2762_v38 = vpop.f32.mrf.mxu1  ;;  %v14516_v1 = vld [vmem:[#allocation72_spill] sm:$0xff] }
 0x299   :  { %v2476_v28 = vpop.f32.mrf.mxu0  ;;  %7156 = vmatmul.mubr.bf16.gmra.mxu0 %v9146_v7 }
 0x29a   :  { %v2477_v9 = vadd.f32 %v2476_v28, %v14514_v58  ;;  %v2765_v8 = vpop.f32.mrf.mxu1  ;;  %7159 = vmatprep.mubr.bf16.mxu0 %v9195_v37 }
 0x29b   :  { %v2478_v55 = vpop.f32.mrf.mxu0 }
 0x29c   :  { %v9926_v40 = vadd.f32 %v2765_v8, %v2477_v9  ;;  %v2767_v20 = vpop.f32.mrf.mxu1  ;;  %v14517_v55 = vld [vmem:[#allocation86_spill] sm:$0xff] }
 0x29d   :  { %v2479_v18 = vpop.f32.mrf.mxu0 }
 0x29e   :  { %v2480_v21 = vadd.f32 %v2479_v18, %v14515_v13  ;;  %v2768_v2 = vpop.f32.mrf.mxu1  ;;  %v7341_v13 = vld [vmem:[%s13588_s1 + $0x2a8] sm:$0xff]  }
 0x29f   :  { %v2481_v30 = vpop.f32.mrf.mxu0  ;;  %4713 = vmatpush2.bf16.msra.mxu1 %v7341_v13  ;;  %v14521_v13 = vld [vmem:[#allocation112_spill] sm:$0xff] }
 0x2a0   :  { %v9929_v36 = vadd.f32 %v2768_v2, %v2480_v21  ;;  %v2770_v62 = vpop.f32.mrf.mxu1  ;;  %4714 = vmatprep.subr.bf16.mxu1 %v14100_v56 }
 0x2a1   :  { %v2484_v7 = vpop.f32.mrf.mxu0  ;;  %7160 = vmatmul.mubr.bf16.gmra.mxu0 %v9249_v22 }
 0x2a2   :  { %v2485_v38 = vadd.f32 %v2484_v7, %v14516_v1  ;;  %v2773_v28 = vpop.f32.mrf.mxu1  ;;  %7163 = vmatprep.mubr.bf16.mxu0 %v9302_v16  ;;  %v14518_v16 = vld [vmem:[#allocation68_spill] sm:$0xff] }
 0x2a3   :  { %v2486_v37 = vpop.f32.mrf.mxu0 }
 0x2a4   :  { %v9934_v58 = vadd.f32 %v2773_v28, %v2485_v38  ;;  %v2775_v9 = vpop.f32.mrf.mxu1 }
 0x2a5   :  { %v2487_v8 = vpop.f32.mrf.mxu0  ;;  %v14519_v9 = vld [vmem:[#allocation80_spill] sm:$0xff] }
 0x2a6   :  { %v2488_v20 = vadd.f32 %v2487_v8, %v14517_v55  ;;  %v2776_v18 = vpop.f32.mrf.mxu1 }
 0x2a7   :  { %v2489_v21 = vpop.f32.mrf.mxu0 }
 0x2a8   :  { %v9940_v2 = vadd.f32 %v2776_v18, %v2488_v20  ;;  %v2778_v22 = vpop.f32.mrf.mxu1  ;;  %v14520_v18 = vld [vmem:[#allocation89_spill] sm:$0xff] }
 0x2a9   :  { %v2492_v30 = vpop.f32.mrf.mxu0  ;;  %7164 = vmatmul.mubr.bf16.gmra.mxu0 %v9353_v52  ;;  %v1155_v52 = vsel %vm14499_vm2, %v14521_v13, %v14520_v18  ;;  %vm14607_vm2 = vcmp.lt.s32.totalorder %v7575_v14, 1 }
 0x2aa   :  { %v2493_v62 = vadd.f32 %v2492_v30, %v14518_v16  ;;  %v2781_v7 = vpop.f32.mrf.mxu1  ;;  %7167 = vmatprep.mubr.bf16.mxu0 %v9397_v29  ;;  %v14522_v29 = vld [vmem:[#allocation84_spill] sm:$0xff] }
 0x2ab   :  { %v2494_v1 = vpop.f32.mrf.mxu0 }
 0x2ac   :  { %v9946_v38 = vadd.f32 %v2781_v7, %v2493_v62  ;;  %v2783_v28 = vpop.f32.mrf.mxu1  ;;  %v1227_v7 = vsel %vm9858_vm1, %v14456_v42, %v1155_v52  ;;  %vm14613_vm1 = vcmp.lt.s32.totalorder %v7575_v14, 7 }
 0x2ad   :  { %v2495_v37 = vpop.f32.mrf.mxu0 }
 0x2ae   :  { %v2496_v8 = vadd.f32 %v2495_v37, %v14519_v9  ;;  %v2784_v55 = vpop.f32.mrf.mxu1 }
 0x2af   :  { %v2497_v20 = vpop.f32.mrf.mxu0 }
 0x2b0   :  { %v9953_v21 = vadd.f32 %v2784_v55, %v2496_v8  ;;  %v2786_v22 = vpop.f32.mrf.mxu1  ;;  %v1279_v8 = vpack.c.bf16 %v1227_v7, %v14454_v47 }
 0x2b1   :  { %v2500_v30 = vpop.f32.mrf.mxu0  ;;  %7168 = vmatmul.mubr.bf16.gmra.mxu0 %v9421_v32  ;;  %v7342_v32 = vld [vmem:[%s13588_s1 + $0x2a0] sm:$0xff]  }
 0x2b2   :  { %v2501_v16 = vadd.f32 %v2500_v30, %v14522_v29  ;;  %v2789_v62 = vpop.f32.mrf.mxu1  ;;  %7171 = vmatprep.mubr.bf16.mxu0 %v9765_v6  ;;  %4715 = vmatpush2.bf16.msra.mxu1 %v7342_v32 }
 0x2b3   :  { %v2502_v1 = vpop.f32.mrf.mxu0  ;;  %4716 = vmatprep.subr.bf16.mxu1 %v14100_v56 }
 0x2b4   :  { %v9961_v28 = vadd.f32 %v2789_v62, %v2501_v16  ;;  %v2791_v37 = vpop.f32.mrf.mxu1 }
 0x2b5   :  { %v2503_v9 = vpop.f32.mrf.mxu0 }
 0x2b6   :  { %v2504_v55 = vadd.f32 %v2503_v9, %v9609_v44  ;;  %v2792_v20 = vpop.f32.mrf.mxu1 }
 0x2b7   :  { %v2505_v18 = vpop.f32.mrf.mxu0 }
 0x2b8   :  { %v9968_v6 = vadd.f32 %v2792_v20, %v2504_v55  ;;  %v2794_v13 = vpop.f32.mrf.mxu1  ;;  %v14523_v55 = vld [vmem:[#allocation83_spill] sm:$0xff] }
 0x2b9   :  { %v2508_v42 = vpop.f32.mrf.mxu0  ;;  %7172 = vmatmul.mubr.bf16.gmra.mxu0 %v1279_v8 }
 0x2ba   :  { %v2509_v52 = vadd.f32 %v2508_v42, %v9612_v49  ;;  %v2797_v22 = vpop.f32.mrf.mxu1 }
 0x2bb   :  { %v2510_v47 = vpop.f32.mrf.mxu0 }
 0x2bc   :  { %v9972_v30 = vadd.f32 %v2797_v22, %v2509_v52  ;;  %v2799_v44 = vpop.f32.mrf.mxu1 }
 0x2bd   :  { %v2511_v29 = vpop.f32.mrf.mxu0 }
 0x2be   :  { %v2512_v16 = vadd.f32 %v2511_v29, %v9615_v33  ;;  %v2800_v62 = vpop.f32.mrf.mxu1  ;;  %v14524_v29 = vld [vmem:[#allocation67_spill] sm:$0xff] }
 0x2bf   :  { %v2513_v7 = vpop.f32.mrf.mxu0 }
 0x2c0   :  { %v9975_v1 = vadd.f32 %v2800_v62, %v2512_v16  ;;  %v2802_v37 = vpop.f32.mrf.mxu1 }
 0x2c1   :  { %v2516_v9 = vpop.f32.mrf.mxu0 }
 0x2c2   :  { %v2517_v8 = vadd.f32 %v2516_v9, %v14523_v55  ;;  %v2805_v20 = vpop.f32.mrf.mxu1 }
 0x2c3   :  { %v2518_v32 = vpop.f32.mrf.mxu0 }
 0x2c4   :  { %v9978_v18 = vadd.f32 %v2805_v20, %v2517_v8  ;;  %v2807_v49 = vpop.f32.mrf.mxu1 }
 0x2c5   :  { %v2519_v13 = vpop.f32.mrf.mxu0 }
 0x2c6   :  { %v2520_v42 = vadd.f32 %v2519_v13, %v9623_v61  ;;  %v2808_v52 = vpop.f32.mrf.mxu1 }
 0x2c7   :  { %v2521_v22 = vpop.f32.mrf.mxu0 }
 0x2c8   :  { %v9981_v47 = vadd.f32 %v2808_v52, %v2520_v42  ;;  %v2810_v33 = vpop.f32.mrf.mxu1  ;;  %v14525_v42 = vld [vmem:[#allocation87_spill] sm:$0xff] }
 0x2c9   :  { %v2524_v44 = vpop.f32.mrf.mxu0 }
 0x2ca   :  { %v2525_v16 = vadd.f32 %v2524_v44, %v14524_v29  ;;  %v2813_v62 = vpop.f32.mrf.mxu1  ;;  %v7344_v44 = vld [vmem:[%s13588_s1 + $0x2f8] sm:$0xff]  }
 0x2cb   :  { %v2526_v7 = vpop.f32.mrf.mxu0  ;;  %4982 = vmatpush1.bf16.msra.mxu0 %v7344_v44 }
 0x2cc   :  { %v9984_v37 = vadd.f32 %v2813_v62, %v2525_v16  ;;  %v2815_v9 = vpop.f32.mrf.mxu1  ;;  %4983 = vmatprep.subr.bf16.mxu0 %v14100_v56 }
 0x2cd   :  { %v2527_v55 = vpop.f32.mrf.mxu0 }
 0x2ce   :  { %v2528_v8 = vadd.f32 %v2527_v55, %v9631_v53  ;;  %v2816_v20 = vpop.f32.mrf.mxu1  ;;  %v7345_v55 = vld [vmem:[%s13588_s1 + $0x2f0] sm:$0xff]  }
 0x2cf   :  { %v2529_v32 = vpop.f32.mrf.mxu0  ;;  %4984 = vmatpush1.bf16.msra.mxu0 %v7345_v55 }
 0x2d0   :  { %v9987_v49 = vadd.f32 %v2816_v20, %v2528_v8  ;;  %v2818_v61 = vpop.f32.mrf.mxu1  ;;  %4985 = vmatprep.subr.bf16.mxu0 %v14100_v56 }
 0x2d1   :  { %v2532_v13 = vpop.f32.mrf.mxu0  ;;  %v14527_v61 = vld [vmem:[#allocation77_spill] sm:$0xff] }
 0x2d2   :  { %v2533_v52 = vadd.f32 %v2532_v13, %v14525_v42  ;;  %v2821_v22 = vpop.f32.mrf.mxu1 }
 0x2d3   :  { %v2534_v33 = vpop.f32.mrf.mxu0 }
 0x2d4   :  { %v9993_v29 = vadd.f32 %v2821_v22, %v2533_v52  ;;  %v2823_v16 = vpop.f32.mrf.mxu1 }
 0x2d5   :  { %v2535_v62 = vpop.f32.mrf.mxu0 }
 0x2d6   :  { %v2536_v53 = vadd.f32 %v2535_v62, %v9639_v0  ;;  %v2824_v7 = vpop.f32.mrf.mxu1  ;;  %v7346_v0 = vld [vmem:[%s13588_s1 + $0x2e8] sm:$0xff]  }
 0x2d7   :  { %v2537_v9 = vpop.f32.mrf.mxu0  ;;  %4986 = vmatpush1.bf16.msra.mxu0 %v7346_v0 }
 0x2d8   :  { %v10000_v8 = vadd.f32 %v2824_v7, %v2536_v53  ;;  %v2826_v20 = vpop.f32.mrf.mxu1  ;;  %4987 = vmatprep.subr.bf16.mxu0 %v14100_v56  ;;  %v7347_v7 = vld [vmem:[%s13588_s1 + $0x2e0] sm:$0xff]  }
 0x2d9   :  { %v2540_v32 = vpop.f32.mrf.mxu0 }
 0x2da   :  { %14526 = vst [vmem:[#allocation113_spill] sm:$0xff] %v10000_v8  ;;  %v2541_v13 = vadd.f32 %v2540_v32, %v14527_v61  ;;  %v2829_v42 = vpop.f32.mrf.mxu1 }
 0x2db   :  { %v2542_v52 = vpop.f32.mrf.mxu0  ;;  %4988 = vmatpush1.bf16.msra.mxu0 %v7347_v7 }
 0x2dc   :  { %v10007_v22 = vadd.f32 %v2829_v42, %v2541_v13  ;;  %v2831_v33 = vpop.f32.mrf.mxu1  ;;  %4989 = vmatprep.subr.bf16.mxu0 %v14100_v56 }
 0x2dd   :  { %v2543_v44 = vpop.f32.mrf.mxu0  ;;  %v14529_v33 = vld [vmem:[#allocation93_spill] sm:$0xff] }
 0x2de   :  { %v2544_v16 = vadd.f32 %v2543_v44, %v9647_v3  ;;  %v2832_v62 = vpop.f32.mrf.mxu1  ;;  %v7349_v3 = vld [vmem:[%s13588_s1 + $0x2d8] sm:$0xff]  }
 0x2df   :  { %v2545_v53 = vpop.f32.mrf.mxu0  ;;  %4990 = vmatpush1.bf16.msra.mxu0 %v7349_v3  ;;  %v7351_v3 = vld [vmem:[%s13588_s1 + $0x2c8] sm:$0xff]  }
 0x2e0   :  { %v10014_v9 = vadd.f32 %v2832_v62, %v2544_v16  ;;  %v2834_v55 = vpop.f32.mrf.mxu1  ;;  %4991 = vmatprep.subr.bf16.mxu0 %v14100_v56 }
 0x2e1   :  { %v2548_v20 = vpop.f32.mrf.mxu0 }
 0x2e2   :  { %v2549_v32 = vadd.f32 %v2548_v20, %v9652_v54  ;;  %v2837_v61 = vpop.f32.mrf.mxu1  ;;  %v7350_v54 = vld [vmem:[%s13588_s1 + $0x2d0] sm:$0xff]  }
 0x2e3   :  { %v2550_v13 = vpop.f32.mrf.mxu0  ;;  %4992 = vmatpush1.bf16.msra.mxu0 %v7350_v54  ;;  %v14531_v20 = vld [vmem:[#allocation91_spill] sm:$0xff]  ;;  %v7352_v54 = vld [vmem:[%s13588_s1 + $0x2c0] sm:$0xff]  }
 0x2e4   :  { %v10021_v42 = vadd.f32 %v2837_v61, %v2549_v32  ;;  %v2839_v52 = vpop.f32.mrf.mxu1  ;;  %4993 = vmatprep.subr.bf16.mxu0 %v14100_v56 }
 0x2e5   :  { %v2551_v0 = vpop.f32.mrf.mxu0 }
 0x2e6   :  { %14528 = vst [vmem:[#allocation110_spill] sm:$0xff] %v10021_v42  ;;  %v2552_v44 = vadd.f32 %v2551_v0, %v14529_v33  ;;  %v2840_v16 = vpop.f32.mrf.mxu1 }
 0x2e7   :  { %v2553_v62 = vpop.f32.mrf.mxu0  ;;  %4994 = vmatpush1.bf16.msra.mxu0 %v7351_v3 }
 0x2e8   :  { %v10028_v53 = vadd.f32 %v2840_v16, %v2552_v44  ;;  %v2842_v7 = vpop.f32.mrf.mxu1  ;;  %4995 = vmatprep.subr.bf16.mxu0 %v14100_v56 }
 0x2e9   :  { %v2556_v55 = vpop.f32.mrf.mxu0 }
 0x2ea   :  { %14530 = vst [vmem:[#allocation111_spill] sm:$0xff] %v10028_v53  ;;  %v2557_v32 = vadd.f32 %v2556_v55, %v14531_v20  ;;  %v2845_v61 = vpop.f32.mrf.mxu1 }
 0x2eb   :  { %v2558_v13 = vpop.f32.mrf.mxu0  ;;  %4996 = vmatpush1.bf16.msra.mxu0 %v7352_v54 }
 0x2ec   :  { %v10035_v52 = vadd.f32 %v2845_v61, %v2557_v32  ;;  %v2847_v0 = vpop.f32.mrf.mxu1  ;;  %4997 = vmatprep.subr.bf16.mxu0 %v14100_v56 }
 0x2ed   :  { %v2559_v33 = vpop.f32.mrf.mxu0 }
 0x2ee   :  { %14532 = vst [vmem:[#allocation116_spill] sm:$0xff] %v10035_v52  ;;  %v2560_v44 = vadd.f32 %v2559_v33, %v9663_v4  ;;  %v2848_v16 = vpop.f32.mrf.mxu1  ;;  %v7354_v4 = vld [vmem:[%s13588_s1 + $0x338] sm:$0xff]  }
 0x2ef   :  { %v2561_v62 = vpop.f32.mrf.mxu0  ;;  %4998 = vmatpush2.bf16.msra.mxu0 %v7354_v4 }
 0x2f0   :  { %v10042_v7 = vadd.f32 %v2848_v16, %v2560_v44  ;;  %v2850_v55 = vpop.f32.mrf.mxu1  ;;  %v14535_v44 = vld [vmem:[#allocation92_spill] sm:$0xff]  ;;  %4999 = vmatprep.subr.bf16.mxu0 %v14100_v56 }
 0x2f1   :  { %v2564_v20 = vpop.f32.mrf.mxu0 }
 0x2f2   :  { %14533 = vst [vmem:[#allocation114_spill] sm:$0xff] %v10042_v7  ;;  %v2565_v32 = vadd.f32 %v2564_v20, %v9668_v27  ;;  %v2853_v61 = vpop.f32.mrf.mxu1  ;;  %v7355_v27 = vld [vmem:[%s13588_s1 + $0x330] sm:$0xff]  }
 0x2f3   :  { %v2566_v13 = vpop.f32.mrf.mxu0  ;;  %5000 = vmatpush2.bf16.msra.mxu0 %v7355_v27 }
 0x2f4   :  { %v10049_v3 = vadd.f32 %v2853_v61, %v2565_v32  ;;  %v2855_v0 = vpop.f32.mrf.mxu1  ;;  %v14537_v32 = vld [vmem:[#allocation94_spill] sm:$0xff]  ;;  %5001 = vmatprep.subr.bf16.mxu0 %v14100_v56 }
 0x2f5   :  { %v2567_v33 = vpop.f32.mrf.mxu0 }
 0x2f6   :  { %14534 = vst [vmem:[#allocation117_spill] sm:$0xff] %v10049_v3  ;;  %v2568_v16 = vadd.f32 %v2567_v33, %v14535_v44  ;;  %v2856_v62 = vpop.f32.mrf.mxu1  ;;  %v7356_v33 = vld [vmem:[%s13588_s1 + $0x328] sm:$0xff]  }
 0x2f7   :  { %v2569_v54 = vpop.f32.mrf.mxu0  ;;  %5002 = vmatpush2.bf16.msra.mxu0 %v7356_v33 }
 0x2f8   :  { %v10056_v55 = vadd.f32 %v2856_v62, %v2568_v16  ;;  %v2858_v20 = vpop.f32.mrf.mxu1  ;;  %v14539_v16 = vld [vmem:[#allocation95_spill] sm:$0xff]  ;;  %5003 = vmatprep.subr.bf16.mxu0 %v14100_v56 }
 0x2f9   :  { %v2572_v13 = vpop.f32.mrf.mxu0 }
 0x2fa   :  { %14536 = vst [vmem:[#allocation115_spill] sm:$0xff] %v10056_v55  ;;  %v2573_v61 = vadd.f32 %v2572_v13, %v14537_v32  ;;  %v2861_v0 = vpop.f32.mrf.mxu1 }
 0x2fb   :  { %v2574_v4 = vpop.f32.mrf.mxu0 }
 0x2fc   :  { %v10063_v44 = vadd.f32 %v2861_v0, %v2573_v61  ;;  %v2863_v54 = vpop.f32.mrf.mxu1  ;;  %v7343_v4 = vld [vmem:[%s13588_s1 + $0x298] sm:$0xff]  }
 0x2fd   :  { %v2575_v46 = vpop.f32.mrf.mxu0  ;;  %4717 = vmatpush2.bf16.msra.mxu1 %v7343_v4 }
 0x2fe   :  { %14538 = vst [vmem:[#allocation118_spill] sm:$0xff] %v10063_v44  ;;  %v2576_v62 = vadd.f32 %v2575_v46, %v14539_v16  ;;  %v2864_v20 = vpop.f32.mrf.mxu1  ;;  %4718 = vmatprep.subr.bf16.mxu1 %v14100_v56  ;;  %v7348_v46 = vld [vmem:[%s13588_s1 + $0x290] sm:$0xff]   ;;  %v14541_v16 = vld [vmem:[#allocation96_spill] sm:$0xff] }
 0x2ff   :  { %v2577_v27 = vpop.f32.mrf.mxu0 }
 0x300   :  { %v10067_v13 = vadd.f32 %v2864_v20, %v2576_v62  ;;  %v2866_v32 = vpop.f32.mrf.mxu1 }
 0x301   :  { %v7113_v55 = vpop.f32.mrf.mxu0  ;;  %4719 = vmatpush2.bf16.msra.mxu1 %v7348_v46  ;;  %v7357_v32 = vld [vmem:[%s13588_s1 + $0x320] sm:$0xff]  }
 0x302   :  { %14540 = vst [vmem:[#allocation17_spill] sm:$0xff] %v10067_v13  ;;  %v10080_v54 = vadd.f32 %v7113_v55, %v9700_v10  ;;  %4720 = vmatprep.subr.bf16.mxu1 %v14100_v56  ;;  %v7353_v55 = vld [vmem:[%s13588_s1 + $0x288] sm:$0xff]   ;;  %5004 = vmatpush2.bf16.msra.mxu0 %v7357_v32 }
 0x303   :  { %v2902_v3 = vpop.f32.mrf.mxu0  ;;  %5005 = vmatprep.subr.bf16.mxu0 %v14100_v56 }
 0x304   :  { %v10074_v0 = vadd.f32 %v2902_v3, %v9689_v35  ;;  %v3235_v46 = vmul.f32 %v10080_v54, %v10080_v54 }
 0x305   :  { %v7114_v61 = vpop.f32.mrf.mxu0  ;;  %4721 = vmatpush2.bf16.msra.mxu1 %v7353_v55 }
 0x306   :  { %v3233_v27 = vmul.f32 %v10074_v0, %v10074_v0  ;;  %v10089_v35 = vadd.f32 %v7114_v61, %v9703_v31  ;;  %4722 = vmatprep.subr.bf16.mxu1 %v14100_v56 }
 0x307   :  { %v2905_v33 = vpop.f32.mrf.mxu0 }
 0x308   :  { %v10083_v62 = vadd.f32 %v2905_v33, %v14541_v16  ;;  %v3236_v13 = vmul.f32 %v10089_v35, %v10089_v35 }
 0x309   :  { %v7117_v20 = vpop.f32.mrf.mxu0 }
 0x30a   :  { %v3157_v3 = vadd.f32 %v10083_v62, %v10074_v0  ;;  %v3234_v10 = vmul.f32 %v10083_v62, %v10083_v62 }
 0x30b   :  { %v2918_v4 = vpop.f32.mrf.mxu0 }
 0x30c   :  { %v3158_v31 = vadd.f32 %v3157_v3, %v10080_v54  ;;  %v3297_v61 = vadd.f32 %v3234_v10, %v3233_v27  ;;  %v10105_v33 = vadd.f32 %v2918_v4, %v9713_v51  ;;  %v7359_v27 = vld [vmem:[%s13588_s1 + $0x318] sm:$0xff]   ;;  %v10116_v51 = vadd.f32 %v7117_v20, %v9724_v63 }
 0x30d   :  { %v7118_v16 = vpop.f32.mrf.mxu0  ;;  %5006 = vmatpush2.bf16.msra.mxu0 %v7359_v27 }
 0x30e   :  { %v3298_v44 = vadd.f32 %v3297_v61, %v3235_v46  ;;  %v3159_v53 = vadd.f32 %v3158_v31, %v10089_v35  ;;  %v3237_v55 = vmul.f32 %v10105_v33, %v10105_v33  ;;  %v10125_v61 = vadd.f32 %v7118_v16, %v9727_v45  ;;  %5007 = vmatprep.subr.bf16.mxu0 %v14100_v56  ;;  %v7358_v16 = vld [vmem:[%s13588_s1 + $0x280] sm:$0xff]  }
 0x30f   :  { %v2921_v3 = vpop.f32.mrf.mxu0  ;;  %4723 = vmatpush2.bf16.msra.mxu1 %v7358_v16  ;;  %v7362_v16 = vld [vmem:[%s13588_s1 + $0x300] sm:$0xff]  }
 0x310   :  { %v3160_v10 = vadd.f32 %v3159_v53, %v10105_v33  ;;  %v3299_v32 = vadd.f32 %v3298_v44, %v3236_v13  ;;  %v10122_v4 = vadd.f32 %v2921_v3, %v9717_v23  ;;  %v7360_v53 = vld [vmem:[%s13588_s1 + $0x310] sm:$0xff]   ;;  %v3239_v23 = vmul.f32 %v10116_v51, %v10116_v51  ;;  %5270 = vmatprep.subr.bf16.mxu1 %v14100_v56 }
 0x311   :  { %v7121_v46 = vpop.f32.mrf.mxu0  ;;  %5008 = vmatpush2.bf16.msra.mxu0 %v7360_v53  ;;  %v3240_v3 = vmul.f32 %v10125_v61, %v10125_v61 }
 0x312   :  { %v3300_v31 = vadd.f32 %v3299_v32, %v3237_v55  ;;  %v3161_v7 = vadd.f32 %v3160_v10, %v10122_v4  ;;  %v3238_v63 = vmul.f32 %v10122_v4, %v10122_v4  ;;  %5009 = vmatprep.subr.bf16.mxu0 %v14100_v56 }
 0x313   :  { %v2934_v44 = vpop.f32.mrf.mxu0 }
 0x314   :  { %v3162_v13 = vadd.f32 %v3161_v7, %v10116_v51  ;;  %v3301_v20 = vadd.f32 %v3300_v31, %v3238_v63  ;;  %v10138_v45 = vadd.f32 %v2934_v44, %v9737_v39  ;;  %v7361_v7 = vld [vmem:[%s13588_s1 + $0x308] sm:$0xff]   ;;  %v10150_v39 = vadd.f32 %v7121_v46, %v9761_v43 }
 0x315   :  { %v7122_v27 = vpop.f32.mrf.mxu0  ;;  %5010 = vmatpush2.bf16.msra.mxu0 %v7361_v7 }
 0x316   :  { %v3302_v10 = vadd.f32 %v3301_v20, %v3239_v23  ;;  %v3163_v55 = vadd.f32 %v3162_v13, %v10125_v61  ;;  %v3241_v63 = vmul.f32 %v10138_v45, %v10138_v45  ;;  %v10161_v43 = vadd.f32 %v7122_v27, %v9767_v19  ;;  %5011 = vmatprep.subr.bf16.mxu0 %v14100_v56 }
 0x317   :  { %v2937_v32 = vpop.f32.mrf.mxu0 }
 0x318   :  { %v3164_v31 = vadd.f32 %v3163_v55, %v10138_v45  ;;  %v3303_v53 = vadd.f32 %v3302_v10, %v3240_v3  ;;  %v10158_v44 = vadd.f32 %v2937_v32, %v9747_v17  ;;  %v3243_v17 = vmul.f32 %v10150_v39, %v10150_v39 }
 0x319   :  { %v7125_v23 = vpop.f32.mrf.mxu0  ;;  %5012 = vmatpush2.bf16.msra.mxu0 %v7362_v16  ;;  %v3244_v7 = vmul.f32 %v10161_v43, %v10161_v43 }
 0x31a   :  { %v3304_v13 = vadd.f32 %v3303_v53, %v3241_v63  ;;  %v3165_v46 = vadd.f32 %v3164_v31, %v10158_v44  ;;  %v3242_v20 = vmul.f32 %v10158_v44, %v10158_v44  ;;  %5559 = vmatprep.subr.bf16.mxu0 %v14100_v56  ;;  %v10181_v63 = vadd.f32 %v7125_v23, %v9794_v57 }
 0x31b   :  { %v2950_v3 = vpop.f32.mrf.mxu0 }
 0x31c   :  { %v3166_v10 = vadd.f32 %v3165_v46, %v10150_v39  ;;  %v3305_v55 = vadd.f32 %v3304_v13, %v3242_v20  ;;  %v10174_v19 = vadd.f32 %v2950_v3, %v9785_v50  ;;  %14542 = vst [vmem:[#allocation119_spill] sm:$0xff] %v10181_v63 }
 0x31d   :  { %v7126_v27 = vpop.f32.mrf.mxu0 }
 0x31e   :  { %v3306_v32 = vadd.f32 %v3305_v55, %v3243_v17  ;;  %v3167_v31 = vadd.f32 %v3166_v10, %v10161_v43  ;;  %v3245_v50 = vmul.f32 %v10174_v19, %v10174_v19  ;;  %v14544_v17 = vld [vmem:[#allocation97_spill] sm:$0xff] }
 0x31f   :  { %v2953_v53 = vpop.f32.mrf.mxu0  ;;  %v10190_v55 = vadd.f32 %v7126_v27, %v14544_v17 }
 0x320   :  { %v3168_v46 = vadd.f32 %v3167_v31, %v10174_v19  ;;  %v3307_v13 = vadd.f32 %v3306_v32, %v3244_v7  ;;  %v10187_v20 = vadd.f32 %v2953_v53, %v9790_v15  ;;  %v3247_v31 = vmul.f32 %v10181_v63, %v10181_v63  ;;  %v14546_v32 = vld [vmem:[#allocation98_spill] sm:$0xff] }
 0x321   :  { %v7129_v16 = vpop.f32.mrf.mxu0  ;;  %14545 = vst [vmem:[#allocation11_spill] sm:$0xff] %v10190_v55  ;;  %v3248_v27 = vmul.f32 %v10190_v55, %v10190_v55 }
 0x322   :  { %14543 = vst [vmem:[#allocation22_spill] sm:$0xff] %v10187_v20  ;;  %v3308_v3 = vadd.f32 %v3307_v13, %v3245_v50  ;;  %v3169_v10 = vadd.f32 %v3168_v46, %v10187_v20  ;;  %v3246_v57 = vmul.f32 %v10187_v20, %v10187_v20  ;;  %v14548_v13 = vld [vmem:[#allocation100_spill] sm:$0xff] }
 0x323   :  { %v2966_v23 = vpop.f32.mrf.mxu0  ;;  %v10205_v17 = vadd.f32 %v7129_v16, %v14548_v13 }
 0x324   :  { %v3170_v56 = vadd.f32 %v3169_v10, %v10181_v63  ;;  %v3309_v7 = vadd.f32 %v3308_v3, %v3246_v57  ;;  %v10199_v15 = vadd.f32 %v2966_v23, %v14546_v32  ;;  %v14550_v57 = vld [vmem:[#allocation99_spill] sm:$0xff]  ;;  %v14552_v63 = vld [vmem:[#allocation101_spill] sm:$0xff] }
 0x325   :  { %v7130_v53 = vpop.f32.mrf.mxu0  ;;  %14549 = vst [vmem:[#allocation18_spill] sm:$0xff] %v10205_v17 }
 0x326   :  { %14547 = vst [vmem:[#allocation27_spill] sm:$0xff] %v10199_v15  ;;  %v3310_v50 = vadd.f32 %v3309_v7, %v3247_v31  ;;  %v3171_v46 = vadd.f32 %v3170_v56, %v10190_v55  ;;  %v3249_v10 = vmul.f32 %v10199_v15, %v10199_v15  ;;  %v10214_v20 = vadd.f32 %v7130_v53, %v14552_v63 }
 0x327   :  { %v2969_v42 = vpop.f32.mrf.mxu0  ;;  %v3251_v7 = vmul.f32 %v10205_v17, %v10205_v17 }
 0x328   :  { %v3172_v52 = vadd.f32 %v3171_v46, %v10199_v15  ;;  %v3311_v3 = vadd.f32 %v3310_v50, %v3248_v27  ;;  %v10211_v23 = vadd.f32 %v2969_v42, %v14550_v57  ;;  %v14553_v50 = vld [vmem:[#allocation102_spill] sm:$0xff]  ;;  %v3252_v63 = vmul.f32 %v10214_v20, %v10214_v20  ;;  %v14558_v15 = vld [vmem:[#allocation107_spill] sm:$0xff] }
 0x329   :  { %v7133_v32 = vpop.f32.mrf.mxu0 }
 0x32a   :  { %14551 = vst [vmem:[#allocation32_spill] sm:$0xff] %v10211_v23  ;;  %v3312_v8 = vadd.f32 %v3311_v3, %v3249_v10  ;;  %v3173_v56 = vadd.f32 %v3172_v52, %v10211_v23  ;;  %v3250_v16 = vmul.f32 %v10211_v23, %v10211_v23  ;;  %v14554_v10 = vld [vmem:[#allocation104_spill] sm:$0xff] }
 0x32b   :  { %v2982_v31 = vpop.f32.mrf.mxu0  ;;  %v10229_v3 = vadd.f32 %v7133_v32, %v14554_v10 }
 0x32c   :  { %v3174_v46 = vadd.f32 %v3173_v56, %v10205_v17  ;;  %v3313_v27 = vadd.f32 %v3312_v8, %v3250_v16  ;;  %v10223_v42 = vadd.f32 %v2982_v31, %v14553_v50  ;;  %v14556_v16 = vld [vmem:[#allocation103_spill] sm:$0xff] }
 0x32d   :  { %v7134_v13 = vpop.f32.mrf.mxu0  ;;  %14555 = vst [vmem:[#allocation15_spill] sm:$0xff] %v10229_v3 }
 0x32e   :  { %v3314_v53 = vadd.f32 %v3313_v27, %v3251_v7  ;;  %v3175_v52 = vadd.f32 %v3174_v46, %v10214_v20  ;;  %v3253_v56 = vmul.f32 %v10223_v42, %v10223_v42  ;;  %v10238_v55 = vadd.f32 %v7134_v13, %v14558_v15 }
 0x32f   :  { %v2985_v57 = vpop.f32.mrf.mxu0  ;;  %v3255_v27 = vmul.f32 %v10229_v3, %v10229_v3 }
 0x330   :  { %v3176_v23 = vadd.f32 %v3175_v52, %v10223_v42  ;;  %v3315_v8 = vadd.f32 %v3314_v53, %v3252_v63  ;;  %v10235_v31 = vadd.f32 %v2985_v57, %v14556_v16  ;;  %v14559_v53 = vld [vmem:[#allocation105_spill] sm:$0xff]  ;;  %v3256_v15 = vmul.f32 %v10238_v55, %v10238_v55 }
 0x331   :  { %v7137_v50 = vpop.f32.mrf.mxu0 }
 0x332   :  { %14557 = vst [vmem:[#allocation37_spill] sm:$0xff] %v10235_v31  ;;  %v3316_v17 = vadd.f32 %v3315_v8, %v3253_v56  ;;  %v3177_v7 = vadd.f32 %v3176_v23, %v10235_v31  ;;  %v3254_v32 = vmul.f32 %v10235_v31, %v10235_v31  ;;  %v10253_v56 = vadd.f32 %v7137_v50, %v9855_v41 }
 0x333   :  { %v2998_v46 = vpop.f32.mrf.mxu0 }
 0x334   :  { %v3178_v52 = vadd.f32 %v3177_v7, %v10229_v3  ;;  %v3317_v63 = vadd.f32 %v3316_v17, %v3254_v32  ;;  %v10247_v10 = vadd.f32 %v2998_v46, %v14559_v53  ;;  %14561 = vst [vmem:[#allocation43_spill] sm:$0xff] %v10253_v56  ;;  %v14562_v3 = vld [vmem:[#allocation108_spill] sm:$0xff] }
 0x335   :  { %v7138_v57 = vpop.f32.mrf.mxu0 }
 0x336   :  { %14560 = vst [vmem:[#allocation23_spill] sm:$0xff] %v10247_v10  ;;  %v3318_v13 = vadd.f32 %v3317_v63, %v3255_v27  ;;  %v3179_v23 = vadd.f32 %v3178_v52, %v10238_v55  ;;  %v3257_v7 = vmul.f32 %v10247_v10, %v10247_v10  ;;  %v10262_v31 = vadd.f32 %v7138_v57, %v14562_v3 }
 0x337   :  { %v3001_v8 = vpop.f32.mrf.mxu0  ;;  %v3259_v52 = vmul.f32 %v10253_v56, %v10253_v56 }
 0x338   :  { %v3180_v16 = vadd.f32 %v3179_v23, %v10247_v10  ;;  %v3319_v17 = vadd.f32 %v3318_v13, %v3256_v15  ;;  %v10259_v32 = vadd.f32 %v3001_v8, %v9850_v48  ;;  %v14563_v13 = vld [vmem:[#allocation109_spill] sm:$0xff]  ;;  %v3260_v3 = vmul.f32 %v10262_v31, %v10262_v31 }
 0x339   :  { %v7141_v46 = vpop.f32.mrf.mxu0 }
 0x33a   :  { %v3320_v53 = vadd.f32 %v3319_v17, %v3257_v7  ;;  %v3181_v27 = vadd.f32 %v3180_v16, %v10259_v32  ;;  %v3258_v41 = vmul.f32 %v10259_v32, %v10259_v32  ;;  %v10277_v16 = vadd.f32 %v7141_v46, %v9886_v25 }
 0x33b   :  { %v3014_v50 = vpop.f32.mrf.mxu0 }
 0x33c   :  { %v3182_v63 = vadd.f32 %v3181_v27, %v10253_v56  ;;  %v3321_v15 = vadd.f32 %v3320_v53, %v3258_v41  ;;  %v10271_v48 = vadd.f32 %v3014_v50, %v14563_v13  ;;  %14564 = vst [vmem:[#allocation19_spill] sm:$0xff] %v10277_v16 }
 0x33d   :  { %v7142_v23 = vpop.f32.mrf.mxu0 }
 0x33e   :  { %v3322_v57 = vadd.f32 %v3321_v15, %v3259_v52  ;;  %v3183_v8 = vadd.f32 %v3182_v63, %v10262_v31  ;;  %v3261_v27 = vmul.f32 %v10271_v48, %v10271_v48  ;;  %v10286_v56 = vadd.f32 %v7142_v23, %v9889_v11 }
 0x33f   :  { %v3017_v7 = vpop.f32.mrf.mxu0  ;;  %v3263_v63 = vmul.f32 %v10277_v16, %v10277_v16 }
 0x340   :  { %v3184_v17 = vadd.f32 %v3183_v8, %v10271_v48  ;;  %v3323_v53 = vadd.f32 %v3322_v57, %v3260_v3  ;;  %v10283_v41 = vadd.f32 %v3017_v7, %v9882_v24  ;;  %14565 = vst [vmem:[#allocation48_spill] sm:$0xff] %v10286_v56  ;;  %v3264_v11 = vmul.f32 %v10286_v56, %v10286_v56 }
 0x341   :  { %v7145_v50 = vpop.f32.mrf.mxu0 }
 0x342   :  { %v3324_v13 = vadd.f32 %v3323_v53, %v3261_v27  ;;  %v3185_v52 = vadd.f32 %v3184_v17, %v10283_v41  ;;  %v3262_v25 = vmul.f32 %v10283_v41, %v10283_v41  ;;  %v10301_v7 = vadd.f32 %v7145_v50, %v9906_v5 }
 0x343   :  { %v3030_v46 = vpop.f32.mrf.mxu0 }
 0x344   :  { %v3186_v15 = vadd.f32 %v3185_v52, %v10277_v16  ;;  %v3325_v3 = vadd.f32 %v3324_v13, %v3262_v25  ;;  %v10295_v24 = vadd.f32 %v3030_v46, %v9894_v59  ;;  %14567 = vst [vmem:[#allocation54_spill] sm:$0xff] %v10301_v7  ;;  %v3267_v50 = vmul.f32 %v10301_v7, %v10301_v7 }
 0x345   :  { %v7146_v57 = vpop.f32.mrf.mxu0 }
 0x346   :  { %14566 = vst [vmem:[#allocation28_spill] sm:$0xff] %v10295_v24  ;;  %v3187_v23 = vadd.f32 %v3186_v15, %v10286_v56  ;;  %v3326_v8 = vadd.f32 %v3325_v3, %v3263_v63  ;;  %v3265_v59 = vmul.f32 %v10295_v24, %v10295_v24  ;;  %v10309_v13 = vadd.f32 %v7146_v57, %v9909_v12 }
 0x347   :  { %v3033_v17 = vpop.f32.mrf.mxu0 }
 0x348   :  { %v3188_v27 = vrot.slane %v3187_v23, 4  ;;  %v3327_v53 = vadd.f32 %v3326_v8, %v3264_v11  ;;  %v10304_v10 = vadd.f32 %v3033_v17, %v9901_v60  ;;  %14569 = vst [vmem:[#allocation59_spill] sm:$0xff] %v10309_v13  ;;  %v3268_v12 = vmul.f32 %v10309_v13, %v10309_v13 }
 0x349   :  { %v7149_v52 = vpop.f32.mrf.mxu0 }
 0x34a   :  { %14568 = vst [vmem:[#allocation24_spill] sm:$0xff] %v10304_v10  ;;  %v3189_v25 = vadd.f32 %v3188_v27, %v3187_v23  ;;  %v3328_v46 = vrot.slane %v3327_v53, 4  ;;  %v3194_v63 = vadd.f32 %v10304_v10, %v10295_v24  ;;  %v3266_v5 = vmul.f32 %v10304_v10, %v10304_v10 }
 0x34b   :  { %v3046_v60 = vpop.f32.mrf.mxu0 }
 0x34c   :  { %v3190_v15 = vrot.slane %v3189_v25, 2  ;;  %v3329_v3 = vadd.f32 %v3328_v46, %v3327_v53  ;;  %v3195_v11 = vadd.f32 %v3194_v63, %v10301_v7  ;;  %v3334_v8 = vadd.f32 %v3266_v5, %v3265_v59 }
 0x34d   :  { %v10321_v57 = vadd.f32 %v3046_v60, %v9914_v34  ;;  %v7150_v23 = vpop.f32.mrf.mxu0  ;;  %v10328_v5 = vadd.f32 %v7149_v52, %v9926_v40 }
 0x34e   :  { %v3191_v17 = vadd.f32 %v3190_v15, %v3189_v25  ;;  %v3330_v27 = vrot.slane %v3329_v3, 2  ;;  %v3335_v24 = vadd.f32 %v3334_v8, %v3267_v50  ;;  %v3196_v10 = vadd.f32 %v3195_v11, %v10309_v13 }
 0x34f   :  { %14570 = vst [vmem:[#allocation33_spill] sm:$0xff] %v10321_v57  ;;  %v3269_v56 = vmul.f32 %v10321_v57, %v10321_v57  ;;  %v3049_v16 = vpop.f32.mrf.mxu0  ;;  %14571 = vst [vmem:[#allocation62_spill] sm:$0xff] %v10328_v5  ;;  %v10334_v11 = vadd.f32 %v7150_v23, %v9929_v36 }
 0x350   :  { %v3192_v53 = vrot.slane %v3191_v17, 1  ;;  %v3331_v46 = vadd.f32 %v3330_v27, %v3329_v3  ;;  %v3197_v59 = vadd.f32 %v3196_v10, %v10321_v57  ;;  %v3336_v63 = vadd.f32 %v3335_v24, %v3268_v12 }
 0x351   :  { %v10331_v34 = vadd.f32 %v3049_v16, %v9920_v26  ;;  %v7153_v25 = vpop.f32.mrf.mxu0  ;;  %14573 = vst [vmem:[#allocation70_spill] sm:$0xff] %v10334_v11  ;;  %v3271_v26 = vmul.f32 %v10328_v5, %v10328_v5 }
 0x352   :  { %v3193_v60 = vadd.f32 %v3192_v53, %v3191_v17  ;;  %v3332_v50 = vrot.slane %v3331_v46, 1  ;;  %v3337_v15 = vadd.f32 %v3336_v63, %v3269_v56  ;;  %v3272_v17 = vmul.f32 %v10334_v11, %v10334_v11 }
 0x353   :  { %14572 = vst [vmem:[#allocation29_spill] sm:$0xff] %v10331_v34  ;;  %v3198_v8 = vadd.f32 %v3197_v59, %v10331_v34  ;;  %v3270_v3 = vmul.f32 %v10331_v34, %v10331_v34  ;;  %v3062_v10 = vpop.f32.mrf.mxu0 }
 0x354   :  { %v10339_v24 = vmul.f32 0.00390625, %v3193_v60  ;;  %v3333_v40 = vadd.f32 %v3332_v50, %v3331_v46  ;;  %v10345_v56 = vadd.f32 %v3062_v10, %v9934_v58  ;;  %v10356_v60 = vadd.f32 %v7153_v25, %v9946_v38 }
 0x355   :  { %v3199_v16 = vadd.f32 %v3198_v8, %v10328_v5  ;;  %v3338_v52 = vadd.f32 %v3337_v15, %v3270_v3  ;;  %v7154_v36 = vpop.f32.mrf.mxu0 }
 0x356   :  { %14574 = vst [vmem:[#allocation38_spill] sm:$0xff] %v10345_v56  ;;  %v3371_v12 = vmul.f32 0.00390625, %v3333_v40  ;;  %v3373_v23 = vmul.f32 %v10339_v24, %v10339_v24  ;;  %14576 = vst [vmem:[#allocation34_spill] sm:$0xff] %v10356_v60  ;;  %v3273_v50 = vmul.f32 %v10345_v56, %v10345_v56  ;;  %v3275_v25 = vmul.f32 %v10356_v60, %v10356_v60 }
 0x357   :  { %v3339_v27 = vadd.f32 %v3338_v52, %v3271_v26  ;;  %v3200_v53 = vadd.f32 %v3199_v16, %v10334_v11  ;;  %v3065_v46 = vpop.f32.mrf.mxu0  ;;  %v10364_v26 = vadd.f32 %v7154_v36, %v9953_v21 }
 0x358   :  { %v3375_v59 = vsub.f32 %v3371_v12, %v3373_v23  ;;  %v10353_v63 = vadd.f32 %v3065_v46, %v9940_v2 }
 0x359   :  { %v3201_v58 = vadd.f32 %v3200_v53, %v10345_v56  ;;  %v3340_v15 = vadd.f32 %v3339_v27, %v3272_v17  ;;  %v7157_v8 = vpop.f32.mrf.mxu0  ;;  %14577 = vst [vmem:[#allocation85_spill] sm:$0xff] %v10364_v26  ;;  %v3276_v27 = vmul.f32 %v10364_v26, %v10364_v26  ;;  %v14598_v56 = vld [vmem:[#allocation15_spill] sm:$0xff] }
 0x35a   :  { %14575 = vst [vmem:[#allocation78_spill] sm:$0xff] %v10353_v63  ;;  %v3377_v3 = vmax.f32 %v3375_v59, 0.0  ;;  %v3274_v10 = vmul.f32 %v10353_v63, %v10353_v63  ;;  %v10380_v59 = vadd.f32 %v7157_v8, %v9972_v30 }
 0x35b   :  { %v3341_v40 = vadd.f32 %v3340_v15, %v3273_v50  ;;  %v3202_v2 = vadd.f32 %v3201_v58, %v10353_v63  ;;  %v3078_v16 = vpop.f32.mrf.mxu0  ;;  %v14596_v63 = vld [vmem:[#allocation18_spill] sm:$0xff] }
 0x35c   :  { %v3379_v38 = vadd.f32 1e-05, %v3377_v3  ;;  %v10371_v23 = vadd.f32 %v3078_v16, %v9961_v28  ;;  %14580 = vst [vmem:[#allocation69_spill] sm:$0xff] %v10380_v59  ;;  %v3279_v30 = vmul.f32 %v10380_v59, %v10380_v59 }
 0x35d   :  { %v3203_v52 = vadd.f32 %v3202_v2, %v10356_v60  ;;  %v3342_v12 = vadd.f32 %v3341_v40, %v3274_v10  ;;  %v7158_v17 = vpop.f32.mrf.mxu0 }
 0x35e   :  { %14578 = vst [vmem:[#allocation44_spill] sm:$0xff] %v10371_v23  ;;  %7403 = vrsqrt.f32 %v3379_v38  ;;  %v3277_v28 = vmul.f32 %v10371_v23, %v10371_v23  ;;  %v10388_v40 = vadd.f32 %v7158_v17, %v9975_v1 }
 0x35f   :  { %v3343_v21 = vadd.f32 %v3342_v12, %v3275_v25  ;;  %v3204_v36 = vadd.f32 %v3203_v52, %v10364_v26  ;;  %v3081_v53 = vpop.f32.mrf.mxu0 }
 0x360   :  { %v10377_v46 = vadd.f32 %v3081_v53, %v9968_v6  ;;  %14581 = vst [vmem:[#allocation39_spill] sm:$0xff] %v10388_v40  ;;  %v3280_v52 = vmul.f32 %v10388_v40, %v10388_v40 }
 0x361   :  { %v3205_v58 = vadd.f32 %v3204_v36, %v10371_v23  ;;  %v3344_v50 = vadd.f32 %v3343_v21, %v3276_v27  ;;  %v7161_v15 = vpop.f32.mrf.mxu0  ;;  %v10406_v21 = vld [vmem:[%s13589_s2] sm:$0xf] }
 0x362   :  { %14579 = vst [vmem:[#allocation7_spill] sm:$0xff] %v10377_v46  ;;  %v3278_v3 = vmul.f32 %v10377_v46, %v10377_v46  ;;  %14584 = vst [vmem:[#allocation49_spill] sm:$0xff] %v10406_v21 }
 0x363   :  { %v3345_v10 = vadd.f32 %v3344_v50, %v3277_v28  ;;  %v3206_v6 = vadd.f32 %v3205_v58, %v10377_v46  ;;  %v3094_v2 = vpop.f32.mrf.mxu0  ;;  %v13849_v28 = vsub.s32 0, %v7575_v14  ;;  %v10413_v50 = vadd.f32 %v7161_v15, %v9984_v37 }
 0x364   :  { %v10395_v38 = vadd.f32 %v3094_v2, %v9978_v18 }
 0x365   :  { %v3207_v8 = vadd.f32 %v3206_v6, %v10380_v59  ;;  %v3346_v16 = vadd.f32 %v3345_v10, %v3278_v3  ;;  %v7162_v25 = vpop.f32.mrf.mxu0  ;;  %14585 = vst [vmem:[#allocation46_spill] sm:$0xff] %v10413_v50 }
 0x366   :  { %14582 = vst [vmem:[#allocation76_spill] sm:$0xff] %v10395_v38  ;;  %v3281_v18 = vmul.f32 %v10395_v38, %v10395_v38  ;;  %v10418_v6 = vadd.f32 %v7162_v25, %v9987_v49  ;;  %v13855_v25 = vsub.s32 1, %v7575_v14 }
 0x367   :  { %v3347_v12 = vadd.f32 %v3346_v16, %v3279_v30  ;;  %v3208_v1 = vadd.f32 %v3207_v8, %v10388_v40  ;;  %v3097_v17 = vpop.f32.mrf.mxu0 }
 0x368   :  { %v10401_v27 = vadd.f32 %v3097_v17, %v9981_v47  ;;  %14586 = vst [vmem:[#allocation55_spill] sm:$0xff] %v10418_v6  ;;  %v10437_v17 = vmul.f32 %v10418_v6, %v10418_v6 }
 0x369   :  { %v3209_v36 = vadd.f32 %v3208_v1, %v10395_v38  ;;  %v3348_v53 = vadd.f32 %v3347_v12, %v3280_v52  ;;  %v7165_v58 = vpop.f32.mrf.mxu0 }
 0x36a   :  { %14583 = vst [vmem:[#allocation75_spill] sm:$0xff] %v10401_v27  ;;  %v3282_v47 = vmul.f32 %v10401_v27, %v10401_v27  ;;  %v10422_v30 = vadd.f32 %v7165_v58, %v10007_v22  ;;  %v3283_v22 = vmul.f32 %v10413_v50, %v10413_v50 }
 0x36b   :  { %v7404_v3 = vpop.eup %7403  ;;  %v3349_v10 = vadd.f32 %v3348_v53, %v3281_v18  ;;  %v3210_v2 = vadd.f32 %v3209_v36, %v10401_v27  ;;  %v3110_v8 = vpop.f32.mrf.mxu0 }
 0x36c   :  { %14587 = vst [vmem:[#allocation50_spill] sm:$0xff] %v10422_v30  ;;  %v3383_v16 = vmul.f32 %v7404_v3, %v10406_v21  ;;  %v10426_v52 = vadd.f32 %v3110_v8, %v9993_v29  ;;  %v10441_v29 = vmul.f32 %v10422_v30, %v10422_v30 }
 0x36d   :  { %v3211_v37 = vadd.f32 %v3210_v2, %v10413_v50  ;;  %v3350_v15 = vadd.f32 %v3349_v10, %v3282_v47  ;;  %v7166_v12 = vpop.f32.mrf.mxu0 }
 0x36e   :  { %14588 = vst [vmem:[#allocation60_spill] sm:$0xff] %v10426_v52  ;;  %v3385_v1 = vmul.f32 %v3383_v16, %v10339_v24  ;;  %v3398_v49 = vrot.slane %v3383_v16, %v13849_v28  ;;  %14589 = vst [vmem:[#allocation56_spill] sm:$0xff] %v10441_v29  ;;  %v10445_v36 = vmul.f32 %v10426_v52, %v10426_v52 }
 0x36f   :  { %v10448_v24 = vadd.f32 %v7166_v12, %v10014_v9  ;;  %v10451_v58 = vadd.f32 %v3350_v15, %v3283_v22  ;;  %v10454_v47 = vadd.f32 %v3211_v37, %v10418_v6  ;;  %v10456_v3 = vpop.f32.mrf.mxu0 }
 0x370   :  { %v3389_v18 = vrot.slane %v3385_v1, 7  ;;  %v3432_v53 = vmul.f32 %v3398_v49, %v10283_v41  ;;  %v3405_v10 = vmul.f32 %v3398_v49, %v10080_v54  ;;  %v3403_v2 = vmul.f32 %v3398_v49, %v10074_v0 }
 0x371   :  { %14590 = vst [vmem:[#allocation63_spill] sm:$0xff] %v10448_v24  ;;  %v3404_v8 = vmul.f32 %v3398_v49, %v10083_v62  ;;  %v3406_v16 = vmul.f32 %v3398_v49, %v10089_v35  ;;  %v3407_v12 = vmul.f32 %v3398_v49, %v10105_v33  ;;  %v3408_v41 = vmul.f32 %v3398_v49, %v10122_v4  ;;  %v14591_v33 = vld [vmem:[#allocation22_spill] sm:$0xff]  ;;  %v10475_v4 = vpop.f32.mrf.mxu0 }
 0x372   :  { %v3393_v9 = vsub.f32 %v10406_v21, %v3389_v18  ;;  %v3409_v15 = vmul.f32 %v3398_v49, %v10116_v51  ;;  %v3410_v37 = vmul.f32 %v3398_v49, %v10125_v61  ;;  %v3411_v1 = vmul.f32 %v3398_v49, %v10138_v45  ;;  %v14592_v51 = vld [vmem:[#allocation119_spill] sm:$0xff] }
 0x373   :  { %v3412_v54 = vmul.f32 %v3398_v49, %v10158_v44  ;;  %v3413_v0 = vmul.f32 %v3398_v49, %v10150_v39  ;;  %v3414_v35 = vmul.f32 %v3398_v49, %v10161_v43  ;;  %v3415_v22 = vmul.f32 %v3398_v49, %v10174_v19  ;;  %v14593_v61 = vld [vmem:[#allocation11_spill] sm:$0xff]  ;;  %v14595_v44 = vld [vmem:[#allocation32_spill] sm:$0xff] }
 0x374   :  { %v3470_v62 = vrot.slane %v3393_v9, %v13855_v25  ;;  %v3416_v18 = vmul.f32 %v3398_v49, %v14591_v33  ;;  %v3417_v28 = vmul.f32 %v3398_v49, %v14592_v51  ;;  %v3418_v46 = vmul.f32 %v3398_v49, %v14593_v61  ;;  %v14594_v45 = vld [vmem:[#allocation27_spill] sm:$0xff]  ;;  %v14597_v25 = vld [vmem:[#allocation37_spill] sm:$0xff] }
 0x375   :  { %v3419_v23 = vmul.f32 %v3398_v49, %v14594_v45  ;;  %v3420_v26 = vmul.f32 %v3398_v49, %v14595_v44  ;;  %v3421_v9 = vmul.f32 %v3398_v49, %v14596_v63  ;;  %v3422_v43 = vmul.f32 %v3398_v49, %v10214_v20  ;;  %v14601_v63 = vld [vmem:[#allocation19_spill] sm:$0xff]  ;;  %v14602_v44 = vld [vmem:[#allocation48_spill] sm:$0xff] }
 0x376   :  { %v3477_v39 = vadd.f32 %v3470_v62, %v3405_v10  ;;  %v3504_v60 = vadd.f32 %v3470_v62, %v3432_v53  ;;  %v3423_v19 = vmul.f32 %v3398_v49, %v10223_v42  ;;  %v3424_v33 = vmul.f32 %v3398_v49, %v14597_v25  ;;  %v10493_v10 = vpop.f32.mrf.mxu0 }
 0x377   :  { %v3425_v11 = vmul.f32 %v3398_v49, %v14598_v56  ;;  %v3428_v51 = vmul.f32 %v3398_v49, %v10259_v32  ;;  %v3426_v45 = vmul.f32 %v3398_v49, %v10238_v55  ;;  %v3430_v53 = vmul.f32 %v3398_v49, %v10262_v31  ;;  %v14605_v55 = vld [vmem:[#allocation43_spill] sm:$0xff] }
 0x378   :  { %v10487_v40 = vmax.f32 %v3477_v39, 0.0  ;;  %v10489_v61 = vmax.f32 %v3504_v60, 0.0  ;;  %v3431_v20 = vmul.f32 %v3398_v49, %v10271_v48  ;;  %v3433_v42 = vmul.f32 %v3398_v49, %v14601_v63  ;;  %v14604_v60 = vld [vmem:[#allocation23_spill] sm:$0xff]  ;;  %v10509_v7 = vpop.f32.mrf.mxu0 }
 0x379   :  { %v3434_v25 = vmul.f32 %v3398_v49, %v14602_v44  ;;  %v3475_v59 = vadd.f32 %v3470_v62, %v3403_v2  ;;  %v3427_v39 = vmul.f32 %v3398_v49, %v14604_v60  ;;  %v3429_v5 = vmul.f32 %v3398_v49, %v14605_v55 }
 0x37a   :  { %14599 = vst [vmem:[#allocation61_spill] sm:$0xff] %v10487_v40  ;;  %14600 = vst [vmem:[#allocation71_spill] sm:$0xff] %v10489_v61  ;;  %v10499_v56 = vrot.slane %v10487_v40, 7  ;;  %v10502_v32 = vrot.slane %v10489_v61, 7  ;;  %v3476_v31 = vadd.f32 %v3470_v62, %v3404_v8  ;;  %v3478_v34 = vadd.f32 %v3470_v62, %v3406_v16 }
 0x37b   :  { %v3479_v57 = vadd.f32 %v3470_v62, %v3407_v12  ;;  %v3480_v13 = vadd.f32 %v3470_v62, %v3408_v41  ;;  %v10507_v48 = vrot.slane %v10487_v40, 1  ;;  %v3481_v63 = vadd.f32 %v3470_v62, %v3409_v15 }
 0x37c   :  { %14603 = vst [vmem:[#allocation64_spill] sm:$0xff] %v10502_v32  ;;  %v3482_v44 = vadd.f32 %v3470_v62, %v3410_v37  ;;  %v3483_v2 = vadd.f32 %v3470_v62, %v3411_v1  ;;  %v3484_v6 = vadd.f32 %v3470_v62, %v3412_v54  ;;  %v3485_v50 = vadd.f32 %v3470_v62, %v3413_v0  ;;  %v10511_v37 = vpop.f32.mrf.mxu0 }
 0x37d   :  { %14606 = vst [vmem:[#allocation79_spill] sm:$0xff] %v10507_v48  ;;  %v3486_v27 = vadd.f32 %v3470_v62, %v3414_v35  ;;  %v3487_v38 = vadd.f32 %v3470_v62, %v3415_v22  ;;  %v3488_v21 = vadd.f32 %v3470_v62, %v3416_v18  ;;  %v3489_v60 = vadd.f32 %v3470_v62, %v3417_v28 }
 0x37e   :  { %v3490_v61 = vadd.f32 %v3470_v62, %v3418_v46  ;;  %v3491_v49 = vadd.f32 %v3470_v62, %v3419_v23  ;;  %v3492_v8 = vadd.f32 %v3470_v62, %v3420_v26  ;;  %v3493_v16 = vadd.f32 %v3470_v62, %v3421_v9 }
 0x37f   :  { %v3494_v12 = vadd.f32 %v3470_v62, %v3422_v43  ;;  %v3495_v41 = vadd.f32 %v3470_v62, %v3423_v19  ;;  %v3496_v55 = vadd.f32 %v3470_v62, %v3424_v33  ;;  %v3497_v29 = vadd.f32 %v3470_v62, %v3425_v11 }
 0x380   :  { %v3498_v40 = vadd.f32 %v3470_v62, %v3426_v45  ;;  %v3499_v15 = vadd.f32 %v3470_v62, %v3427_v39  ;;  %v3500_v1 = vadd.f32 %v3470_v62, %v3428_v51  ;;  %v3501_v30 = vadd.f32 %v3470_v62, %v3429_v5 }
 0x381   :  { %v3502_v54 = vadd.f32 %v3470_v62, %v3430_v53  ;;  %v3503_v0 = vadd.f32 %v3470_v62, %v3431_v20  ;;  %v10517_v46 = vsel %vm14607_vm2, %v10502_v32, %v10499_v56  ;;  %v3505_v26 = vadd.f32 %v3470_v62, %v3433_v42 }
 0x382   :  { %v10519_v23 = vadd.f32 %v3470_v62, %v3434_v25  ;;  %v10521_v28 = vmax.f32 %v3475_v59, 0.0  ;;  %v10523_v11 = vmax.f32 %v3476_v31, 0.0  ;;  %v10525_v35 = vmax.f32 %v3478_v34, 0.0  ;;  %v7173_v62 = vpop.f32.mrf.mxu0 }
 0x383   :  { %v10527_v22 = vmax.f32 %v3479_v57, 0.0  ;;  %v10529_v5 = vmax.f32 %v3480_v13, 0.0  ;;  %v10531_v18 = vmax.f32 %v3481_v63, 0.0  ;;  %v10533_v9 = vmax.f32 %v3482_v44, 0.0 }
 0x384   :  { %14608 = vst [vmem:[#allocation72_spill] sm:$0xff] %v10519_v23  ;;  %v10535_v43 = vmax.f32 %v3483_v2, 0.0  ;;  %v10537_v19 = vmax.f32 %v3484_v6, 0.0  ;;  %v10539_v33 = vmax.f32 %v3485_v50, 0.0  ;;  %v10541_v59 = vmax.f32 %v3486_v27, 0.0  ;;  %v3142_v25 = vpop.f32.mrf.mxu0 }
 0x385   :  { %v10543_v51 = vmax.f32 %v3487_v38, 0.0  ;;  %v10545_v34 = vmax.f32 %v3488_v21, 0.0  ;;  %v10547_v57 = vmax.f32 %v3489_v60, 0.0  ;;  %v10549_v13 = vmax.f32 %v3490_v61, 0.0 }
 0x386   :  { %v10551_v45 = vmax.f32 %v3491_v49, 0.0  ;;  %v10553_v53 = vmax.f32 %v3492_v8, 0.0  ;;  %v10555_v20 = vmax.f32 %v3493_v16, 0.0  ;;  %v10557_v6 = vmax.f32 %v3494_v12, 0.0  ;;  %v14616_v8 = vld [vmem:[#allocation116_spill] sm:$0xff]  ;;  %v14617_v49 = vld [vmem:[#allocation110_spill] sm:$0xff] }
 0x387   :  { %v10559_v50 = vmax.f32 %v3495_v41, 0.0  ;;  %v10561_v27 = vmax.f32 %v3496_v55, 0.0  ;;  %v10563_v38 = vmax.f32 %v3497_v29, 0.0  ;;  %v10565_v21 = vmax.f32 %v3498_v40, 0.0  ;;  %v14614_v55 = vld [vmem:[#allocation113_spill] sm:$0xff]  ;;  %v14619_v40 = vld [vmem:[#allocation114_spill] sm:$0xff] }
 0x388   :  { %v10567_v42 = vmax.f32 %v3499_v15, 0.0  ;;  %v10569_v61 = vmax.f32 %v3500_v1, 0.0  ;;  %v10571_v39 = vmax.f32 %v3501_v30, 0.0  ;;  %v10573_v31 = vmax.f32 %v3502_v54, 0.0  ;;  %v7174_v1 = vpop.f32.mrf.mxu0 }
 0x389   :  { %v10575_v63 = vmax.f32 %v3503_v0, 0.0  ;;  %v10577_v44 = vmax.f32 %v3505_v26, 0.0  ;;  %v10580_v2 = vrot.slane %v10525_v35, 7  ;;  %v10583_v29 = vrot.slane %v10525_v35, 1 }
 0x38a   :  { %14609 = vst [vmem:[#allocation86_spill] sm:$0xff] %v10573_v31  ;;  %v3213_v41 = vadd.f32 %v10454_v47, %v10426_v52  ;;  %v3352_v15 = vadd.f32 %v10451_v58, %v10437_v17  ;;  %v3288_v54 = vmul.f32 %v10448_v24, %v10448_v24  ;;  %v10619_v0 = vadd.f32 %v10456_v3, %v14614_v55  ;;  %v14620_v17 = vld [vmem:[#allocation111_spill] sm:$0xff] }
 0x38b   :  { %14610 = vst [vmem:[#allocation68_spill] sm:$0xff] %v10575_v63  ;;  %14611 = vst [vmem:[#allocation80_spill] sm:$0xff] %v10577_v44  ;;  %v10595_v12 = vsel %vm14607_vm2, %v10499_v56, %v10580_v2  ;;  %v10603_v26 = vrot.slane %v10575_v63, 1  ;;  %v10609_v16 = vsel %vm14613_vm1, %v10507_v48, %v10583_v29  ;;  %v10623_v30 = vadd.f32 %v10475_v4, %v14616_v8  ;;  %v14622_v8 = vld [vmem:[#allocation118_spill] sm:$0xff]  ;;  %v14627_v44 = vld [vmem:[#allocation17_spill] sm:$0xff] }
 0x38c   :  { %14615 = vst [vmem:[#allocation112_spill] sm:$0xff] %v10619_v0  ;;  %v10627_v60 = vadd.f32 %v10493_v10, %v14617_v49  ;;  %v10631_v47 = vadd.f32 %v10509_v7, %v14619_v40  ;;  %v10635_v58 = vadd.f32 %v10511_v37, %v14620_v17  ;;  %v3353_v32 = vadd.f32 %v3352_v15, %v10445_v36  ;;  %v3145_v10 = vpop.f32.mrf.mxu0  ;;  %v14623_v40 = vld [vmem:[#allocation50_spill] sm:$0xff]  ;;  %v14624_v17 = vld [vmem:[#allocation117_spill] sm:$0xff]  ;;  %v14628_v63 = vld [vmem:[#allocation115_spill] sm:$0xff] }
 0x38d   :  { %14612 = vst [vmem:[#allocation89_spill] sm:$0xff] %v10603_v26  ;;  %v3214_v3 = vadd.f32 %v3213_v41, %v10619_v0  ;;  %v3286_v4 = vmul.f32 %v10619_v0, %v10619_v0  ;;  %v10642_v55 = vadd.f32 %v7173_v62, %v14622_v8  ;;  %v3291_v49 = vmul.f32 %v10623_v30, %v10623_v30  ;;  %v14625_v0 = vld [vmem:[#allocation61_spill] sm:$0xff]  ;;  %vm14631_vm1 = vmmov %vm14607_vm2 }
 0x38e   :  { %14618 = vst [vmem:[#allocation84_spill] sm:$0xff] %v10627_v60  ;;  %14621 = vst [vmem:[#allocation83_spill] sm:$0xff] %v10635_v58  ;;  %v3289_v7 = vmul.f32 %v10627_v60, %v10627_v60  ;;  %v10650_v37 = vmul.f32 %v10631_v47, %v10631_v47  ;;  %v3290_v36 = vmul.f32 %v10635_v58, %v10635_v58 }
 0x38f   :  { %v3215_v41 = vadd.f32 %v3214_v3, %v14623_v40  ;;  %v3354_v15 = vadd.f32 %v3353_v32, %v3286_v4  ;;  %v10657_v62 = vmul.f32 %v10642_v55, %v10642_v55  ;;  %v10660_v8 = vadd.f32 %v3142_v25, %v14624_v17  ;;  %v7363_v25 = vld [vmem:[%s13588_s1 + $0x378] sm:$0xff]   ;;  %vm14632_vm2 = vmmov %vm14631_vm1 }
 0x390   :  { %v10664_v52 = vpack.c.bf16 %v10525_v35, %v14625_v0  ;;  %v10667_v26 = vadd.f32 %v7174_v1, %v14627_v44  ;;  %v10670_v23 = vadd.f32 %v3145_v10, %v14628_v63  ;;  %v3880_v3 = vsel %vm7715_vm3, %v10609_v16, %v10517_v46  ;;  %v14630_v4 = vld [vmem:[#allocation56_spill] sm:$0xff]  ;;  %vm14634_vm0 = vmmov %vm14631_vm1 }
 0x391   :  { %v3355_v17 = vadd.f32 %v3354_v15, %v14630_v4  ;;  %v3216_v35 = vadd.f32 %v3215_v41, %v10448_v24  ;;  %v3293_v44 = vmul.f32 %v10660_v8, %v10660_v8  ;;  %v3952_v1 = vpack.c.bf16 %v10595_v12, %v3880_v3 }
 0x392   :  { %14626 = vst [vmem:[#allocation67_spill] sm:$0xff] %v10664_v52  ;;  %4724 = vmatprep.mubr.bf16.mxu1 %v10664_v52  ;;  %v10687_v63 = vmul.f32 %v10667_v26, %v10667_v26  ;;  %v10691_v46 = vmul.f32 %v10670_v23, %v10670_v23  ;;  %v3750_v0 = vrot.slane %v10521_v28, 7  ;;  %v3751_v10 = vrot.slane %v10523_v11, 7 }
 0x393   :  { %v3217_v41 = vadd.f32 %v3216_v35, %v10627_v60  ;;  %v3356_v15 = vadd.f32 %v3355_v17, %v3288_v54  ;;  %4725 = vmatmul.mubr.bf16.vlgmr.msra.gmra.mxu1 %v3952_v1  ;;  %v3816_v3 = vrot.slane %v10521_v28, 1  ;;  %v3817_v4 = vrot.slane %v10523_v11, 1  ;;  %v7364_v17 = vld [vmem:[%s13588_s1 + $0x370] sm:$0xff]  }
 0x394   :  { %v3811_v32 = vsel %vm14631_vm1, %v3750_v0, %v3751_v10  ;;  %v3812_v24 = vsel %vm14632_vm2, %v10580_v2, %v3750_v0  ;;  %v10705_v40 = vpack.c.bf16 %v10523_v11, %v10521_v28  ;;  %5271 = vmatpush1.bf16.msra.mxu1 %v7363_v25  ;;  %v3810_v54 = vsel %vm14634_vm0, %v3751_v10, %v10499_v56  ;;  %v14639_v25 = vld [vmem:[#allocation6_spill] sm:$0xff] }
 0x395   :  { %v3357_v35 = vadd.f32 %v3356_v15, %v3289_v7  ;;  %v3218_v1 = vadd.f32 %v3217_v41, %v10635_v58  ;;  %vm14635_vm1 = vcmp.lt.s32.totalorder %v7575_v14, 7  ;;  %v14637_v11 = vmov 0  }
 0x396   :  { %14633 = vst [vmem:[#allocation87_spill] sm:$0xff] %v10705_v40  ;;  %v3876_v0 = vsel %vm14635_vm1, %v3817_v4, %v10507_v48  ;;  %vm14636_vm2 = vmmov %vm14635_vm1  ;;  %5272 = vmatprep.subr.bf16.mxu1 %v14637_v11  ;;  %vm14640_vm0 = vnez %v14639_v25  ;;  %4732 = vmatprep.mubr.bf16.mxu1 %v10705_v40  ;;  %v3884_v15 = vsel %vm7742_vm5, %v10609_v16, %v3810_v54  ;;  %v3752_v40 = vrot.slane %v10527_v22, 7 }
 0x397   :  { %v3877_v28 = vsel %vm14636_vm2, %v3816_v3, %v3817_v4  ;;  %vm14638_vm3 = vmmov %vm14635_vm1  ;;  %v3919_v7 = vsel %vm7794_vm6, %v3811_v32, %v3876_v0  ;;  %v3219_v4 = vadd.f32 %v3218_v1, %v10623_v30  ;;  %v3358_v58 = vadd.f32 %v3357_v35, %v3290_v36  ;;  %v7365_v35 = vld [vmem:[%s13588_s1 + $0x368] sm:$0xff]  }
 0x398   :  { %v3878_v56 = vsel %vm14638_vm3, %v10583_v29, %v3816_v3  ;;  %v3882_v10 = vsel %vm14640_vm0, %v3877_v28, %v3812_v24  ;;  %v10737_v24 = vpack.c.bf16 %v10595_v12, %v3884_v15  ;;  %v10739_v0 = vpack.c.bf16 %v3919_v7, %v3877_v28  ;;  %5273 = vmatpush1.bf16.msra.mxu1 %v7364_v17  ;;  %vm14651_vm6 = vmmov %vm14636_vm2 }
 0x399   :  { %v3953_v48 = vpack.c.bf16 %v3811_v32, %v3882_v10  ;;  %v3917_v3 = vsel %vm7734_vm4, %v10595_v12, %v3878_v56  ;;  %v3359_v60 = vadd.f32 %v3358_v58, %v3291_v49  ;;  %v3220_v54 = vadd.f32 %v3219_v4, %v10631_v47  ;;  %5274 = vmatprep.subr.bf16.mxu1 %v14637_v11  ;;  %v7372_v10 = vld [vmem:[%s13588_s1 + $0x3f8] sm:$0xff]  }
 0x39a   :  { %v3986_v25 = vpack.c.bf16 %v3917_v3, %v10609_v16  ;;  %14644 = vst [vmem:[#allocation77_spill] sm:$0xff] %v10737_v24  ;;  %14645 = vst [vmem:[#allocation93_spill] sm:$0xff] %v10739_v0  ;;  %v3753_v36 = vrot.slane %v10529_v5, 7  ;;  %v3818_v32 = vrot.slane %v10527_v22, 1  ;;  %vm14646_vm3 = vcmp.lt.s32.totalorder %v7575_v14, 1  ;;  %v14770_v3 = vld [vmem:[#allocation86_spill] sm:$0xff] }
 0x39b   :  { %5013 = vmatprep.mubr.bf16.mxu0 %v3953_v48  ;;  %v3808_v1 = vsel %vm14646_vm3, %v10580_v2, %v3752_v40  ;;  %v3819_v58 = vrot.slane %v10529_v5, 1  ;;  %v10755_v49 = vpack.c.bf16 %v10529_v5, %v10527_v22  ;;  %v3754_v17 = vrot.slane %v10531_v18, 7  ;;  %4733 = vmatmul.mubr.bf16.gmra.mxu1 %v3953_v48  ;;  %vm14648_vm1 = vmmov %vm14646_vm3 }
 0x39c   :  { %5014 = vmatmul.mubr.bf16.vlgmr.msra.gmra.mxu0 %v3986_v25  ;;  %v3221_v28 = vadd.f32 %v3220_v54, %v10660_v8  ;;  %v3360_v56 = vadd.f32 %v3359_v60, %v10650_v37  ;;  %v3807_v25 = vsel %vm14648_vm1, %v3752_v40, %v3753_v36  ;;  %v3755_v2 = vrot.slane %v10533_v9, 7  ;;  %4740 = vmatprep.mubr.bf16.mxu1 %v10664_v52  ;;  %vm14650_vm3 = vmmov %vm14636_vm2 }
 0x39d   :  { %14647 = vst [vmem:[#allocation91_spill] sm:$0xff] %v10755_v49  ;;  %5021 = vmatprep.mubr.bf16.mxu0 %v10737_v24  ;;  %v14649_v22 = vrot.slane %v10531_v18, 1  ;;  %v3873_v60 = vsel %vm14650_vm3, %v3818_v32, %v3819_v58  ;;  %v3874_v48 = vsel %vm14651_vm6, %v10583_v29, %v3818_v32  ;;  %v3806_v37 = vsel %vm14648_vm1, %v3753_v36, %v3754_v17  ;;  %vm14656_vm6 = vmmov %vm14648_vm1  ;;  %v14791_v29 = vld [vmem:[#allocation79_spill] sm:$0xff] }
 0x39e   :  { %v3361_v40 = vadd.f32 %v3360_v56, %v3293_v44  ;;  %v3222_v7 = vadd.f32 %v3221_v28, %v10670_v23  ;;  %v3886_v4 = vsel %vm7805_vm7, %v3873_v60, %v3808_v1  ;;  %5275 = vmatpush1.bf16.msra.mxu1 %v7365_v35  ;;  %v3921_v36 = vsel %vm7851_vm8, %v10595_v12, %v3874_v48  ;;  %vm14661_vm3 = vmmov %vm14636_vm2 }
 0x39f   :  { %v3872_v5 = vsel %vm14636_vm2, %v3819_v58, %v14649_v22  ;;  %v7366_v58 = vld [vmem:[%s13588_s1 + $0x360] sm:$0xff]   ;;  %v10787_v22 = vpack.c.bf16 %v3807_v25, %v3886_v4  ;;  %v3805_v44 = vsel %vm14656_vm6, %v3754_v17, %v3755_v2  ;;  %v3821_v32 = vrot.slane %v10533_v9, 1  ;;  %5276 = vmatprep.subr.bf16.mxu1 %v14637_v11  ;;  %5560 = vmatpush1.bf16.msra.mxu0 %v7372_v10  ;;  %vm14668_vm6 = vmmov %vm14648_vm1 }
 0x3a0   :  { %v3923_v54 = vsel %vm7921_vm10, %v3807_v25, %v3872_v5  ;;  %v3223_v35 = vadd.f32 %v3222_v7, %v10642_v55  ;;  %v3362_v1 = vadd.f32 %v3361_v40, %v10691_v46  ;;  %v10799_v28 = vpack.c.bf16 %v3921_v36, %v10609_v16  ;;  %5561 = vmatprep.subr.bf16.mxu0 %v14637_v11  ;;  %v14764_v7 = vld [vmem:[#allocation58_spill] sm:$0xff] }
 0x3a1   :  { %14654 = vst [vmem:[#allocation92_spill] sm:$0xff] %v10787_v22  ;;  %v10803_v56 = vpack.c.bf16 %v10533_v9, %v10531_v18  ;;  %v14659_v12 = vrot.slane %v10535_v43, 1  ;;  %v14660_v25 = vrot.slane %v10531_v18, 1  ;;  %v10814_v46 = vpack.c.bf16 %v3923_v54, %v3873_v60  ;;  %v7367_v18 = vld [vmem:[%s13588_s1 + $0x358] sm:$0xff]  }
 0x3a2   :  { %14657 = vst [vmem:[#allocation94_spill] sm:$0xff] %v10799_v28  ;;  %v3756_v16 = vrot.slane %v10535_v43, 7  ;;  %v3224_v5 = vadd.f32 %v3223_v35, %v10667_v26  ;;  %v3363_v9 = vadd.f32 %v3362_v1, %v10657_v62  ;;  %5277 = vmatpush1.bf16.msra.mxu1 %v7366_v58  ;;  %v3757_v54 = vrot.slane %v10537_v19, 7 }
 0x3a3   :  { %14658 = vst [vmem:[#allocation95_spill] sm:$0xff] %v10803_v56  ;;  %v3870_v17 = vsel %vm14636_vm2, %v3821_v32, %v14659_v12  ;;  %v3871_v10 = vsel %vm14661_vm3, %v14660_v25, %v3821_v32  ;;  %14662 = vst [vmem:[#allocation96_spill] sm:$0xff] %v10814_v46  ;;  %v3823_v36 = vrot.slane %v10537_v19, 1  ;;  %5278 = vmatprep.subr.bf16.mxu1 %v14637_v11  ;;  %4741 = vmatmul.mubr.bf16.gmra.mxu1 %v10737_v24  ;;  %v14682_v24 = vld [vmem:[#allocation26_spill] sm:$0xff] }
 0x3a4   :  { %v3888_v40 = vsel %vm7869_vm9, %v3871_v10, %v3806_v37  ;;  %v3925_v4 = vsel %vm7992_vm12, %v3805_v44, %v3870_v17  ;;  %5022 = vmatmul.mubr.bf16.gmra.mxu0 %v10739_v0  ;;  %v3804_v62 = vsel %vm14648_vm1, %v3755_v2, %v3756_v16  ;;  %v3225_v37 = vrot.slane %v3224_v5, 4  ;;  %4748 = vmatprep.mubr.bf16.mxu1 %v10755_v49  ;;  %vm14671_vm3 = vmmov %vm14636_vm2 }
 0x3a5   :  { %v10827_v60 = vpack.c.bf16 %v3805_v44, %v3888_v40  ;;  %v3364_v58 = vadd.f32 %v3363_v9, %v10687_v63  ;;  %5029 = vmatprep.mubr.bf16.mxu0 %v10787_v22  ;;  %v10839_v44 = vpack.c.bf16 %v10537_v19, %v10535_v43  ;;  %v10841_v32 = vpack.c.bf16 %v3925_v4, %v3871_v10  ;;  %v14673_v40 = vld [vmem:[#allocation30_spill] sm:$0xff]  ;;  %v7368_v4 = vld [vmem:[%s13588_s1 + $0x350] sm:$0xff]  }
 0x3a6   :  { %v3803_v2 = vsel %vm14668_vm6, %v3756_v16, %v3757_v54  ;;  %v14669_v35 = vrot.slane %v10539_v33, 1  ;;  %v14670_v1 = vmov %v14659_v12  ;;  %v3758_v19 = vrot.slane %v10539_v33, 7  ;;  %5279 = vmatpush1.bf16.msra.mxu1 %v7367_v18 }
 0x3a7   :  { %14665 = vst [vmem:[#allocation97_spill] sm:$0xff] %v10827_v60  ;;  %14666 = vst [vmem:[#allocation98_spill] sm:$0xff] %v10839_v44  ;;  %v3869_v12 = vsel %vm14671_vm3, %v14670_v1, %v3823_v36  ;;  %v3226_v17 = vadd.f32 %v3225_v37, %v3224_v5  ;;  %v3365_v25 = vrot.slane %v3364_v58, 4  ;;  %vm14674_vm1 = vnez %v14673_v40  ;;  %5280 = vmatprep.subr.bf16.mxu1 %v14637_v11 }
 0x3a8   :  { %14667 = vst [vmem:[#allocation100_spill] sm:$0xff] %v10841_v32  ;;  %v3868_v63 = vsel %vm14636_vm2, %v3823_v36, %v14669_v35  ;;  %v3890_v9 = vsel %vm7937_vm11, %v3869_v12, %v3804_v62  ;;  %v3759_v43 = vrot.slane %v10541_v59, 7  ;;  %v3802_v36 = vsel %vm14668_vm6, %v3757_v54, %v3758_v19  ;;  %vm14678_vm2 = vmmov %vm14668_vm6 }
 0x3a9   :  { %v3927_v16 = vsel %vm14674_vm1, %v3803_v2, %v3868_v63  ;;  %v10862_v35 = vpack.c.bf16 %v3803_v2, %v3890_v9  ;;  %v3825_v5 = vrot.slane %v10541_v59, 1  ;;  %v3227_v62 = vrot.slane %v3226_v17, 2  ;;  %vm14681_vm6 = vmmov %vm14671_vm3 }
 0x3aa   :  { %v3366_v37 = vadd.f32 %v3365_v25, %v3364_v58  ;;  %v10871_v18 = vpack.c.bf16 %v10541_v59, %v10539_v33  ;;  %v10873_v63 = vpack.c.bf16 %v3927_v16, %v3869_v12  ;;  %v3801_v2 = vsel %vm14678_vm2, %v3758_v19, %v3759_v43  ;;  %v14684_v16 = vld [vmem:[#allocation35_spill] sm:$0xff]  ;;  %5281 = vmatpush1.bf16.msra.mxu1 %v7368_v4 }
 0x3ab   :  { %14675 = vst [vmem:[#allocation99_spill] sm:$0xff] %v10862_v35  ;;  %v14679_v1 = vrot.slane %v10543_v51, 1  ;;  %v14680_v9 = vrot.slane %v10539_v33, 1  ;;  %v3760_v58 = vrot.slane %v10543_v51, 7  ;;  %v3228_v25 = vadd.f32 %v3227_v62, %v3226_v17  ;;  %5282 = vmatprep.subr.bf16.mxu1 %v14637_v11  ;;  %4749 = vmatmul.mubr.bf16.gmra.mxu1 %v10787_v22 }
 0x3ac   :  { %14676 = vst [vmem:[#allocation101_spill] sm:$0xff] %v10871_v18  ;;  %14677 = vst [vmem:[#allocation102_spill] sm:$0xff] %v10873_v63  ;;  %v3367_v59 = vrot.slane %v3366_v37, 2  ;;  %vm14683_vm1 = vnez %v14682_v24  ;;  %vm14685_vm12 = vnez %v14684_v16  ;;  %5030 = vmatmul.mubr.bf16.gmra.mxu0 %v10799_v28  ;;  %v3827_v62 = vrot.slane %v10545_v34, 1  ;;  %4756 = vmatprep.mubr.bf16.mxu1 %v10803_v56  ;;  %v14693_v28 = vld [vmem:[#allocation31_spill] sm:$0xff]  ;;  %v14730_v16 = vld [vmem:[#allocation52_spill] sm:$0xff] }
 0x3ad   :  { %v3866_v54 = vsel %vm14671_vm3, %v3825_v5, %v14679_v1  ;;  %v3867_v49 = vsel %vm14681_vm6, %v14680_v9, %v3825_v5  ;;  %v7369_v1 = vld [vmem:[%s13588_s1 + $0x348] sm:$0xff]   ;;  %v3761_v5 = vrot.slane %v10545_v34, 7  ;;  %v3800_v17 = vsel %vm14678_vm2, %v3759_v43, %v3760_v58  ;;  %5037 = vmatprep.mubr.bf16.mxu0 %v10827_v60  ;;  %v7374_v43 = vld [vmem:[%s13588_s1 + $0x3f0] sm:$0xff]   ;;  %vm14689_vm3 = vmmov %vm14678_vm2 }
 0x3ae   :  { %v3892_v12 = vsel %vm14683_vm1, %v3867_v49, %v3802_v36  ;;  %v3929_v19 = vsel %vm14685_vm12, %v3801_v2, %v3866_v54  ;;  %v3229_v36 = vrot.slane %v3228_v25, 1  ;;  %v3368_v54 = vadd.f32 %v3367_v59, %v3366_v37  ;;  %vm14692_vm2 = vmmov %vm14681_vm6  ;;  %5283 = vmatpush1.bf16.msra.mxu1 %v7369_v1  ;;  %5562 = vmatpush1.bf16.msra.mxu0 %v7374_v43 }
 0x3af   :  { %v10894_v33 = vpack.c.bf16 %v3801_v2, %v3892_v12  ;;  %v10905_v4 = vpack.c.bf16 %v10545_v34, %v10543_v51  ;;  %v10907_v2 = vpack.c.bf16 %v3929_v19, %v3867_v49  ;;  %v3799_v9 = vsel %vm14689_vm3, %v3760_v58, %v3761_v5  ;;  %5284 = vmatprep.subr.bf16.mxu1 %v14637_v11 }
 0x3b0   :  { %v14690_v37 = vrot.slane %v10547_v57, 1  ;;  %v14691_v12 = vrot.slane %v10543_v51, 1  ;;  %v3762_v49 = vrot.slane %v10547_v57, 7  ;;  %v3230_v19 = vadd.f32 %v3229_v36, %v3228_v25  ;;  %5563 = vmatprep.subr.bf16.mxu0 %v14637_v11 }
 0x3b1   :  { %14686 = vst [vmem:[#allocation104_spill] sm:$0xff] %v10894_v33  ;;  %14687 = vst [vmem:[#allocation103_spill] sm:$0xff] %v10905_v4  ;;  %v3369_v22 = vrot.slane %v3368_v54, 1  ;;  %vm14694_vm12 = vnez %v14693_v28  ;;  %v3829_v36 = vrot.slane %v10549_v13, 1  ;;  %vm14731_vm11 = vnez %v14730_v16 }
 0x3b2   :  { %14688 = vst [vmem:[#allocation107_spill] sm:$0xff] %v10907_v2  ;;  %v3864_v59 = vsel %vm14681_vm6, %v3827_v62, %v14690_v37  ;;  %v3865_v34 = vsel %vm14692_vm2, %v14691_v12, %v3827_v62  ;;  %v7370_v37 = vld [vmem:[%s13588_s1 + $0x340] sm:$0xff]   ;;  %v3763_v62 = vrot.slane %v10549_v13, 7  ;;  %v3798_v25 = vsel %vm14689_vm3, %v3761_v5, %v3762_v49  ;;  %vm14699_vm6 = vmmov %vm14689_vm3 }
 0x3b3   :  { %v3894_v56 = vsel %vm14694_vm12, %v3865_v34, %v3800_v17  ;;  %v3931_v58 = vsel %vm14264_vm14, %v3799_v9, %v3864_v59  ;;  %v10939_v17 = vmul.f32 0.00390625, %v3230_v19  ;;  %v3370_v1 = vadd.f32 %v3369_v22, %v3368_v54  ;;  %vm14702_vm3 = vmmov %vm14692_vm2  ;;  %5285 = vmatpush1.bf16.msra.mxu1 %v7370_v37 }
 0x3b4   :  { %v10931_v51 = vpack.c.bf16 %v3799_v9, %v3894_v56  ;;  %v10943_v59 = vpack.c.bf16 %v10549_v13, %v10547_v57  ;;  %v10945_v56 = vpack.c.bf16 %v3931_v58, %v3865_v34  ;;  %v3797_v43 = vsel %vm14699_vm6, %v3762_v49, %v3763_v62  ;;  %v14703_v34 = vld [vmem:[#allocation36_spill] sm:$0xff]  ;;  %v14705_v49 = vld [vmem:[#allocation42_spill] sm:$0xff]  ;;  %5038 = vmatmul.mubr.bf16.gmra.mxu0 %v10814_v46 }
 0x3b5   :  { %v14700_v5 = vrot.slane %v10551_v45, 1  ;;  %v14701_v12 = vrot.slane %v10547_v57, 1  ;;  %v3764_v22 = vrot.slane %v10551_v45, 7  ;;  %v3372_v54 = vmul.f32 0.00390625, %v3370_v1  ;;  %v7371_v57 = vld [vmem:[%s13588_s1 + $0x3b8] sm:$0xff]   ;;  %5286 = vmatprep.subr.bf16.mxu1 %v14637_v11  ;;  %5045 = vmatprep.mubr.bf16.mxu0 %v10862_v35 }
 0x3b6   :  { %14696 = vst [vmem:[#allocation105_spill] sm:$0xff] %v10931_v51  ;;  %14697 = vst [vmem:[#allocation108_spill] sm:$0xff] %v10943_v59  ;;  %v3374_v13 = vmul.f32 %v10939_v17, %v10939_v17  ;;  %vm14704_vm14 = vnez %v14703_v34  ;;  %vm14706_vm6 = vnez %v14705_v49  ;;  %v3765_v1 = vrot.slane %v10553_v53, 7  ;;  %4757 = vmatmul.mubr.bf16.gmra.mxu1 %v10827_v60  ;;  %v14716_v60 = vld [vmem:[#allocation41_spill] sm:$0xff] }
 0x3b7   :  { %14698 = vst [vmem:[#allocation109_spill] sm:$0xff] %v10945_v56  ;;  %v3862_v9 = vsel %vm14692_vm2, %v3829_v36, %v14700_v5  ;;  %v3863_v19 = vsel %vm14702_vm3, %v14701_v12, %v3829_v36  ;;  %vm14708_vm2 = vcmp.lt.s32.totalorder %v7575_v14, 1  ;;  %v3831_v12 = vrot.slane %v10553_v53, 1  ;;  %4764 = vmatprep.mubr.bf16.mxu1 %v10839_v44  ;;  %v14718_v44 = vld [vmem:[#allocation47_spill] sm:$0xff]  ;;  %5287 = vmatpush2.bf16.msra.mxu1 %v7371_v57 }
 0x3b8   :  { %v3896_v58 = vsel %vm14704_vm14, %v3863_v19, %v3798_v25  ;;  %v3933_v0 = vsel %vm14706_vm6, %v3797_v43, %v3862_v9  ;;  %v3796_v5 = vsel %vm14708_vm2, %v3763_v62, %v3764_v22  ;;  %v3376_v25 = vsub.f32 %v3372_v54, %v3374_v13  ;;  %vm14711_vm3 = vmmov %vm14708_vm2  ;;  %5288 = vmatprep.subr.bf16.mxu1 %v14637_v11 }
 0x3b9   :  { %v10968_v36 = vpack.c.bf16 %v3797_v43, %v3896_v58  ;;  %v10979_v37 = vpack.c.bf16 %v10553_v53, %v10551_v45  ;;  %v10981_v43 = vpack.c.bf16 %v3933_v0, %v3863_v19  ;;  %v3766_v9 = vrot.slane %v10555_v20, 7 }
 0x3ba   :  { %v3795_v62 = vsel %vm14711_vm3, %v3764_v22, %v3765_v1  ;;  %v14712_v58 = vrot.slane %v10555_v20, 1  ;;  %vm14713_vm2 = vcmp.lt.s32.totalorder %v7575_v14, 7  ;;  %v14714_v13 = vrot.slane %v10551_v45, 1  ;;  %v7373_v45 = vld [vmem:[%s13588_s1 + $0x3b0] sm:$0xff]  }
 0x3bb   :  { %14707 = vst [vmem:[#allocation22_spill] sm:$0xff] %v10968_v36  ;;  %14709 = vst [vmem:[#allocation119_spill] sm:$0xff] %v10979_v37  ;;  %v3767_v0 = vrot.slane %v10557_v6, 7  ;;  %v3378_v19 = vmax.f32 %v3376_v25, 0.0  ;;  %vm14717_vm12 = vnez %v14716_v60  ;;  %vm14719_vm1 = vnez %v14718_v44  ;;  %5289 = vmatpush2.bf16.msra.mxu1 %v7373_v45  ;;  %v7375_v45 = vld [vmem:[%s13588_s1 + $0x3a8] sm:$0xff]  }
 0x3bc   :  { %14710 = vst [vmem:[#allocation11_spill] sm:$0xff] %v10981_v43  ;;  %v3860_v54 = vsel %vm14713_vm2, %v3831_v12, %v14712_v58  ;;  %vm14715_vm14 = vmmov %vm14713_vm2  ;;  %v3794_v22 = vsel %vm14711_vm3, %v3765_v1, %v3766_v9  ;;  %v3833_v25 = vrot.slane %v10557_v6, 1  ;;  %v3768_v57 = vrot.slane %v10559_v50, 7  ;;  %5046 = vmatmul.mubr.bf16.gmra.mxu0 %v10841_v32  ;;  %5290 = vmatprep.subr.bf16.mxu1 %v14637_v11 }
 0x3bd   :  { %v3861_v53 = vsel %vm14715_vm14, %v14714_v13, %v3831_v12  ;;  %v3935_v52 = vsel %vm14719_vm1, %v3795_v62, %v3860_v54  ;;  %vm14721_vm14 = vmmov %vm14711_vm3  ;;  %v3380_v54 = vadd.f32 1e-05, %v3378_v19  ;;  %v3769_v13 = vrot.slane %v10561_v27, 7  ;;  %5053 = vmatprep.mubr.bf16.mxu0 %v10894_v33 }
 0x3be   :  { %v3898_v46 = vsel %vm14717_vm12, %v3861_v53, %v3796_v5  ;;  %v3793_v12 = vsel %vm14721_vm14, %v3766_v9, %v3767_v0  ;;  %v11012_v5 = vpack.c.bf16 %v10557_v6, %v10555_v20  ;;  %v11015_v1 = vpack.c.bf16 %v3935_v52, %v3861_v53  ;;  %vm14726_vm3 = vmmov %vm14713_vm2  ;;  %v14728_v53 = vld [vmem:[#allocation45_spill] sm:$0xff]  ;;  %4765 = vmatmul.mubr.bf16.gmra.mxu1 %v10862_v35 }
 0x3bf   :  { %v11005_v58 = vpack.c.bf16 %v3795_v62, %v3898_v46  ;;  %v14724_v46 = vrot.slane %v10559_v50, 1  ;;  %v14725_v62 = vrot.slane %v10555_v20, 1  ;;  %v3835_v34 = vrot.slane %v10561_v27, 1  ;;  %4772 = vmatprep.mubr.bf16.mxu1 %v10871_v18  ;;  %5291 = vmatpush2.bf16.msra.mxu1 %v7375_v45  ;;  %v14753_v45 = vld [vmem:[#allocation53_spill] sm:$0xff] }
 0x3c0   :  { %14722 = vst [vmem:[#allocation32_spill] sm:$0xff] %v11012_v5  ;;  %14723 = vst [vmem:[#allocation18_spill] sm:$0xff] %v11015_v1  ;;  %v11030_v52 = vpack.c.bf16 %v10561_v27, %v10559_v50  ;;  %7405 = vrsqrt.f32 %v3380_v54  ;;  %vm14729_vm14 = vnez %v14728_v53  ;;  %v14735_v27 = vrot.slane %v10563_v38, 1  ;;  %5292 = vmatprep.subr.bf16.mxu1 %v14637_v11 }
 0x3c1   :  { %14720 = vst [vmem:[#allocation27_spill] sm:$0xff] %v11005_v58  ;;  %v3858_v9 = vsel %vm14713_vm2, %v3833_v25, %v14724_v46  ;;  %v3859_v6 = vsel %vm14726_vm3, %v14725_v62, %v3833_v25  ;;  %vm14732_vm2 = vcmp.lt.s32.totalorder %v7575_v14, 1  ;;  %vm14736_vm10 = vcmp.lt.s32.totalorder %v7575_v14, 7 }
 0x3c2   :  { %14727 = vst [vmem:[#allocation37_spill] sm:$0xff] %v11030_v52  ;;  %v3900_v19 = vsel %vm14729_vm14, %v3859_v6, %v3794_v22  ;;  %v3937_v28 = vsel %vm14731_vm11, %v3793_v12, %v3858_v9  ;;  %v3791_v46 = vsel %vm14732_vm2, %v3768_v57, %v3769_v13  ;;  %vm14734_vm3 = vmmov %vm14732_vm2  ;;  %v3856_v54 = vsel %vm14736_vm10, %v3835_v34, %v14735_v27 }
 0x3c3   :  { %v11039_v20 = vpack.c.bf16 %v3793_v12, %v3900_v19  ;;  %v3792_v25 = vsel %vm14734_vm3, %v3767_v0, %v3768_v57  ;;  %v14737_v22 = vrot.slane %v10559_v50, 1  ;;  %vm14738_vm9 = vmmov %vm14736_vm10  ;;  %v14739_v12 = vld [vmem:[#allocation51_spill] sm:$0xff]  ;;  %v14741_v57 = vld [vmem:[#allocation57_spill] sm:$0xff]  ;;  %v11060_v19 = vpack.c.bf16 %v3937_v28, %v3859_v6 }
 0x3c4   :  { %vm14740_vm2 = vnez %v14739_v12  ;;  %vm14742_vm3 = vnez %v14741_v57  ;;  %v3770_v50 = vrot.slane %v10563_v38, 7  ;;  %v3837_v35 = vrot.slane %v10565_v21, 1  ;;  %5054 = vmatmul.mubr.bf16.gmra.mxu0 %v10873_v63 }
 0x3c5   :  { %14733 = vst [vmem:[#allocation15_spill] sm:$0xff] %v11039_v20  ;;  %v3857_v9 = vsel %vm14738_vm9, %v14737_v22, %v3835_v34  ;;  %v3939_v62 = vsel %vm14742_vm3, %v3791_v46, %v3856_v54  ;;  %14743 = vst [vmem:[#allocation19_spill] sm:$0xff] %v11060_v19  ;;  %v7376_v34 = vld [vmem:[%s13588_s1 + $0x3e8] sm:$0xff]   ;;  %v3771_v22 = vrot.slane %v10565_v21, 7  ;;  %vm14746_vm9 = vcmp.lt.s32.totalorder %v7575_v14, 1  ;;  %5061 = vmatprep.mubr.bf16.mxu0 %v10931_v51 }
 0x3c6   :  { %v3902_v0 = vsel %vm14740_vm2, %v3857_v9, %v3792_v25  ;;  %v11073_v25 = vpack.c.bf16 %v10565_v21, %v10563_v38  ;;  %v3790_v28 = vsel %vm14746_vm9, %v3769_v13, %v3770_v50  ;;  %v11078_v6 = vpack.c.bf16 %v3939_v62, %v3857_v9  ;;  %5564 = vmatpush1.bf16.msra.mxu0 %v7376_v34  ;;  %vm14748_vm10 = vmmov %vm14746_vm9 }
 0x3c7   :  { %v11067_v27 = vpack.c.bf16 %v3791_v46, %v3902_v0  ;;  %v3772_v54 = vrot.slane %v10567_v42, 7  ;;  %v3773_v46 = vrot.slane %v10569_v61, 7  ;;  %v3789_v0 = vsel %vm14748_vm10, %v3770_v50, %v3771_v22  ;;  %5565 = vmatprep.subr.bf16.mxu0 %v14637_v11  ;;  %v14755_v50 = vld [vmem:[#allocation65_spill] sm:$0xff]  ;;  %4773 = vmatmul.mubr.bf16.gmra.mxu1 %v10894_v33 }
 0x3c8   :  { %14745 = vst [vmem:[#allocation23_spill] sm:$0xff] %v11073_v25  ;;  %14747 = vst [vmem:[#allocation43_spill] sm:$0xff] %v11078_v6  ;;  %v14749_v18 = vrot.slane %v10567_v42, 1  ;;  %vm14750_vm8 = vcmp.lt.s32.totalorder %v7575_v14, 7  ;;  %v14751_v32 = vrot.slane %v10563_v38, 1  ;;  %v3839_v9 = vrot.slane %v10569_v61, 1  ;;  %4780 = vmatprep.mubr.bf16.mxu1 %v10905_v4 }
 0x3c9   :  { %14744 = vst [vmem:[#allocation48_spill] sm:$0xff] %v11067_v27  ;;  %vm14752_vm9 = vmmov %vm14750_vm8  ;;  %vm14754_vm7 = vnez %v14753_v45  ;;  %vm14756_vm10 = vnez %v14755_v50  ;;  %vm14757_vm3 = vcmp.lt.s32.totalorder %v7575_v14, 1  ;;  %v14761_v24 = vrot.slane %v10567_v42, 1  ;;  %v14789_v45 = vld [vmem:[#allocation49_spill] sm:$0xff] }
 0x3ca   :  { %v3854_v21 = vsel %vm14750_vm8, %v3837_v35, %v14749_v18  ;;  %v3855_v13 = vsel %vm14752_vm9, %v14751_v32, %v3837_v35  ;;  %v3787_v18 = vsel %vm14757_vm3, %v3772_v54, %v3773_v46  ;;  %vm14758_vm8 = vmmov %vm14757_vm3  ;;  %v14760_v32 = vrot.slane %v10571_v39, 1 }
 0x3cb   :  { %v3904_v62 = vsel %vm14754_vm7, %v3855_v13, %v3790_v28  ;;  %v3941_v34 = vsel %vm14756_vm10, %v3789_v0, %v3854_v21  ;;  %v3788_v38 = vsel %vm14758_vm8, %v3771_v22, %v3772_v54  ;;  %vm14762_vm7 = vmmov %vm14752_vm9  ;;  %v11115_v21 = vpack.c.bf16 %v10569_v61, %v10567_v42  ;;  %v14766_v22 = vld [vmem:[#allocation73_spill] sm:$0xff]  ;;  %v14772_v61 = vld [vmem:[#allocation72_spill] sm:$0xff] }
 0x3cc   :  { %v11103_v40 = vpack.c.bf16 %v3789_v0, %v3904_v62  ;;  %v3852_v35 = vsel %vm14752_vm9, %v3839_v9, %v14760_v32  ;;  %v3853_v28 = vsel %vm14762_vm7, %v14761_v24, %v3839_v9  ;;  %vm14765_vm3 = vnez %v14764_v7  ;;  %5062 = vmatmul.mubr.bf16.gmra.mxu0 %v10907_v2  ;;  %v14814_v2 = vld [vmem:[#allocation83_spill] sm:$0xff] }
 0x3cd   :  { %14763 = vst [vmem:[#allocation116_spill] sm:$0xff] %v11115_v21  ;;  %v3906_v10 = vsel %vm14765_vm3, %v3853_v28, %v3788_v38  ;;  %vm14767_vm8 = vnez %v14766_v22  ;;  %v11121_v0 = vpack.c.bf16 %v3941_v34, %v3855_v13  ;;  %v3774_v62 = vrot.slane %v10571_v39, 7  ;;  %5069 = vmatprep.mubr.bf16.mxu0 %v10968_v36 }
 0x3ce   :  { %14759 = vst [vmem:[#allocation113_spill] sm:$0xff] %v11103_v40  ;;  %v3943_v54 = vsel %vm14767_vm8, %v3787_v18, %v3852_v35  ;;  %v11125_v32 = vpack.c.bf16 %v3787_v18, %v3906_v10  ;;  %v3775_v24 = vrot.slane %v14770_v3, 7  ;;  %v3841_v9 = vrot.slane %v14770_v3, 1  ;;  %v14775_v10 = vld [vmem:[#allocation68_spill] sm:$0xff]  ;;  %v14776_v35 = vld [vmem:[#allocation71_spill] sm:$0xff] }
 0x3cf   :  { %14768 = vst [vmem:[#allocation110_spill] sm:$0xff] %v11121_v0  ;;  %v11131_v42 = vpack.c.bf16 %v14770_v3, %v10571_v39  ;;  %v3570_v38 = vmax.f32 %v14772_v61, 0.0  ;;  %vm14773_vm7 = vcmp.lt.s32.totalorder %v7575_v14, 1  ;;  %v11138_v34 = vpack.c.bf16 %v3943_v54, %v3853_v28  ;;  %v14778_v61 = vld [vmem:[#allocation89_spill] sm:$0xff]  ;;  %v14782_v28 = vld [vmem:[#allocation66_spill] sm:$0xff]  ;;  %4781 = vmatmul.mubr.bf16.gmra.mxu1 %v10931_v51  ;;  %v14812_v51 = vld [vmem:[#allocation63_spill] sm:$0xff] }
 0x3d0   :  { %14769 = vst [vmem:[#allocation114_spill] sm:$0xff] %v11125_v32  ;;  %v3786_v13 = vsel %vm14773_vm7, %v3773_v46, %v3774_v62  ;;  %v11141_v18 = vrot.slane %v14775_v10, 7  ;;  %v11144_v63 = vrot.slane %v14776_v35, 1  ;;  %vm14777_vm9 = vmmov %vm14773_vm7  ;;  %vm14779_vm8 = vcmp.lt.s32.totalorder %v7575_v14, 7  ;;  %4788 = vmatprep.mubr.bf16.mxu1 %v10943_v59  ;;  %v14810_v59 = vld [vmem:[#allocation112_spill] sm:$0xff] }
 0x3d1   :  { %14771 = vst [vmem:[#allocation111_spill] sm:$0xff] %v11131_v42  ;;  %14774 = vst [vmem:[#allocation118_spill] sm:$0xff] %v11138_v34  ;;  %v3785_v3 = vsel %vm14777_vm9, %v3774_v62, %v3775_v24  ;;  %v3850_v33 = vsel %vm14779_vm8, %v3841_v9, %v14778_v61  ;;  %v14780_v48 = vrot.slane %v10571_v39, 1  ;;  %vm14783_vm3 = vnez %v14782_v28  ;;  %v7406_v62 = vpop.eup %7405  ;;  %v14788_v39 = vld [vmem:[#allocation80_spill] sm:$0xff] }
 0x3d2   :  { %vm14781_vm7 = vmmov %vm14779_vm8  ;;  %v3945_v15 = vsel %vm8673_vm13, %v3785_v3, %v3850_v33  ;;  %v13930_v50 = vrot.slane %v14788_v39, 7  ;;  %v3845_v28 = vrot.slane %v3570_v38, 1  ;;  %v11173_v33 = vpack.c.bf16 %v3570_v38, %v14788_v39 }
 0x3d3   :  { %v3851_v46 = vsel %vm14781_vm7, %v14780_v48, %v3841_v9  ;;  %vm14785_vm10 = vmmov %vm14777_vm9  ;;  %v3384_v48 = vmul.f32 %v7406_v62, %v14789_v45  ;;  %v3779_v9 = vrot.slane %v3570_v38, 7 }
 0x3d4   :  { %v3908_v54 = vsel %vm14783_vm3, %v3851_v46, %v3786_v13  ;;  %v11163_v4 = vsel %vm14785_vm10, %v3775_v24, %v11141_v18  ;;  %v11167_v7 = vpack.c.bf16 %v3945_v15, %v3851_v46  ;;  %v13929_v13 = vrot.slane %v14788_v39, 1  ;;  %14790 = vst [vmem:[#allocation17_spill] sm:$0xff] %v11173_v33  ;;  %vm14792_vm10 = vmmov %vm14781_vm7  ;;  %5070 = vmatmul.mubr.bf16.gmra.mxu0 %v10945_v56  ;;  %v14809_v33 = vld [vmem:[#allocation60_spill] sm:$0xff] }
 0x3d5   :  { %v11165_v22 = vpack.c.bf16 %v3785_v3, %v3908_v54  ;;  %v11179_v24 = vsel %vm14792_vm10, %v11144_v63, %v14791_v29  ;;  %v3386_v15 = vmul.f32 %v3384_v48, %v10939_v17  ;;  %vm14794_vm8 = vmmov %vm14777_vm9  ;;  %v7377_v29 = vld [vmem:[%s13588_s1 + $0x3a0] sm:$0xff]   ;;  %v11201_v17 = vsel %vm14781_vm7, %v3845_v28, %v14778_v61  ;;  %5077 = vmatprep.mubr.bf16.mxu0 %v11005_v58  ;;  %v14813_v56 = vld [vmem:[#allocation84_spill] sm:$0xff] }
 0x3d6   :  { %14787 = vst [vmem:[#allocation61_spill] sm:$0xff] %v11167_v7  ;;  %14793 = vst [vmem:[#allocation115_spill] sm:$0xff] %v11179_v24  ;;  %v11186_v3 = vsel %vm14794_vm8, %v13930_v50, %v3779_v9  ;;  %v7378_v54 = vld [vmem:[%s13588_s1 + $0x3e0] sm:$0xff]   ;;  %5293 = vmatpush2.bf16.msra.mxu1 %v7377_v29  ;;  %v14808_v24 = vld [vmem:[#allocation55_spill] sm:$0xff] }
 0x3d7   :  { %14786 = vst [vmem:[#allocation117_spill] sm:$0xff] %v11165_v22  ;;  %14795 = vst [vmem:[#allocation56_spill] sm:$0xff] %v11186_v3  ;;  %v3390_v62 = vrot.slane %v3386_v15, 7  ;;  %5566 = vmatpush1.bf16.msra.mxu0 %v7378_v54  ;;  %5294 = vmatprep.subr.bf16.mxu1 %v14637_v11  ;;  %v14803_v15 = vsub.s32 1, %v7575_v14  ;;  %v14805_v54 = vld [vmem:[#allocation76_spill] sm:$0xff] }
 0x3d8   :  { %vm14796_vm9 = vmmov %vm14781_vm7  ;;  %14798 = vst [vmem:[#allocation9_spill] sm:$0xff] %v11201_v17  ;;  %5567 = vmatprep.subr.bf16.mxu0 %v14637_v11  ;;  %4789 = vmatmul.mubr.bf16.gmra.mxu1 %v10968_v36 }
 0x3d9   :  { %v11193_v38 = vsel %vm14796_vm9, %v13929_v13, %v3845_v28  ;;  %vm14799_vm10 = vmmov %vm14794_vm8  ;;  %v3394_v28 = vsub.f32 %v14789_v45, %v3390_v62  ;;  %4796 = vmatprep.mubr.bf16.mxu1 %v10979_v37  ;;  %v14806_v62 = vld [vmem:[#allocation75_spill] sm:$0xff] }
 0x3da   :  { %14797 = vst [vmem:[#allocation10_spill] sm:$0xff] %v11193_v38  ;;  %v11206_v46 = vsel %vm14799_vm10, %v3779_v9, %v11141_v18  ;;  %v14801_v9 = vsub.s32 0, %v7575_v14  ;;  %vm14817_vm9 = vmmov %vm14781_vm7 }
 0x3db   :  { %14800 = vst [vmem:[#allocation42_spill] sm:$0xff] %v11206_v46  ;;  %v11226_v29 = vrot.slane %v3394_v28, %v14803_v15  ;;  %v14811_v15 = vld [vmem:[#allocation50_spill] sm:$0xff]  ;;  %vm14820_vm7 = vmmov %vm14794_vm8 }
 0x3dc   :  { %v11219_v13 = vrot.slane %v3384_v48, %v14801_v9  ;;  %v14807_v48 = vld [vmem:[#allocation46_spill] sm:$0xff]  ;;  %5078 = vmatmul.mubr.bf16.gmra.mxu0 %v10981_v43 }
 0x3dd   :  { %14804 = vst [vmem:[#allocation47_spill] sm:$0xff] %v11226_v29  ;;  %5085 = vmatprep.mubr.bf16.mxu0 %v11039_v20 }
 0x3de   :  { %14802 = vst [vmem:[#allocation41_spill] sm:$0xff] %v11219_v13  ;;  %v3451_v45 = vmul.f32 %v11219_v13, %v14805_v54  ;;  %v3452_v50 = vmul.f32 %v11219_v13, %v14806_v62  ;;  %v3453_v9 = vmul.f32 %v11219_v13, %v14807_v48  ;;  %v3454_v46 = vmul.f32 %v11219_v13, %v14808_v24 }
 0x3df   :  { %v3455_v36 = vmul.f32 %v11219_v13, %v14809_v33  ;;  %v3456_v28 = vmul.f32 %v11219_v13, %v14810_v59  ;;  %v3457_v37 = vmul.f32 %v11219_v13, %v14811_v15  ;;  %v3458_v54 = vmul.f32 %v11219_v13, %v14812_v51 }
 0x3e0   :  { %v3459_v62 = vmul.f32 %v11219_v13, %v14813_v56  ;;  %v3460_v48 = vmul.f32 %v11219_v13, %v14814_v2  ;;  %v3461_v24 = vmul.f32 %v11219_v13, %v10623_v30  ;;  %v3462_v33 = vmul.f32 %v11219_v13, %v10631_v47  ;;  %4797 = vmatmul.mubr.bf16.gmra.mxu1 %v11005_v58 }
 0x3e1   :  { %v3463_v59 = vmul.f32 %v11219_v13, %v10660_v8  ;;  %v3465_v15 = vmul.f32 %v11219_v13, %v10642_v55  ;;  %v3466_v51 = vmul.f32 %v11219_v13, %v10667_v26  ;;  %v11260_v56 = vadd.f32 %v11226_v29, %v3451_v45  ;;  %4804 = vmatprep.mubr.bf16.mxu1 %v11012_v5  ;;  %v14827_v5 = vld [vmem:[#allocation28_spill] sm:$0xff] }
 0x3e2   :  { %v11263_v2 = vadd.f32 %v11226_v29, %v3452_v50  ;;  %v11266_v30 = vadd.f32 %v11226_v29, %v3453_v9  ;;  %v11269_v47 = vadd.f32 %v11226_v29, %v3454_v46  ;;  %v11272_v8 = vadd.f32 %v11226_v29, %v3455_v36 }
 0x3e3   :  { %v11275_v55 = vadd.f32 %v11226_v29, %v3456_v28  ;;  %v11278_v26 = vadd.f32 %v11226_v29, %v3457_v37  ;;  %v11281_v45 = vadd.f32 %v11226_v29, %v3458_v54  ;;  %v11284_v50 = vadd.f32 %v11226_v29, %v3459_v62  ;;  %v7379_v28 = vld [vmem:[%s13588_s1 + $0x398] sm:$0xff]  }
 0x3e4   :  { %v11288_v46 = vadd.f32 %v11226_v29, %v3460_v48  ;;  %v11291_v36 = vadd.f32 %v11226_v29, %v3461_v24  ;;  %v11294_v9 = vadd.f32 %v11226_v29, %v3462_v33  ;;  %v11297_v37 = vadd.f32 %v11226_v29, %v3463_v59  ;;  %5295 = vmatpush2.bf16.msra.mxu1 %v7379_v28  ;;  %v7380_v48 = vld [vmem:[%s13588_s1 + $0x3d8] sm:$0xff]  }
 0x3e5   :  { %v11304_v54 = vadd.f32 %v11226_v29, %v3465_v15  ;;  %v11307_v62 = vadd.f32 %v11226_v29, %v3466_v51  ;;  %5296 = vmatprep.subr.bf16.mxu1 %v14637_v11  ;;  %5568 = vmatpush1.bf16.msra.mxu0 %v7380_v48  ;;  %v14815_v24 = vrot.slane %v14788_v39, 7  ;;  %v14816_v33 = vld [vmem:[#allocation64_spill] sm:$0xff]  ;;  %v3464_v15 = vmul.f32 %v11219_v13, %v10670_v23  ;;  %v14822_v23 = vld [vmem:[#allocation74_spill] sm:$0xff] }
 0x3e6   :  { %5086 = vmatmul.mubr.bf16.gmra.mxu0 %v11015_v1  ;;  %5569 = vmatprep.subr.bf16.mxu0 %v14637_v11  ;;  %v11331_v51 = vsel %vm14817_vm9, %v14778_v61, %v11144_v63  ;;  %vm14823_vm10 = vnez %v14822_v23  ;;  %v3435_v58 = vmul.f32 %v11219_v13, %v14827_v5  ;;  %v14829_v1 = vld [vmem:[#allocation54_spill] sm:$0xff] }
 0x3e7   :  { %5093 = vmatprep.mubr.bf16.mxu0 %v11067_v27  ;;  %v3783_v59 = vsel %vm14794_vm8, %v14816_v33, %v14815_v24  ;;  %14818 = vst [vmem:[#allocation45_spill] sm:$0xff] %v11331_v51  ;;  %v3536_v28 = vadd.f32 %v11226_v29, %v3464_v15  ;;  %v11341_v24 = vsel %vm14820_vm7, %v11141_v18, %v14816_v33  ;;  %v14825_v15 = vrot.slane %v14788_v39, 1  ;;  %vm14826_vm8 = vmmov %vm14817_vm9  ;;  %v14828_v18 = vld [vmem:[#allocation24_spill] sm:$0xff]  ;;  %v14831_v39 = vld [vmem:[#allocation33_spill] sm:$0xff] }
 0x3e8   :  { %4805 = vmatmul.mubr.bf16.gmra.mxu1 %v11039_v20  ;;  %14821 = vst [vmem:[#allocation52_spill] sm:$0xff] %v11341_v24  ;;  %v3910_v20 = vsel %vm14823_vm10, %v11331_v51, %v11163_v4  ;;  %v3436_v33 = vmul.f32 %v11219_v13, %v14828_v18  ;;  %v3437_v43 = vmul.f32 %v11219_v13, %v14829_v1  ;;  %v14830_v4 = vld [vmem:[#allocation59_spill] sm:$0xff]  ;;  %vm14851_vm10 = vmmov %vm14826_vm8 }
 0x3e9   :  { %4812 = vmatprep.mubr.bf16.mxu1 %v11030_v52  ;;  %v3912_v52 = vsel %vm14324_vm15, %v11193_v38, %v3783_v59  ;;  %v11355_v59 = vsel %vm14826_vm8, %v11144_v63, %v14825_v15  ;;  %v3439_v48 = vmul.f32 %v11219_v13, %v14831_v39  ;;  %v14832_v38 = vld [vmem:[#allocation29_spill] sm:$0xff]  ;;  %v14833_v15 = vld [vmem:[#allocation62_spill] sm:$0xff]  ;;  %v7381_v1 = vld [vmem:[%s13588_s1 + $0x390] sm:$0xff]  }
 0x3ea   :  { %v11348_v61 = vpack.c.bf16 %v11186_v3, %v3912_v52  ;;  %v3438_v52 = vmul.f32 %v11219_v13, %v14830_v4  ;;  %v3440_v63 = vmul.f32 %v11219_v13, %v14832_v38  ;;  %v3441_v5 = vmul.f32 %v11219_v13, %v14833_v15  ;;  %v14834_v3 = vld [vmem:[#allocation69_spill] sm:$0xff]  ;;  %5297 = vmatpush2.bf16.msra.mxu1 %v7381_v1  ;;  %vm14850_vm15 = vmmov %vm14820_vm7 }
 0x3eb   :  { %v3449_v18 = vmul.f32 %v11219_v13, %v14834_v3  ;;  %v11378_v4 = vmax.f32 %v3536_v28, 0.0  ;;  %v3509_v17 = vadd.f32 %v11226_v29, %v3437_v43  ;;  %v3507_v15 = vadd.f32 %v11226_v29, %v3435_v58  ;;  %5298 = vmatprep.subr.bf16.mxu1 %v14637_v11 }
 0x3ec   :  { %14824 = vst [vmem:[#allocation51_spill] sm:$0xff] %v11348_v61  ;;  %v3510_v38 = vadd.f32 %v11226_v29, %v3438_v52  ;;  %v3508_v3 = vadd.f32 %v11226_v29, %v3436_v33  ;;  %v3511_v23 = vadd.f32 %v11226_v29, %v3439_v48  ;;  %v3512_v28 = vadd.f32 %v11226_v29, %v3440_v63  ;;  %v14837_v52 = vld [vmem:[#allocation70_spill] sm:$0xff]  ;;  %v14840_v33 = vld [vmem:[#allocation88_spill] sm:$0xff] }
 0x3ed   :  { %14835 = vst [vmem:[#allocation86_spill] sm:$0xff] %v11378_v4  ;;  %v3513_v57 = vadd.f32 %v11226_v29, %v3441_v5  ;;  %v11396_v58 = vpack.c.bf16 %v11341_v24, %v3910_v20  ;;  %v11400_v48 = vpack.c.bf16 %v14776_v35, %v14775_v10  ;;  %vm14841_vm9 = vnez %v14840_v33  ;;  %v7382_v5 = vld [vmem:[%s13588_s1 + $0x3d0] sm:$0xff]  }
 0x3ee   :  { %5094 = vmatmul.mubr.bf16.gmra.mxu0 %v11060_v19  ;;  %v14836_v19 = vld [vmem:[#allocation39_spill] sm:$0xff]  ;;  %v11414_v20 = vrot.slane %v11378_v4, 1  ;;  %v11416_v1 = vmax.f32 %v3509_v17, 0.0  ;;  %v11418_v10 = vmax.f32 %v3510_v38, 0.0  ;;  %v11427_v63 = vmax.f32 %v3511_v23, 0.0 }
 0x3ef   :  { %5101 = vmatprep.mubr.bf16.mxu0 %v11103_v40  ;;  %v3450_v39 = vmul.f32 %v11219_v13, %v14836_v19  ;;  %v3521_v19 = vadd.f32 %v11226_v29, %v3449_v18  ;;  %14838 = vst [vmem:[#allocation72_spill] sm:$0xff] %v11396_v58  ;;  %14839 = vst [vmem:[#allocation68_spill] sm:$0xff] %v11400_v48  ;;  %v11411_v18 = vrot.slane %v11378_v4, 7  ;;  %5570 = vmatpush1.bf16.msra.mxu0 %v7382_v5 }
 0x3f0   :  { %4813 = vmatmul.mubr.bf16.gmra.mxu1 %v11067_v27  ;;  %v3442_v27 = vmul.f32 %v11219_v13, %v14837_v52  ;;  %14843 = vst [vmem:[#allocation89_spill] sm:$0xff] %v11414_v20  ;;  %v11425_v52 = vmax.f32 %v3508_v3, 0.0  ;;  %v11431_v13 = vmax.f32 %v3513_v57, 0.0  ;;  %v11442_v38 = vmax.f32 %v11263_v2, 0.0  ;;  %v7383_v57 = vld [vmem:[%s13588_s1 + $0x3c8] sm:$0xff]   ;;  %5571 = vmatprep.subr.bf16.mxu0 %v14637_v11 }
 0x3f1   :  { %4820 = vmatprep.mubr.bf16.mxu1 %v11073_v25  ;;  %v3522_v43 = vadd.f32 %v11226_v29, %v3450_v39  ;;  %14842 = vst [vmem:[#allocation71_spill] sm:$0xff] %v11411_v18  ;;  %v11423_v39 = vmax.f32 %v3507_v15, 0.0  ;;  %v11429_v25 = vmax.f32 %v3512_v28, 0.0  ;;  %v11433_v4 = vmax.f32 %v3521_v19, 0.0 }
 0x3f2   :  { %v11421_v35 = vadd.f32 %v11226_v29, %v3442_v27  ;;  %14845 = vst [vmem:[#allocation49_spill] sm:$0xff] %v11431_v13  ;;  %v11439_v27 = vmax.f32 %v11260_v56, 0.0  ;;  %v11445_v23 = vmax.f32 %v11266_v30, 0.0  ;;  %v11448_v15 = vmax.f32 %v11269_v47, 0.0 }
 0x3f3   :  { %v11435_v17 = vmax.f32 %v3522_v43, 0.0  ;;  %v11455_v3 = vmax.f32 %v11272_v8, 0.0  ;;  %v4004_v56 = vrot.slane %v11416_v1, 7  ;;  %v11459_v2 = vrot.slane %v11416_v1, 1  ;;  %5572 = vmatpush1.bf16.msra.mxu0 %v7383_v57 }
 0x3f4   :  { %14844 = vst [vmem:[#allocation80_spill] sm:$0xff] %v11421_v35  ;;  %v11462_v30 = vrot.slane %v11418_v10, 1  ;;  %v11467_v47 = vrot.slane %v11418_v10, 7  ;;  %v4006_v28 = vrot.slane %v11423_v39, 7  ;;  %v4072_v8 = vrot.slane %v11423_v39, 1  ;;  %5573 = vmatprep.subr.bf16.mxu0 %v14637_v11 }
 0x3f5   :  { %v4073_v19 = vrot.slane %v11425_v52, 1  ;;  %v11474_v43 = vmax.f32 %v11275_v55, 0.0  ;;  %v11477_v5 = vmax.f32 %v11278_v26, 0.0  ;;  %v11489_v13 = vmax.f32 %v11291_v36, 0.0  ;;  %v7384_v26 = vld [vmem:[%s13588_s1 + $0x3c0] sm:$0xff]  }
 0x3f6   :  { %5102 = vmatmul.mubr.bf16.gmra.mxu0 %v11078_v6  ;;  %14846 = vst [vmem:[#allocation79_spill] sm:$0xff] %v11462_v30  ;;  %v11486_v6 = vmax.f32 %v11288_v46, 0.0  ;;  %v11492_v29 = vmax.f32 %v11294_v9, 0.0  ;;  %v11495_v55 = vmax.f32 %v11297_v37, 0.0  ;;  %v4007_v36 = vrot.slane %v11425_v52, 7  ;;  %v7385_v46 = vld [vmem:[%s13588_s1 + $0x388] sm:$0xff]  }
 0x3f7   :  { %5109 = vmatprep.mubr.bf16.mxu0 %v11125_v32  ;;  %v4068_v9 = vsel %vm14820_vm7, %v11467_v47, %v4006_v28  ;;  %v11514_v37 = vsel %vm14826_vm8, %v4072_v8, %v4073_v19  ;;  %v4086_v57 = vrot.slane %v11439_v27, 1  ;;  %v11531_v35 = vsel %vm14820_vm7, %v4004_v56, %v11467_v47  ;;  %5574 = vmatpush1.bf16.msra.mxu0 %v7384_v26 }
 0x3f8   :  { %4821 = vmatmul.mubr.bf16.gmra.mxu1 %v11103_v40  ;;  %v11480_v40 = vmax.f32 %v11281_v45, 0.0  ;;  %14847 = vst [vmem:[#allocation76_spill] sm:$0xff] %v11492_v29  ;;  %v11502_v45 = vmax.f32 %v11304_v54, 0.0  ;;  %v4069_v54 = vsel %vm14850_vm15, %v11411_v18, %v4004_v56  ;;  %vm14852_vm15 = vmmov %vm14826_vm8  ;;  %v4138_v26 = vsel %vm14640_vm0, %v11514_v37, %v4068_v9  ;;  %v14855_v18 = vld [vmem:[#allocation8_spill] sm:$0xff]  ;;  %5575 = vmatprep.subr.bf16.mxu0 %v14637_v11 }
 0x3f9   :  { %4828 = vmatprep.mubr.bf16.mxu1 %v11115_v21  ;;  %v11483_v21 = vmax.f32 %v11284_v50, 0.0  ;;  %v11505_v50 = vmax.f32 %v11307_v62, 0.0  ;;  %v11523_v62 = vsel %vm14851_vm10, %v11459_v2, %v11462_v30  ;;  %vm14853_vm10 = vmmov %vm14820_vm7  ;;  %vm14856_vm8 = vnez %v14855_v18  ;;  %5299 = vmatpush2.bf16.msra.mxu1 %v7385_v46 }
 0x3fa   :  { %14848 = vst [vmem:[#allocation75_spill] sm:$0xff] %v11502_v45  ;;  %v11553_v20 = vsel %vm14853_vm10, %v4006_v28, %v4007_v36  ;;  %v4136_v45 = vsel %vm14856_vm8, %v11523_v62, %v4069_v54  ;;  %v11568_v28 = vsel %vm14820_vm7, %v4007_v36, %v4004_v56  ;;  %v4019_v29 = vrot.slane %v11435_v17, 7  ;;  %5300 = vmatprep.subr.bf16.mxu1 %v14637_v11  ;;  %vm14861_vm0 = vmmov %vm14820_vm7  ;;  %v7388_v54 = vld [vmem:[%s13588_s1 + $0x428] sm:$0xff]  }
 0x3fb   :  { %14849 = vst [vmem:[#allocation46_spill] sm:$0xff] %v11505_v50  ;;  %v4134_v50 = vsel %vm14852_vm15, %v11462_v30, %v4072_v8  ;;  %v11548_v8 = vrot.slane %v11495_v55, 1  ;;  %v13981_v30 = vrot.slane %v11433_v4, 7  ;;  %v11574_v18 = vpack.c.bf16 %v11418_v10, %v11416_v1  ;;  %vm14865_vm8 = vmmov %vm14861_vm0 }
 0x3fc   :  { %v14857_v31 = vsel %vm14841_vm9, %v11341_v24, %v11355_v59  ;;  %v11586_v56 = vpack.c.bf16 %v11425_v52, %v11423_v39  ;;  %v4085_v36 = vrot.slane %v11435_v17, 1  ;;  %v11596_v10 = vpack.c.bf16 %v11553_v20, %v4138_v26  ;;  %v7387_v52 = vld [vmem:[%s13588_s1 + $0x430] sm:$0xff]  }
 0x3fd   :  { %v11599_v59 = vpack.c.bf16 %v11531_v35, %v4136_v45  ;;  %v11605_v39 = vsel %vm14861_vm0, %v13981_v30, %v4019_v29  ;;  %v14863_v9 = vrot.slane %v11433_v4, 1  ;;  %v4021_v45 = vrot.slane %v11442_v38, 7 }
 0x3fe   :  { %5110 = vmatmul.mubr.bf16.gmra.mxu0 %v11121_v0  ;;  %v7386_v0 = vld [vmem:[%s13588_s1 + $0x438] sm:$0xff]   ;;  %14859 = vst [vmem:[#allocation60_spill] sm:$0xff] %v11586_v56  ;;  %v4023_v30 = vrot.slane %v11448_v15, 7  ;;  %v4089_v24 = vrot.slane %v11448_v15, 1  ;;  %v11683_v44 = vpack.c.bf16 %v11448_v15, %v11445_v23  ;;  %v7389_v15 = vld [vmem:[%s13588_s1 + $0x420] sm:$0xff]   ;;  %v14884_v12 = vrot.slane %v11483_v21, 1 }
 0x3ff   :  { %5117 = vmatprep.mubr.bf16.mxu0 %v11165_v22  ;;  %5576 = vmatpush2.bf16.msra.mxu0 %v7386_v0 }
 0x400   :  { %4829 = vmatmul.mubr.bf16.gmra.mxu1 %v11125_v32  ;;  %v4173_v32 = vsel %vm7734_vm4, %v11531_v35, %v4134_v50  ;;  %v11582_v50 = vpack.c.bf16 %v14857_v31, %v11331_v51  ;;  %vm14860_vm4 = vmmov %vm14852_vm15  ;;  %5577 = vmatprep.subr.bf16.mxu0 %v14637_v11  ;;  %v4020_v31 = vrot.slane %v11439_v27, 7 }
 0x401   :  { %4836 = vmatprep.mubr.bf16.mxu1 %v11131_v42  ;;  %v11593_v1 = vsel %vm14860_vm4, %v4073_v19, %v11459_v2  ;;  %v11611_v19 = vpack.c.bf16 %v4173_v32, %v11523_v62  ;;  %vm14862_vm15 = vmmov %vm14860_vm4  ;;  %v4022_v32 = vrot.slane %v11445_v23, 7 }
 0x402   :  { %14858 = vst [vmem:[#allocation55_spill] sm:$0xff] %v11582_v50  ;;  %v4118_v46 = vsel %vm14862_vm15, %v4085_v36, %v4086_v57  ;;  %vm14864_vm10 = vmmov %vm14860_vm4  ;;  %v4052_v49 = vsel %vm14865_vm8, %v4019_v29, %v4020_v31 }
 0x403   :  { %v11623_v0 = vsel %vm14864_vm10, %v14863_v9, %v4085_v36  ;;  %v4189_v26 = vsel %vm14706_vm6, %v11605_v39, %v4118_v46  ;;  %v4087_v36 = vrot.slane %v11442_v38, 1  ;;  %v11638_v9 = vpack.c.bf16 %v11442_v38, %v11439_v27  ;;  %5578 = vmatpush2.bf16.msra.mxu0 %v7387_v52  ;;  %vm14866_vm6 = vmmov %vm14861_vm0 }
 0x404   :  { %v11644_v46 = vpack.c.bf16 %v4189_v26, %v11623_v0  ;;  %v4051_v27 = vsel %vm14866_vm6, %v4020_v31, %v4021_v45  ;;  %v14867_v38 = vrot.slane %v11445_v23, 1  ;;  %vm14868_vm7 = vmmov %vm14860_vm4  ;;  %5579 = vmatprep.subr.bf16.mxu0 %v14637_v11  ;;  %v4049_v51 = vsel %vm14861_vm0, %v4022_v32, %v4023_v30 }
 0x405   :  { %v4117_v26 = vsel %vm14860_vm4, %v4086_v57, %v4087_v36  ;;  %vm14869_vm15 = vmmov %vm14861_vm0  ;;  %v14870_v57 = vrot.slane %v11455_v3, 1 }
 0x406   :  { %5118 = vmatmul.mubr.bf16.gmra.mxu0 %v11138_v34  ;;  %v4116_v29 = vsel %vm14868_vm7, %v4087_v36, %v14867_v38  ;;  %v4154_v52 = vsel %vm14717_vm12, %v4117_v26, %v4052_v49  ;;  %v4050_v38 = vsel %vm14869_vm15, %v4021_v45, %v4022_v32  ;;  %vm14871_vm10 = vmmov %vm14860_vm4 }
 0x407   :  { %5125 = vmatprep.mubr.bf16.mxu0 %v11396_v58  ;;  %v4191_v31 = vsel %vm14719_vm1, %v4051_v27, %v4116_v29  ;;  %v4114_v36 = vsel %vm14871_vm10, %v4089_v24, %v14870_v57  ;;  %vm14873_vm12 = vmmov %vm14860_vm4  ;;  %5580 = vmatpush2.bf16.msra.mxu0 %v7388_v54  ;;  %v14876_v54 = vrot.slane %v11477_v5, 1 }
 0x408   :  { %4837 = vmatmul.mubr.bf16.gmra.mxu1 %v11165_v22  ;;  %v11671_v22 = vpack.c.bf16 %v4051_v27, %v4154_v52  ;;  %v4193_v45 = vsel %vm14731_vm11, %v4049_v51, %v4114_v36  ;;  %v11689_v32 = vpack.c.bf16 %v4191_v31, %v4117_v26  ;;  %v4024_v27 = vrot.slane %v11455_v3, 7  ;;  %5581 = vmatprep.subr.bf16.mxu0 %v14637_v11  ;;  %vm14874_vm1 = vmmov %vm14861_vm0  ;;  %v14880_v36 = vld [vmem:[#allocation57_spill] sm:$0xff] }
 0x409   :  { %4844 = vmatprep.mubr.bf16.mxu1 %v11400_v48  ;;  %v14872_v48 = vrot.slane %v11445_v23, 1  ;;  %v4025_v52 = vrot.slane %v11474_v43, 7  ;;  %v4026_v23 = vrot.slane %v11477_v5, 7  ;;  %vm14875_vm11 = vmmov %vm14861_vm0  ;;  %v14878_v26 = vmov %v14870_v57 }
 0x40a   :  { %v4048_v16 = vsel %vm14874_vm1, %v4023_v30, %v4024_v27  ;;  %vm14879_vm8 = vmmov %vm14860_vm4  ;;  %vm14881_vm6 = vnez %v14880_v36  ;;  %v4028_v36 = vrot.slane %v11483_v21, 7 }
 0x40b   :  { %v4115_v60 = vsel %vm14873_vm12, %v14872_v48, %v4089_v24  ;;  %v4091_v24 = vrot.slane %v11474_v43, 1  ;;  %v11698_v48 = vpack.c.bf16 %v11474_v43, %v11455_v3  ;;  %v4047_v43 = vsel %vm14875_vm11, %v4024_v27, %v4025_v52  ;;  %vm14882_vm7 = vmmov %vm14861_vm0  ;;  %v7390_v3 = vld [vmem:[%s13588_s1 + $0x380] sm:$0xff]   ;;  %5582 = vmatpush2.bf16.msra.mxu0 %v7389_v15 }
 0x40c   :  { %v4156_v49 = vsel %vm14729_vm14, %v4115_v60, %v4050_v38  ;;  %v11703_v53 = vpack.c.bf16 %v4193_v45, %v4115_v60  ;;  %vm14877_vm14 = vmmov %vm14860_vm4  ;;  %v4093_v38 = vrot.slane %v11480_v40, 1  ;;  %5301 = vmatpush2.bf16.msra.mxu1 %v7390_v3  ;;  %5583 = vmatprep.subr.bf16.mxu0 %v14637_v11  ;;  %v14896_v3 = vrot.slane %v11483_v21, 1 }
 0x40d   :  { %v11692_v29 = vpack.c.bf16 %v4049_v51, %v4156_v49  ;;  %v4027_v51 = vrot.slane %v11480_v40, 7  ;;  %v4112_v30 = vsel %vm14877_vm14, %v4091_v24, %v14876_v54  ;;  %v4113_v31 = vsel %vm14879_vm8, %v14878_v26, %v4091_v24  ;;  %vm14883_vm4 = vmmov %vm14861_vm0 }
 0x40e   :  { %5126 = vmatmul.mubr.bf16.gmra.mxu0 %v11167_v7  ;;  %v4158_v57 = vsel %vm14740_vm2, %v4113_v31, %v4048_v16  ;;  %v4195_v60 = vsel %vm14881_vm6, %v4047_v43, %v4112_v30  ;;  %v4046_v45 = vsel %vm14883_vm4, %v4025_v52, %v4026_v23  ;;  %vm14885_vm2 = vmmov %vm14879_vm8  ;;  %v14886_v16 = vmov %v14876_v54  ;;  %v14890_v30 = vld [vmem:[#allocation65_spill] sm:$0xff] }
 0x40f   :  { %5133 = vmatprep.mubr.bf16.mxu0 %v11348_v61  ;;  %v4045_v49 = vsel %vm14882_vm7, %v4026_v23, %v4027_v51  ;;  %v11735_v27 = vpack.c.bf16 %v4047_v43, %v4158_v57  ;;  %v4110_v24 = vsel %vm14885_vm2, %v4093_v38, %v14884_v12  ;;  %vm14887_vm0 = vmmov %vm14885_vm2  ;;  %v11747_v52 = vpack.c.bf16 %v11480_v40, %v11477_v5  ;;  %v14888_v23 = vld [vmem:[#allocation53_spill] sm:$0xff] }
 0x410   :  { %4845 = vmatmul.mubr.bf16.gmra.mxu1 %v11396_v58  ;;  %v4111_v54 = vsel %vm14887_vm0, %v14886_v16, %v4093_v38  ;;  %vm14889_vm15 = vnez %v14888_v23  ;;  %vm14891_vm10 = vnez %v14890_v30  ;;  %v11754_v57 = vpack.c.bf16 %v4195_v60, %v4113_v31  ;;  %v7391_v38 = vld [vmem:[%s13588_s1 + $0x418] sm:$0xff]   ;;  %vm14892_vm12 = vmmov %vm14874_vm1 }
 0x411   :  { %4852 = vmatprep.mubr.bf16.mxu1 %v11574_v18  ;;  %v4160_v43 = vsel %vm14889_vm15, %v4111_v54, %v4046_v45  ;;  %v4197_v26 = vsel %vm14891_vm10, %v4045_v49, %v4110_v24  ;;  %v4029_v40 = vrot.slane %v11486_v6, 7  ;;  %v4095_v5 = vrot.slane %v11486_v6, 1  ;;  %vm14895_vm11 = vmmov %vm14887_vm0  ;;  %5584 = vmatpush2.bf16.msra.mxu0 %v7391_v38 }
 0x412   :  { %v11760_v12 = vpack.c.bf16 %v4045_v49, %v4160_v43  ;;  %v11766_v45 = vpack.c.bf16 %v11486_v6, %v11483_v21  ;;  %v4044_v15 = vsel %vm14892_vm12, %v4027_v51, %v4028_v36  ;;  %v11771_v31 = vpack.c.bf16 %v4197_v26, %v4111_v54  ;;  %v14893_v49 = vld [vmem:[#allocation76_spill] sm:$0xff]  ;;  %vm14897_vm14 = vmmov %vm14887_vm0  ;;  %v14898_v54 = vld [vmem:[#allocation58_spill] sm:$0xff]  ;;  %5585 = vmatprep.subr.bf16.mxu0 %v14637_v11 }
 0x413   :  { %v4030_v60 = vrot.slane %v11489_v13, 7  ;;  %v4031_v24 = vrot.slane %v14893_v49, 7  ;;  %v4043_v16 = vsel %vm14874_vm1, %v4028_v36, %v4029_v40  ;;  %v14894_v23 = vrot.slane %v11489_v13, 1  ;;  %v14900_v26 = vld [vmem:[#allocation73_spill] sm:$0xff]  ;;  %vm14902_vm7 = vmmov %vm14874_vm1  ;;  %v7392_v21 = vld [vmem:[%s13588_s1 + $0x410] sm:$0xff]  }
 0x414   :  { %v4109_v43 = vsel %vm14897_vm14, %v14896_v3, %v4095_v5  ;;  %v4097_v51 = vrot.slane %v14893_v49, 1  ;;  %vm14899_vm8 = vnez %v14898_v54  ;;  %vm14901_vm6 = vnez %v14900_v26  ;;  %vm14903_vm4 = vmmov %vm14874_vm1 }
 0x415   :  { %v4108_v6 = vsel %vm14895_vm11, %v4095_v5, %v14894_v23  ;;  %v4162_v30 = vsel %vm14899_vm8, %v4109_v43, %v4044_v15  ;;  %v4041_v36 = vsel %vm14902_vm7, %v4030_v60, %v4031_v24  ;;  %v4042_v58 = vsel %vm14903_vm4, %v4029_v40, %v4030_v60  ;;  %vm14904_vm2 = vmmov %vm14887_vm0  ;;  %v14916_v40 = vld [vmem:[#allocation46_spill] sm:$0xff]  ;;  %5586 = vmatpush2.bf16.msra.mxu0 %v7392_v21 }
 0x416   :  { %v4199_v61 = vsel %vm14901_vm6, %v4043_v16, %v4108_v6  ;;  %5134 = vmatmul.mubr.bf16.gmra.mxu0 %v11582_v50  ;;  %v11798_v5 = vpack.c.bf16 %v4043_v16, %v4162_v30  ;;  %v4106_v15 = vsel %vm14904_vm2, %v4097_v51, %v11548_v8  ;;  %v4107_v6 = vsel %vm14887_vm0, %v14894_v23, %v4097_v51  ;;  %vm14908_vm15 = vmmov %vm14887_vm0  ;;  %v14921_v50 = vld [vmem:[#allocation120_spill] sm:$0xff] }
 0x417   :  { %v11809_v38 = vpack.c.bf16 %v14893_v49, %v11489_v13  ;;  %5141 = vmatprep.mubr.bf16.mxu0 %v11596_v10  ;;  %v4164_v60 = vsel %vm14783_vm3, %v4107_v6, %v4042_v58  ;;  %v4201_v3 = vsel %vm8673_vm13, %v4041_v36, %v4106_v15  ;;  %v11816_v54 = vpack.c.bf16 %v4199_v61, %v4109_v43  ;;  %v14907_v13 = vld [vmem:[#allocation89_spill] sm:$0xff]  ;;  %v14909_v58 = vld [vmem:[#allocation86_spill] sm:$0xff]  ;;  %v14912_v61 = vld [vmem:[#allocation71_spill] sm:$0xff] }
 0x418   :  { %v4032_v30 = vrot.slane %v11495_v55, 7  ;;  %4853 = vmatmul.mubr.bf16.gmra.mxu1 %v11599_v59  ;;  %v11821_v51 = vpack.c.bf16 %v4041_v36, %v4164_v60  ;;  %v4102_v49 = vsel %vm14908_vm15, %v11548_v8, %v14907_v13  ;;  %v11829_v26 = vpack.c.bf16 %v14909_v58, %v11495_v55  ;;  %vm14913_vm13 = vmmov %vm14874_vm1  ;;  %v14915_v36 = vld [vmem:[#allocation75_spill] sm:$0xff]  ;;  %v7393_v55 = vld [vmem:[%s13588_s1 + $0x408] sm:$0xff]   ;;  %5587 = vmatprep.subr.bf16.mxu0 %v14637_v11 }
 0x419   :  { %v11831_v15 = vpack.c.bf16 %v4201_v3, %v4107_v6  ;;  %4860 = vmatprep.mubr.bf16.mxu1 %v11586_v56  ;;  %vm14914_vm3 = vmmov %vm14874_vm1  ;;  %v4034_v23 = vrot.slane %v14915_v36, 7  ;;  %v4035_v60 = vrot.slane %v14916_v40, 7  ;;  %v14917_v6 = vld [vmem:[#allocation74_spill] sm:$0xff]  ;;  %v4100_v3 = vrot.slane %v14915_v36, 1  ;;  %v14919_v56 = vld [vmem:[#allocation9_spill] sm:$0xff]  ;;  %5588 = vmatpush2.bf16.msra.mxu0 %v7393_v55 }
 0x41a   :  { %14910 = vst [vmem:[#allocation112_spill] sm:$0xff] %v11829_v26  ;;  %v4036_v43 = vsel %vm14913_vm13, %v4032_v30, %v14912_v61  ;;  %v4040_v59 = vsel %vm14914_vm3, %v4031_v24, %v4032_v30  ;;  %vm14918_vm10 = vnez %v14917_v6  ;;  %v4101_v58 = vrot.slane %v14916_v40, 1  ;;  %v14920_v24 = vld [vmem:[#allocation56_spill] sm:$0xff]  ;;  %vm14924_vm11 = vmmov %vm14874_vm1  ;;  %v14925_v6 = vld [vmem:[#allocation10_spill] sm:$0xff]  ;;  %5589 = vmatprep.subr.bf16.mxu0 %v14637_v11 }
 0x41b   :  { %14911 = vst [vmem:[#allocation50_spill] sm:$0xff] %v11831_v15  ;;  %v4166_v16 = vsel %vm14918_vm10, %v4102_v49, %v4040_v59  ;;  %vm14922_vm12 = vnez %v14921_v50  ;;  %v4038_v21 = vsel %vm14874_vm1, %v4034_v23, %v4035_v60  ;;  %v4039_v59 = vsel %vm14924_vm11, %v14912_v61, %v4034_v23  ;;  %vm14928_vm14 = vmmov %vm14887_vm0  ;;  %v14933_v61 = vld [vmem:[#allocation82_spill] sm:$0xff]  ;;  %v14938_v55 = vld [vmem:[#allocation80_spill] sm:$0xff] }
 0x41c   :  { %v3949_v7 = vsel %vm14922_vm12, %v14920_v24, %v14919_v56  ;;  %v11853_v42 = vpack.c.bf16 %v4036_v43, %v4166_v16  ;;  %v14926_v15 = vsel %vm7742_vm5, %v11523_v62, %v11568_v28  ;;  %v4104_v56 = vsel %vm14928_vm14, %v4100_v3, %v4101_v58  ;;  %vm14929_vm8 = vmmov %vm14887_vm0  ;;  %v7394_v24 = vld [vmem:[%s13588_s1 + $0x400] sm:$0xff]   ;;  %v14944_v50 = vld [vmem:[#allocation38_spill] sm:$0xff] }
 0x41d   :  { %v11861_v34 = vpack.c.bf16 %v3949_v7, %v14925_v6  ;;  %v11869_v26 = vpack.c.bf16 %v11531_v35, %v14926_v15  ;;  %v4105_v16 = vsel %vm14929_vm8, %v14907_v13, %v4100_v3  ;;  %v11879_v7 = vld [vmem:[%s13588_s1 + $0x478] sm:$0xff]   ;;  %v11883_v41 = vpack.c.bf16 %v14916_v40, %v14915_v36  ;;  %vm14932_vm5 = vmmov %vm14874_vm1  ;;  %5590 = vmatpush2.bf16.msra.mxu0 %v7394_v24  ;;  %v14960_v24 = vld [vmem:[#allocation49_spill] sm:$0xff] }
 0x41e   :  { %14923 = vst [vmem:[#allocation63_spill] sm:$0xff] %v11853_v42  ;;  %v14931_v28 = vrot.slane %v11427_v63, 7  ;;  %vm14934_vm6 = vnez %v14933_v61  ;;  %v4203_v3 = vsel %vm14841_vm9, %v4036_v43, %v4105_v16  ;;  %vm14935_vm7 = vmmov %vm14887_vm0  ;;  %5142 = vmatmul.mubr.bf16.gmra.mxu0 %v11611_v19  ;;  %v4009_v40 = vrot.slane %v11429_v25, 7  ;;  %7175 = vmatprep.subr.bf16.mxu1 %v11879_v7  ;;  %v14946_v61 = vld [vmem:[#allocation78_spill] sm:$0xff] }
 0x41f   :  { %14927 = vst [vmem:[#allocation84_spill] sm:$0xff] %v11869_v26  ;;  %14930 = vst [vmem:[#allocation83_spill] sm:$0xff] %v11883_v41  ;;  %v4168_v23 = vsel %vm14934_vm6, %v4104_v56, %v4039_v59  ;;  %v4103_v36 = vsel %vm14935_vm7, %v4101_v58, %v11548_v8  ;;  %v11904_v6 = vpack.c.bf16 %v4203_v3, %v4102_v49  ;;  %v11910_v59 = vmax.f32 %v14938_v55, 0.0  ;;  %v14947_v3 = vld [vmem:[#allocation90_spill] sm:$0xff] }
 0x420   :  { %v4064_v15 = vsel %vm14932_vm5, %v11467_v47, %v14931_v28  ;;  %v11902_v47 = vpack.c.bf16 %v4038_v21, %v4168_v23  ;;  %v4205_v33 = vsel %vm14922_vm12, %v4038_v21, %v4103_v36  ;;  %5149 = vmatprep.mubr.bf16.mxu0 %v11869_v26  ;;  %v14939_v8 = vrot.slane %v11429_v25, 1  ;;  %vm14941_vm9 = vmmov %vm14887_vm0  ;;  %v14945_v21 = vld [vmem:[#allocation41_spill] sm:$0xff]  ;;  %4861 = vmatmul.mubr.bf16.gmra.mxu1 %v11596_v10  ;;  %v14952_v55 = vld [vmem:[#allocation106_spill] sm:$0xff] }
 0x421   :  { %14937 = vst [vmem:[#allocation28_spill] sm:$0xff] %v11904_v6  ;;  %v14940_v19 = vrot.slane %v11427_v63, 1  ;;  %v11922_v16 = vpack.c.bf16 %v4205_v33, %v4104_v56  ;;  %vm14943_vm4 = vmmov %vm14874_vm1  ;;  %v3443_v28 = vmul.f32 %v14945_v21, %v14944_v50  ;;  %v3444_v23 = vmul.f32 %v14945_v21, %v14946_v61  ;;  %v14949_v33 = vld [vmem:[#allocation12_spill] sm:$0xff]  ;;  %4868 = vmatprep.mubr.bf16.mxu1 %v11574_v18 }
 0x422   :  { %14936 = vst [vmem:[#allocation64_spill] sm:$0xff] %v11902_v47  ;;  %v4037_v11 = vsel %vm14943_vm4, %v4035_v60, %v4032_v30  ;;  %vm14948_vm2 = vnez %v14947_v3  ;;  %v4135_v56 = vsel %vm14887_vm0, %v14907_v13, %v11459_v2  ;;  %vm14950_vm15 = vnez %v14949_v33  ;;  %vm14956_vm3 = vmmov %vm14874_vm1  ;;  %v14957_v13 = vld [vmem:[#allocation13_spill] sm:$0xff] }
 0x423   :  { %v11919_v58 = vsel %vm14941_vm9, %v14940_v19, %v14939_v8  ;;  %14942 = vst [vmem:[#allocation24_spill] sm:$0xff] %v11922_v16  ;;  %v4170_v36 = vsel %vm14948_vm2, %v4102_v49, %v4037_v11  ;;  %v4175_v30 = vsel %vm14950_vm15, %v11553_v20, %v11593_v1  ;;  %vm14953_vm13 = vnez %v14952_v55  ;;  %v14954_v8 = vld [vmem:[#allocation47_spill] sm:$0xff]  ;;  %vm14964_vm12 = vmmov %vm14887_vm0  ;;  %v14972_v55 = vld [vmem:[#allocation16_spill] sm:$0xff] }
 0x424   :  { %v11942_v60 = vpack.c.bf16 %v4036_v43, %v4170_v36  ;;  %v4207_v10 = vsel %vm14953_vm13, %v4036_v43, %v4135_v56  ;;  %v3515_v19 = vadd.f32 %v14954_v8, %v3443_v28  ;;  %v14955_v11 = vrot.slane %v11427_v63, 7  ;;  %vm14966_vm11 = vmmov %vm14887_vm0 }
 0x425   :  { %vm14958_vm10 = vnez %v14957_v13  ;;  %v11954_v20 = vpack.c.bf16 %v4207_v10, %v4102_v49  ;;  %v3516_v1 = vadd.f32 %v14954_v8, %v3444_v23  ;;  %v4076_v61 = vrot.slane %v14960_v24, 1  ;;  %v14963_v49 = vld [vmem:[#allocation79_spill] sm:$0xff]  ;;  %v14967_v13 = vld [vmem:[#allocation34_spill] sm:$0xff]  ;;  %vm14971_vm8 = vmmov %vm14874_vm1 }
 0x426   :  { %14951 = vst [vmem:[#allocation54_spill] sm:$0xff] %v11942_v60  ;;  %v4063_v2 = vsel %vm14956_vm3, %v14955_v11, %v4009_v40  ;;  %v4142_v50 = vsel %vm14958_vm10, %v11919_v58, %v4064_v15  ;;  %v4010_v36 = vrot.slane %v14960_v24, 7  ;;  %v4077_v43 = vrot.slane %v11910_v59, 1  ;;  %vm14976_vm6 = vmmov %vm14887_vm0 }
 0x427   :  { %14959 = vst [vmem:[#allocation59_spill] sm:$0xff] %v11954_v20  ;;  %v11961_v28 = vpack.c.bf16 %v4175_v30, %v11514_v37  ;;  %v11963_v56 = vpack.c.bf16 %v4063_v2, %v4142_v50  ;;  %v3579_v33 = vmax.f32 %v3515_v19, 0.0  ;;  %v14962_v15 = vrot.slane %v11427_v63, 1  ;;  %vm14977_vm7 = vmmov %vm14874_vm1 }
 0x428   :  { %v4011_v10 = vrot.slane %v11910_v59, 7  ;;  %v11972_v11 = vmax.f32 %v3516_v1, 0.0  ;;  %v11977_v37 = vpack.c.bf16 %v11429_v25, %v11427_v63  ;;  %v4062_v30 = vsel %vm14874_vm1, %v4009_v40, %v4010_v36  ;;  %4869 = vmatmul.mubr.bf16.gmra.mxu1 %v11869_v26  ;;  %vm14978_vm9 = vmmov %vm14887_vm0 }
 0x429   :  { %14961 = vst [vmem:[#allocation33_spill] sm:$0xff] %v11963_v56  ;;  %5150 = vmatmul.mubr.bf16.gmra.mxu0 %v11961_v28  ;;  %v4130_v23 = vsel %vm14964_vm12, %v14963_v49, %v14962_v15  ;;  %v4127_v19 = vsel %vm14966_vm11, %v4076_v61, %v4077_v43  ;;  %v3445_v50 = vmul.f32 %v14945_v21, %v14967_v13  ;;  %v14968_v15 = vld [vmem:[#allocation85_spill] sm:$0xff]  ;;  %v14969_v49 = vld [vmem:[#allocation14_spill] sm:$0xff]  ;;  %v4078_v16 = vrot.slane %v3579_v33, 1  ;;  %vm14983_vm0 = vmmov %vm14874_vm1 }
 0x42a   :  { %5157 = vmatprep.mubr.bf16.mxu0 %v11963_v56  ;;  %14965 = vst [vmem:[#allocation29_spill] sm:$0xff] %v11977_v37  ;;  %v3446_v1 = vmul.f32 %v14945_v21, %v14968_v15  ;;  %4876 = vmatprep.mubr.bf16.mxu1 %v11977_v37  ;;  %vm14970_vm14 = vnez %v14969_v49  ;;  %v4061_v40 = vsel %vm14971_vm8, %v4010_v36, %v4011_v10  ;;  %v4012_v41 = vrot.slane %v3579_v33, 7  ;;  %v14981_v49 = vld [vmem:[#allocation20_spill] sm:$0xff]  ;;  %vm14986_vm3 = vmmov %vm14976_vm6 }
 0x42b   :  { %v4177_v63 = vsel %vm14970_vm14, %v11531_v35, %v4130_v23  ;;  %v3517_v20 = vadd.f32 %v14954_v8, %v3445_v50  ;;  %vm14973_vm5 = vnez %v14972_v55  ;;  %v4079_v15 = vrot.slane %v11972_v11, 1  ;;  %vm14987_vm10 = vmmov %vm14983_vm0 }
 0x42c   :  { %v4144_v60 = vsel %vm14973_vm5, %v4127_v19, %v4062_v30  ;;  %v3518_v13 = vadd.f32 %v14954_v8, %v3446_v1  ;;  %v12000_v37 = vpack.c.bf16 %v4177_v63, %v11523_v62  ;;  %v14975_v23 = vrot.slane %v11429_v25, 1  ;;  %vm14988_vm12 = vmmov %vm14986_vm3 }
 0x42d   :  { %v12002_v26 = vpack.c.bf16 %v4061_v40, %v4144_v60  ;;  %v3581_v35 = vmax.f32 %v3517_v20, 0.0  ;;  %v4013_v55 = vrot.slane %v11972_v11, 7  ;;  %v12013_v50 = vpack.c.bf16 %v11910_v59, %v14960_v24  ;;  %v14979_v60 = vld [vmem:[#allocation44_spill] sm:$0xff]  ;;  %vm14991_vm11 = vmmov %vm14983_vm0 }
 0x42e   :  { %14974 = vst [vmem:[#allocation62_spill] sm:$0xff] %v12000_v37  ;;  %v4128_v36 = vsel %vm14976_vm6, %v14975_v23, %v4076_v61  ;;  %v3582_v30 = vmax.f32 %v3518_v13, 0.0  ;;  %v4060_v62 = vsel %vm14977_vm7, %v4011_v10, %v4012_v41  ;;  %v4125_v25 = vsel %vm14978_vm9, %v4078_v16, %v4079_v15  ;;  %v14980_v61 = vld [vmem:[#allocation7_spill] sm:$0xff]  ;;  %v14984_v10 = vld [vmem:[#allocation21_spill] sm:$0xff]  ;;  %vm14994_vm8 = vmmov %vm14986_vm3 }
 0x42f   :  { %v3447_v20 = vmul.f32 %v14945_v21, %v14979_v60  ;;  %v3448_v1 = vmul.f32 %v14945_v21, %v14980_v61  ;;  %vm14982_vm4 = vnez %v14981_v49  ;;  %v4059_v24 = vsel %vm14983_vm0, %v4012_v41, %v4013_v55  ;;  %v14992_v49 = vld [vmem:[#allocation26_spill] sm:$0xff]  ;;  %vm14995_vm5 = vmmov %vm14983_vm0 }
 0x430   :  { %4877 = vmatmul.mubr.bf16.gmra.mxu1 %v11963_v56  ;;  %v4179_v63 = vsel %vm14982_vm4, %v4063_v2, %v4128_v36  ;;  %vm14985_vm15 = vnez %v14984_v10  ;;  %v4080_v60 = vrot.slane %v3581_v35, 1  ;;  %v4014_v56 = vrot.slane %v3581_v35, 7  ;;  %vm14996_vm6 = vmmov %vm14986_vm3 }
 0x431   :  { %5158 = vmatmul.mubr.bf16.gmra.mxu0 %v12000_v37  ;;  %4884 = vmatprep.mubr.bf16.mxu1 %v12013_v50  ;;  %v3519_v59 = vadd.f32 %v14954_v8, %v3447_v20  ;;  %v4146_v13 = vsel %vm14985_vm15, %v4125_v25, %v4060_v62  ;;  %v3520_v23 = vadd.f32 %v14954_v8, %v3448_v1  ;;  %v4081_v37 = vrot.slane %v3582_v30, 1  ;;  %v14989_v1 = vld [vmem:[#allocation25_spill] sm:$0xff]  ;;  %vm14999_vm9 = vmmov %vm14983_vm0 }
 0x432   :  { %5165 = vmatprep.mubr.bf16.mxu0 %v12002_v26  ;;  %v12034_v21 = vpack.c.bf16 %v4179_v63, %v11919_v58  ;;  %v12036_v61 = vpack.c.bf16 %v4059_v24, %v4146_v13  ;;  %v4126_v36 = vsel %vm14986_vm3, %v4077_v43, %v4078_v16  ;;  %v4015_v41 = vrot.slane %v3582_v30, 7  ;;  %vm15002_vm0 = vmmov %vm14986_vm3 }
 0x433   :  { %v3583_v2 = vmax.f32 %v3519_v59, 0.0  ;;  %v3584_v20 = vmax.f32 %v3520_v23, 0.0  ;;  %v12043_v8 = vpack.c.bf16 %v11972_v11, %v3579_v33  ;;  %v4058_v62 = vsel %vm14987_vm10, %v4013_v55, %v4014_v56  ;;  %vm15004_vm15 = vmmov %vm14995_vm5 }
 0x434   :  { %v4123_v58 = vsel %vm14988_vm12, %v4080_v60, %v4081_v37  ;;  %vm14990_vm1 = vnez %v14989_v1  ;;  %v4057_v43 = vsel %vm14991_vm11, %v4014_v56, %v4015_v41  ;;  %vm14993_vm14 = vnez %v14992_v49  ;;  %vm15010_vm12 = vmmov %vm15002_vm0 }
 0x435   :  { %v4181_v16 = vsel %vm14990_vm1, %v4061_v40, %v4126_v36  ;;  %v4148_v33 = vsel %vm14993_vm14, %v4123_v58, %v4058_v62  ;;  %v4082_v11 = vrot.slane %v3583_v2, 1  ;;  %v4016_v63 = vrot.slane %v3583_v2, 7  ;;  %v15104_v3 = vld [vmem:[#allocation62_spill] sm:$0xff] }
 0x436   :  { %v4083_v59 = vrot.slane %v3584_v20, 1  ;;  %v12057_v55 = vpack.c.bf16 %v4181_v16, %v4127_v19  ;;  %v12059_v10 = vpack.c.bf16 %v4057_v43, %v4148_v33  ;;  %v4124_v13 = vsel %vm14994_vm8, %v4079_v15, %v4080_v60  ;;  %v14997_v19 = vld [vmem:[#allocation30_spill] sm:$0xff]  ;;  %v15000_v60 = vld [vmem:[#allocation31_spill] sm:$0xff] }
 0x437   :  { %v4017_v40 = vrot.slane %v3584_v20, 7  ;;  %v12065_v23 = vpack.c.bf16 %v3582_v30, %v3581_v35  ;;  %v4056_v56 = vsel %vm14995_vm5, %v4015_v41, %v4016_v63  ;;  %vm14998_vm7 = vnez %v14997_v19 }
 0x438   :  { %4885 = vmatmul.mubr.bf16.gmra.mxu1 %v12002_v26  ;;  %v4121_v36 = vsel %vm14996_vm6, %v4082_v11, %v4083_v59  ;;  %v4183_v62 = vsel %vm14998_vm7, %v4059_v24, %v4124_v13  ;;  %vm15001_vm4 = vnez %v15000_v60  ;;  %v4122_v41 = vsel %vm15002_vm0, %v4081_v37, %v4082_v11  ;;  %v15007_v37 = vld [vmem:[#allocation36_spill] sm:$0xff] }
 0x439   :  { %5166 = vmatmul.mubr.bf16.gmra.mxu0 %v12034_v21  ;;  %4892 = vmatprep.mubr.bf16.mxu1 %v12043_v8  ;;  %v4055_v15 = vsel %vm14999_vm9, %v4016_v63, %v4017_v40  ;;  %v4150_v35 = vsel %vm15001_vm4, %v4121_v36, %v4056_v56  ;;  %v12079_v30 = vpack.c.bf16 %v4183_v62, %v4125_v25  ;;  %v15003_v16 = vrot.slane %v11433_v4, 7  ;;  %v15005_v25 = vld [vmem:[#allocation35_spill] sm:$0xff] }
 0x43a   :  { %5173 = vmatprep.mubr.bf16.mxu0 %v12036_v61  ;;  %v12081_v1 = vpack.c.bf16 %v4055_v15, %v4150_v35  ;;  %v12087_v24 = vpack.c.bf16 %v3584_v20, %v3583_v2  ;;  %vm15006_vm3 = vnez %v15005_v25  ;;  %vm15008_vm10 = vnez %v15007_v37 }
 0x43b   :  { %v4054_v49 = vsel %vm15004_vm15, %v4017_v40, %v15003_v16  ;;  %v4185_v33 = vsel %vm15006_vm3, %v4057_v43, %v4122_v41  ;;  %v15009_v20 = vrot.slane %v11433_v4, 1  ;;  %v12113_v43 = vpack.c.bf16 %v11435_v17, %v11433_v4 }
 0x43c   :  { %v4152_v11 = vsel %vm15008_vm10, %v11623_v0, %v4054_v49  ;;  %v12100_v63 = vpack.c.bf16 %v4185_v33, %v4123_v58  ;;  %v15011_v0 = vld [vmem:[#allocation40_spill] sm:$0xff] }
 0x43d   :  { %v12103_v2 = vpack.c.bf16 %v11605_v39, %v4152_v11  ;;  %v4120_v13 = vsel %vm15010_vm12, %v4083_v59, %v15009_v20  ;;  %vm15012_vm1 = vnez %v15011_v0 }
 0x43e   :  { %v4187_v58 = vsel %vm15012_vm1, %v4055_v15, %v4120_v13 }
 0x43f   :  { %v12119_v39 = vpack.c.bf16 %v4187_v58, %v4121_v36 }
 0x440   :  { %4893 = vmatmul.mubr.bf16.gmra.mxu1 %v12036_v61 }
 0x441   :  { %5174 = vmatmul.mubr.bf16.gmra.mxu0 %v12057_v55  ;;  %4900 = vmatprep.mubr.bf16.mxu1 %v12065_v23 }
 0x442   :  { %5181 = vmatprep.mubr.bf16.mxu0 %v12059_v10 }
 0x448   :  { %4901 = vmatmul.mubr.bf16.gmra.mxu1 %v12059_v10 }
 0x449   :  { %5182 = vmatmul.mubr.bf16.gmra.mxu0 %v12079_v30  ;;  %4908 = vmatprep.mubr.bf16.mxu1 %v12087_v24 }
 0x44a   :  { %5189 = vmatprep.mubr.bf16.mxu0 %v12081_v1 }
 0x450   :  { %4909 = vmatmul.mubr.bf16.gmra.mxu1 %v12081_v1 }
 0x451   :  { %5190 = vmatmul.mubr.bf16.gmra.mxu0 %v12100_v63  ;;  %4916 = vmatprep.mubr.bf16.mxu1 %v12113_v43 }
 0x452   :  { %5197 = vmatprep.mubr.bf16.mxu0 %v12103_v2 }
 0x453   :  { %v4726_v59 = vpop.f32.mrf.mxu1 }
 0x455   :  { %v4728_v4 = vpop.f32.mrf.mxu1 }
 0x457   :  { %v4729_v17 = vpop.f32.mrf.mxu1 }
 0x458   :  { %4917 = vmatmul.mubr.bf16.gmra.mxu1 %v12103_v2 }
 0x459   :  { %5198 = vmatmul.mubr.bf16.gmra.mxu0 %v12119_v39  ;;  %4924 = vmatprep.mubr.bf16.mxu1 %v11638_v9  ;;  %v4731_v40 = vpop.f32.mrf.mxu1 }
 0x45a   :  { %5205 = vmatprep.mubr.bf16.mxu0 %v11671_v22 }
 0x45b   :  { %v4734_v36 = vpop.f32.mrf.mxu1 }
 0x45c   :  { %v5015_v56 = vpop.f32.mrf.mxu0 }
 0x45d   :  { %v12126_v19 = vadd.f32 %v5015_v56, %v4726_v59  ;;  %v4736_v15 = vpop.f32.mrf.mxu1 }
 0x45e   :  { %v5017_v62 = vpop.f32.mrf.mxu0 }
 0x45f   :  { %v4737_v41 = vpop.f32.mrf.mxu1 }
 0x460   :  { %4925 = vmatmul.mubr.bf16.gmra.mxu1 %v11671_v22  ;;  %v5018_v60 = vpop.f32.mrf.mxu0 }
 0x461   :  { %5206 = vmatmul.mubr.bf16.gmra.mxu0 %v11644_v46  ;;  %4932 = vmatprep.mubr.bf16.mxu1 %v11683_v44  ;;  %v12131_v35 = vadd.f32 %v5018_v60, %v4729_v17  ;;  %v4739_v49 = vpop.f32.mrf.mxu1 }
 0x462   :  { %5213 = vmatprep.mubr.bf16.mxu0 %v11692_v29  ;;  %v5020_v16 = vpop.f32.mrf.mxu0 }
 0x463   :  { %v4742_v37 = vpop.f32.mrf.mxu1 }
 0x464   :  { %v5023_v25 = vpop.f32.mrf.mxu0 }
 0x465   :  { %v12134_v33 = vadd.f32 %v5023_v25, %v4734_v36  ;;  %v4744_v20 = vpop.f32.mrf.mxu1 }
 0x466   :  { %v5025_v11 = vpop.f32.mrf.mxu0 }
 0x467   :  { %v4745_v58 = vpop.f32.mrf.mxu1 }
 0x468   :  { %4933 = vmatmul.mubr.bf16.gmra.mxu1 %v11692_v29  ;;  %v5026_v13 = vpop.f32.mrf.mxu0 }
 0x469   :  { %5214 = vmatmul.mubr.bf16.gmra.mxu0 %v11689_v32  ;;  %4940 = vmatprep.mubr.bf16.mxu1 %v11698_v48  ;;  %v12139_v0 = vadd.f32 %v5026_v13, %v4737_v41  ;;  %v4747_v4 = vpop.f32.mrf.mxu1 }
 0x46a   :  { %5221 = vmatprep.mubr.bf16.mxu0 %v11735_v27  ;;  %v5028_v59 = vpop.f32.mrf.mxu0 }
 0x46b   :  { %v4750_v56 = vpop.f32.mrf.mxu1 }
 0x46c   :  { %v5031_v17 = vpop.f32.mrf.mxu0 }
 0x46d   :  { %v12142_v40 = vadd.f32 %v5031_v17, %v4742_v37  ;;  %v4752_v62 = vpop.f32.mrf.mxu1 }
 0x46e   :  { %v5033_v36 = vpop.f32.mrf.mxu0 }
 0x46f   :  { %v4753_v41 = vpop.f32.mrf.mxu1 }
 0x470   :  { %4941 = vmatmul.mubr.bf16.gmra.mxu1 %v11735_v27  ;;  %v5034_v15 = vpop.f32.mrf.mxu0 }
 0x471   :  { %5222 = vmatmul.mubr.bf16.gmra.mxu0 %v11703_v53  ;;  %4948 = vmatprep.mubr.bf16.mxu1 %v11747_v52  ;;  %v12147_v60 = vadd.f32 %v5034_v15, %v4745_v58  ;;  %v4755_v49 = vpop.f32.mrf.mxu1 }
 0x472   :  { %5229 = vmatprep.mubr.bf16.mxu0 %v11760_v12  ;;  %v5036_v16 = vpop.f32.mrf.mxu0 }
 0x474   :  { %v5039_v25 = vpop.f32.mrf.mxu0 }
 0x475   :  { %v12150_v37 = vadd.f32 %v5039_v25, %v4750_v56 }
 0x476   :  { %v4758_v11 = vpop.f32.mrf.mxu1  ;;  %v5041_v20 = vpop.f32.mrf.mxu0 }
 0x478   :  { %4949 = vmatmul.mubr.bf16.gmra.mxu1 %v11760_v12  ;;  %v4760_v13 = vpop.f32.mrf.mxu1  ;;  %v5042_v59 = vpop.f32.mrf.mxu0 }
 0x479   :  { %5230 = vmatmul.mubr.bf16.gmra.mxu0 %v11754_v57  ;;  %4956 = vmatprep.mubr.bf16.mxu1 %v11766_v45  ;;  %v12155_v58 = vadd.f32 %v5042_v59, %v4753_v41 }
 0x47a   :  { %5237 = vmatprep.mubr.bf16.mxu0 %v11798_v5  ;;  %v4761_v4 = vpop.f32.mrf.mxu1  ;;  %v5044_v17 = vpop.f32.mrf.mxu0 }
 0x47c   :  { %v4763_v36 = vpop.f32.mrf.mxu1  ;;  %v5047_v62 = vpop.f32.mrf.mxu0 }
 0x47d   :  { %v12158_v56 = vadd.f32 %v5047_v62, %v4758_v11 }
 0x47e   :  { %v4766_v15 = vpop.f32.mrf.mxu1  ;;  %v5049_v16 = vpop.f32.mrf.mxu0 }
 0x47f   :  { %15013 = vst [vmem:[#allocation69_spill] sm:$0xff] %v12158_v56  ;;  %v15016_v16 = vld [vmem:[#allocation112_spill] sm:$0xff]  ;;  %v15018_v56 = vld [vmem:[#allocation50_spill] sm:$0xff] }
 0x480   :  { %4957 = vmatmul.mubr.bf16.gmra.mxu1 %v11798_v5  ;;  %v4768_v49 = vpop.f32.mrf.mxu1  ;;  %v5050_v25 = vpop.f32.mrf.mxu0 }
 0x481   :  { %5238 = vmatmul.mubr.bf16.gmra.mxu0 %v11771_v31  ;;  %4964 = vmatprep.mubr.bf16.mxu1 %v11809_v38  ;;  %v12163_v41 = vadd.f32 %v5050_v25, %v4761_v4 }
 0x482   :  { %5245 = vmatprep.mubr.bf16.mxu0 %v11821_v51  ;;  %v4769_v20 = vpop.f32.mrf.mxu1  ;;  %v5052_v13 = vpop.f32.mrf.mxu0 }
 0x483   :  { %15014 = vst [vmem:[#allocation39_spill] sm:$0xff] %v12163_v41 }
 0x484   :  { %v4771_v59 = vpop.f32.mrf.mxu1  ;;  %v5055_v17 = vpop.f32.mrf.mxu0 }
 0x485   :  { %v12166_v11 = vadd.f32 %v5055_v17, %v4766_v15 }
 0x486   :  { %v5057_v62 = vpop.f32.mrf.mxu0 }
 0x487   :  { %15015 = vst [vmem:[#allocation70_spill] sm:$0xff] %v12166_v11  ;;  %v4774_v36 = vpop.f32.mrf.mxu1  ;;  %v15020_v11 = vld [vmem:[#allocation93_spill] sm:$0xff] }
 0x488   :  { %4965 = vmatmul.mubr.bf16.gmra.mxu1 %v11821_v51  ;;  %v5058_v14 = vpop.f32.mrf.mxu0 }
 0x489   :  { %5246 = vmatmul.mubr.bf16.gmra.mxu0 %v11816_v54  ;;  %4972 = vmatprep.mubr.bf16.mxu1 %v15016_v16  ;;  %v4776_v49 = vpop.f32.mrf.mxu1  ;;  %v12171_v4 = vadd.f32 %v5058_v14, %v4769_v20 }
 0x48a   :  { %5253 = vmatprep.mubr.bf16.mxu0 %v11853_v42  ;;  %v5060_v13 = vpop.f32.mrf.mxu0 }
 0x48b   :  { %15017 = vst [vmem:[#allocation88_spill] sm:$0xff] %v12171_v4  ;;  %v4777_v25 = vpop.f32.mrf.mxu1 }
 0x48c   :  { %v5063_v41 = vpop.f32.mrf.mxu0 }
 0x48d   :  { %v4779_v59 = vpop.f32.mrf.mxu1  ;;  %v12174_v15 = vadd.f32 %v5063_v41, %v4774_v36  ;;  %v7396_v41 = vld [vmem:[%s13588_s1 + $0x470] sm:$0xff]  }
 0x48e   :  { %v5065_v62 = vpop.f32.mrf.mxu0 }
 0x48f   :  { %15019 = vst [vmem:[#allocation6_spill] sm:$0xff] %v12174_v15  ;;  %v4782_v17 = vpop.f32.mrf.mxu1  ;;  %v15023_v62 = vld [vmem:[#allocation67_spill] sm:$0xff]  ;;  %v15027_v15 = vld [vmem:[#allocation77_spill] sm:$0xff] }
 0x490   :  { %4973 = vmatmul.mubr.bf16.gmra.mxu1 %v11853_v42  ;;  %v5066_v16 = vpop.f32.mrf.mxu0 }
 0x491   :  { %5254 = vmatmul.mubr.bf16.gmra.mxu0 %v15018_v56  ;;  %5302 = vmatprep.mubr.bf16.mxu1 %v15020_v11  ;;  %v4784_v49 = vpop.f32.mrf.mxu1  ;;  %v12179_v14 = vadd.f32 %v5066_v16, %v4777_v25  ;;  %v15025_v16 = vld [vmem:[#allocation94_spill] sm:$0xff] }
 0x492   :  { %5261 = vmatprep.mubr.bf16.mxu0 %v11902_v47  ;;  %v5068_v13 = vpop.f32.mrf.mxu0  ;;  %v15024_v49 = vld [vmem:[#allocation87_spill] sm:$0xff] }
 0x493   :  { %15021 = vst [vmem:[#allocation8_spill] sm:$0xff] %v12179_v14  ;;  %v4785_v20 = vpop.f32.mrf.mxu1 }
 0x494   :  { %v5071_v4 = vpop.f32.mrf.mxu0 }
 0x495   :  { %v4787_v59 = vpop.f32.mrf.mxu1  ;;  %v12185_v36 = vadd.f32 %v5071_v4, %v4782_v17 }
 0x496   :  { %v5073_v11 = vpop.f32.mrf.mxu0  ;;  %v7397_v59 = vld [vmem:[%s13588_s1 + $0x468] sm:$0xff]  }
 0x497   :  { %15022 = vst [vmem:[#allocation57_spill] sm:$0xff] %v12185_v36 }
 0x498   :  { %v4790_v47 = vpop.f32.mrf.mxu1  ;;  %5303 = vmatmul.mubr.bf16.vlgmr.msra.gmra.mxu1 %v15024_v49  ;;  %v5074_v13 = vpop.f32.mrf.mxu0 }
 0x499   :  { %5262 = vmatmul.mubr.bf16.gmra.mxu0 %v11904_v6  ;;  %5310 = vmatprep.mubr.bf16.mxu1 %v15025_v16  ;;  %v12194_v14 = vadd.f32 %v5074_v13, %v4785_v20  ;;  %v15030_v20 = vld [vmem:[#allocation96_spill] sm:$0xff] }
 0x49a   :  { %5591 = vmatprep.mubr.bf16.mxu0 %v15023_v62  ;;  %7176 = vmatpush3.bf16.msra.mxu1 %v11879_v7  ;;  %v4792_v25 = vpop.f32.mrf.mxu1  ;;  %v5076_v17 = vpop.f32.mrf.mxu0  ;;  %v7398_v7 = vld [vmem:[%s13588_s1 + $0x460] sm:$0xff]  }
 0x49b   :  { %7177 = vmatprep.subr.bf16.mxu1 %v7396_v41  ;;  %15026 = vst [vmem:[#allocation53_spill] sm:$0xff] %v12194_v14  ;;  %v15029_v25 = vld [vmem:[#allocation91_spill] sm:$0xff]  ;;  %v15035_v14 = vld [vmem:[#allocation100_spill] sm:$0xff] }
 0x49c   :  { %v4793_v4 = vpop.f32.mrf.mxu1  ;;  %v5079_v11 = vpop.f32.mrf.mxu0 }
 0x49d   :  { %v12200_v49 = vadd.f32 %v5079_v11, %v4790_v47 }
 0x49e   :  { %v4795_v36 = vpop.f32.mrf.mxu1  ;;  %7178 = vmatpush3.bf16.msra.mxu1 %v7396_v41  ;;  %v5081_v16 = vpop.f32.mrf.mxu0 }
 0x49f   :  { %7179 = vmatprep.subr.bf16.mxu1 %v7397_v59  ;;  %15028 = vst [vmem:[#allocation65_spill] sm:$0xff] %v12200_v49  ;;  %v15032_v16 = vld [vmem:[#allocation92_spill] sm:$0xff] }
 0x4a0   :  { %v4798_v42 = vpop.f32.mrf.mxu1  ;;  %5311 = vmatmul.mubr.bf16.gmra.mxu1 %v15023_v62  ;;  %v5082_v41 = vpop.f32.mrf.mxu0 }
 0x4a1   :  { %5592 = vmatmul.mubr.bf16.vlgmr.msra.gmra.mxu0 %v15027_v15  ;;  %5318 = vmatprep.mubr.bf16.mxu1 %v15030_v20  ;;  %v7399_v15 = vld [vmem:[%s13588_s1 + $0x458] sm:$0xff]   ;;  %v12208_v13 = vadd.f32 %v5082_v41, %v4793_v4 }
 0x4a2   :  { %5599 = vmatprep.mubr.bf16.mxu0 %v15029_v25  ;;  %7180 = vmatpush3.bf16.msra.mxu1 %v7397_v59  ;;  %v4800_v36 = vpop.f32.mrf.mxu1  ;;  %v5084_v47 = vpop.f32.mrf.mxu0  ;;  %v15034_v59 = vld [vmem:[#allocation95_spill] sm:$0xff] }
 0x4a3   :  { %7181 = vmatprep.subr.bf16.mxu1 %v7398_v7  ;;  %15031 = vst [vmem:[#allocation76_spill] sm:$0xff] %v12208_v13 }
 0x4a4   :  { %v4801_v17 = vpop.f32.mrf.mxu1 }
 0x4a6   :  { %7182 = vmatpush3.bf16.msra.mxu1 %v7398_v7  ;;  %v5087_v11 = vpop.f32.mrf.mxu0  ;;  %v4803_v49 = vpop.f32.mrf.mxu1 }
 0x4a7   :  { %7183 = vmatprep.subr.bf16.mxu1 %v7399_v15  ;;  %v12211_v62 = vadd.f32 %v5087_v11, %v4798_v42  ;;  %v15037_v49 = vld [vmem:[#allocation97_spill] sm:$0xff] }
 0x4a8   :  { %v5089_v36 = vpop.f32.mrf.mxu0  ;;  %v4806_v20 = vpop.f32.mrf.mxu1  ;;  %5319 = vmatmul.mubr.bf16.gmra.mxu1 %v15029_v25  ;;  %v15040_v25 = vld [vmem:[#allocation102_spill] sm:$0xff] }
 0x4a9   :  { %5600 = vmatmul.mubr.bf16.gmra.mxu0 %v15032_v16  ;;  %15033 = vst [vmem:[#allocation58_spill] sm:$0xff] %v12211_v62  ;;  %5326 = vmatprep.mubr.bf16.mxu1 %v15035_v14  ;;  %v15039_v62 = vld [vmem:[#allocation98_spill] sm:$0xff]  ;;  %v15042_v14 = vld [vmem:[#allocation99_spill] sm:$0xff] }
 0x4aa   :  { %5607 = vmatprep.mubr.bf16.mxu0 %v15034_v59  ;;  %7184 = vmatpush3.bf16.msra.mxu1 %v7399_v15  ;;  %v5090_v4 = vpop.f32.mrf.mxu0  ;;  %v4808_v41 = vpop.f32.mrf.mxu1 }
 0x4ab   :  { %v12216_v47 = vadd.f32 %v5090_v4, %v4801_v17 }
 0x4ac   :  { %v5092_v7 = vpop.f32.mrf.mxu0  ;;  %v4809_v13 = vpop.f32.mrf.mxu1 }
 0x4ad   :  { %15036 = vst [vmem:[#allocation73_spill] sm:$0xff] %v12216_v47 }
 0x4ae   :  { %v5095_v16 = vpop.f32.mrf.mxu0  ;;  %v4811_v42 = vpop.f32.mrf.mxu1 }
 0x4af   :  { %v12219_v11 = vadd.f32 %v5095_v16, %v4806_v20  ;;  %v15044_v16 = vld [vmem:[#allocation101_spill] sm:$0xff] }
 0x4b0   :  { %v5097_v36 = vpop.f32.mrf.mxu0  ;;  %v4814_v6 = vpop.f32.mrf.mxu1  ;;  %5327 = vmatmul.mubr.bf16.gmra.mxu1 %v15034_v59  ;;  %v15045_v59 = vld [vmem:[#allocation107_spill] sm:$0xff] }
 0x4b1   :  { %5608 = vmatmul.mubr.bf16.gmra.mxu0 %v15037_v49  ;;  %15038 = vst [vmem:[#allocation66_spill] sm:$0xff] %v12219_v11  ;;  %5334 = vmatprep.mubr.bf16.mxu1 %v15040_v25  ;;  %v15057_v25 = vld [vmem:[#allocation22_spill] sm:$0xff] }
 0x4b2   :  { %5615 = vmatprep.mubr.bf16.mxu0 %v15039_v62  ;;  %v5098_v15 = vpop.f32.mrf.mxu0  ;;  %v4816_v41 = vpop.f32.mrf.mxu1 }
 0x4b3   :  { %v12224_v17 = vadd.f32 %v5098_v15, %v4809_v13 }
 0x4b4   :  { %v5100_v4 = vpop.f32.mrf.mxu0  ;;  %v4817_v7 = vpop.f32.mrf.mxu1 }
 0x4b5   :  { %15041 = vst [vmem:[#allocation81_spill] sm:$0xff] %v12224_v17 }
 0x4b6   :  { %v5103_v47 = vpop.f32.mrf.mxu0  ;;  %v4819_v49 = vpop.f32.mrf.mxu1 }
 0x4b7   :  { %v12227_v20 = vadd.f32 %v5103_v47, %v4814_v6  ;;  %v15047_v47 = vld [vmem:[#allocation104_spill] sm:$0xff] }
 0x4b8   :  { %v5105_v42 = vpop.f32.mrf.mxu0  ;;  %v4822_v36 = vpop.f32.mrf.mxu1  ;;  %5335 = vmatmul.mubr.bf16.gmra.mxu1 %v15039_v62  ;;  %v15049_v62 = vld [vmem:[#allocation103_spill] sm:$0xff] }
 0x4b9   :  { %5616 = vmatmul.mubr.bf16.gmra.mxu0 %v15042_v14  ;;  %15043 = vst [vmem:[#allocation89_spill] sm:$0xff] %v12227_v20  ;;  %5342 = vmatprep.mubr.bf16.mxu1 %v15045_v59  ;;  %v7400_v14 = vld [vmem:[%s13588_s1 + $0x450] sm:$0xff]  }
 0x4ba   :  { %5623 = vmatprep.mubr.bf16.mxu0 %v15044_v16  ;;  %v5106_v11 = vpop.f32.mrf.mxu0  ;;  %v4824_v41 = vpop.f32.mrf.mxu1  ;;  %7185 = vmatprep.subr.bf16.mxu1 %v7400_v14 }
 0x4bb   :  { %v12232_v13 = vadd.f32 %v5106_v11, %v4817_v7  ;;  %7186 = vmatpush3.bf16.msra.mxu1 %v7400_v14  ;;  %v15050_v11 = vld [vmem:[#allocation109_spill] sm:$0xff] }
 0x4bc   :  { %v5108_v15 = vpop.f32.mrf.mxu0  ;;  %v4825_v4 = vpop.f32.mrf.mxu1 }
 0x4bd   :  { %15046 = vst [vmem:[#allocation86_spill] sm:$0xff] %v12232_v13 }
 0x4be   :  { %v5111_v6 = vpop.f32.mrf.mxu0  ;;  %v4827_v49 = vpop.f32.mrf.mxu1 }
 0x4bf   :  { %v12238_v42 = vadd.f32 %v5111_v6, %v4822_v36  ;;  %v15052_v49 = vld [vmem:[#allocation105_spill] sm:$0xff] }
 0x4c0   :  { %v5113_v20 = vpop.f32.mrf.mxu0  ;;  %v4830_v41 = vpop.f32.mrf.mxu1  ;;  %5343 = vmatmul.mubr.bf16.gmra.mxu1 %v15044_v16  ;;  %v15055_v16 = vld [vmem:[#allocation11_spill] sm:$0xff] }
 0x4c1   :  { %5624 = vmatmul.mubr.bf16.gmra.mxu0 %v15047_v47  ;;  %15048 = vst [vmem:[#allocation71_spill] sm:$0xff] %v12238_v42  ;;  %5350 = vmatprep.mubr.bf16.mxu1 %v15050_v11  ;;  %v15054_v42 = vld [vmem:[#allocation108_spill] sm:$0xff] }
 0x4c2   :  { %5631 = vmatprep.mubr.bf16.mxu0 %v15049_v62  ;;  %v5114_v7 = vpop.f32.mrf.mxu0  ;;  %v4832_v15 = vpop.f32.mrf.mxu1 }
 0x4c3   :  { %v12243_v13 = vadd.f32 %v5114_v7, %v4825_v4 }
 0x4c4   :  { %v5116_v17 = vpop.f32.mrf.mxu0  ;;  %v4833_v59 = vpop.f32.mrf.mxu1 }
 0x4c5   :  { %15051 = vst [vmem:[#allocation75_spill] sm:$0xff] %v12243_v13 }
 0x4c6   :  { %v5119_v47 = vpop.f32.mrf.mxu0  ;;  %v4835_v36 = vpop.f32.mrf.mxu1 }
 0x4c7   :  { %v12246_v6 = vadd.f32 %v5119_v47, %v4830_v41  ;;  %v15059_v47 = vld [vmem:[#allocation119_spill] sm:$0xff] }
 0x4c8   :  { %v5121_v20 = vpop.f32.mrf.mxu0  ;;  %v4838_v14 = vpop.f32.mrf.mxu1  ;;  %5351 = vmatmul.mubr.bf16.gmra.mxu1 %v15049_v62  ;;  %v15060_v62 = vld [vmem:[#allocation18_spill] sm:$0xff] }
 0x4c9   :  { %5632 = vmatmul.mubr.bf16.gmra.mxu0 %v15052_v49  ;;  %15053 = vst [vmem:[#allocation46_spill] sm:$0xff] %v12246_v6  ;;  %5358 = vmatprep.mubr.bf16.mxu1 %v15055_v16  ;;  %v15062_v16 = vld [vmem:[#allocation27_spill] sm:$0xff] }
 0x4ca   :  { %5639 = vmatprep.mubr.bf16.mxu0 %v15054_v42  ;;  %v5122_v11 = vpop.f32.mrf.mxu0  ;;  %v4840_v15 = vpop.f32.mrf.mxu1 }
 0x4cb   :  { %v12251_v4 = vadd.f32 %v5122_v11, %v4833_v59 }
 0x4cc   :  { %v5124_v17 = vpop.f32.mrf.mxu0  ;;  %v4841_v7 = vpop.f32.mrf.mxu1 }
 0x4cd   :  { %15056 = vst [vmem:[#allocation74_spill] sm:$0xff] %v12251_v4 }
 0x4ce   :  { %v5127_v13 = vpop.f32.mrf.mxu0  ;;  %v4843_v49 = vpop.f32.mrf.mxu1 }
 0x4cf   :  { %v12254_v41 = vadd.f32 %v5127_v13, %v4838_v14  ;;  %v15064_v14 = vld [vmem:[#allocation32_spill] sm:$0xff] }
 0x4d0   :  { %v5129_v36 = vpop.f32.mrf.mxu0  ;;  %v4846_v20 = vpop.f32.mrf.mxu1  ;;  %5359 = vmatmul.mubr.bf16.gmra.mxu1 %v15054_v42  ;;  %v15065_v42 = vld [vmem:[#allocation19_spill] sm:$0xff] }
 0x4d1   :  { %5640 = vmatmul.mubr.bf16.gmra.mxu0 %v15057_v25  ;;  %15058 = vst [vmem:[#allocation9_spill] sm:$0xff] %v12254_v41  ;;  %5366 = vmatprep.mubr.bf16.mxu1 %v15060_v62  ;;  %v15077_v62 = vld [vmem:[#allocation113_spill] sm:$0xff] }
 0x4d2   :  { %5647 = vmatprep.mubr.bf16.mxu0 %v15059_v47  ;;  %v5130_v6 = vpop.f32.mrf.mxu0  ;;  %v4848_v15 = vpop.f32.mrf.mxu1 }
 0x4d3   :  { %v12259_v59 = vadd.f32 %v5130_v6, %v4841_v7 }
 0x4d4   :  { %v5132_v11 = vpop.f32.mrf.mxu0  ;;  %v4849_v17 = vpop.f32.mrf.mxu1 }
 0x4d5   :  { %15061 = vst [vmem:[#allocation56_spill] sm:$0xff] %v12259_v59 }
 0x4d6   :  { %v5135_v4 = vpop.f32.mrf.mxu0  ;;  %v4851_v25 = vpop.f32.mrf.mxu1 }
 0x4d7   :  { %v12262_v13 = vadd.f32 %v5135_v4, %v4846_v20  ;;  %v15067_v20 = vld [vmem:[#allocation15_spill] sm:$0xff] }
 0x4d8   :  { %v5137_v49 = vpop.f32.mrf.mxu0  ;;  %v4854_v36 = vpop.f32.mrf.mxu1  ;;  %5367 = vmatmul.mubr.bf16.gmra.mxu1 %v15059_v47  ;;  %v15069_v47 = vld [vmem:[#allocation37_spill] sm:$0xff] }
 0x4d9   :  { %5648 = vmatmul.mubr.bf16.gmra.mxu0 %v15062_v16  ;;  %15063 = vst [vmem:[#allocation120_spill] sm:$0xff] %v12262_v13  ;;  %5374 = vmatprep.mubr.bf16.mxu1 %v15065_v42  ;;  %v7401_v16 = vld [vmem:[%s13588_s1 + $0x448] sm:$0xff]  }
 0x4da   :  { %5655 = vmatprep.mubr.bf16.mxu0 %v15064_v14  ;;  %v5138_v41 = vpop.f32.mrf.mxu0  ;;  %v4856_v15 = vpop.f32.mrf.mxu1  ;;  %7187 = vmatprep.subr.bf16.mxu1 %v7401_v16 }
 0x4db   :  { %v12267_v6 = vadd.f32 %v5138_v41, %v4849_v17  ;;  %7188 = vmatpush3.bf16.msra.mxu1 %v7401_v16  ;;  %v15070_v41 = vld [vmem:[#allocation43_spill] sm:$0xff] }
 0x4dc   :  { %v5140_v7 = vpop.f32.mrf.mxu0  ;;  %v4857_v11 = vpop.f32.mrf.mxu1 }
 0x4dd   :  { %15066 = vst [vmem:[#allocation10_spill] sm:$0xff] %v12267_v6 }
 0x4de   :  { %v5143_v4 = vpop.f32.mrf.mxu0  ;;  %v4859_v25 = vpop.f32.mrf.mxu1 }
 0x4df   :  { %v12273_v49 = vadd.f32 %v5143_v4, %v4854_v36  ;;  %v15072_v25 = vld [vmem:[#allocation48_spill] sm:$0xff] }
 0x4e0   :  { %v5145_v13 = vpop.f32.mrf.mxu0  ;;  %v4862_v15 = vpop.f32.mrf.mxu1  ;;  %5375 = vmatmul.mubr.bf16.gmra.mxu1 %v15064_v14  ;;  %v15075_v14 = vld [vmem:[#allocation110_spill] sm:$0xff] }
 0x4e1   :  { %5656 = vmatmul.mubr.bf16.gmra.mxu0 %v15067_v20  ;;  %15068 = vst [vmem:[#allocation82_spill] sm:$0xff] %v12273_v49  ;;  %5382 = vmatprep.mubr.bf16.mxu1 %v15070_v41  ;;  %v15074_v49 = vld [vmem:[#allocation23_spill] sm:$0xff] }
 0x4e2   :  { %5663 = vmatprep.mubr.bf16.mxu0 %v15069_v47  ;;  %v5146_v17 = vpop.f32.mrf.mxu0  ;;  %v4864_v7 = vpop.f32.mrf.mxu1 }
 0x4e3   :  { %v12278_v6 = vadd.f32 %v5146_v17, %v4857_v11 }
 0x4e4   :  { %v5148_v59 = vpop.f32.mrf.mxu0  ;;  %v4865_v42 = vpop.f32.mrf.mxu1 }
 0x4e5   :  { %15071 = vst [vmem:[#allocation80_spill] sm:$0xff] %v12278_v6 }
 0x4e6   :  { %v4867_v36 = vpop.f32.mrf.mxu1 }
 0x4e8   :  { %v4870_v16 = vpop.f32.mrf.mxu1  ;;  %5383 = vmatmul.mubr.bf16.gmra.mxu1 %v15069_v47  ;;  %v15080_v47 = vld [vmem:[#allocation118_spill] sm:$0xff] }
 0x4e9   :  { %v5151_v20 = vpop.f32.mrf.mxu0  ;;  %5664 = vmatmul.mubr.bf16.gmra.mxu0 %v15072_v25  ;;  %5390 = vmatprep.mubr.bf16.mxu1 %v15075_v14  ;;  %v15082_v14 = vld [vmem:[#allocation114_spill] sm:$0xff] }
 0x4ea   :  { %v12281_v4 = vadd.f32 %v5151_v20, %v4862_v15  ;;  %5671 = vmatprep.mubr.bf16.mxu0 %v15074_v49  ;;  %v4872_v7 = vpop.f32.mrf.mxu1  ;;  %v15079_v20 = vld [vmem:[#allocation116_spill] sm:$0xff] }
 0x4eb   :  { %v5153_v13 = vpop.f32.mrf.mxu0 }
 0x4ec   :  { %15073 = vst [vmem:[#allocation38_spill] sm:$0xff] %v12281_v4  ;;  %v4873_v17 = vpop.f32.mrf.mxu1 }
 0x4ed   :  { %v5154_v41 = vpop.f32.mrf.mxu0 }
 0x4ee   :  { %v12286_v11 = vadd.f32 %v5154_v41, %v4865_v42  ;;  %v4875_v25 = vpop.f32.mrf.mxu1 }
 0x4ef   :  { %v5156_v59 = vpop.f32.mrf.mxu0 }
 0x4f0   :  { %15076 = vst [vmem:[#allocation41_spill] sm:$0xff] %v12286_v11  ;;  %v4878_v13 = vpop.f32.mrf.mxu1  ;;  %5391 = vmatmul.mubr.bf16.gmra.mxu1 %v15074_v49  ;;  %v15085_v49 = vld [vmem:[#allocation61_spill] sm:$0xff] }
 0x4f1   :  { %v5159_v6 = vpop.f32.mrf.mxu0  ;;  %5672 = vmatmul.mubr.bf16.gmra.mxu0 %v15077_v62  ;;  %5398 = vmatprep.mubr.bf16.mxu1 %v15080_v47 }
 0x4f2   :  { %v12289_v15 = vadd.f32 %v5159_v6, %v4870_v16  ;;  %5679 = vmatprep.mubr.bf16.mxu0 %v15079_v20  ;;  %v4880_v7 = vpop.f32.mrf.mxu1  ;;  %v15084_v16 = vld [vmem:[#allocation111_spill] sm:$0xff] }
 0x4f3   :  { %v5161_v36 = vpop.f32.mrf.mxu0 }
 0x4f4   :  { %15078 = vst [vmem:[#allocation78_spill] sm:$0xff] %v12289_v15  ;;  %v4881_v59 = vpop.f32.mrf.mxu1 }
 0x4f5   :  { %v5162_v4 = vpop.f32.mrf.mxu0 }
 0x4f6   :  { %v12294_v42 = vadd.f32 %v5162_v4, %v4873_v17  ;;  %v4883_v62 = vpop.f32.mrf.mxu1 }
 0x4f7   :  { %v5164_v41 = vpop.f32.mrf.mxu0 }
 0x4f8   :  { %15081 = vst [vmem:[#allocation90_spill] sm:$0xff] %v12294_v42  ;;  %v4886_v36 = vpop.f32.mrf.mxu1  ;;  %5399 = vmatmul.mubr.bf16.gmra.mxu1 %v15079_v20  ;;  %v15089_v20 = vld [vmem:[#allocation68_spill] sm:$0xff] }
 0x4f9   :  { %v5167_v11 = vpop.f32.mrf.mxu0  ;;  %5680 = vmatmul.mubr.bf16.gmra.mxu0 %v15082_v14  ;;  %5406 = vmatprep.mubr.bf16.mxu1 %v15085_v49  ;;  %v7402_v14 = vld [vmem:[%s13588_s1 + $0x440] sm:$0xff]  }
 0x4fa   :  { %v12297_v6 = vadd.f32 %v5167_v11, %v4878_v13  ;;  %5687 = vmatprep.mubr.bf16.mxu0 %v15084_v16  ;;  %v4888_v7 = vpop.f32.mrf.mxu1  ;;  %v15087_v13 = vld [vmem:[#allocation117_spill] sm:$0xff]  ;;  %7189 = vmatprep.subr.bf16.mxu1 %v7402_v14 }
 0x4fb   :  { %v5169_v25 = vpop.f32.mrf.mxu0  ;;  %7190 = vmatpush3.bf16.msra.mxu1 %v7402_v14 }
 0x4fc   :  { %15083 = vst [vmem:[#allocation12_spill] sm:$0xff] %v12297_v6  ;;  %v4889_v41 = vpop.f32.mrf.mxu1 }
 0x4fd   :  { %v5170_v15 = vpop.f32.mrf.mxu0 }
 0x4fe   :  { %v12302_v4 = vadd.f32 %v5170_v15, %v4881_v59  ;;  %v4891_v62 = vpop.f32.mrf.mxu1  ;;  %v15090_v15 = vld [vmem:[#allocation55_spill] sm:$0xff] }
 0x4ff   :  { %v5172_v17 = vpop.f32.mrf.mxu0  ;;  %v15092_v62 = vld [vmem:[#allocation72_spill] sm:$0xff] }
 0x500   :  { %15086 = vst [vmem:[#allocation47_spill] sm:$0xff] %v12302_v4  ;;  %v4894_v7 = vpop.f32.mrf.mxu1  ;;  %5407 = vmatmul.mubr.bf16.gmra.mxu1 %v15084_v16 }
 0x501   :  { %v5175_v11 = vpop.f32.mrf.mxu0  ;;  %5688 = vmatmul.mubr.bf16.gmra.mxu0 %v15087_v13  ;;  %5414 = vmatprep.mubr.bf16.mxu1 %v15090_v15  ;;  %v15096_v15 = vld [vmem:[#allocation51_spill] sm:$0xff] }
 0x502   :  { %v12308_v25 = vadd.f32 %v5175_v11, %v4886_v36  ;;  %5695 = vmatprep.mubr.bf16.mxu0 %v15089_v20  ;;  %v4896_v17 = vpop.f32.mrf.mxu1 }
 0x503   :  { %v5177_v6 = vpop.f32.mrf.mxu0 }
 0x504   :  { %15088 = vst [vmem:[#allocation13_spill] sm:$0xff] %v12308_v25  ;;  %v4897_v49 = vpop.f32.mrf.mxu1  ;;  %v15094_v25 = vld [vmem:[#allocation17_spill] sm:$0xff] }
 0x505   :  { %v5178_v59 = vpop.f32.mrf.mxu0 }
 0x506   :  { %v12313_v4 = vadd.f32 %v5178_v59, %v4889_v41  ;;  %v4899_v36 = vpop.f32.mrf.mxu1 }
 0x507   :  { %v5180_v42 = vpop.f32.mrf.mxu0 }
 0x508   :  { %15091 = vst [vmem:[#allocation49_spill] sm:$0xff] %v12313_v4  ;;  %v4902_v14 = vpop.f32.mrf.mxu1  ;;  %5415 = vmatmul.mubr.bf16.gmra.mxu1 %v15089_v20 }
 0x509   :  { %v5183_v13 = vpop.f32.mrf.mxu0  ;;  %5696 = vmatmul.mubr.bf16.gmra.mxu0 %v15092_v62  ;;  %5422 = vmatprep.mubr.bf16.mxu1 %v11861_v34 }
 0x50a   :  { %v12316_v11 = vadd.f32 %v5183_v13, %v4894_v7  ;;  %5703 = vmatprep.mubr.bf16.mxu0 %v15094_v25  ;;  %v4904_v17 = vpop.f32.mrf.mxu1 }
 0x50b   :  { %v5185_v6 = vpop.f32.mrf.mxu0  ;;  %v15099_v17 = vld [vmem:[#allocation45_spill] sm:$0xff] }
 0x50c   :  { %15093 = vst [vmem:[#allocation79_spill] sm:$0xff] %v12316_v11  ;;  %v4905_v59 = vpop.f32.mrf.mxu1  ;;  %v15098_v6 = vld [vmem:[#allocation42_spill] sm:$0xff]  ;;  %v15103_v11 = vld [vmem:[#allocation60_spill] sm:$0xff] }
 0x50d   :  { %v5186_v16 = vpop.f32.mrf.mxu0 }
 0x50e   :  { %v12321_v41 = vadd.f32 %v5186_v16, %v4897_v49  ;;  %v4907_v62 = vpop.f32.mrf.mxu1  ;;  %v3914_v49 = vsel %vm14948_vm2, %v15099_v17, %v15098_v6 }
 0x50f   :  { %v5188_v42 = vpop.f32.mrf.mxu0 }
 0x510   :  { %15095 = vst [vmem:[#allocation34_spill] sm:$0xff] %v12321_v41  ;;  %v4910_v36 = vpop.f32.mrf.mxu1  ;;  %5423 = vmatmul.mubr.bf16.gmra.mxu1 %v15094_v25 }
 0x511   :  { %v5191_v4 = vpop.f32.mrf.mxu0  ;;  %5704 = vmatmul.mubr.bf16.gmra.mxu0 %v15096_v15  ;;  %5430 = vmatprep.mubr.bf16.mxu1 %v11961_v28 }
 0x512   :  { %v12324_v7 = vadd.f32 %v5191_v4, %v4902_v14  ;;  %5711 = vmatprep.mubr.bf16.mxu0 %v15089_v20  ;;  %v4912_v42 = vpop.f32.mrf.mxu1  ;;  %v15101_v4 = vld [vmem:[#allocation52_spill] sm:$0xff] }
 0x513   :  { %v5193_v13 = vpop.f32.mrf.mxu0  ;;  %v3969_v14 = vpack.c.bf16 %v15101_v4, %v3914_v49 }
 0x514   :  { %15097 = vst [vmem:[#allocation85_spill] sm:$0xff] %v12324_v7  ;;  %v4913_v62 = vpop.f32.mrf.mxu1 }
 0x515   :  { %v5194_v16 = vpop.f32.mrf.mxu0 }
 0x516   :  { %v12333_v41 = vadd.f32 %v5194_v16, %v4905_v59  ;;  %v4915_v13 = vpop.f32.mrf.mxu1 }
 0x517   :  { %v5196_v15 = vpop.f32.mrf.mxu0 }
 0x518   :  { %15100 = vst [vmem:[#allocation14_spill] sm:$0xff] %v12333_v41  ;;  %v4918_v25 = vpop.f32.mrf.mxu1  ;;  %5431 = vmatmul.mubr.bf16.gmra.mxu1 %v15103_v11  ;;  %v15106_v41 = vld [vmem:[#allocation84_spill] sm:$0xff] }
 0x519   :  { %v5199_v20 = vpop.f32.mrf.mxu0  ;;  %5712 = vmatmul.mubr.bf16.gmra.mxu0 %v3969_v14  ;;  %5438 = vmatprep.mubr.bf16.mxu1 %v15104_v3 }
 0x51a   :  { %v12336_v7 = vadd.f32 %v5199_v20, %v4910_v36  ;;  %5719 = vmatprep.mubr.bf16.mxu0 %v11574_v18  ;;  %v4920_v59 = vpop.f32.mrf.mxu1  ;;  %v15107_v20 = vld [vmem:[#allocation29_spill] sm:$0xff] }
 0x51b   :  { %v5201_v28 = vpop.f32.mrf.mxu0 }
 0x51c   :  { %15102 = vst [vmem:[#allocation16_spill] sm:$0xff] %v12336_v7  ;;  %v4921_v49 = vpop.f32.mrf.mxu1  ;;  %v15108_v7 = vld [vmem:[#allocation33_spill] sm:$0xff] }
 0x51d   :  { %v5202_v6 = vpop.f32.mrf.mxu0 }
 0x51e   :  { %v12341_v16 = vadd.f32 %v5202_v6, %v4913_v62  ;;  %v4923_v14 = vpop.f32.mrf.mxu1 }
 0x51f   :  { %v5204_v42 = vpop.f32.mrf.mxu0 }
 0x520   :  { %15105 = vst [vmem:[#allocation44_spill] sm:$0xff] %v12341_v16  ;;  %v4926_v28 = vpop.f32.mrf.mxu1  ;;  %5439 = vmatmul.mubr.bf16.gmra.mxu1 %v11574_v18 }
 0x521   :  { %v5207_v15 = vpop.f32.mrf.mxu0  ;;  %5720 = vmatmul.mubr.bf16.gmra.mxu0 %v15106_v41  ;;  %5446 = vmatprep.mubr.bf16.mxu1 %v12034_v21 }
 0x522   :  { %v12344_v36 = vadd.f32 %v5207_v15, %v4918_v25  ;;  %5727 = vmatprep.mubr.bf16.mxu0 %v15107_v20  ;;  %v4928_v59 = vpop.f32.mrf.mxu1 }
 0x523   :  { %v5209_v13 = vpop.f32.mrf.mxu0 }
 0x524   :  { %v4929_v42 = vpop.f32.mrf.mxu1 }
 0x525   :  { %v5210_v11 = vpop.f32.mrf.mxu0 }
 0x526   :  { %v12349_v62 = vadd.f32 %v5210_v11, %v4921_v49  ;;  %v4931_v41 = vpop.f32.mrf.mxu1 }
 0x527   :  { %v5212_v6 = vpop.f32.mrf.mxu0 }
 0x528   :  { %v4934_v14 = vpop.f32.mrf.mxu1  ;;  %5447 = vmatmul.mubr.bf16.gmra.mxu1 %v15107_v20 }
 0x529   :  { %v5215_v16 = vpop.f32.mrf.mxu0  ;;  %5728 = vmatmul.mubr.bf16.gmra.mxu0 %v15108_v7  ;;  %5454 = vmatprep.mubr.bf16.mxu1 %v12057_v55 }
 0x52a   :  { %v12352_v25 = vadd.f32 %v5215_v16, %v4926_v28  ;;  %5735 = vmatprep.mubr.bf16.mxu0 %v12013_v50  ;;  %v4936_v13 = vpop.f32.mrf.mxu1 }
 0x52b   :  { %v5217_v15 = vpop.f32.mrf.mxu0 }
 0x52c   :  { %v4937_v59 = vpop.f32.mrf.mxu1 }
 0x52d   :  { %v5218_v18 = vpop.f32.mrf.mxu0 }
 0x52e   :  { %v12357_v49 = vadd.f32 %v5218_v18, %v4929_v42  ;;  %v4939_v7 = vpop.f32.mrf.mxu1 }
 0x52f   :  { %v5220_v11 = vpop.f32.mrf.mxu0 }
 0x530   :  { %v4942_v41 = vpop.f32.mrf.mxu1  ;;  %5455 = vmatmul.mubr.bf16.gmra.mxu1 %v12013_v50 }
 0x531   :  { %v5223_v6 = vpop.f32.mrf.mxu0  ;;  %5736 = vmatmul.mubr.bf16.gmra.mxu0 %v12002_v26  ;;  %5462 = vmatprep.mubr.bf16.mxu1 %v12079_v30 }
 0x532   :  { %v12360_v16 = vadd.f32 %v5223_v6, %v4934_v14  ;;  %5743 = vmatprep.mubr.bf16.mxu0 %v12043_v8  ;;  %v4944_v15 = vpop.f32.mrf.mxu1 }
 0x533   :  { %v5225_v28 = vpop.f32.mrf.mxu0 }
 0x534   :  { %v4945_v13 = vpop.f32.mrf.mxu1 }
 0x535   :  { %v5226_v20 = vpop.f32.mrf.mxu0 }
 0x536   :  { %v12365_v42 = vadd.f32 %v5226_v20, %v4937_v59  ;;  %v4947_v26 = vpop.f32.mrf.mxu1 }
 0x537   :  { %v5228_v18 = vpop.f32.mrf.mxu0 }
 0x538   :  { %v4950_v7 = vpop.f32.mrf.mxu1  ;;  %5463 = vmatmul.mubr.bf16.gmra.mxu1 %v12043_v8 }
 0x539   :  { %v5231_v11 = vpop.f32.mrf.mxu0  ;;  %5744 = vmatmul.mubr.bf16.gmra.mxu0 %v12036_v61  ;;  %5470 = vmatprep.mubr.bf16.mxu1 %v12100_v63 }
 0x53a   :  { %v12368_v14 = vadd.f32 %v5231_v11, %v4942_v41  ;;  %5751 = vmatprep.mubr.bf16.mxu0 %v12065_v23  ;;  %v4952_v28 = vpop.f32.mrf.mxu1 }
 0x53b   :  { %v5233_v6 = vpop.f32.mrf.mxu0 }
 0x53c   :  { %v4953_v15 = vpop.f32.mrf.mxu1 }
 0x53d   :  { %v5234_v50 = vpop.f32.mrf.mxu0 }
 0x53e   :  { %v12373_v59 = vadd.f32 %v5234_v50, %v4945_v13  ;;  %v4955_v61 = vpop.f32.mrf.mxu1 }
 0x53f   :  { %v5236_v20 = vpop.f32.mrf.mxu0 }
 0x540   :  { %v4958_v26 = vpop.f32.mrf.mxu1  ;;  %5471 = vmatmul.mubr.bf16.gmra.mxu1 %v12065_v23 }
 0x541   :  { %v5239_v18 = vpop.f32.mrf.mxu0  ;;  %5752 = vmatmul.mubr.bf16.gmra.mxu0 %v12059_v10  ;;  %5478 = vmatprep.mubr.bf16.mxu1 %v12119_v39 }
 0x542   :  { %v12376_v41 = vadd.f32 %v5239_v18, %v4950_v7  ;;  %5759 = vmatprep.mubr.bf16.mxu0 %v12087_v24  ;;  %v4960_v6 = vpop.f32.mrf.mxu1 }
 0x543   :  { %v5241_v11 = vpop.f32.mrf.mxu0 }
 0x544   :  { %v4961_v28 = vpop.f32.mrf.mxu1 }
 0x545   :  { %v5242_v8 = vpop.f32.mrf.mxu0 }
 0x546   :  { %v12381_v13 = vadd.f32 %v5242_v8, %v4953_v15  ;;  %v4963_v10 = vpop.f32.mrf.mxu1 }
 0x547   :  { %v5244_v50 = vpop.f32.mrf.mxu0 }
 0x548   :  { %v4966_v61 = vpop.f32.mrf.mxu1  ;;  %5479 = vmatmul.mubr.bf16.gmra.mxu1 %v12087_v24 }
 0x549   :  { %v5247_v20 = vpop.f32.mrf.mxu0  ;;  %5760 = vmatmul.mubr.bf16.gmra.mxu0 %v12081_v1  ;;  %5486 = vmatprep.mubr.bf16.mxu1 %v11644_v46 }
 0x54a   :  { %v12384_v7 = vadd.f32 %v5247_v20, %v4958_v26  ;;  %5767 = vmatprep.mubr.bf16.mxu0 %v12113_v43  ;;  %v4968_v11 = vpop.f32.mrf.mxu1 }
 0x54b   :  { %v5249_v18 = vpop.f32.mrf.mxu0 }
 0x54c   :  { %v4969_v6 = vpop.f32.mrf.mxu1 }
 0x54d   :  { %v5250_v23 = vpop.f32.mrf.mxu0 }
 0x54e   :  { %v12389_v15 = vadd.f32 %v5250_v23, %v4961_v28  ;;  %v4971_v1 = vpop.f32.mrf.mxu1 }
 0x54f   :  { %v5252_v8 = vpop.f32.mrf.mxu0 }
 0x550   :  { %v4974_v10 = vpop.f32.mrf.mxu1  ;;  %5487 = vmatmul.mubr.bf16.gmra.mxu1 %v12113_v43 }
 0x551   :  { %v5255_v50 = vpop.f32.mrf.mxu0  ;;  %5768 = vmatmul.mubr.bf16.gmra.mxu0 %v12103_v2  ;;  %5494 = vmatprep.mubr.bf16.mxu1 %v11689_v32 }
 0x552   :  { %v12392_v26 = vadd.f32 %v5255_v50, %v4966_v61  ;;  %5775 = vmatprep.mubr.bf16.mxu0 %v11638_v9  ;;  %v4976_v18 = vpop.f32.mrf.mxu1 }
 0x553   :  { %v5257_v20 = vpop.f32.mrf.mxu0 }
 0x554   :  { %v4977_v11 = vpop.f32.mrf.mxu1 }
 0x555   :  { %v5258_v24 = vpop.f32.mrf.mxu0 }
 0x556   :  { %v12397_v28 = vadd.f32 %v5258_v24, %v4969_v6  ;;  %v4979_v2 = vpop.f32.mrf.mxu1 }
 0x557   :  { %v5260_v23 = vpop.f32.mrf.mxu0 }
 0x558   :  { %v5304_v1 = vpop.f32.mrf.mxu1  ;;  %5495 = vmatmul.mubr.bf16.gmra.mxu1 %v11638_v9 }
 0x559   :  { %v5263_v8 = vpop.f32.mrf.mxu0  ;;  %5776 = vmatmul.mubr.bf16.gmra.mxu0 %v11671_v22  ;;  %v5305_v43 = vadd.f32 %v5304_v1, %v12126_v19  ;;  %5502 = vmatprep.mubr.bf16.mxu1 %v11703_v53 }
 0x55a   :  { %v12400_v61 = vadd.f32 %v5263_v8, %v4974_v10  ;;  %5783 = vmatprep.mubr.bf16.mxu0 %v11683_v44  ;;  %v5306_v20 = vpop.f32.mrf.mxu1 }
 0x55b   :  { %v5265_v50 = vpop.f32.mrf.mxu0 }
 0x55c   :  { %v5307_v23 = vpop.f32.mrf.mxu1 }
 0x55d   :  { %v5266_v6 = vpop.f32.mrf.mxu0  ;;  %v5308_v22 = vadd.f32 %v5307_v23, %v12131_v35 }
 0x55e   :  { %v12406_v24 = vadd.f32 %v5266_v6, %v4977_v11  ;;  %v5309_v8 = vpop.f32.mrf.mxu1 }
 0x55f   :  { %v5268_v18 = vpop.f32.mrf.mxu0 }
 0x560   :  { %v5312_v19 = vpop.f32.mrf.mxu1  ;;  %5503 = vmatmul.mubr.bf16.gmra.mxu1 %v11683_v44 }
 0x561   :  { %v5593_v10 = vpop.f32.mrf.mxu0  ;;  %5784 = vmatmul.mubr.bf16.gmra.mxu0 %v11692_v29  ;;  %v5313_v50 = vadd.f32 %v5312_v19, %v12134_v33  ;;  %5510 = vmatprep.mubr.bf16.mxu1 %v11754_v57 }
 0x562   :  { %v12410_v2 = vadd.f32 %v5593_v10, %v5305_v43  ;;  %5791 = vmatprep.mubr.bf16.mxu0 %v11698_v48  ;;  %v5314_v1 = vpop.f32.mrf.mxu1 }
 0x563   :  { %v5595_v9 = vpop.f32.mrf.mxu0 }
 0x564   :  { %v5315_v20 = vpop.f32.mrf.mxu1 }
 0x565   :  { %v5596_v11 = vpop.f32.mrf.mxu0  ;;  %v5316_v29 = vadd.f32 %v5315_v20, %v12139_v0 }
 0x566   :  { %v12416_v6 = vadd.f32 %v5596_v11, %v5308_v22  ;;  %v5317_v18 = vpop.f32.mrf.mxu1 }
 0x567   :  { %v5598_v35 = vpop.f32.mrf.mxu0 }
 0x568   :  { %v5320_v33 = vpop.f32.mrf.mxu1  ;;  %5511 = vmatmul.mubr.bf16.gmra.mxu1 %v11698_v48 }
 0x569   :  { %v5601_v43 = vpop.f32.mrf.mxu0  ;;  %5792 = vmatmul.mubr.bf16.gmra.mxu0 %v11735_v27  ;;  %v5321_v10 = vadd.f32 %v5320_v33, %v12142_v40  ;;  %5518 = vmatprep.mubr.bf16.mxu1 %v11771_v31 }
 0x56a   :  { %v12420_v23 = vadd.f32 %v5601_v43, %v5313_v50  ;;  %5799 = vmatprep.mubr.bf16.mxu0 %v11747_v52  ;;  %v5322_v8 = vpop.f32.mrf.mxu1 }
 0x56b   :  { %v5603_v44 = vpop.f32.mrf.mxu0 }
 0x56c   :  { %v5323_v19 = vpop.f32.mrf.mxu1 }
 0x56d   :  { %v5604_v22 = vpop.f32.mrf.mxu0  ;;  %v5324_v27 = vadd.f32 %v5323_v19, %v12147_v60 }
 0x56e   :  { %v12426_v9 = vadd.f32 %v5604_v22, %v5316_v29  ;;  %v5325_v11 = vpop.f32.mrf.mxu1  ;;  %v15109_v22 = vld [vmem:[#allocation69_spill] sm:$0xff] }
 0x56f   :  { %v5606_v0 = vpop.f32.mrf.mxu0 }
 0x570   :  { %v5328_v40 = vpop.f32.mrf.mxu1  ;;  %5519 = vmatmul.mubr.bf16.gmra.mxu1 %v11747_v52 }
 0x571   :  { %v5609_v50 = vpop.f32.mrf.mxu0  ;;  %5800 = vmatmul.mubr.bf16.gmra.mxu0 %v11760_v12  ;;  %v5329_v35 = vadd.f32 %v5328_v40, %v12150_v37  ;;  %5526 = vmatprep.mubr.bf16.mxu1 %v11816_v54 }
 0x572   :  { %v12430_v1 = vadd.f32 %v5609_v50, %v5321_v10  ;;  %5807 = vmatprep.mubr.bf16.mxu0 %v11766_v45  ;;  %v5330_v29 = vpop.f32.mrf.mxu1 }
 0x573   :  { %v5611_v48 = vpop.f32.mrf.mxu0 }
 0x574   :  { %v5331_v18 = vpop.f32.mrf.mxu1 }
 0x575   :  { %v5612_v20 = vpop.f32.mrf.mxu0  ;;  %v5332_v12 = vadd.f32 %v5331_v18, %v12155_v58 }
 0x576   :  { %v12436_v43 = vadd.f32 %v5612_v20, %v5324_v27  ;;  %v5333_v33 = vpop.f32.mrf.mxu1  ;;  %v15111_v20 = vld [vmem:[#allocation112_spill] sm:$0xff] }
 0x577   :  { %v5614_v60 = vpop.f32.mrf.mxu0 }
 0x578   :  { %v5336_v37 = vpop.f32.mrf.mxu1  ;;  %5527 = vmatmul.mubr.bf16.gmra.mxu1 %v11766_v45  ;;  %v15112_v60 = vld [vmem:[#allocation70_spill] sm:$0xff] }
 0x579   :  { %v5617_v44 = vpop.f32.mrf.mxu0  ;;  %5808 = vmatmul.mubr.bf16.gmra.mxu0 %v11798_v5  ;;  %v5337_v8 = vadd.f32 %v5336_v37, %v15109_v22  ;;  %5534 = vmatprep.mubr.bf16.mxu1 %v15018_v56  ;;  %v15110_v5 = vld [vmem:[#allocation39_spill] sm:$0xff] }
 0x57a   :  { %v12440_v10 = vadd.f32 %v5617_v44, %v5329_v35  ;;  %5815 = vmatprep.mubr.bf16.mxu0 %v11809_v38  ;;  %v5338_v19 = vpop.f32.mrf.mxu1 }
 0x57b   :  { %v5619_v52 = vpop.f32.mrf.mxu0  ;;  %v15116_v19 = vld [vmem:[#allocation63_spill] sm:$0xff] }
 0x57c   :  { %v5339_v50 = vpop.f32.mrf.mxu1 }
 0x57d   :  { %v5620_v0 = vpop.f32.mrf.mxu0  ;;  %v5340_v11 = vadd.f32 %v5339_v50, %v15110_v5  ;;  %v15117_v5 = vld [vmem:[#allocation83_spill] sm:$0xff] }
 0x57e   :  { %v12446_v27 = vadd.f32 %v5620_v0, %v5332_v12  ;;  %v5341_v40 = vpop.f32.mrf.mxu1  ;;  %v15113_v12 = vld [vmem:[#allocation28_spill] sm:$0xff] }
 0x57f   :  { %v5622_v58 = vpop.f32.mrf.mxu0  ;;  %v15118_v40 = vld [vmem:[#allocation6_spill] sm:$0xff] }
 0x580   :  { %v5344_v29 = vpop.f32.mrf.mxu1  ;;  %5535 = vmatmul.mubr.bf16.gmra.mxu1 %v11809_v38 }
 0x581   :  { %v5625_v48 = vpop.f32.mrf.mxu0  ;;  %5816 = vmatmul.mubr.bf16.gmra.mxu0 %v11821_v51  ;;  %v5345_v18 = vadd.f32 %v5344_v29, %v15112_v60  ;;  %5542 = vmatprep.mubr.bf16.mxu1 %v15113_v12  ;;  %v15115_v51 = vld [vmem:[#allocation88_spill] sm:$0xff] }
 0x582   :  { %v12450_v35 = vadd.f32 %v5625_v48, %v5337_v8  ;;  %5823 = vmatprep.mubr.bf16.mxu0 %v15111_v20  ;;  %v5346_v33 = vpop.f32.mrf.mxu1 }
 0x583   :  { %v5627_v45 = vpop.f32.mrf.mxu0 }
 0x584   :  { %v5347_v22 = vpop.f32.mrf.mxu1 }
 0x585   :  { %v5628_v44 = vpop.f32.mrf.mxu0  ;;  %v5348_v0 = vadd.f32 %v5347_v22, %v15115_v51  ;;  %v15121_v22 = vld [vmem:[#allocation8_spill] sm:$0xff] }
 0x586   :  { %v12456_v52 = vadd.f32 %v5628_v44, %v5340_v11  ;;  %v5349_v58 = vpop.f32.mrf.mxu1  ;;  %v15119_v11 = vld [vmem:[#allocation24_spill] sm:$0xff] }
 0x587   :  { %v5630_v37 = vpop.f32.mrf.mxu0 }
 0x588   :  { %15114 = vst [vmem:[#allocation7_spill] sm:$0xff] %v12456_v52  ;;  %v5352_v48 = vpop.f32.mrf.mxu1  ;;  %5543 = vmatmul.mubr.bf16.gmra.mxu1 %v15111_v20  ;;  %v15130_v52 = vld [vmem:[#allocation96_spill] sm:$0xff] }
 0x589   :  { %v5633_v8 = vpop.f32.mrf.mxu0  ;;  %5824 = vmatmul.mubr.bf16.gmra.mxu0 %v15116_v19  ;;  %v5353_v45 = vadd.f32 %v5352_v48, %v15118_v40  ;;  %5550 = vmatprep.mubr.bf16.mxu1 %v15119_v11  ;;  %v15124_v40 = vld [vmem:[#allocation57_spill] sm:$0xff] }
 0x58a   :  { %v12460_v50 = vadd.f32 %v5633_v8, %v5345_v18  ;;  %5831 = vmatprep.mubr.bf16.mxu0 %v15117_v5  ;;  %v5354_v60 = vpop.f32.mrf.mxu1  ;;  %v15122_v8 = vld [vmem:[#allocation64_spill] sm:$0xff] }
 0x58b   :  { %v5635_v38 = vpop.f32.mrf.mxu0 }
 0x58c   :  { %v5355_v37 = vpop.f32.mrf.mxu1 }
 0x58d   :  { %v5636_v29 = vpop.f32.mrf.mxu0  ;;  %v5356_v51 = vadd.f32 %v5355_v37, %v15121_v22 }
 0x58e   :  { %v12466_v44 = vadd.f32 %v5636_v29, %v5348_v0  ;;  %v5357_v19 = vpop.f32.mrf.mxu1  ;;  %v15125_v0 = vld [vmem:[#allocation94_spill] sm:$0xff] }
 0x58f   :  { %v5638_v33 = vpop.f32.mrf.mxu0 }
 0x590   :  { %15120 = vst [vmem:[#allocation20_spill] sm:$0xff] %v12466_v44  ;;  %v5360_v48 = vpop.f32.mrf.mxu1  ;;  %5551 = vmatmul.mubr.bf16.gmra.mxu1 %v15117_v5 }
 0x591   :  { %v5641_v18 = vpop.f32.mrf.mxu0  ;;  %5832 = vmatmul.mubr.bf16.gmra.mxu0 %v15122_v8  ;;  %v5361_v60 = vadd.f32 %v5360_v48, %v15124_v40  ;;  %7191 = vmatprep.mubr.bf16.mxu1 %v15125_v0  ;;  %v15127_v8 = vld [vmem:[#allocation53_spill] sm:$0xff]  ;;  %v15132_v0 = vld [vmem:[#allocation100_spill] sm:$0xff] }
 0x592   :  { %v12470_v58 = vadd.f32 %v5641_v18, %v5353_v45  ;;  %5839 = vmatprep.mubr.bf16.mxu0 %v15111_v20  ;;  %v5362_v33 = vpop.f32.mrf.mxu1  ;;  %v15128_v18 = vld [vmem:[#allocation54_spill] sm:$0xff]  ;;  %v15131_v48 = vld [vmem:[#allocation65_spill] sm:$0xff] }
 0x593   :  { %v5643_v38 = vpop.f32.mrf.mxu0 }
 0x594   :  { %15123 = vst [vmem:[#allocation21_spill] sm:$0xff] %v12470_v58  ;;  %v5363_v22 = vpop.f32.mrf.mxu1 }
 0x595   :  { %v5644_v29 = vpop.f32.mrf.mxu0  ;;  %v5364_v19 = vadd.f32 %v5363_v22, %v15127_v8  ;;  %v15134_v8 = vld [vmem:[#allocation76_spill] sm:$0xff] }
 0x596   :  { %v12476_v44 = vadd.f32 %v5644_v29, %v5356_v51  ;;  %v5365_v20 = vpop.f32.mrf.mxu1 }
 0x597   :  { %v5646_v37 = vpop.f32.mrf.mxu0 }
 0x598   :  { %15126 = vst [vmem:[#allocation25_spill] sm:$0xff] %v12476_v44  ;;  %v5368_v5 = vpop.f32.mrf.mxu1  ;;  %7192 = vmatmul.mubr.bf16.vlgmr.msra.gmra.mxu1 %v15130_v52  ;;  %v15137_v52 = vld [vmem:[#allocation58_spill] sm:$0xff] }
 0x599   :  { %v5649_v45 = vpop.f32.mrf.mxu0  ;;  %5840 = vmatmul.mubr.bf16.gmra.mxu0 %v15128_v18  ;;  %v5369_v40 = vadd.f32 %v5368_v5, %v15131_v48  ;;  %7195 = vmatprep.mubr.bf16.mxu1 %v15132_v0  ;;  %v15138_v48 = vld [vmem:[#allocation107_spill] sm:$0xff] }
 0x59a   :  { %v12480_v38 = vadd.f32 %v5649_v45, %v5361_v60  ;;  %v5370_v29 = vpop.f32.mrf.mxu1 }
 0x59b   :  { %v5651_v58 = vpop.f32.mrf.mxu0 }
 0x59c   :  { %15129 = vst [vmem:[#allocation26_spill] sm:$0xff] %v12480_v38  ;;  %v5371_v22 = vpop.f32.mrf.mxu1  ;;  %v15136_v38 = vld [vmem:[#allocation102_spill] sm:$0xff] }
 0x59d   :  { %v5652_v51 = vpop.f32.mrf.mxu0  ;;  %v5372_v44 = vadd.f32 %v5371_v22, %v15134_v8 }
 0x59e   :  { %v12485_v33 = vadd.f32 %v5652_v51, %v5364_v19  ;;  %v5373_v20 = vpop.f32.mrf.mxu1 }
 0x59f   :  { %v5654_v37 = vpop.f32.mrf.mxu0 }
 0x5a0   :  { %15133 = vst [vmem:[#allocation30_spill] sm:$0xff] %v12485_v33  ;;  %v5376_v45 = vpop.f32.mrf.mxu1  ;;  %7196 = vmatmul.mubr.bf16.gmra.mxu1 %v15136_v38  ;;  %v15140_v33 = vld [vmem:[#allocation73_spill] sm:$0xff]  ;;  %v15143_v38 = vld [vmem:[#allocation66_spill] sm:$0xff] }
 0x5a1   :  { %v5657_v18 = vpop.f32.mrf.mxu0  ;;  %v5377_v5 = vadd.f32 %v5376_v45, %v15137_v52  ;;  %7199 = vmatprep.mubr.bf16.mxu1 %v15138_v48  ;;  %v15144_v52 = vld [vmem:[#allocation11_spill] sm:$0xff] }
 0x5a2   :  { %v12488_v60 = vadd.f32 %v5657_v18, %v5369_v40  ;;  %v5378_v29 = vpop.f32.mrf.mxu1 }
 0x5a3   :  { %v5659_v58 = vpop.f32.mrf.mxu0 }
 0x5a4   :  { %15135 = vst [vmem:[#allocation31_spill] sm:$0xff] %v12488_v60  ;;  %v5379_v37 = vpop.f32.mrf.mxu1  ;;  %v15142_v60 = vld [vmem:[#allocation109_spill] sm:$0xff] }
 0x5a5   :  { %v5660_v0 = vpop.f32.mrf.mxu0  ;;  %v5380_v22 = vadd.f32 %v5379_v37, %v15140_v33 }
 0x5a6   :  { %v12493_v19 = vadd.f32 %v5660_v0, %v5372_v44  ;;  %v5381_v20 = vpop.f32.mrf.mxu1 }
 0x5a7   :  { %v5662_v51 = vpop.f32.mrf.mxu0 }
 0x5a8   :  { %15139 = vst [vmem:[#allocation35_spill] sm:$0xff] %v12493_v19  ;;  %v5384_v58 = vpop.f32.mrf.mxu1  ;;  %7200 = vmatmul.mubr.bf16.gmra.mxu1 %v15142_v60  ;;  %v15146_v19 = vld [vmem:[#allocation81_spill] sm:$0xff] }
 0x5a9   :  { %v5665_v8 = vpop.f32.mrf.mxu0  ;;  %v5385_v45 = vadd.f32 %v5384_v58, %v15143_v38  ;;  %7203 = vmatprep.mubr.bf16.mxu1 %v15144_v52  ;;  %v15149_v60 = vld [vmem:[#allocation89_spill] sm:$0xff]  ;;  %v15150_v38 = vld [vmem:[#allocation19_spill] sm:$0xff] }
 0x5aa   :  { %v12496_v40 = vadd.f32 %v5665_v8, %v5377_v5  ;;  %v5386_v29 = vpop.f32.mrf.mxu1 }
 0x5ab   :  { %v5667_v18 = vpop.f32.mrf.mxu0 }
 0x5ac   :  { %15141 = vst [vmem:[#allocation36_spill] sm:$0xff] %v12496_v40  ;;  %v5387_v51 = vpop.f32.mrf.mxu1  ;;  %v15148_v40 = vld [vmem:[#allocation18_spill] sm:$0xff] }
 0x5ad   :  { %v5668_v48 = vpop.f32.mrf.mxu0  ;;  %v5388_v33 = vadd.f32 %v5387_v51, %v15146_v19 }
 0x5ae   :  { %v12501_v44 = vadd.f32 %v5668_v48, %v5380_v22  ;;  %v5389_v20 = vpop.f32.mrf.mxu1 }
 0x5af   :  { %v5670_v0 = vpop.f32.mrf.mxu0 }
 0x5b0   :  { %15145 = vst [vmem:[#allocation40_spill] sm:$0xff] %v12501_v44  ;;  %v5392_v18 = vpop.f32.mrf.mxu1  ;;  %7204 = vmatmul.mubr.bf16.gmra.mxu1 %v15148_v40  ;;  %v15152_v44 = vld [vmem:[#allocation86_spill] sm:$0xff]  ;;  %v15154_v40 = vld [vmem:[#allocation71_spill] sm:$0xff] }
 0x5b1   :  { %v5673_v37 = vpop.f32.mrf.mxu0  ;;  %v5393_v58 = vadd.f32 %v5392_v18, %v15149_v60  ;;  %7207 = vmatprep.mubr.bf16.mxu1 %v15150_v38  ;;  %v15155_v60 = vld [vmem:[#allocation110_spill] sm:$0xff] }
 0x5b2   :  { %v12504_v5 = vadd.f32 %v5673_v37, %v5385_v45  ;;  %v5394_v29 = vpop.f32.mrf.mxu1 }
 0x5b3   :  { %v5675_v8 = vpop.f32.mrf.mxu0 }
 0x5b4   :  { %15147 = vst [vmem:[#allocation50_spill] sm:$0xff] %v12504_v5  ;;  %v5395_v0 = vpop.f32.mrf.mxu1  ;;  %v15153_v5 = vld [vmem:[#allocation43_spill] sm:$0xff] }
 0x5b5   :  { %v5676_v52 = vpop.f32.mrf.mxu0  ;;  %v5396_v19 = vadd.f32 %v5395_v0, %v15152_v44 }
 0x5b6   :  { %v12509_v22 = vadd.f32 %v5676_v52, %v5388_v33  ;;  %v5397_v20 = vpop.f32.mrf.mxu1 }
 0x5b7   :  { %v5678_v48 = vpop.f32.mrf.mxu0 }
 0x5b8   :  { %15151 = vst [vmem:[#allocation93_spill] sm:$0xff] %v12509_v22  ;;  %v5400_v8 = vpop.f32.mrf.mxu1  ;;  %7208 = vmatmul.mubr.bf16.gmra.mxu1 %v15153_v5  ;;  %v15157_v22 = vld [vmem:[#allocation75_spill] sm:$0xff]  ;;  %v15159_v5 = vld [vmem:[#allocation46_spill] sm:$0xff] }
 0x5b9   :  { %v5681_v51 = vpop.f32.mrf.mxu0  ;;  %v5401_v18 = vadd.f32 %v5400_v8, %v15154_v40  ;;  %7211 = vmatprep.mubr.bf16.mxu1 %v15155_v60  ;;  %v15160_v40 = vld [vmem:[#allocation61_spill] sm:$0xff] }
 0x5ba   :  { %v12512_v45 = vadd.f32 %v5681_v51, %v5393_v58  ;;  %v5402_v29 = vpop.f32.mrf.mxu1 }
 0x5bb   :  { %v5683_v37 = vpop.f32.mrf.mxu0 }
 0x5bc   :  { %v5403_v48 = vpop.f32.mrf.mxu1 }
 0x5bd   :  { %v5684_v38 = vpop.f32.mrf.mxu0  ;;  %v5404_v44 = vadd.f32 %v5403_v48, %v15157_v22 }
 0x5be   :  { %v12517_v33 = vadd.f32 %v5684_v38, %v5396_v19  ;;  %v5405_v20 = vpop.f32.mrf.mxu1 }
 0x5bf   :  { %v5686_v52 = vpop.f32.mrf.mxu0 }
 0x5c0   :  { %15156 = vst [vmem:[#allocation67_spill] sm:$0xff] %v12517_v33  ;;  %v5408_v37 = vpop.f32.mrf.mxu1  ;;  %7212 = vmatmul.mubr.bf16.gmra.mxu1 %v15080_v47  ;;  %v15161_v33 = vld [vmem:[#allocation74_spill] sm:$0xff]  ;;  %v15163_v47 = vld [vmem:[#allocation9_spill] sm:$0xff] }
 0x5c1   :  { %v5689_v0 = vpop.f32.mrf.mxu0  ;;  %v5409_v8 = vadd.f32 %v5408_v37, %v15159_v5  ;;  %7215 = vmatprep.mubr.bf16.mxu1 %v15160_v40 }
 0x5c2   :  { %v12520_v58 = vadd.f32 %v5689_v0, %v5401_v18  ;;  %v5410_v29 = vpop.f32.mrf.mxu1 }
 0x5c3   :  { %v5691_v51 = vpop.f32.mrf.mxu0 }
 0x5c4   :  { %15158 = vst [vmem:[#allocation87_spill] sm:$0xff] %v12520_v58  ;;  %v5411_v52 = vpop.f32.mrf.mxu1  ;;  %v15162_v58 = vld [vmem:[#allocation55_spill] sm:$0xff] }
 0x5c5   :  { %v5692_v60 = vpop.f32.mrf.mxu0  ;;  %v5412_v22 = vadd.f32 %v5411_v52, %v15161_v33  ;;  %v15167_v52 = vld [vmem:[#allocation56_spill] sm:$0xff] }
 0x5c6   :  { %v12525_v19 = vadd.f32 %v5692_v60, %v5404_v44  ;;  %v5413_v20 = vpop.f32.mrf.mxu1  ;;  %v15165_v60 = vld [vmem:[#allocation115_spill] sm:$0xff] }
 0x5c7   :  { %v5694_v38 = vpop.f32.mrf.mxu0  ;;  %v3951_v33 = vsel %vm14953_vm13, %v15101_v4, %v15165_v60 }
 0x5c8   :  { %v5416_v51 = vpop.f32.mrf.mxu1  ;;  %7216 = vmatmul.mubr.bf16.gmra.mxu1 %v15162_v58  ;;  %v4003_v58 = vpack.c.bf16 %v3951_v33, %v15099_v17 }
 0x5c9   :  { %v5697_v48 = vpop.f32.mrf.mxu0  ;;  %v5417_v37 = vadd.f32 %v5416_v51, %v15163_v47  ;;  %7219 = vmatprep.mubr.bf16.mxu1 %v11861_v34 }
 0x5ca   :  { %v12528_v18 = vadd.f32 %v5697_v48, %v5409_v8  ;;  %v5418_v40 = vpop.f32.mrf.mxu1 }
 0x5cb   :  { %v5699_v0 = vpop.f32.mrf.mxu0 }
 0x5cc   :  { %v5419_v8 = vpop.f32.mrf.mxu1 }
 0x5cd   :  { %v5700_v5 = vpop.f32.mrf.mxu0  ;;  %v5420_v48 = vadd.f32 %v5419_v8, %v15167_v52  ;;  %v15169_v8 = vld [vmem:[#allocation10_spill] sm:$0xff] }
 0x5ce   :  { %v12533_v44 = vadd.f32 %v5700_v5, %v5412_v22  ;;  %v5421_v0 = vpop.f32.mrf.mxu1  ;;  %v15168_v22 = vld [vmem:[#allocation120_spill] sm:$0xff] }
 0x5cf   :  { %v5702_v38 = vpop.f32.mrf.mxu0 }
 0x5d0   :  { %15164 = vst [vmem:[#allocation77_spill] sm:$0xff] %v12533_v44  ;;  %v5424_v47 = vpop.f32.mrf.mxu1  ;;  %7220 = vmatmul.mubr.bf16.gmra.mxu1 %v4003_v58 }
 0x5d1   :  { %v5705_v20 = vpop.f32.mrf.mxu0  ;;  %v5425_v5 = vadd.f32 %v5424_v47, %v15168_v22  ;;  %7223 = vmatprep.mubr.bf16.mxu1 %v15104_v3 }
 0x5d2   :  { %v12541_v51 = vadd.f32 %v5705_v20, %v5417_v37  ;;  %v5426_v29 = vpop.f32.mrf.mxu1  ;;  %v15170_v20 = vld [vmem:[#allocation82_spill] sm:$0xff] }
 0x5d3   :  { %v5707_v34 = vpop.f32.mrf.mxu0 }
 0x5d4   :  { %v5427_v38 = vpop.f32.mrf.mxu1 }
 0x5d5   :  { %v5708_v40 = vpop.f32.mrf.mxu0  ;;  %v5428_v52 = vadd.f32 %v5427_v38, %v15169_v8 }
 0x5d6   :  { %v12545_v4 = vadd.f32 %v5708_v40, %v5420_v48  ;;  %v5429_v44 = vpop.f32.mrf.mxu1  ;;  %v15171_v40 = vld [vmem:[#allocation80_spill] sm:$0xff] }
 0x5d7   :  { %v5710_v60 = vpop.f32.mrf.mxu0 }
 0x5d8   :  { %v5432_v33 = vpop.f32.mrf.mxu1  ;;  %7224 = vmatmul.mubr.bf16.gmra.mxu1 %v12034_v21  ;;  %v15172_v21 = vld [vmem:[#allocation38_spill] sm:$0xff] }
 0x5d9   :  { %v5713_v0 = vpop.f32.mrf.mxu0  ;;  %v5433_v58 = vadd.f32 %v5432_v33, %v15170_v20  ;;  %7227 = vmatprep.mubr.bf16.mxu1 %v12057_v55 }
 0x5da   :  { %v12548_v17 = vadd.f32 %v5713_v0, %v5425_v5  ;;  %v5434_v34 = vpop.f32.mrf.mxu1 }
 0x5db   :  { %v5715_v37 = vpop.f32.mrf.mxu0 }
 0x5dc   :  { %v5435_v22 = vpop.f32.mrf.mxu1 }
 0x5dd   :  { %v5716_v3 = vpop.f32.mrf.mxu0  ;;  %v5436_v29 = vadd.f32 %v5435_v22, %v15171_v40 }
 0x5de   :  { %v12553_v48 = vadd.f32 %v5716_v3, %v5428_v52  ;;  %v5437_v44 = vpop.f32.mrf.mxu1  ;;  %v15173_v3 = vld [vmem:[#allocation41_spill] sm:$0xff] }
 0x5df   :  { %v5718_v47 = vpop.f32.mrf.mxu0 }
 0x5e0   :  { %v5440_v8 = vpop.f32.mrf.mxu1  ;;  %7228 = vmatmul.mubr.bf16.gmra.mxu1 %v12079_v30  ;;  %v15174_v30 = vld [vmem:[#allocation78_spill] sm:$0xff] }
 0x5e1   :  { %v5721_v60 = vpop.f32.mrf.mxu0  ;;  %v5441_v0 = vadd.f32 %v5440_v8, %v15172_v21  ;;  %7231 = vmatprep.mubr.bf16.mxu1 %v12100_v63 }
 0x5e2   :  { %v12556_v5 = vadd.f32 %v5721_v60, %v5433_v58  ;;  %v5442_v37 = vpop.f32.mrf.mxu1 }
 0x5e3   :  { %v5723_v38 = vpop.f32.mrf.mxu0 }
 0x5e4   :  { %v5443_v20 = vpop.f32.mrf.mxu1 }
 0x5e5   :  { %v5724_v55 = vpop.f32.mrf.mxu0  ;;  %v5444_v34 = vadd.f32 %v5443_v20, %v15173_v3 }
 0x5e6   :  { %v12561_v52 = vadd.f32 %v5724_v55, %v5436_v29  ;;  %v5445_v22 = vpop.f32.mrf.mxu1  ;;  %v15175_v55 = vld [vmem:[#allocation90_spill] sm:$0xff] }
 0x5e7   :  { %v5726_v33 = vpop.f32.mrf.mxu0 }
 0x5e8   :  { %v5448_v60 = vpop.f32.mrf.mxu1  ;;  %7232 = vmatmul.mubr.bf16.gmra.mxu1 %v12119_v39  ;;  %v15176_v39 = vld [vmem:[#allocation12_spill] sm:$0xff] }
 0x5e9   :  { %v5729_v47 = vpop.f32.mrf.mxu0  ;;  %v5449_v44 = vadd.f32 %v5448_v60, %v15174_v30  ;;  %7235 = vmatprep.mubr.bf16.mxu1 %v11644_v46 }
 0x5ea   :  { %v12564_v58 = vadd.f32 %v5729_v47, %v5441_v0  ;;  %v5450_v38 = vpop.f32.mrf.mxu1 }
 0x5eb   :  { %v5731_v40 = vpop.f32.mrf.mxu0 }
 0x5ec   :  { %v5451_v21 = vpop.f32.mrf.mxu1 }
 0x5ed   :  { %v5732_v63 = vpop.f32.mrf.mxu0  ;;  %v5452_v37 = vadd.f32 %v5451_v21, %v15175_v55 }
 0x5ee   :  { %v12569_v29 = vadd.f32 %v5732_v63, %v5444_v34  ;;  %v5453_v20 = vpop.f32.mrf.mxu1  ;;  %v15177_v63 = vld [vmem:[#allocation47_spill] sm:$0xff] }
 0x5ef   :  { %v5734_v8 = vpop.f32.mrf.mxu0 }
 0x5f0   :  { %v5456_v47 = vpop.f32.mrf.mxu1  ;;  %7236 = vmatmul.mubr.bf16.gmra.mxu1 %v11689_v32  ;;  %v15178_v32 = vld [vmem:[#allocation13_spill] sm:$0xff] }
 0x5f1   :  { %v5737_v33 = vpop.f32.mrf.mxu0  ;;  %v5457_v22 = vadd.f32 %v5456_v47, %v15176_v39  ;;  %7239 = vmatprep.mubr.bf16.mxu1 %v11703_v53 }
 0x5f2   :  { %v12572_v0 = vadd.f32 %v5737_v33, %v5449_v44  ;;  %v5458_v40 = vpop.f32.mrf.mxu1 }
 0x5f3   :  { %v5739_v3 = vpop.f32.mrf.mxu0 }
 0x5f4   :  { %v5459_v30 = vpop.f32.mrf.mxu1 }
 0x5f5   :  { %v5740_v46 = vpop.f32.mrf.mxu0  ;;  %v5460_v38 = vadd.f32 %v5459_v30, %v15177_v63 }
 0x5f6   :  { %v12577_v34 = vadd.f32 %v5740_v46, %v5452_v37  ;;  %v5461_v21 = vpop.f32.mrf.mxu1  ;;  %v15179_v46 = vld [vmem:[#allocation49_spill] sm:$0xff] }
 0x5f7   :  { %v5742_v60 = vpop.f32.mrf.mxu0 }
 0x5f8   :  { %v5464_v33 = vpop.f32.mrf.mxu1  ;;  %7240 = vmatmul.mubr.bf16.gmra.mxu1 %v11754_v57  ;;  %v15180_v57 = vld [vmem:[#allocation79_spill] sm:$0xff] }
 0x5f9   :  { %v5745_v8 = vpop.f32.mrf.mxu0  ;;  %v5465_v20 = vadd.f32 %v5464_v33, %v15178_v32  ;;  %7243 = vmatprep.mubr.bf16.mxu1 %v11771_v31 }
 0x5fa   :  { %v12580_v44 = vadd.f32 %v5745_v8, %v5457_v22  ;;  %v5466_v3 = vpop.f32.mrf.mxu1 }
 0x5fb   :  { %v5747_v55 = vpop.f32.mrf.mxu0 }
 0x5fc   :  { %v5467_v39 = vpop.f32.mrf.mxu1 }
 0x5fd   :  { %v5748_v53 = vpop.f32.mrf.mxu0  ;;  %v5468_v40 = vadd.f32 %v5467_v39, %v15179_v46 }
 0x5fe   :  { %v12585_v37 = vadd.f32 %v5748_v53, %v5460_v38  ;;  %v5469_v30 = vpop.f32.mrf.mxu1  ;;  %v15181_v53 = vld [vmem:[#allocation34_spill] sm:$0xff] }
 0x5ff   :  { %v5750_v47 = vpop.f32.mrf.mxu0 }
 0x600   :  { %v5472_v8 = vpop.f32.mrf.mxu1  ;;  %7244 = vmatmul.mubr.bf16.gmra.mxu1 %v11816_v54  ;;  %v15182_v54 = vld [vmem:[#allocation85_spill] sm:$0xff] }
 0x601   :  { %v5753_v60 = vpop.f32.mrf.mxu0  ;;  %v5473_v21 = vadd.f32 %v5472_v8, %v15180_v57  ;;  %7247 = vmatprep.mubr.bf16.mxu1 %v15018_v56 }
 0x602   :  { %v12588_v22 = vadd.f32 %v5753_v60, %v5465_v20  ;;  %v5474_v55 = vpop.f32.mrf.mxu1 }
 0x603   :  { %v5755_v63 = vpop.f32.mrf.mxu0 }
 0x604   :  { %v5475_v32 = vpop.f32.mrf.mxu1 }
 0x605   :  { %v5756_v31 = vpop.f32.mrf.mxu0  ;;  %v5476_v3 = vadd.f32 %v5475_v32, %v15181_v53 }
 0x606   :  { %v12593_v38 = vadd.f32 %v5756_v31, %v5468_v40  ;;  %v5477_v39 = vpop.f32.mrf.mxu1  ;;  %v15184_v31 = vld [vmem:[#allocation14_spill] sm:$0xff] }
 0x607   :  { %v5758_v33 = vpop.f32.mrf.mxu0  ;;  %v15186_v39 = vld [vmem:[#allocation59_spill] sm:$0xff] }
 0x608   :  { %v5480_v60 = vpop.f32.mrf.mxu1  ;;  %7248 = vmatmul.mubr.bf16.gmra.mxu1 %v15113_v12  ;;  %v15187_v12 = vld [vmem:[#allocation16_spill] sm:$0xff] }
 0x609   :  { %v5761_v47 = vpop.f32.mrf.mxu0  ;;  %v5481_v30 = vadd.f32 %v5480_v60, %v15182_v54  ;;  %7251 = vmatprep.mubr.bf16.mxu1 %v15119_v11 }
 0x60a   :  { %v12596_v20 = vadd.f32 %v5761_v47, %v5473_v21  ;;  %v5482_v63 = vpop.f32.mrf.mxu1 }
 0x60b   :  { %v5763_v46 = vpop.f32.mrf.mxu0  ;;  %v15188_v63 = vld [vmem:[#allocation44_spill] sm:$0xff] }
 0x60c   :  { %v5483_v57 = vpop.f32.mrf.mxu1 }
 0x60d   :  { %v5764_v56 = vpop.f32.mrf.mxu0  ;;  %v5484_v55 = vadd.f32 %v5483_v57, %v15184_v31 }
 0x60e   :  { %v12601_v40 = vadd.f32 %v5764_v56, %v5476_v3  ;;  %v5485_v32 = vpop.f32.mrf.mxu1 }
 0x60f   :  { %v5766_v8 = vpop.f32.mrf.mxu0 }
 0x610   :  { %15183 = vst [vmem:[#allocation91_spill] sm:$0xff] %v12601_v40  ;;  %v5488_v47 = vpop.f32.mrf.mxu1  ;;  %7252 = vmatmul.mubr.bf16.gmra.mxu1 %v15186_v39 }
 0x611   :  { %v5769_v33 = vpop.f32.mrf.mxu0  ;;  %v5489_v46 = vadd.f32 %v5488_v47, %v15187_v12 }
 0x612   :  { %v12604_v21 = vadd.f32 %v5769_v33, %v5481_v30  ;;  %v5490_v11 = vpop.f32.mrf.mxu1 }
 0x613   :  { %v5771_v53 = vpop.f32.mrf.mxu0 }
 0x614   :  { %15185 = vst [vmem:[#allocation92_spill] sm:$0xff] %v12604_v21  ;;  %v5491_v56 = vpop.f32.mrf.mxu1 }
 0x615   :  { %v5772_v60 = vpop.f32.mrf.mxu0  ;;  %v5492_v8 = vadd.f32 %v5491_v56, %v15188_v63 }
 0x616   :  { %v12608_v54 = vadd.f32 %v5772_v60, %v5484_v55  ;;  %v5493_v57 = vpop.f32.mrf.mxu1 }
 0x617   :  { %v5774_v3 = vpop.f32.mrf.mxu0 }
 0x618   :  { %v5496_v33 = vpop.f32.mrf.mxu1 }
 0x619   :  { %v5777_v40 = vpop.f32.mrf.mxu0  ;;  %v5497_v32 = vadd.f32 %v5496_v33, %v12344_v36 }
 0x61a   :  { %v12611_v31 = vadd.f32 %v5777_v40, %v5489_v46  ;;  %v5498_v39 = vpop.f32.mrf.mxu1 }
 0x61b   :  { %v5779_v30 = vpop.f32.mrf.mxu0 }
 0x61c   :  { %v5499_v12 = vpop.f32.mrf.mxu1 }
 0x61d   :  { %v5780_v53 = vpop.f32.mrf.mxu0  ;;  %v5500_v55 = vadd.f32 %v5499_v12, %v12349_v62 }
 0x61e   :  { %v12614_v21 = vadd.f32 %v5780_v53, %v5492_v8  ;;  %v5501_v11 = vpop.f32.mrf.mxu1 }
 0x61f   :  { %v5782_v47 = vpop.f32.mrf.mxu0 }
 0x620   :  { %v5504_v63 = vpop.f32.mrf.mxu1 }
 0x621   :  { %v5785_v60 = vpop.f32.mrf.mxu0  ;;  %v5505_v40 = vadd.f32 %v5504_v63, %v12352_v25 }
 0x622   :  { %v12617_v3 = vadd.f32 %v5785_v60, %v5497_v32  ;;  %v5506_v57 = vpop.f32.mrf.mxu1 }
 0x623   :  { %v5787_v56 = vpop.f32.mrf.mxu0 }
 0x624   :  { %v5507_v33 = vpop.f32.mrf.mxu1 }
 0x625   :  { %v5788_v46 = vpop.f32.mrf.mxu0  ;;  %v5508_v8 = vadd.f32 %v5507_v33, %v12357_v49 }
 0x626   :  { %v12620_v30 = vadd.f32 %v5788_v46, %v5500_v55  ;;  %v5509_v39 = vpop.f32.mrf.mxu1 }
 0x627   :  { %v5790_v36 = vpop.f32.mrf.mxu0 }
 0x628   :  { %v5512_v12 = vpop.f32.mrf.mxu1 }
 0x629   :  { %v5793_v53 = vpop.f32.mrf.mxu0  ;;  %v5513_v32 = vadd.f32 %v5512_v12, %v12360_v16 }
 0x62a   :  { %v12623_v47 = vadd.f32 %v5793_v53, %v5505_v40  ;;  %v5514_v11 = vpop.f32.mrf.mxu1 }
 0x62b   :  { %v5795_v62 = vpop.f32.mrf.mxu0 }
 0x62c   :  { %v5515_v63 = vpop.f32.mrf.mxu1 }
 0x62d   :  { %v5796_v60 = vpop.f32.mrf.mxu0  ;;  %v5516_v55 = vadd.f32 %v5515_v63, %v12365_v42 }
 0x62e   :  { %v12626_v56 = vadd.f32 %v5796_v60, %v5508_v8  ;;  %v5517_v57 = vpop.f32.mrf.mxu1 }
 0x62f   :  { %v5798_v25 = vpop.f32.mrf.mxu0 }
 0x630   :  { %v5520_v33 = vpop.f32.mrf.mxu1 }
 0x631   :  { %v5801_v46 = vpop.f32.mrf.mxu0  ;;  %v5521_v40 = vadd.f32 %v5520_v33, %v12368_v14 }
 0x632   :  { %v12629_v36 = vadd.f32 %v5801_v46, %v5513_v32  ;;  %v5522_v39 = vpop.f32.mrf.mxu1 }
 0x633   :  { %v5803_v49 = vpop.f32.mrf.mxu0 }
 0x634   :  { %v5523_v12 = vpop.f32.mrf.mxu1 }
 0x635   :  { %v5804_v53 = vpop.f32.mrf.mxu0  ;;  %v5524_v8 = vadd.f32 %v5523_v12, %v12373_v59 }
 0x636   :  { %v12632_v62 = vadd.f32 %v5804_v53, %v5516_v55  ;;  %v5525_v11 = vpop.f32.mrf.mxu1 }
 0x637   :  { %v5806_v16 = vpop.f32.mrf.mxu0 }
 0x638   :  { %15189 = vst [vmem:[#allocation95_spill] sm:$0xff] %v12632_v62  ;;  %v5528_v63 = vpop.f32.mrf.mxu1 }
 0x639   :  { %v5809_v60 = vpop.f32.mrf.mxu0  ;;  %v5529_v32 = vadd.f32 %v5528_v63, %v12376_v41 }
 0x63a   :  { %v12635_v25 = vadd.f32 %v5809_v60, %v5521_v40  ;;  %v5530_v57 = vpop.f32.mrf.mxu1 }
 0x63b   :  { %v5811_v42 = vpop.f32.mrf.mxu0 }
 0x63c   :  { %v5531_v33 = vpop.f32.mrf.mxu1 }
 0x63d   :  { %v5812_v46 = vpop.f32.mrf.mxu0  ;;  %v5532_v55 = vadd.f32 %v5531_v33, %v12381_v13 }
 0x63e   :  { %v12638_v49 = vadd.f32 %v5812_v46, %v5524_v8  ;;  %v5533_v39 = vpop.f32.mrf.mxu1 }
 0x63f   :  { %v5814_v14 = vpop.f32.mrf.mxu0 }
 0x640   :  { %15190 = vst [vmem:[#allocation97_spill] sm:$0xff] %v12638_v49  ;;  %v5536_v12 = vpop.f32.mrf.mxu1  ;;  %v15211_v49 = vld [vmem:[#allocation40_spill] sm:$0xff] }
 0x641   :  { %v5817_v53 = vpop.f32.mrf.mxu0  ;;  %v5537_v40 = vadd.f32 %v5536_v12, %v12384_v7 }
 0x642   :  { %v12641_v16 = vadd.f32 %v5817_v53, %v5529_v32  ;;  %v5538_v11 = vpop.f32.mrf.mxu1 }
 0x643   :  { %v5819_v59 = vpop.f32.mrf.mxu0 }
 0x644   :  { %15191 = vst [vmem:[#allocation98_spill] sm:$0xff] %v12641_v16  ;;  %v5539_v63 = vpop.f32.mrf.mxu1 }
 0x645   :  { %v5820_v60 = vpop.f32.mrf.mxu0  ;;  %v5540_v8 = vadd.f32 %v5539_v63, %v12389_v15 }
 0x646   :  { %v12644_v42 = vadd.f32 %v5820_v60, %v5532_v55  ;;  %v5541_v57 = vpop.f32.mrf.mxu1 }
 0x647   :  { %v5822_v41 = vpop.f32.mrf.mxu0 }
 0x648   :  { %15192 = vst [vmem:[#allocation99_spill] sm:$0xff] %v12644_v42  ;;  %v5544_v33 = vpop.f32.mrf.mxu1 }
 0x649   :  { %v5825_v46 = vpop.f32.mrf.mxu0  ;;  %v5545_v32 = vadd.f32 %v5544_v33, %v12392_v26 }
 0x64a   :  { %v12647_v14 = vadd.f32 %v5825_v46, %v5537_v40  ;;  %v5546_v39 = vpop.f32.mrf.mxu1 }
 0x64b   :  { %v5827_v13 = vpop.f32.mrf.mxu0 }
 0x64c   :  { %15193 = vst [vmem:[#allocation101_spill] sm:$0xff] %v12647_v14  ;;  %v5547_v12 = vpop.f32.mrf.mxu1 }
 0x64d   :  { %v5828_v53 = vpop.f32.mrf.mxu0  ;;  %v5548_v55 = vadd.f32 %v5547_v12, %v12397_v28 }
 0x64e   :  { %v12650_v59 = vadd.f32 %v5828_v53, %v5540_v8  ;;  %v5549_v11 = vpop.f32.mrf.mxu1 }
 0x64f   :  { %v5830_v7 = vpop.f32.mrf.mxu0 }
 0x650   :  { %15194 = vst [vmem:[#allocation104_spill] sm:$0xff] %v12650_v59  ;;  %v5552_v63 = vpop.f32.mrf.mxu1  ;;  %v15204_v59 = vld [vmem:[#allocation30_spill] sm:$0xff] }
 0x651   :  { %v5833_v60 = vpop.f32.mrf.mxu0  ;;  %v5553_v40 = vadd.f32 %v5552_v63, %v12400_v61 }
 0x652   :  { %v12653_v41 = vadd.f32 %v5833_v60, %v5545_v32  ;;  %v5554_v57 = vpop.f32.mrf.mxu1 }
 0x653   :  { %v5835_v15 = vpop.f32.mrf.mxu0 }
 0x654   :  { %15195 = vst [vmem:[#allocation103_spill] sm:$0xff] %v12653_v41  ;;  %v5555_v33 = vpop.f32.mrf.mxu1 }
 0x655   :  { %v5836_v46 = vpop.f32.mrf.mxu0  ;;  %v5556_v8 = vadd.f32 %v5555_v33, %v12406_v24 }
 0x656   :  { %v12656_v13 = vadd.f32 %v5836_v46, %v5548_v55  ;;  %v5557_v39 = vpop.f32.mrf.mxu1 }
 0x657   :  { %v5838_v26 = vpop.f32.mrf.mxu0 }
 0x658   :  { %15196 = vst [vmem:[#allocation105_spill] sm:$0xff] %v12656_v13  ;;  %v7193_v12 = vpop.f32.mrf.mxu1 }
 0x659   :  { %v5841_v53 = vpop.f32.mrf.mxu0  ;;  %v12667_v46 = vadd.f32 %v7193_v12, %v12420_v23 }
 0x65a   :  { %v12659_v7 = vadd.f32 %v5841_v53, %v5553_v40  ;;  %v5882_v60 = vpop.f32.mrf.mxu1 }
 0x65b   :  { %v5843_v28 = vpop.f32.mrf.mxu0  ;;  %v12664_v63 = vadd.f32 %v5882_v60, %v12410_v2  ;;  %v6215_v23 = vmul.f32 %v12667_v46, %v12667_v46 }
 0x65c   :  { %15197 = vst [vmem:[#allocation108_spill] sm:$0xff] %v12659_v7  ;;  %v7194_v61 = vpop.f32.mrf.mxu1 }
 0x65d   :  { %v5844_v32 = vpop.f32.mrf.mxu0  ;;  %v6213_v57 = vmul.f32 %v12664_v63, %v12664_v63  ;;  %v12675_v26 = vadd.f32 %v7194_v61, %v12426_v9 }
 0x65e   :  { %v12661_v11 = vadd.f32 %v5844_v32, %v5556_v8  ;;  %v5885_v55 = vpop.f32.mrf.mxu1 }
 0x65f   :  { %v5846_v15 = vpop.f32.mrf.mxu0  ;;  %v12670_v24 = vadd.f32 %v5885_v55, %v12416_v6  ;;  %v6216_v9 = vmul.f32 %v12675_v26, %v12675_v26 }
 0x660   :  { %15198 = vst [vmem:[#allocation22_spill] sm:$0xff] %v12661_v11  ;;  %v7197_v40 = vpop.f32.mrf.mxu1  ;;  %v15200_v11 = vld [vmem:[#allocation20_spill] sm:$0xff] }
 0x661   :  { %v6137_v33 = vadd.f32 %v12670_v24, %v12664_v63  ;;  %v6214_v2 = vmul.f32 %v12670_v24, %v12670_v24  ;;  %v12691_v60 = vadd.f32 %v7197_v40, %v12440_v10 }
 0x662   :  { %v5898_v8 = vpop.f32.mrf.mxu1 }
 0x663   :  { %v6138_v6 = vadd.f32 %v6137_v33, %v12667_v46  ;;  %v6277_v53 = vadd.f32 %v6214_v2, %v6213_v57  ;;  %v12685_v39 = vadd.f32 %v5898_v8, %v12430_v1 }
 0x664   :  { %v7198_v28 = vpop.f32.mrf.mxu1 }
 0x665   :  { %v6278_v12 = vadd.f32 %v6277_v53, %v6215_v23  ;;  %v6139_v32 = vadd.f32 %v6138_v6, %v12675_v26  ;;  %v6217_v55 = vmul.f32 %v12685_v39, %v12685_v39  ;;  %v12700_v8 = vadd.f32 %v7198_v28, %v12446_v27 }
 0x666   :  { %v5901_v15 = vpop.f32.mrf.mxu1  ;;  %v6219_v6 = vmul.f32 %v12691_v60, %v12691_v60 }
 0x667   :  { %v6140_v61 = vadd.f32 %v6139_v32, %v12685_v39  ;;  %v6279_v57 = vadd.f32 %v6278_v12, %v6216_v9  ;;  %v12697_v1 = vadd.f32 %v5901_v15, %v12436_v43  ;;  %v6220_v27 = vmul.f32 %v12700_v8, %v12700_v8 }
 0x668   :  { %v7201_v33 = vpop.f32.mrf.mxu1 }
 0x669   :  { %v6280_v2 = vadd.f32 %v6279_v57, %v6217_v55  ;;  %v6141_v23 = vadd.f32 %v6140_v61, %v12697_v1  ;;  %v6218_v10 = vmul.f32 %v12697_v1, %v12697_v1  ;;  %v12715_v15 = vadd.f32 %v7201_v33, %v12460_v50 }
 0x66a   :  { %v5914_v40 = vpop.f32.mrf.mxu1 }
 0x66b   :  { %v6142_v53 = vadd.f32 %v6141_v23, %v12691_v60  ;;  %v6281_v9 = vadd.f32 %v6280_v2, %v6218_v10  ;;  %v12709_v43 = vadd.f32 %v5914_v40, %v12450_v35  ;;  %v15199_v23 = vld [vmem:[#allocation7_spill] sm:$0xff] }
 0x66c   :  { %v7202_v12 = vpop.f32.mrf.mxu1 }
 0x66d   :  { %v6282_v28 = vadd.f32 %v6281_v9, %v6219_v6  ;;  %v6143_v32 = vadd.f32 %v6142_v53, %v12700_v8  ;;  %v6221_v57 = vmul.f32 %v12709_v43, %v12709_v43  ;;  %v12724_v7 = vadd.f32 %v7202_v12, %v15200_v11 }
 0x66e   :  { %v5917_v61 = vpop.f32.mrf.mxu1  ;;  %v6223_v53 = vmul.f32 %v12715_v15, %v12715_v15 }
 0x66f   :  { %v6144_v55 = vadd.f32 %v6143_v32, %v12709_v43  ;;  %v6283_v2 = vadd.f32 %v6282_v28, %v6220_v27  ;;  %v12721_v35 = vadd.f32 %v5917_v61, %v15199_v23  ;;  %v15201_v28 = vld [vmem:[#allocation21_spill] sm:$0xff]  ;;  %v6224_v11 = vmul.f32 %v12724_v7, %v12724_v7 }
 0x670   :  { %v7205_v10 = vpop.f32.mrf.mxu1 }
 0x671   :  { %v6284_v40 = vadd.f32 %v6283_v2, %v6221_v57  ;;  %v6145_v6 = vadd.f32 %v6144_v55, %v12721_v35  ;;  %v6222_v50 = vmul.f32 %v12721_v35, %v12721_v35  ;;  %v15202_v57 = vld [vmem:[#allocation26_spill] sm:$0xff] }
 0x672   :  { %v5930_v33 = vpop.f32.mrf.mxu1  ;;  %v12739_v2 = vadd.f32 %v7205_v10, %v15202_v57 }
 0x673   :  { %v6146_v9 = vadd.f32 %v6145_v6, %v12715_v15  ;;  %v6285_v27 = vadd.f32 %v6284_v40, %v6222_v50  ;;  %v12733_v32 = vadd.f32 %v5930_v33, %v15201_v28  ;;  %v15203_v50 = vld [vmem:[#allocation25_spill] sm:$0xff] }
 0x674   :  { %v7206_v61 = vpop.f32.mrf.mxu1 }
 0x675   :  { %v6286_v12 = vadd.f32 %v6285_v27, %v6223_v53  ;;  %v6147_v55 = vadd.f32 %v6146_v9, %v12724_v7  ;;  %v6225_v6 = vmul.f32 %v12733_v32, %v12733_v32  ;;  %v12748_v14 = vadd.f32 %v7206_v61, %v15204_v59 }
 0x676   :  { %v5933_v23 = vpop.f32.mrf.mxu1  ;;  %v6227_v27 = vmul.f32 %v12739_v2, %v12739_v2 }
 0x677   :  { %v6148_v13 = vadd.f32 %v6147_v55, %v12733_v32  ;;  %v6287_v40 = vadd.f32 %v6286_v12, %v6224_v11  ;;  %v12745_v33 = vadd.f32 %v5933_v23, %v15203_v50  ;;  %v15205_v12 = vld [vmem:[#allocation31_spill] sm:$0xff]  ;;  %v6228_v59 = vmul.f32 %v12748_v14, %v12748_v14 }
 0x678   :  { %v7209_v28 = vpop.f32.mrf.mxu1 }
 0x679   :  { %v6288_v41 = vadd.f32 %v6287_v40, %v6225_v6  ;;  %v6149_v53 = vadd.f32 %v6148_v13, %v12745_v33  ;;  %v6226_v10 = vmul.f32 %v12745_v33, %v12745_v33  ;;  %v15207_v6 = vld [vmem:[#allocation36_spill] sm:$0xff] }
 0x67a   :  { %v5946_v9 = vpop.f32.mrf.mxu1  ;;  %v12763_v40 = vadd.f32 %v7209_v28, %v15207_v6 }
 0x67b   :  { %v6150_v55 = vadd.f32 %v6149_v53, %v12739_v2  ;;  %v6289_v11 = vadd.f32 %v6288_v41, %v6226_v10  ;;  %v12757_v57 = vadd.f32 %v5946_v9, %v15205_v12  ;;  %v15209_v10 = vld [vmem:[#allocation35_spill] sm:$0xff] }
 0x67c   :  { %v7210_v23 = vpop.f32.mrf.mxu1  ;;  %15208 = vst [vmem:[#allocation27_spill] sm:$0xff] %v12763_v40 }
 0x67d   :  { %15206 = vst [vmem:[#allocation119_spill] sm:$0xff] %v12757_v57  ;;  %v6290_v61 = vadd.f32 %v6289_v11, %v6227_v27  ;;  %v6151_v13 = vadd.f32 %v6150_v55, %v12748_v14  ;;  %v6229_v53 = vmul.f32 %v12757_v57, %v12757_v57  ;;  %v12772_v62 = vadd.f32 %v7210_v23, %v15211_v49 }
 0x67e   :  { %v5949_v50 = vpop.f32.mrf.mxu1  ;;  %v6231_v11 = vmul.f32 %v12763_v40, %v12763_v40 }
 0x67f   :  { %v6152_v42 = vadd.f32 %v6151_v13, %v12757_v57  ;;  %v6291_v41 = vadd.f32 %v6290_v61, %v6228_v59  ;;  %v12769_v9 = vadd.f32 %v5949_v50, %v15209_v10  ;;  %v15212_v61 = vld [vmem:[#allocation50_spill] sm:$0xff]  ;;  %v6232_v49 = vmul.f32 %v12772_v62, %v12772_v62 }
 0x680   :  { %v7213_v12 = vpop.f32.mrf.mxu1 }
 0x681   :  { %15210 = vst [vmem:[#allocation32_spill] sm:$0xff] %v12769_v9  ;;  %v6292_v16 = vadd.f32 %v6291_v41, %v6229_v53  ;;  %v6153_v27 = vadd.f32 %v6152_v42, %v12769_v9  ;;  %v6230_v28 = vmul.f32 %v12769_v9, %v12769_v9  ;;  %v12787_v53 = vadd.f32 %v7213_v12, %v12512_v45  ;;  %v15216_v9 = vld [vmem:[#allocation67_spill] sm:$0xff] }
 0x682   :  { %v5962_v55 = vpop.f32.mrf.mxu1 }
 0x683   :  { %v6154_v13 = vadd.f32 %v6153_v27, %v12763_v40  ;;  %v6293_v59 = vadd.f32 %v6292_v16, %v6230_v28  ;;  %v12781_v6 = vadd.f32 %v5962_v55, %v15212_v61  ;;  %15213 = vst [vmem:[#allocation15_spill] sm:$0xff] %v12787_v53  ;;  %v15214_v28 = vld [vmem:[#allocation93_spill] sm:$0xff] }
 0x684   :  { %v7214_v50 = vpop.f32.mrf.mxu1 }
 0x685   :  { %v6294_v23 = vadd.f32 %v6293_v59, %v6231_v11  ;;  %v6155_v42 = vadd.f32 %v6154_v13, %v12772_v62  ;;  %v6233_v27 = vmul.f32 %v12781_v6, %v12781_v6  ;;  %v12796_v57 = vadd.f32 %v7214_v50, %v15216_v9 }
 0x686   :  { %v5965_v41 = vpop.f32.mrf.mxu1  ;;  %v6235_v13 = vmul.f32 %v12787_v53, %v12787_v53 }
 0x687   :  { %v6156_v10 = vadd.f32 %v6155_v42, %v12781_v6  ;;  %v6295_v16 = vadd.f32 %v6294_v23, %v6232_v49  ;;  %v12793_v55 = vadd.f32 %v5965_v41, %v15214_v28  ;;  %v15217_v23 = vld [vmem:[#allocation87_spill] sm:$0xff]  ;;  %v6236_v9 = vmul.f32 %v12796_v57, %v12796_v57 }
 0x688   :  { %v7217_v61 = vpop.f32.mrf.mxu1 }
 0x689   :  { %15215 = vst [vmem:[#allocation37_spill] sm:$0xff] %v12793_v55  ;;  %v6296_v40 = vadd.f32 %v6295_v16, %v6233_v27  ;;  %v6157_v11 = vadd.f32 %v6156_v10, %v12793_v55  ;;  %v6234_v45 = vmul.f32 %v12793_v55, %v12793_v55  ;;  %v12811_v27 = vadd.f32 %v7217_v61, %v12528_v18 }
 0x68a   :  { %v5978_v12 = vpop.f32.mrf.mxu1 }
 0x68b   :  { %v6158_v59 = vadd.f32 %v6157_v11, %v12787_v53  ;;  %v6297_v49 = vadd.f32 %v6296_v40, %v6234_v45  ;;  %v12805_v42 = vadd.f32 %v5978_v12, %v15217_v23  ;;  %v15218_v53 = vld [vmem:[#allocation77_spill] sm:$0xff] }
 0x68c   :  { %v7218_v41 = vpop.f32.mrf.mxu1 }
 0x68d   :  { %v6298_v50 = vadd.f32 %v6297_v49, %v6235_v13  ;;  %v6159_v10 = vadd.f32 %v6158_v59, %v12796_v57  ;;  %v6237_v11 = vmul.f32 %v12805_v42, %v12805_v42  ;;  %v12820_v55 = vadd.f32 %v7218_v41, %v15218_v53 }
 0x68e   :  { %v5981_v16 = vpop.f32.mrf.mxu1  ;;  %v6239_v59 = vmul.f32 %v12811_v27, %v12811_v27 }
 0x68f   :  { %v6160_v28 = vadd.f32 %v6159_v10, %v12805_v42  ;;  %v6299_v40 = vadd.f32 %v6298_v50, %v6236_v9  ;;  %v12817_v45 = vadd.f32 %v5981_v16, %v12525_v19  ;;  %v6240_v53 = vmul.f32 %v12820_v55, %v12820_v55 }
 0x690   :  { %v7221_v12 = vpop.f32.mrf.mxu1 }
 0x691   :  { %v6300_v23 = vadd.f32 %v6299_v40, %v6237_v11  ;;  %v6161_v13 = vadd.f32 %v6160_v28, %v12817_v45  ;;  %v6238_v18 = vmul.f32 %v12817_v45, %v12817_v45  ;;  %v12835_v16 = vadd.f32 %v7221_v12, %v12548_v17 }
 0x692   :  { %v5994_v61 = vpop.f32.mrf.mxu1 }
 0x693   :  { %v6162_v49 = vadd.f32 %v6161_v13, %v12811_v27  ;;  %v6301_v9 = vadd.f32 %v6300_v23, %v6238_v18  ;;  %v12829_v19 = vadd.f32 %v5994_v61, %v12541_v51  ;;  %15220 = vst [vmem:[#allocation23_spill] sm:$0xff] %v12835_v16 }
 0x694   :  { %v7222_v50 = vpop.f32.mrf.mxu1 }
 0x695   :  { %15219 = vst [vmem:[#allocation48_spill] sm:$0xff] %v12829_v19  ;;  %v6302_v41 = vadd.f32 %v6301_v9, %v6239_v59  ;;  %v6163_v10 = vadd.f32 %v6162_v49, %v12820_v55  ;;  %v6241_v40 = vmul.f32 %v12829_v19, %v12829_v19  ;;  %v12844_v61 = vadd.f32 %v7222_v50, %v12553_v48 }
 0x696   :  { %v5997_v28 = vpop.f32.mrf.mxu1  ;;  %v6243_v49 = vmul.f32 %v12835_v16, %v12835_v16 }
 0x697   :  { %v6164_v11 = vadd.f32 %v6163_v10, %v12829_v19  ;;  %v6303_v23 = vadd.f32 %v6302_v41, %v6240_v53  ;;  %v12841_v51 = vadd.f32 %v5997_v28, %v12545_v4  ;;  %15221 = vst [vmem:[#allocation113_spill] sm:$0xff] %v12844_v61  ;;  %v6244_v48 = vmul.f32 %v12844_v61, %v12844_v61 }
 0x698   :  { %v7225_v13 = vpop.f32.mrf.mxu1 }
 0x699   :  { %v6304_v18 = vadd.f32 %v6303_v23, %v6241_v40  ;;  %v6165_v59 = vadd.f32 %v6164_v11, %v12841_v51  ;;  %v6242_v17 = vmul.f32 %v12841_v51, %v12841_v51  ;;  %v12859_v28 = vadd.f32 %v7225_v13, %v12564_v58 }
 0x69a   :  { %v6010_v12 = vpop.f32.mrf.mxu1 }
 0x69b   :  { %v6166_v9 = vadd.f32 %v6165_v59, %v12835_v16  ;;  %v6305_v53 = vadd.f32 %v6304_v18, %v6242_v17  ;;  %v12853_v4 = vadd.f32 %v6010_v12, %v12556_v5  ;;  %v6247_v13 = vmul.f32 %v12859_v28, %v12859_v28 }
 0x69c   :  { %v7226_v41 = vpop.f32.mrf.mxu1 }
 0x69d   :  { %15222 = vst [vmem:[#allocation116_spill] sm:$0xff] %v12853_v4  ;;  %v6167_v50 = vadd.f32 %v6166_v9, %v12844_v61  ;;  %v6306_v10 = vadd.f32 %v6305_v53, %v6243_v49  ;;  %v6245_v5 = vmul.f32 %v12853_v4, %v12853_v4  ;;  %v12867_v18 = vadd.f32 %v7226_v41, %v12569_v29 }
 0x69e   :  { %v6013_v11 = vpop.f32.mrf.mxu1 }
 0x69f   :  { %v6168_v40 = vrot.slane %v6167_v50, 4  ;;  %v6307_v23 = vadd.f32 %v6306_v10, %v6244_v48  ;;  %v12862_v19 = vadd.f32 %v6013_v11, %v12561_v52  ;;  %v6248_v29 = vmul.f32 %v12867_v18, %v12867_v18 }
 0x6a0   :  { %v7229_v59 = vpop.f32.mrf.mxu1 }
 0x6a1   :  { %15223 = vst [vmem:[#allocation118_spill] sm:$0xff] %v12862_v19  ;;  %v6169_v17 = vadd.f32 %v6168_v40, %v6167_v50  ;;  %v6308_v12 = vrot.slane %v6307_v23, 4  ;;  %v6174_v49 = vadd.f32 %v12862_v19, %v12853_v4  ;;  %v6246_v58 = vmul.f32 %v12862_v19, %v12862_v19 }
 0x6a2   :  { %v6026_v52 = vpop.f32.mrf.mxu1 }
 0x6a3   :  { %v6170_v9 = vrot.slane %v6169_v17, 2  ;;  %v6309_v53 = vadd.f32 %v6308_v12, %v6307_v23  ;;  %v6175_v48 = vadd.f32 %v6174_v49, %v12859_v28  ;;  %v6314_v10 = vadd.f32 %v6246_v58, %v6245_v5 }
 0x6a4   :  { %v12879_v41 = vadd.f32 %v6026_v52, %v12572_v0  ;;  %v7230_v50 = vpop.f32.mrf.mxu1  ;;  %v12886_v58 = vadd.f32 %v7229_v59, %v12580_v44 }
 0x6a5   :  { %v6171_v11 = vadd.f32 %v6170_v9, %v6169_v17  ;;  %v6310_v40 = vrot.slane %v6309_v53, 2  ;;  %v6315_v4 = vadd.f32 %v6314_v10, %v6247_v13  ;;  %v6176_v19 = vadd.f32 %v6175_v48, %v12867_v18 }
 0x6a6   :  { %v6249_v61 = vmul.f32 %v12879_v41, %v12879_v41  ;;  %v6029_v16 = vpop.f32.mrf.mxu1  ;;  %v12892_v48 = vadd.f32 %v7230_v50, %v12585_v37 }
 0x6a7   :  { %v6172_v23 = vrot.slane %v6171_v11, 1  ;;  %v6311_v12 = vadd.f32 %v6310_v40, %v6309_v53  ;;  %v6177_v5 = vadd.f32 %v6176_v19, %v12879_v41  ;;  %v6316_v49 = vadd.f32 %v6315_v4, %v6248_v29 }
 0x6a8   :  { %v12889_v0 = vadd.f32 %v6029_v16, %v12577_v34  ;;  %v7233_v17 = vpop.f32.mrf.mxu1  ;;  %v6251_v34 = vmul.f32 %v12886_v58, %v12886_v58 }
 0x6a9   :  { %v6173_v52 = vadd.f32 %v6172_v23, %v6171_v11  ;;  %v6312_v13 = vrot.slane %v6311_v12, 1  ;;  %v6317_v9 = vadd.f32 %v6316_v49, %v6249_v61  ;;  %v6252_v11 = vmul.f32 %v12892_v48, %v12892_v48 }
 0x6aa   :  { %v6178_v10 = vadd.f32 %v6177_v5, %v12889_v0  ;;  %v6250_v53 = vmul.f32 %v12889_v0, %v12889_v0  ;;  %v6042_v19 = vpop.f32.mrf.mxu1 }
 0x6ab   :  { %v12897_v4 = vmul.f32 0.00390625, %v6173_v52  ;;  %v6313_v44 = vadd.f32 %v6312_v13, %v6311_v12  ;;  %v12903_v61 = vadd.f32 %v6042_v19, %v12588_v22  ;;  %v12914_v52 = vadd.f32 %v7233_v17, %v12596_v20 }
 0x6ac   :  { %v6179_v16 = vadd.f32 %v6178_v10, %v12886_v58  ;;  %v6318_v59 = vadd.f32 %v6317_v9, %v6250_v53  ;;  %v7234_v37 = vpop.f32.mrf.mxu1 }
 0x6ad   :  { %v6351_v29 = vmul.f32 0.00390625, %v6313_v44  ;;  %v6353_v50 = vmul.f32 %v12897_v4, %v12897_v4  ;;  %v6253_v13 = vmul.f32 %v12903_v61, %v12903_v61  ;;  %v6255_v17 = vmul.f32 %v12914_v52, %v12914_v52 }
 0x6ae   :  { %v6319_v40 = vadd.f32 %v6318_v59, %v6251_v34  ;;  %v6180_v23 = vadd.f32 %v6179_v16, %v12892_v48  ;;  %v6045_v12 = vpop.f32.mrf.mxu1  ;;  %v15224_v34 = vld [vmem:[#allocation91_spill] sm:$0xff] }
 0x6af   :  { %v6355_v5 = vsub.f32 %v6351_v29, %v6353_v50  ;;  %v12911_v49 = vadd.f32 %v6045_v12, %v12593_v38  ;;  %v12922_v16 = vadd.f32 %v7234_v37, %v15224_v34 }
 0x6b0   :  { %v6181_v22 = vadd.f32 %v6180_v23, %v12903_v61  ;;  %v6320_v9 = vadd.f32 %v6319_v40, %v6252_v11  ;;  %v7237_v10 = vpop.f32.mrf.mxu1  ;;  %v15225_v11 = vld [vmem:[#allocation92_spill] sm:$0xff] }
 0x6b1   :  { %v6357_v53 = vmax.f32 %v6355_v5, 0.0  ;;  %v6254_v19 = vmul.f32 %v12911_v49, %v12911_v49  ;;  %v6256_v12 = vmul.f32 %v12922_v16, %v12922_v16 }
 0x6b2   :  { %v6321_v44 = vadd.f32 %v6320_v9, %v6253_v13  ;;  %v6182_v38 = vadd.f32 %v6181_v22, %v12911_v49  ;;  %v6058_v59 = vpop.f32.mrf.mxu1  ;;  %v12938_v9 = vadd.f32 %v7237_v10, %v12611_v31 }
 0x6b3   :  { %v6359_v20 = vadd.f32 1e-05, %v6357_v53  ;;  %v12929_v40 = vadd.f32 %v6058_v59, %v15225_v11 }
 0x6b4   :  { %v6183_v29 = vadd.f32 %v6182_v38, %v12914_v52  ;;  %v6322_v50 = vadd.f32 %v6321_v44, %v6254_v19  ;;  %v7238_v23 = vpop.f32.mrf.mxu1  ;;  %15227 = vst [vmem:[#allocation111_spill] sm:$0xff] %v12938_v9  ;;  %v6259_v31 = vmul.f32 %v12938_v9, %v12938_v9 }
 0x6b5   :  { %7407 = vrsqrt.f32 %v6359_v20  ;;  %v6257_v19 = vmul.f32 %v12929_v40, %v12929_v40  ;;  %v12946_v20 = vadd.f32 %v7238_v23, %v12614_v21 }
 0x6b6   :  { %v6323_v37 = vadd.f32 %v6322_v50, %v6255_v17  ;;  %v6184_v5 = vadd.f32 %v6183_v29, %v12922_v16  ;;  %v6061_v22 = vpop.f32.mrf.mxu1 }
 0x6b7   :  { %v12935_v13 = vadd.f32 %v6061_v22, %v12608_v54  ;;  %15228 = vst [vmem:[#allocation117_spill] sm:$0xff] %v12946_v20 }
 0x6b8   :  { %v6185_v53 = vadd.f32 %v6184_v5, %v12929_v40  ;;  %v6324_v44 = vadd.f32 %v6323_v37, %v6256_v12  ;;  %v7241_v34 = vpop.f32.mrf.mxu1  ;;  %v6260_v12 = vmul.f32 %v12946_v20, %v12946_v20 }
 0x6b9   :  { %15226 = vst [vmem:[#allocation114_spill] sm:$0xff] %v12935_v13  ;;  %v6258_v38 = vmul.f32 %v12935_v13, %v12935_v13  ;;  %v12962_v22 = vadd.f32 %v7241_v34, %v12623_v47  ;;  %v12977_v34 = vld [vmem:[%s13589_s2] sm:$0xf] }
 0x6ba   :  { %v6325_v59 = vadd.f32 %v6324_v44, %v6257_v19  ;;  %v6186_v54 = vadd.f32 %v6185_v53, %v12935_v13  ;;  %v6074_v17 = vpop.f32.mrf.mxu1 }
 0x6bb   :  { %v12953_v50 = vadd.f32 %v6074_v17, %v12617_v3  ;;  %15231 = vst [vmem:[#allocation17_spill] sm:$0xff] %v12962_v22 }
 0x6bc   :  { %v6187_v10 = vadd.f32 %v6186_v54, %v12938_v9  ;;  %v6326_v29 = vadd.f32 %v6325_v59, %v6258_v38  ;;  %v7242_v11 = vpop.f32.mrf.mxu1  ;;  %v15232_v38 = vld [vmem:[#allocation5_spill] sm:$0xff] }
 0x6bd   :  { %15229 = vst [vmem:[#allocation68_spill] sm:$0xff] %v12953_v50  ;;  %v6261_v3 = vmul.f32 %v12953_v50, %v12953_v50  ;;  %v14026_v59 = vsub.s32 2, %v15232_v38  ;;  %v12969_v54 = vadd.f32 %v7242_v11, %v12626_v56 }
 0x6be   :  { %v6327_v37 = vadd.f32 %v6326_v29, %v6259_v31  ;;  %v6188_v21 = vadd.f32 %v6187_v10, %v12946_v20  ;;  %v6077_v23 = vpop.f32.mrf.mxu1 }
 0x6bf   :  { %v12959_v5 = vadd.f32 %v6077_v23, %v12620_v30  ;;  %15233 = vst [vmem:[#allocation51_spill] sm:$0xff] %v12969_v54  ;;  %v14030_v23 = vsub.s32 3, %v15232_v38 }
 0x6c0   :  { %v6189_v53 = vadd.f32 %v6188_v21, %v12953_v50  ;;  %v6328_v19 = vadd.f32 %v6327_v37, %v6260_v12  ;;  %v7245_v44 = vpop.f32.mrf.mxu1  ;;  %v6263_v12 = vmul.f32 %v12962_v22, %v12962_v22 }
 0x6c1   :  { %15230 = vst [vmem:[#allocation72_spill] sm:$0xff] %v12959_v5  ;;  %v6262_v17 = vmul.f32 %v12959_v5, %v12959_v5 }
 0x6c2   :  { %v7408_v30 = vpop.eup %7407  ;;  %v6329_v31 = vadd.f32 %v6328_v19, %v6261_v3  ;;  %v6190_v47 = vadd.f32 %v6189_v53, %v12959_v5  ;;  %v6090_v29 = vpop.f32.mrf.mxu1  ;;  %v12989_v53 = vmul.f32 %v12969_v54, %v12969_v54  ;;  %v12994_v19 = vadd.f32 %v7245_v44, %v12635_v25 }
 0x6c3   :  { %v6363_v10 = vmul.f32 %v12977_v34, %v7408_v30  ;;  %v12997_v30 = vadd.f32 %v6090_v29, %v12629_v36 }
 0x6c4   :  { %v6191_v56 = vadd.f32 %v6190_v47, %v12962_v22  ;;  %v6330_v11 = vadd.f32 %v6329_v31, %v6262_v17  ;;  %v15237_v22 = vld [vmem:[#allocation37_spill] sm:$0xff] }
 0x6c5   :  { %v6365_v37 = vmul.f32 %v6363_v10, %v12897_v4  ;;  %v6378_v21 = vrot.slane %v6363_v10, %v14026_v59 }
 0x6c6   :  { %v12991_v3 = vadd.f32 %v6330_v11, %v6263_v12  ;;  %v13000_v17 = vadd.f32 %v6191_v56, %v12969_v54 }
 0x6c7   :  { %v6369_v4 = vrot.slane %v6365_v37, 7  ;;  %v6412_v31 = vmul.f32 %v6378_v21, %v12841_v51  ;;  %v6383_v47 = vmul.f32 %v6378_v21, %v12664_v63  ;;  %v6384_v10 = vmul.f32 %v6378_v21, %v12670_v24 }
 0x6c8   :  { %v6385_v59 = vmul.f32 %v6378_v21, %v12667_v46  ;;  %v6386_v12 = vmul.f32 %v6378_v21, %v12675_v26  ;;  %v6387_v25 = vmul.f32 %v6378_v21, %v12685_v39  ;;  %v6388_v44 = vmul.f32 %v6378_v21, %v12697_v1 }
 0x6c9   :  { %v6373_v36 = vsub.f32 %v12977_v34, %v6369_v4  ;;  %v6389_v29 = vmul.f32 %v6378_v21, %v12691_v60  ;;  %v6390_v56 = vmul.f32 %v6378_v21, %v12700_v8  ;;  %v6391_v51 = vmul.f32 %v6378_v21, %v12709_v43  ;;  %v15234_v8 = vld [vmem:[#allocation119_spill] sm:$0xff]  ;;  %v15235_v43 = vld [vmem:[#allocation32_spill] sm:$0xff] }
 0x6ca   :  { %v6392_v63 = vmul.f32 %v6378_v21, %v12721_v35  ;;  %v6393_v24 = vmul.f32 %v6378_v21, %v12715_v15  ;;  %v6394_v46 = vmul.f32 %v6378_v21, %v12724_v7  ;;  %v6395_v26 = vmul.f32 %v6378_v21, %v12733_v32  ;;  %v15236_v35 = vld [vmem:[#allocation27_spill] sm:$0xff] }
 0x6cb   :  { %v6450_v39 = vrot.slane %v6373_v36, %v14030_v23  ;;  %v6396_v1 = vmul.f32 %v6378_v21, %v12745_v33  ;;  %v6397_v11 = vmul.f32 %v6378_v21, %v12739_v2  ;;  %v6398_v60 = vmul.f32 %v6378_v21, %v12748_v14  ;;  %v15238_v36 = vld [vmem:[#allocation15_spill] sm:$0xff]  ;;  %v13029_v33 = vpop.f32.mrf.mxu1 }
 0x6cc   :  { %v6399_v37 = vmul.f32 %v6378_v21, %v15234_v8  ;;  %v6400_v4 = vmul.f32 %v6378_v21, %v15235_v43  ;;  %v6401_v54 = vmul.f32 %v6378_v21, %v15236_v35  ;;  %v6402_v15 = vmul.f32 %v6378_v21, %v12772_v62 }
 0x6cd   :  { %v6484_v7 = vadd.f32 %v6450_v39, %v6412_v31  ;;  %v6403_v32 = vmul.f32 %v6378_v21, %v12781_v6  ;;  %v6404_v5 = vmul.f32 %v6378_v21, %v15237_v22  ;;  %v6405_v23 = vmul.f32 %v6378_v21, %v15238_v36  ;;  %v15239_v31 = vld [vmem:[#allocation48_spill] sm:$0xff]  ;;  %v15240_v6 = vld [vmem:[#allocation23_spill] sm:$0xff]  ;;  %v15241_v22 = vld [vmem:[#allocation113_spill] sm:$0xff] }
 0x6ce   :  { %v6406_v2 = vmul.f32 %v6378_v21, %v12796_v57  ;;  %v6407_v14 = vmul.f32 %v6378_v21, %v12805_v42  ;;  %v6408_v8 = vmul.f32 %v6378_v21, %v12817_v45  ;;  %v6409_v43 = vmul.f32 %v6378_v21, %v12811_v27  ;;  %v7417_v42 = vld [vmem:[%s13587_s0 + $0xe8] sm:$0xff] }
 0x6cf   :  { %v6548_v35 = vmax.f32 %v6484_v7, 0.0  ;;  %v6410_v62 = vmul.f32 %v6378_v21, %v12820_v55  ;;  %v6411_v50 = vmul.f32 %v6378_v21, %v15239_v31  ;;  %v6413_v20 = vmul.f32 %v6378_v21, %v15240_v6  ;;  %v13054_v31 = vpop.f32.mrf.mxu1 }
 0x6d0   :  { %v6414_v9 = vmul.f32 %v6378_v21, %v15241_v22  ;;  %v13039_v36 = vadd.f32 %v6450_v39, %v6383_v47  ;;  %v13041_v13 = vadd.f32 %v6450_v39, %v6384_v10  ;;  %v13043_v57 = vadd.f32 %v6450_v39, %v6385_v59 }
 0x6d1   :  { %v6612_v27 = vadd.f32 %v7417_v42, %v6548_v35  ;;  %v13048_v45 = vadd.f32 %v6450_v39, %v6386_v12  ;;  %v13050_v55 = vadd.f32 %v6450_v39, %v6387_v25  ;;  %v13052_v7 = vadd.f32 %v6450_v39, %v6388_v44 }
 0x6d2   :  { %v13056_v21 = vadd.f32 %v6450_v39, %v6389_v29  ;;  %v13058_v47 = vadd.f32 %v6450_v39, %v6390_v56  ;;  %v13060_v10 = vadd.f32 %v6450_v39, %v6391_v51  ;;  %v13062_v59 = vadd.f32 %v6450_v39, %v6392_v63 }
 0x6d3   :  { %6676 = vst [vmem:[#allocation2 + $0xe8] sm:$0xff] %v6612_v27  ;;  %v13064_v6 = vadd.f32 %v6450_v39, %v6393_v24  ;;  %v13066_v35 = vadd.f32 %v6450_v39, %v6394_v46  ;;  %v13068_v12 = vadd.f32 %v6450_v39, %v6395_v26  ;;  %v13070_v25 = vadd.f32 %v6450_v39, %v6396_v1  ;;  %v13088_v26 = vpop.f32.mrf.mxu1 }
 0x6d4   :  { %v13072_v44 = vadd.f32 %v6450_v39, %v6397_v11  ;;  %v13074_v22 = vadd.f32 %v6450_v39, %v6398_v60  ;;  %v13076_v29 = vadd.f32 %v6450_v39, %v6399_v37  ;;  %v13078_v56 = vadd.f32 %v6450_v39, %v6400_v4 }
 0x6d5   :  { %v13080_v51 = vadd.f32 %v6450_v39, %v6401_v54  ;;  %v13082_v63 = vadd.f32 %v6450_v39, %v6402_v15  ;;  %v13084_v24 = vadd.f32 %v6450_v39, %v6403_v32  ;;  %v13086_v46 = vadd.f32 %v6450_v39, %v6404_v5 }
 0x6d6   :  { %v13090_v1 = vadd.f32 %v6450_v39, %v6405_v23  ;;  %v13092_v11 = vadd.f32 %v6450_v39, %v6406_v2  ;;  %v13094_v60 = vadd.f32 %v6450_v39, %v6407_v14  ;;  %v13096_v37 = vadd.f32 %v6450_v39, %v6408_v8 }
 0x6d7   :  { %v13098_v4 = vadd.f32 %v6450_v39, %v6409_v43  ;;  %v13100_v54 = vadd.f32 %v6450_v39, %v6410_v62  ;;  %v13102_v15 = vadd.f32 %v6450_v39, %v6411_v50  ;;  %v13104_v32 = vadd.f32 %v6450_v39, %v6413_v20  ;;  %v13115_v50 = vpop.f32.mrf.mxu1 }
 0x6d8   :  { %v13106_v5 = vadd.f32 %v6450_v39, %v6414_v9  ;;  %v6519_v42 = vmax.f32 %v13039_v36, 0.0  ;;  %v6520_v23 = vmax.f32 %v13041_v13, 0.0  ;;  %v6521_v2 = vmax.f32 %v13043_v57, 0.0 }
 0x6d9   :  { %v6522_v14 = vmax.f32 %v13048_v45, 0.0  ;;  %v6523_v8 = vmax.f32 %v13050_v55, 0.0  ;;  %v6524_v43 = vmax.f32 %v13052_v7, 0.0  ;;  %v6525_v62 = vmax.f32 %v13056_v21, 0.0 }
 0x6da   :  { %v6526_v20 = vmax.f32 %v13058_v47, 0.0  ;;  %v6527_v9 = vmax.f32 %v13060_v10, 0.0  ;;  %v6528_v39 = vmax.f32 %v13062_v59, 0.0  ;;  %v6529_v13 = vmax.f32 %v13064_v6, 0.0 }
 0x6db   :  { %v6530_v36 = vmax.f32 %v13066_v35, 0.0  ;;  %v6531_v57 = vmax.f32 %v13068_v12, 0.0  ;;  %v6532_v27 = vmax.f32 %v13070_v25, 0.0  ;;  %v6533_v45 = vmax.f32 %v13072_v44, 0.0  ;;  %v13133_v12 = vpop.f32.mrf.mxu1  ;;  %v7418_v35 = vld [vmem:[%s13587_s0] sm:$0xff]  ;;  %v7419_v44 = vld [vmem:[%s13587_s0 + $0x8] sm:$0xff] }
 0x6dc   :  { %v6534_v55 = vmax.f32 %v13074_v22, 0.0  ;;  %v6535_v7 = vmax.f32 %v13076_v29, 0.0  ;;  %v6536_v21 = vmax.f32 %v13078_v56, 0.0  ;;  %v6537_v47 = vmax.f32 %v13080_v51, 0.0  ;;  %v7420_v56 = vld [vmem:[%s13587_s0 + $0x10] sm:$0xff]  ;;  %v7422_v51 = vld [vmem:[%s13587_s0 + $0x20] sm:$0xff] }
 0x6dd   :  { %v6538_v10 = vmax.f32 %v13082_v63, 0.0  ;;  %v6542_v25 = vmax.f32 %v13092_v11, 0.0  ;;  %v6583_v59 = vadd.f32 %v7418_v35, %v6519_v42  ;;  %v6584_v22 = vadd.f32 %v7419_v44, %v6520_v23  ;;  %v7421_v63 = vld [vmem:[%s13587_s0 + $0x18] sm:$0xff]  ;;  %v7423_v35 = vld [vmem:[%s13587_s0 + $0x28] sm:$0xff]  ;;  %v7424_v44 = vld [vmem:[%s13587_s0 + $0x30] sm:$0xff] }
 0x6de   :  { %v6585_v29 = vadd.f32 %v7420_v56, %v6521_v2  ;;  %v6586_v6 = vadd.f32 %v7421_v63, %v6522_v14  ;;  %v6587_v42 = vadd.f32 %v7422_v51, %v6523_v8  ;;  %v6588_v23 = vadd.f32 %v7423_v35, %v6524_v43  ;;  %v7425_v56 = vld [vmem:[%s13587_s0 + $0x38] sm:$0xff]  ;;  %v13167_v63 = vpop.f32.mrf.mxu1  ;;  %v7426_v8 = vld [vmem:[%s13587_s0 + $0x40] sm:$0xff]  ;;  %v7427_v43 = vld [vmem:[%s13587_s0 + $0x48] sm:$0xff] }
 0x6df   :  { %v6589_v2 = vadd.f32 %v7424_v44, %v6525_v62  ;;  %v6590_v14 = vadd.f32 %v7425_v56, %v6526_v20  ;;  %v6591_v51 = vadd.f32 %v7426_v8, %v6527_v9  ;;  %v6592_v35 = vadd.f32 %v7427_v43, %v6528_v39  ;;  %v7428_v62 = vld [vmem:[%s13587_s0 + $0x50] sm:$0xff]  ;;  %v7429_v20 = vld [vmem:[%s13587_s0 + $0x58] sm:$0xff]  ;;  %6647 = vst [vmem:[#allocation2] sm:$0xff] %v6583_v59  ;;  %v7430_v9 = vld [vmem:[%s13587_s0 + $0x60] sm:$0xff] }
 0x6e0   :  { %v6593_v44 = vadd.f32 %v7428_v62, %v6529_v13  ;;  %v6594_v56 = vadd.f32 %v7429_v20, %v6530_v36  ;;  %6648 = vst [vmem:[#allocation2 + $0x8] sm:$0xff] %v6584_v22  ;;  %6649 = vst [vmem:[#allocation2 + $0x10] sm:$0xff] %v6585_v29  ;;  %v6595_v8 = vadd.f32 %v7430_v9, %v6531_v57  ;;  %v7431_v39 = vld [vmem:[%s13587_s0 + $0x68] sm:$0xff]  ;;  %v7432_v13 = vld [vmem:[%s13587_s0 + $0x70] sm:$0xff]  ;;  %v15246_v11 = vmax.f32 %v13096_v37, 0.0 }
 0x6e1   :  { %6650 = vst [vmem:[#allocation2 + $0x18] sm:$0xff] %v6586_v6  ;;  %v6596_v43 = vadd.f32 %v7431_v39, %v6532_v27  ;;  %v6597_v62 = vadd.f32 %v7432_v13, %v6533_v45  ;;  %v7433_v36 = vld [vmem:[%s13587_s0 + $0x78] sm:$0xff]  ;;  %6651 = vst [vmem:[#allocation2 + $0x20] sm:$0xff] %v6587_v42  ;;  %v7434_v57 = vld [vmem:[%s13587_s0 + $0x80] sm:$0xff]  ;;  %v15247_v39 = vmax.f32 %v13098_v4, 0.0 }
 0x6e2   :  { %v6598_v59 = vadd.f32 %v7433_v36, %v6534_v55  ;;  %6652 = vst [vmem:[#allocation2 + $0x28] sm:$0xff] %v6588_v23  ;;  %6653 = vst [vmem:[#allocation2 + $0x30] sm:$0xff] %v6589_v2  ;;  %v6599_v6 = vadd.f32 %v7434_v57, %v6535_v7  ;;  %v7435_v27 = vld [vmem:[%s13587_s0 + $0x88] sm:$0xff]  ;;  %v7436_v45 = vld [vmem:[%s13587_s0 + $0x90] sm:$0xff]  ;;  %v15243_v2 = vmax.f32 %v13086_v46, 0.0  ;;  %v13225_v46 = vpop.f32.mrf.mxu1  ;;  %v15249_v36 = vmax.f32 %v13102_v15, 0.0 }
 0x6e3   :  { %6654 = vst [vmem:[#allocation2 + $0x38] sm:$0xff] %v6590_v14  ;;  %v6600_v22 = vadd.f32 %v7435_v27, %v6536_v21  ;;  %v6601_v29 = vadd.f32 %v7436_v45, %v6537_v47  ;;  %v7437_v55 = vld [vmem:[%s13587_s0 + $0x98] sm:$0xff]  ;;  %6655 = vst [vmem:[#allocation2 + $0x40] sm:$0xff] %v6591_v51  ;;  %v7438_v7 = vld [vmem:[%s13587_s0 + $0xa0] sm:$0xff]  ;;  %v15242_v21 = vmax.f32 %v13084_v24, 0.0  ;;  %v15244_v51 = vmax.f32 %v13090_v1, 0.0 }
 0x6e4   :  { %v6602_v42 = vadd.f32 %v7437_v55, %v6538_v10  ;;  %6656 = vst [vmem:[#allocation2 + $0x48] sm:$0xff] %v6592_v35  ;;  %6657 = vst [vmem:[#allocation2 + $0x50] sm:$0xff] %v6593_v44  ;;  %v7439_v47 = vld [vmem:[%s13587_s0 + $0xa8] sm:$0xff]  ;;  %v7440_v10 = vld [vmem:[%s13587_s0 + $0xb0] sm:$0xff]  ;;  %v15245_v1 = vmax.f32 %v13094_v60, 0.0  ;;  %v15248_v60 = vmax.f32 %v13100_v54, 0.0  ;;  %v6193_v15 = vadd.f32 %v13000_v17, %v12997_v30  ;;  %v6122_v55 = vpop.f32.mrf.mxu1 }
 0x6e5   :  { %6658 = vst [vmem:[#allocation2 + $0x58] sm:$0xff] %v6594_v56  ;;  %v6603_v23 = vadd.f32 %v7438_v7, %v15242_v21  ;;  %v6604_v14 = vadd.f32 %v7439_v47, %v15243_v2  ;;  %v6605_v35 = vadd.f32 %v7440_v10, %v15244_v51  ;;  %v7441_v44 = vld [vmem:[%s13587_s0 + $0xb8] sm:$0xff]  ;;  %6659 = vst [vmem:[#allocation2 + $0x60] sm:$0xff] %v6595_v8  ;;  %v7442_v20 = vld [vmem:[%s13587_s0 + $0xc0] sm:$0xff]  ;;  %v15250_v57 = vmax.f32 %v13104_v32, 0.0 }
 0x6e6   :  { %v6606_v24 = vadd.f32 %v7441_v44, %v6542_v25  ;;  %6660 = vst [vmem:[#allocation2 + $0x68] sm:$0xff] %v6596_v43  ;;  %6661 = vst [vmem:[#allocation2 + $0x70] sm:$0xff] %v6597_v62  ;;  %v6607_v56 = vadd.f32 %v7442_v20, %v15245_v1  ;;  %v7443_v9 = vld [vmem:[%s13587_s0 + $0xc8] sm:$0xff]  ;;  %v7444_v8 = vld [vmem:[%s13587_s0 + $0xd0] sm:$0xff]  ;;  %v6265_v32 = vmul.f32 %v12997_v30, %v12997_v30 }
 0x6e7   :  { %6662 = vst [vmem:[#allocation2 + $0x78] sm:$0xff] %v6598_v59  ;;  %v6608_v25 = vadd.f32 %v7443_v9, %v15246_v11  ;;  %v6609_v43 = vadd.f32 %v7444_v8, %v15247_v39  ;;  %v7445_v13 = vld [vmem:[%s13587_s0 + $0xd8] sm:$0xff]  ;;  %6663 = vst [vmem:[#allocation2 + $0x80] sm:$0xff] %v6599_v6  ;;  %v7446_v37 = vld [vmem:[%s13587_s0 + $0xe0] sm:$0xff]  ;;  %v15251_v6 = vmax.f32 %v13106_v5, 0.0  ;;  %v6332_v45 = vadd.f32 %v12991_v3, %v12989_v53 }
 0x6e8   :  { %v6610_v62 = vadd.f32 %v7445_v13, %v15248_v60  ;;  %6664 = vst [vmem:[#allocation2 + $0x88] sm:$0xff] %v6600_v22  ;;  %6665 = vst [vmem:[#allocation2 + $0x90] sm:$0xff] %v6601_v29  ;;  %v6611_v59 = vadd.f32 %v7446_v37, %v15249_v36  ;;  %v7447_v4 = vld [vmem:[%s13587_s0 + $0xf0] sm:$0xff]  ;;  %v7448_v54 = vld [vmem:[%s13587_s0 + $0xf8] sm:$0xff]  ;;  %v6267_v53 = vmul.f32 %v12994_v19, %v12994_v19 }
 0x6e9   :  { %6666 = vst [vmem:[#allocation2 + $0x98] sm:$0xff] %v6602_v42  ;;  %v6613_v27 = vadd.f32 %v7447_v4, %v15250_v57  ;;  %v6614_v22 = vadd.f32 %v7448_v54, %v15251_v6  ;;  %6667 = vst [vmem:[#allocation2 + $0xa0] sm:$0xff] %v6603_v23  ;;  %v15252_v29 = vld [vmem:[#allocation95_spill] sm:$0xff]  ;;  %v6333_v42 = vadd.f32 %v6332_v45, %v6265_v32  ;;  %v15253_v17 = vld [vmem:[#allocation97_spill] sm:$0xff] }
 0x6ea   :  { %6668 = vst [vmem:[#allocation2 + $0xa8] sm:$0xff] %v6604_v14  ;;  %6669 = vst [vmem:[#allocation2 + $0xb0] sm:$0xff] %v6605_v35  ;;  %v13270_v5 = vadd.f32 %v13054_v31, %v15252_v29  ;;  %v13274_v7 = vadd.f32 %v13029_v33, %v15253_v17  ;;  %v15254_v47 = vld [vmem:[#allocation98_spill] sm:$0xff]  ;;  %v15255_v14 = vld [vmem:[#allocation99_spill] sm:$0xff]  ;;  %v7254_v33 = vpop.f32.mrf.mxu1 }
 0x6eb   :  { %6670 = vst [vmem:[#allocation2 + $0xb8] sm:$0xff] %v6606_v24  ;;  %6671 = vst [vmem:[#allocation2 + $0xc0] sm:$0xff] %v6607_v56  ;;  %v13284_v2 = vadd.f32 %v13115_v50, %v15254_v47  ;;  %v13288_v10 = vadd.f32 %v13167_v63, %v15255_v14  ;;  %v15256_v24 = vld [vmem:[#allocation101_spill] sm:$0xff]  ;;  %v15258_v60 = vld [vmem:[#allocation103_spill] sm:$0xff] }
 0x6ec   :  { %6672 = vst [vmem:[#allocation2 + $0xc8] sm:$0xff] %v6608_v25  ;;  %6673 = vst [vmem:[#allocation2 + $0xd0] sm:$0xff] %v6609_v43  ;;  %v6194_v21 = vadd.f32 %v6193_v15, %v13270_v5  ;;  %v6266_v23 = vmul.f32 %v13270_v5, %v13270_v5  ;;  %v6268_v51 = vmul.f32 %v13274_v7, %v13274_v7  ;;  %v6125_v9 = vpop.f32.mrf.mxu1  ;;  %v15257_v25 = vld [vmem:[#allocation104_spill] sm:$0xff]  ;;  %v15259_v37 = vld [vmem:[#allocation105_spill] sm:$0xff] }
 0x6ed   :  { %6674 = vst [vmem:[#allocation2 + $0xd8] sm:$0xff] %v6610_v62  ;;  %6675 = vst [vmem:[#allocation2 + $0xe0] sm:$0xff] %v6611_v59  ;;  %v13295_v20 = vadd.f32 %v13088_v26, %v15256_v24  ;;  %v6269_v50 = vmul.f32 %v13284_v2, %v13284_v2  ;;  %v6270_v63 = vmul.f32 %v13288_v10, %v13288_v10  ;;  %v15260_v57 = vld [vmem:[#allocation108_spill] sm:$0xff]  ;;  %v15261_v45 = vld [vmem:[#allocation22_spill] sm:$0xff] }
 0x6ee   :  { %6677 = vst [vmem:[#allocation2 + $0xf0] sm:$0xff] %v6613_v27  ;;  %6678 = vst [vmem:[#allocation2 + $0xf8] sm:$0xff] %v6614_v22  ;;  %v6195_v3 = vadd.f32 %v6194_v21, %v12994_v19  ;;  %v6334_v31 = vadd.f32 %v6333_v42, %v6266_v23  ;;  %v13304_v8 = vadd.f32 %v13133_v12, %v15257_v25 }
 0x6ef   :  { %v6271_v26 = vmul.f32 %v13295_v20, %v13295_v20  ;;  %v13311_v62 = vadd.f32 %v6122_v55, %v15258_v60  ;;  %v6126_v36 = vadd.f32 %v6125_v9, %v15259_v37  ;;  %v13319_v27 = vadd.f32 %v13225_v46, %v15260_v57 }
 0x6f0   :  { %v6335_v35 = vadd.f32 %v6334_v31, %v6267_v53  ;;  %v6196_v44 = vadd.f32 %v6195_v3, %v13274_v7  ;;  %v6272_v59 = vmul.f32 %v13304_v8, %v13304_v8  ;;  %v13325_v29 = vadd.f32 %v7254_v33, %v15261_v45 }
 0x6f1   :  { %v6273_v6 = vmul.f32 %v13311_v62, %v13311_v62  ;;  %v6274_v15 = vmul.f32 %v6126_v36, %v6126_v36  ;;  %v6275_v42 = vmul.f32 %v13319_v27, %v13319_v27 }
 0x6f2   :  { %v6197_v1 = vadd.f32 %v6196_v44, %v13284_v2  ;;  %v6336_v56 = vadd.f32 %v6335_v35, %v6268_v51  ;;  %v6276_v46 = vmul.f32 %v13325_v29, %v13325_v29 }
 0x6f4   :  { %v6337_v11 = vadd.f32 %v6336_v56, %v6269_v50  ;;  %v6198_v39 = vadd.f32 %v6197_v1, %v13288_v10 }
 0x6f6   :  { %v6199_v43 = vadd.f32 %v6198_v39, %v13295_v20  ;;  %v6338_v13 = vadd.f32 %v6337_v11, %v6270_v63 }
 0x6f8   :  { %v6339_v4 = vadd.f32 %v6338_v13, %v6271_v26  ;;  %v6200_v12 = vadd.f32 %v6199_v43, %v13304_v8 }
 0x6fa   :  { %v6201_v54 = vadd.f32 %v6200_v12, %v13311_v62  ;;  %v6340_v22 = vadd.f32 %v6339_v4, %v6272_v59  ;;  %v15262_v59 = vsub.s32 2, %v15232_v38 }
 0x6fc   :  { %v6341_v32 = vadd.f32 %v6340_v22, %v6273_v6  ;;  %v6202_v55 = vadd.f32 %v6201_v54, %v6126_v36  ;;  %v15263_v54 = vld [vmem:[#allocation116_spill] sm:$0xff]  ;;  %v15264_v22 = vld [vmem:[#allocation118_spill] sm:$0xff] }
 0x6fe   :  { %v6203_v17 = vadd.f32 %v6202_v55, %v13319_v27  ;;  %v6342_v21 = vadd.f32 %v6341_v32, %v6274_v15 }
 0x700   :  { %v6204_v23 = vadd.f32 %v6203_v17, %v13325_v29  ;;  %v6343_v53 = vadd.f32 %v6342_v21, %v6275_v42 }
 0x702   :  { %v6205_v3 = vrot.slane %v6204_v23, 4  ;;  %v6344_v31 = vadd.f32 %v6343_v53, %v6276_v46 }
 0x704   :  { %v6206_v47 = vadd.f32 %v6205_v3, %v6204_v23  ;;  %v6345_v14 = vrot.slane %v6344_v31, 4 }
 0x706   :  { %v6207_v51 = vrot.slane %v6206_v47, 2  ;;  %v6346_v33 = vadd.f32 %v6345_v14, %v6344_v31 }
 0x708   :  { %v6208_v35 = vadd.f32 %v6207_v51, %v6206_v47  ;;  %v6347_v44 = vrot.slane %v6346_v33, 2 }
 0x70a   :  { %v6209_v24 = vrot.slane %v6208_v35, 1  ;;  %v6348_v1 = vadd.f32 %v6347_v44, %v6346_v33 }
 0x70c   :  { %v6210_v50 = vadd.f32 %v6209_v24, %v6208_v35  ;;  %v6349_v56 = vrot.slane %v6348_v1, 1 }
 0x70e   :  { %v6212_v63 = vmul.f32 0.00390625, %v6210_v50  ;;  %v6350_v9 = vadd.f32 %v6349_v56, %v6348_v1 }
 0x710   :  { %v6352_v11 = vmul.f32 0.00390625, %v6350_v9  ;;  %v6354_v25 = vmul.f32 %v6212_v63, %v6212_v63 }
 0x712   :  { %v6356_v39 = vsub.f32 %v6352_v11, %v6354_v25 }
 0x714   :  { %v6358_v26 = vmax.f32 %v6356_v39, 0.0 }
 0x716   :  { %v6360_v43 = vadd.f32 1e-05, %v6358_v26 }
 0x718   :  { %7409 = vrsqrt.f32 %v6360_v43 }
 0x725   :  { %v7410_v13 = vpop.eup %7409 }
 0x726   :  { %v6364_v60 = vmul.f32 %v12977_v34, %v7410_v13 }
 0x728   :  { %v6366_v37 = vmul.f32 %v6364_v60, %v6212_v63  ;;  %v6382_v4 = vrot.slane %v6364_v60, %v15262_v59 }
 0x72a   :  { %v6370_v12 = vrot.slane %v6366_v37, 7  ;;  %v6444_v57 = vmul.f32 %v6382_v4, %v6126_v36  ;;  %v6415_v6 = vmul.f32 %v6382_v4, %v15263_v54  ;;  %v6416_v15 = vmul.f32 %v6382_v4, %v15264_v22 }
 0x72b   :  { %v6417_v32 = vmul.f32 %v6382_v4, %v12859_v28  ;;  %v6418_v45 = vmul.f32 %v6382_v4, %v12867_v18  ;;  %v6419_v55 = vmul.f32 %v6382_v4, %v12879_v41  ;;  %v6420_v42 = vmul.f32 %v6382_v4, %v12889_v0  ;;  %v15266_v0 = vld [vmem:[#allocation114_spill] sm:$0xff] }
 0x72c   :  { %v6374_v17 = vsub.f32 %v12977_v34, %v6370_v12  ;;  %v6421_v21 = vmul.f32 %v6382_v4, %v12886_v58  ;;  %v6422_v46 = vmul.f32 %v6382_v4, %v12892_v48  ;;  %v6423_v36 = vmul.f32 %v6382_v4, %v12903_v61  ;;  %v15267_v34 = vld [vmem:[#allocation111_spill] sm:$0xff]  ;;  %v15268_v58 = vld [vmem:[#allocation117_spill] sm:$0xff]  ;;  %v15269_v48 = vld [vmem:[#allocation68_spill] sm:$0xff] }
 0x72d   :  { %v6424_v23 = vmul.f32 %v6382_v4, %v12911_v49  ;;  %v6425_v53 = vmul.f32 %v6382_v4, %v12914_v52  ;;  %v6426_v28 = vmul.f32 %v6382_v4, %v12922_v16  ;;  %v6427_v18 = vmul.f32 %v6382_v4, %v12929_v40  ;;  %v15270_v61 = vld [vmem:[#allocation72_spill] sm:$0xff]  ;;  %v15271_v49 = vld [vmem:[#allocation17_spill] sm:$0xff]  ;;  %v15272_v52 = vld [vmem:[#allocation51_spill] sm:$0xff] }
 0x72e   :  { %v15265_v41 = vsub.s32 3, %v15232_v38  ;;  %v6428_v31 = vmul.f32 %v6382_v4, %v15266_v0  ;;  %v6429_v47 = vmul.f32 %v6382_v4, %v15267_v34  ;;  %v6430_v14 = vmul.f32 %v6382_v4, %v15268_v58 }
 0x72f   :  { %v6431_v51 = vmul.f32 %v6382_v4, %v15269_v48  ;;  %v6432_v33 = vmul.f32 %v6382_v4, %v15270_v61  ;;  %v6433_v35 = vmul.f32 %v6382_v4, %v15271_v49  ;;  %v6434_v44 = vmul.f32 %v6382_v4, %v15272_v52 }
 0x730   :  { %v6454_v3 = vrot.slane %v6374_v17, %v15265_v41  ;;  %v6435_v40 = vmul.f32 %v6382_v4, %v12997_v30  ;;  %v6436_v38 = vmul.f32 %v6382_v4, %v13270_v5  ;;  %v6437_v24 = vmul.f32 %v6382_v4, %v12994_v19 }
 0x731   :  { %v6438_v1 = vmul.f32 %v6382_v4, %v13274_v7  ;;  %v6439_v50 = vmul.f32 %v6382_v4, %v13284_v2  ;;  %v6440_v56 = vmul.f32 %v6382_v4, %v13288_v10  ;;  %v6441_v63 = vmul.f32 %v6382_v4, %v13295_v20  ;;  %v7449_v2 = vld [vmem:[%s13587_s0 + $0x1e8] sm:$0xff] }
 0x732   :  { %v6516_v16 = vadd.f32 %v6454_v3, %v6444_v57  ;;  %v6442_v11 = vmul.f32 %v6382_v4, %v13304_v8  ;;  %v6443_v25 = vmul.f32 %v6382_v4, %v13311_v62  ;;  %v6445_v39 = vmul.f32 %v6382_v4, %v13319_v27 }
 0x733   :  { %v6446_v30 = vmul.f32 %v6382_v4, %v13325_v29  ;;  %v13370_v5 = vadd.f32 %v6454_v3, %v6415_v6  ;;  %v13372_v19 = vadd.f32 %v6454_v3, %v6416_v15  ;;  %v13374_v7 = vadd.f32 %v6454_v3, %v6417_v32 }
 0x734   :  { %v6580_v9 = vmax.f32 %v6516_v16, 0.0  ;;  %v13379_v20 = vadd.f32 %v6454_v3, %v6418_v45  ;;  %v13381_v8 = vadd.f32 %v6454_v3, %v6419_v55  ;;  %v13383_v62 = vadd.f32 %v6454_v3, %v6420_v42 }
 0x735   :  { %v13385_v27 = vadd.f32 %v6454_v3, %v6421_v21  ;;  %v13387_v29 = vadd.f32 %v6454_v3, %v6422_v46  ;;  %v13389_v26 = vadd.f32 %v6454_v3, %v6423_v36  ;;  %v13391_v43 = vadd.f32 %v6454_v3, %v6424_v23 }
 0x736   :  { %v6644_v10 = vadd.f32 %v7449_v2, %v6580_v9  ;;  %v13393_v13 = vadd.f32 %v6454_v3, %v6425_v53  ;;  %v13395_v60 = vadd.f32 %v6454_v3, %v6426_v28  ;;  %v13397_v37 = vadd.f32 %v6454_v3, %v6427_v18 }
 0x737   :  { %v13399_v59 = vadd.f32 %v6454_v3, %v6428_v31  ;;  %v13401_v4 = vadd.f32 %v6454_v3, %v6429_v47  ;;  %v13403_v12 = vadd.f32 %v6454_v3, %v6430_v14  ;;  %v13405_v57 = vadd.f32 %v6454_v3, %v6431_v51 }
 0x738   :  { %6708 = vst [vmem:[#allocation2 + $0x1e8] sm:$0xff] %v6644_v10  ;;  %v13407_v54 = vadd.f32 %v6454_v3, %v6432_v33  ;;  %v13409_v6 = vadd.f32 %v6454_v3, %v6433_v35  ;;  %v13411_v22 = vadd.f32 %v6454_v3, %v6434_v44  ;;  %v13413_v15 = vadd.f32 %v6454_v3, %v6435_v40  ;;  %v7452_v10 = vld [vmem:[%s13587_s0 + $0x110] sm:$0xff] }
 0x739   :  { %v13415_v32 = vadd.f32 %v6454_v3, %v6436_v38  ;;  %v13417_v45 = vadd.f32 %v6454_v3, %v6437_v24  ;;  %v13419_v55 = vadd.f32 %v6454_v3, %v6438_v1  ;;  %v13421_v42 = vadd.f32 %v6454_v3, %v6439_v50 }
 0x73a   :  { %v13423_v17 = vadd.f32 %v6454_v3, %v6440_v56  ;;  %v13425_v21 = vadd.f32 %v6454_v3, %v6441_v63  ;;  %v13427_v46 = vadd.f32 %v6454_v3, %v6442_v11  ;;  %v13429_v36 = vadd.f32 %v6454_v3, %v6443_v25 }
 0x73b   :  { %v13431_v23 = vadd.f32 %v6454_v3, %v6445_v39  ;;  %v13433_v53 = vadd.f32 %v6454_v3, %v6446_v30  ;;  %v6551_v28 = vmax.f32 %v13370_v5, 0.0  ;;  %v6552_v18 = vmax.f32 %v13372_v19, 0.0  ;;  %v7450_v5 = vld [vmem:[%s13587_s0 + $0x100] sm:$0xff] }
 0x73c   :  { %v6553_v41 = vmax.f32 %v13374_v7, 0.0  ;;  %v6554_v0 = vmax.f32 %v13379_v20, 0.0  ;;  %v6555_v31 = vmax.f32 %v13381_v8, 0.0  ;;  %v6556_v34 = vmax.f32 %v13383_v62, 0.0  ;;  %v7451_v7 = vld [vmem:[%s13587_s0 + $0x108] sm:$0xff]  ;;  %v7453_v8 = vld [vmem:[%s13587_s0 + $0x118] sm:$0xff] }
 0x73d   :  { %v6557_v47 = vmax.f32 %v13385_v27, 0.0  ;;  %v6558_v58 = vmax.f32 %v13387_v29, 0.0  ;;  %v6559_v14 = vmax.f32 %v13389_v26, 0.0  ;;  %v6560_v3 = vmax.f32 %v13391_v43, 0.0  ;;  %v7454_v27 = vld [vmem:[%s13587_s0 + $0x120] sm:$0xff]  ;;  %v7455_v26 = vld [vmem:[%s13587_s0 + $0x128] sm:$0xff] }
 0x73e   :  { %v6561_v48 = vmax.f32 %v13393_v13, 0.0  ;;  %v6562_v51 = vmax.f32 %v13395_v60, 0.0  ;;  %v6563_v61 = vmax.f32 %v13397_v37, 0.0  ;;  %v6564_v33 = vmax.f32 %v13399_v59, 0.0  ;;  %v7456_v13 = vld [vmem:[%s13587_s0 + $0x130] sm:$0xff]  ;;  %v7457_v37 = vld [vmem:[%s13587_s0 + $0x138] sm:$0xff] }
 0x73f   :  { %v6565_v49 = vmax.f32 %v13401_v4, 0.0  ;;  %v6566_v35 = vmax.f32 %v13403_v12, 0.0  ;;  %v6567_v52 = vmax.f32 %v13405_v57, 0.0  ;;  %v6568_v44 = vmax.f32 %v13407_v54, 0.0  ;;  %v7458_v4 = vld [vmem:[%s13587_s0 + $0x140] sm:$0xff]  ;;  %v7459_v57 = vld [vmem:[%s13587_s0 + $0x148] sm:$0xff] }
 0x740   :  { %v6569_v16 = vmax.f32 %v13409_v6, 0.0  ;;  %v6570_v40 = vmax.f32 %v13411_v22, 0.0  ;;  %v6571_v38 = vmax.f32 %v13413_v15, 0.0  ;;  %v6572_v24 = vmax.f32 %v13415_v32, 0.0  ;;  %v7460_v6 = vld [vmem:[%s13587_s0 + $0x150] sm:$0xff]  ;;  %v7474_v32 = vld [vmem:[%s13587_s0 + $0x1c0] sm:$0xff] }
 0x741   :  { %v6573_v1 = vmax.f32 %v13417_v45, 0.0  ;;  %v6574_v50 = vmax.f32 %v13419_v55, 0.0  ;;  %v6575_v56 = vmax.f32 %v13421_v42, 0.0  ;;  %v6576_v63 = vmax.f32 %v13423_v17, 0.0  ;;  %v7475_v45 = vld [vmem:[%s13587_s0 + $0x1c8] sm:$0xff]  ;;  %v7476_v55 = vld [vmem:[%s13587_s0 + $0x1d0] sm:$0xff] }
 0x742   :  { %v6577_v9 = vmax.f32 %v13425_v21, 0.0  ;;  %v6578_v11 = vmax.f32 %v13427_v46, 0.0  ;;  %v6579_v25 = vmax.f32 %v13429_v36, 0.0  ;;  %v6581_v39 = vmax.f32 %v13431_v23, 0.0  ;;  %v7478_v17 = vld [vmem:[%s13587_s0 + $0x1e0] sm:$0xff] }
 0x743   :  { %v6582_v30 = vmax.f32 %v13433_v53, 0.0  ;;  %v6615_v19 = vadd.f32 %v7450_v5, %v6551_v28  ;;  %v6616_v2 = vadd.f32 %v7451_v7, %v6552_v18  ;;  %v6617_v20 = vadd.f32 %v7452_v10, %v6553_v41  ;;  %v7461_v28 = vld [vmem:[%s13587_s0 + $0x158] sm:$0xff]  ;;  %v7462_v41 = vld [vmem:[%s13587_s0 + $0x160] sm:$0xff]  ;;  %v7472_v7 = vld [vmem:[%s13587_s0 + $0x1b0] sm:$0xff] }
 0x744   :  { %v6618_v62 = vadd.f32 %v7453_v8, %v6554_v0  ;;  %v6619_v29 = vadd.f32 %v7454_v27, %v6555_v31  ;;  %v6620_v43 = vadd.f32 %v7455_v26, %v6556_v34  ;;  %v6621_v60 = vadd.f32 %v7456_v13, %v6557_v47  ;;  %v7463_v31 = vld [vmem:[%s13587_s0 + $0x168] sm:$0xff]  ;;  %v7464_v47 = vld [vmem:[%s13587_s0 + $0x170] sm:$0xff]  ;;  %v7473_v10 = vld [vmem:[%s13587_s0 + $0x1b8] sm:$0xff] }
 0x745   :  { %v6622_v59 = vadd.f32 %v7457_v37, %v6558_v58  ;;  %v6623_v12 = vadd.f32 %v7458_v4, %v6559_v14  ;;  %v6624_v54 = vadd.f32 %v7459_v57, %v6560_v3  ;;  %v6625_v22 = vadd.f32 %v7460_v6, %v6561_v48  ;;  %6679 = vst [vmem:[#allocation2 + $0x100] sm:$0xff] %v6615_v19  ;;  %v7465_v14 = vld [vmem:[%s13587_s0 + $0x178] sm:$0xff]  ;;  %v7466_v48 = vld [vmem:[%s13587_s0 + $0x180] sm:$0xff] }
 0x746   :  { %v6626_v18 = vadd.f32 %v7461_v28, %v6562_v51  ;;  %6680 = vst [vmem:[#allocation2 + $0x108] sm:$0xff] %v6616_v2  ;;  %6681 = vst [vmem:[#allocation2 + $0x110] sm:$0xff] %v6617_v20  ;;  %v6627_v0 = vadd.f32 %v7462_v41, %v6563_v61  ;;  %v6628_v34 = vadd.f32 %v7463_v31, %v6564_v33  ;;  %v7467_v61 = vld [vmem:[%s13587_s0 + $0x188] sm:$0xff] }
 0x747   :  { %6682 = vst [vmem:[#allocation2 + $0x118] sm:$0xff] %v6618_v62  ;;  %v6629_v58 = vadd.f32 %v7464_v47, %v6565_v49  ;;  %v6630_v3 = vadd.f32 %v7465_v14, %v6566_v35  ;;  %6683 = vst [vmem:[#allocation2 + $0x120] sm:$0xff] %v6619_v29  ;;  %v6631_v51 = vadd.f32 %v7466_v48, %v6567_v52  ;;  %v7468_v49 = vld [vmem:[%s13587_s0 + $0x190] sm:$0xff]  ;;  %v7469_v35 = vld [vmem:[%s13587_s0 + $0x198] sm:$0xff] }
 0x748   :  { %6684 = vst [vmem:[#allocation2 + $0x128] sm:$0xff] %v6620_v43  ;;  %6685 = vst [vmem:[#allocation2 + $0x130] sm:$0xff] %v6621_v60  ;;  %v6632_v33 = vadd.f32 %v7467_v61, %v6568_v44  ;;  %v6633_v5 = vadd.f32 %v7468_v49, %v6569_v16  ;;  %v6634_v19 = vadd.f32 %v7469_v35, %v6570_v40  ;;  %v7470_v52 = vld [vmem:[%s13587_s0 + $0x1a0] sm:$0xff]  ;;  %v7471_v16 = vld [vmem:[%s13587_s0 + $0x1a8] sm:$0xff] }
 0x749   :  { %6686 = vst [vmem:[#allocation2 + $0x138] sm:$0xff] %v6622_v59  ;;  %6687 = vst [vmem:[#allocation2 + $0x140] sm:$0xff] %v6623_v12  ;;  %v6635_v44 = vadd.f32 %v7470_v52, %v6571_v38  ;;  %v6636_v40 = vadd.f32 %v7471_v16, %v6572_v24  ;;  %v6637_v2 = vadd.f32 %v7472_v7, %v6573_v1 }
 0x74a   :  { %6688 = vst [vmem:[#allocation2 + $0x148] sm:$0xff] %v6624_v54  ;;  %6689 = vst [vmem:[#allocation2 + $0x150] sm:$0xff] %v6625_v22  ;;  %v6638_v15 = vadd.f32 %v7473_v10, %v6574_v50  ;;  %v6639_v38 = vadd.f32 %v7474_v32, %v6575_v56  ;;  %v6640_v24 = vadd.f32 %v7475_v45, %v6576_v63  ;;  %v7477_v50 = vld [vmem:[%s13587_s0 + $0x1d8] sm:$0xff]  ;;  %v7479_v56 = vld [vmem:[%s13587_s0 + $0x1f0] sm:$0xff] }
 0x74b   :  { %6690 = vst [vmem:[#allocation2 + $0x158] sm:$0xff] %v6626_v18  ;;  %6691 = vst [vmem:[#allocation2 + $0x160] sm:$0xff] %v6627_v0  ;;  %v6641_v1 = vadd.f32 %v7476_v55, %v6577_v9  ;;  %v6642_v42 = vadd.f32 %v7477_v50, %v6578_v11  ;;  %v6643_v21 = vadd.f32 %v7478_v17, %v6579_v25  ;;  %v7480_v63 = vld [vmem:[%s13587_s0 + $0x1f8] sm:$0xff] }
 0x74c   :  { %6692 = vst [vmem:[#allocation2 + $0x168] sm:$0xff] %v6628_v34  ;;  %6693 = vst [vmem:[#allocation2 + $0x170] sm:$0xff] %v6629_v58  ;;  %v6645_v46 = vadd.f32 %v7479_v56, %v6581_v39  ;;  %v6646_v9 = vadd.f32 %v7480_v63, %v6582_v30 }
 0x74d   :  { %6694 = vst [vmem:[#allocation2 + $0x178] sm:$0xff] %v6630_v3  ;;  %6695 = vst [vmem:[#allocation2 + $0x180] sm:$0xff] %v6631_v51 }
 0x74e   :  { %6696 = vst [vmem:[#allocation2 + $0x188] sm:$0xff] %v6632_v33  ;;  %6697 = vst [vmem:[#allocation2 + $0x190] sm:$0xff] %v6633_v5 }
 0x74f   :  { %6698 = vst [vmem:[#allocation2 + $0x198] sm:$0xff] %v6634_v19  ;;  %6699 = vst [vmem:[#allocation2 + $0x1a0] sm:$0xff] %v6635_v44 }
 0x750   :  { %6700 = vst [vmem:[#allocation2 + $0x1a8] sm:$0xff] %v6636_v40  ;;  %6701 = vst [vmem:[#allocation2 + $0x1b0] sm:$0xff] %v6637_v2 }
 0x751   :  { %6702 = vst [vmem:[#allocation2 + $0x1b8] sm:$0xff] %v6638_v15  ;;  %6703 = vst [vmem:[#allocation2 + $0x1c0] sm:$0xff] %v6639_v38 }
 0x752   :  { %6704 = vst [vmem:[#allocation2 + $0x1c8] sm:$0xff] %v6640_v24  ;;  %6705 = vst [vmem:[#allocation2 + $0x1d0] sm:$0xff] %v6641_v1 }
 0x753   :  { %6706 = vst [vmem:[#allocation2 + $0x1d8] sm:$0xff] %v6642_v42  ;;  %6707 = vst [vmem:[#allocation2 + $0x1e0] sm:$0xff] %v6643_v21 }
 0x754   :  { %6709 = vst [vmem:[#allocation2 + $0x1f0] sm:$0xff] %v6645_v46  ;;  %6710 = vst [vmem:[#allocation2 + $0x1f8] sm:$0xff] %v6646_v9 }
 0x755   :  { %7492 = shalt.err (!%p7489_p4)
}
 0x756   :  { %s7505_s0 = smov 128   ;;  %s7506_s23 = smov 8  }
 0x757   :  { %6722 = dma.vmem_to_hbm [thread:$0]  %s6717_s28, 8192, %s13590_s3, [#allocation3], %s7505_s0, %s7505_s0, %s7506_s23  }
 0x758   :  { %7501 = dma.done.wait [#allocation3], 8192  }
 0x759   :  { %7502 = vsyncadd [#allocation3], 4294959104 }
 0x75a   :  { %6726 = vsyncpa [#allocation3], 1 }

</bundles_post_ra>
